<compile_context>
chip_gen: v6e
topology: v6e:2x2x1
jax: 0.10.0
libtpu: 0.0.40
codegen_flags: <defaults>
</compile_context>

<pallas_src>
import functools

import jax
import jax.numpy as jnp
from jax import lax
from jax.experimental import pallas as pl
from jax.experimental.pallas import tpu as pltpu


# ---------------------------------------------------------------------------
# helpers
# ---------------------------------------------------------------------------
def _row_tile(total, cap):
    """Largest row tile <= cap that divides `total` and is a multiple of 8,
    falling back to the full extent when no such divisor exists."""
    if total <= cap:
        return total
    t = cap - (cap % 8)
    while t >= 8:
        if total % t == 0:
            return t
        t -= 8
    return total


def _upsample_bilinear_x2_nhwc(x):
    """F.upsample(scale_factor=2, mode='bilinear', align_corners=True), NHWC."""
    # TODO(synk): upsample + channel concat are gather/layout ops left to XLA.
    N, H, W, C = x.shape
    Ho, Wo = 2 * H, 2 * W

    def lin(n_in, n_out):
        if n_in == 1:
            z = jnp.zeros((n_out,), jnp.int32)
            return z, z, jnp.zeros((n_out,), jnp.float32)
        src = jnp.arange(n_out, dtype=jnp.float32) * ((n_in - 1) / (n_out - 1))
        i0 = jnp.clip(jnp.floor(src).astype(jnp.int32), 0, n_in - 2)
        return i0, i0 + 1, src - i0.astype(jnp.float32)

    h0, h1, fh = lin(H, Ho)
    w0, w1, fw = lin(W, Wo)
    xr = (x[:, h0] * (1.0 - fh)[None, :, None, None]
          + x[:, h1] * fh[None, :, None, None])
    return (xr[:, :, w0] * (1.0 - fw)[None, None, :, None]
            + xr[:, :, w1] * fw[None, None, :, None])


def _bn_scale_shift(stats, gamma, beta, count, eps):
    """Fold training-mode BatchNorm (batch stats, biased var) into y = x*scale+shift."""
    s = jnp.sum(stats[:, 0, :], axis=0)
    ss = jnp.sum(stats[:, 1, :], axis=0)
    mean = s / count
    var = ss / count - mean * mean
    scale = gamma * lax.rsqrt(var + eps)
    shift = beta - mean * scale
    return scale, shift


# ---------------------------------------------------------------------------
# K1 / K2: 3x3 conv (one image per grid step) + fused BN batch statistics.
# Optionally applies the *previous* layer's BN-normalize + ReLU to its input.
# ---------------------------------------------------------------------------
def _conv3x3_bnstat_kernel(*refs, apply_input_bn_relu):
    if apply_input_bn_relu:
        x_ref, scale_ref, shift_ref, w_ref, o_ref, stat_ref, xp_ref = refs
    else:
        x_ref, w_ref, o_ref, stat_ref, xp_ref = refs
        scale_ref = shift_ref = None

    H, W, Cin = x_ref.shape
    Cout = w_ref.shape[1]

    x = x_ref[...].astype(jnp.float32)
    if apply_input_bn_relu:
        x = jnp.maximum(x * scale_ref[...].reshape(1, 1, Cin)
                        + shift_ref[...].reshape(1, 1, Cin), 0.0)

    # Zero-pad the 1-pixel halo into a VMEM scratch (no wrapper jnp.pad / HBM copy).
    xp_ref[...] = jnp.zeros_like(xp_ref)
    xp_ref[1:H + 1, 1:W + 1, :] = x
    xp = xp_ref[...]

    # im2col: one (H*W, 9*Cin) x (9*Cin, Cout) MXU matmul instead of 9 tiny ones.
    cols = [xp[kh:kh + H, kw:kw + W, :].reshape(H * W, Cin)
            for kh in range(3) for kw in range(3)]
    patches = jnp.concatenate(cols, axis=1)
    acc = jnp.dot(patches, w_ref[...], preferred_element_type=jnp.float32)

    # Fused BatchNorm batch statistics (per-image partial sums; the tiny (N,2,Cout)
    # reduction over N is done in the wrapper).
    s1 = jnp.sum(acc, axis=0, keepdims=True)
    s2 = jnp.sum(acc * acc, axis=0, keepdims=True)
    stat_ref[...] = jnp.concatenate([s1, s2], axis=0)

    # Raw (pre-BN) conv output, channel-minor [H*W, Cout].
    o_ref[...] = acc.astype(o_ref.dtype)


def _conv_bnstat(x_nhwc, w_oihw, in_scale=None, in_shift=None):
    """Returns raw conv output [N, H*W, Cout] and BN partial stats [N, 2, Cout]."""
    N, H, W, Cin = x_nhwc.shape
    Cout = w_oihw.shape[0]
    # OIHW -> HWIO, flattened to (kh, kw, cin) x cout for the im2col matmul.
    w_flat = jnp.transpose(w_oihw, (2, 3, 1, 0)).reshape(9 * Cin, Cout)
    w_flat = w_flat.astype(jnp.float32)
    fused = in_scale is not None

    in_specs = [pl.BlockSpec((None, H, W, Cin), lambda n: (n, 0, 0, 0))]
    args = [x_nhwc]
    if fused:
        in_specs += [pl.BlockSpec((1, Cin), lambda n: (0, 0)),
                     pl.BlockSpec((1, Cin), lambda n: (0, 0))]
        args += [in_scale.reshape(1, Cin).astype(jnp.float32),
                 in_shift.reshape(1, Cin).astype(jnp.float32)]
    in_specs += [pl.BlockSpec((9 * Cin, Cout), lambda n: (0, 0))]
    args += [w_flat]

    raw, stats = pl.pallas_call(
        functools.partial(_conv3x3_bnstat_kernel, apply_input_bn_relu=fused),
        grid=(N,),
        in_specs=in_specs,
        out_specs=[pl.BlockSpec((None, H * W, Cout), lambda n: (n, 0, 0)),
                   pl.BlockSpec((None, 2, Cout), lambda n: (n, 0, 0))],
        out_shape=[jax.ShapeDtypeStruct((N, H * W, Cout), jnp.float32),
                   jax.ShapeDtypeStruct((N, 2, Cout), jnp.float32)],
        scratch_shapes=[pltpu.VMEM((H + 2, W + 2, Cin), jnp.float32)],
        compiler_params=pltpu.CompilerParams(
            dimension_semantics=("parallel",)),
    )(*args)
    return raw, stats


# ---------------------------------------------------------------------------
# K3: bn2-normalize + ReLU (recomputed) + per-image global average-pool sums.
# ---------------------------------------------------------------------------
def _bn_relu_pool_kernel(x_ref, scale_ref, shift_ref, pool_ref):
    @pl.when(pl.program_id(1) == 0)
    def _init():
        pool_ref[...] = jnp.zeros_like(pool_ref)

    y = jnp.maximum(x_ref[...].astype(jnp.float32) * scale_ref[...]
                    + shift_ref[...], 0.0)
    pool_ref[...] += jnp.sum(y, axis=0, keepdims=True)


def _bn_relu_global_avgpool(raw, scale, shift):
    """Global average pool of relu(bn(conv2)) -> [N, C] (input to the cSE gate)."""
    N, M, C = raw.shape
    tm = _row_tile(M, 1024)
    sums = pl.pallas_call(
        _bn_relu_pool_kernel,
        grid=(N, M // tm),
        in_specs=[pl.BlockSpec((None, tm, C), lambda n, t: (n, t, 0)),
                  pl.BlockSpec((1, C), lambda n, t: (0, 0)),
                  pl.BlockSpec((1, C), lambda n, t: (0, 0))],
        out_specs=pl.BlockSpec((None, 1, C), lambda n, t: (n, 0, 0)),
        out_shape=jax.ShapeDtypeStruct((N, 1, C), jnp.float32),
        compiler_params=pltpu.CompilerParams(
            dimension_semantics=("parallel", "arbitrary")),
    )(raw, scale.reshape(1, C).astype(jnp.float32),
      shift.reshape(1, C).astype(jnp.float32))
    return sums[:, 0, :] / float(M)


# ---------------------------------------------------------------------------
# K4: bn2-normalize + ReLU (recomputed) + sSE 1x1 conv + sigmoid + scSE gating.
# ---------------------------------------------------------------------------
def _gate_kernel(x_ref, scale_ref, shift_ref, ws_ref, bs_ref, g2_ref, o_ref):
    x2 = jnp.maximum(x_ref[...].astype(jnp.float32) * scale_ref[...]
                     + shift_ref[...], 0.0)                       # (tm, C)
    logit = jnp.sum(x2 * ws_ref[...], axis=-1, keepdims=True) + bs_ref[...]
    g1 = jax.nn.sigmoid(logit)                                    # (tm, 1)
    o_ref[...] = ((g1 + g2_ref[...]) * x2).astype(o_ref.dtype)    # g1*x + g2*x


def _scse_gate_apply(raw, scale, shift, ws, bs, g2):
    N, M, C = raw.shape
    tm = _row_tile(M, 1024)
    return pl.pallas_call(
        _gate_kernel,
        grid=(N, M // tm),
        in_specs=[pl.BlockSpec((None, tm, C), lambda n, t: (n, t, 0)),
                  pl.BlockSpec((1, C), lambda n, t: (0, 0)),
                  pl.BlockSpec((1, C), lambda n, t: (0, 0)),
                  pl.BlockSpec((1, C), lambda n, t: (0, 0)),
                  pl.BlockSpec((1, 1), lambda n, t: (0, 0)),
                  pl.BlockSpec((None, 1, C), lambda n, t: (n, 0, 0))],
        out_specs=pl.BlockSpec((None, tm, C), lambda n, t: (n, t, 0)),
        out_shape=jax.ShapeDtypeStruct((N, M, C), jnp.float32),
        compiler_params=pltpu.CompilerParams(
            dimension_semantics=("parallel", "parallel")),
    )(raw, scale.reshape(1, C).astype(jnp.float32),
      shift.reshape(1, C).astype(jnp.float32),
      ws.astype(jnp.float32), bs.astype(jnp.float32),
      g2.reshape(N, 1, C).astype(jnp.float32))


# ---------------------------------------------------------------------------
# Decoder forward: NCHW in / NCHW out (PyTorch convention).
# ---------------------------------------------------------------------------
def decoder_forward(x, e, p, eps=1e-5):
    # TODO(synk): BatchNorm running-mean/var buffers are not updated (forward-only,
    # training-mode batch statistics, matching nn.BatchNorm2d's normalization).
    x_nhwc = jnp.transpose(x, (0, 2, 3, 1))
    z = _upsample_bilinear_x2_nhwc(x_nhwc)
    if e is not None:
        z = jnp.concatenate([z, jnp.transpose(e, (0, 2, 3, 1))], axis=-1)
    N, H, W, _ = z.shape
    C1 = p["w1"].shape[0]
    C2 = p["w2"].shape[0]
    count = N * H * W

    # conv1 + fused BN statistics
    raw1, stat1 = _conv_bnstat(z, p["w1"])
    scale1, shift1 = _bn_scale_shift(stat1, p["gamma1"], p["beta1"], count, eps)

    # conv2 (bn1-normalize + relu fused onto its input) + fused BN statistics
    raw2, stat2 = _conv_bnstat(raw1.reshape(N, H, W, C1), p["w2"],
                               in_scale=scale1, in_shift=shift1)
    scale2, shift2 = _bn_scale_shift(stat2, p["gamma2"], p["beta2"], count, eps)

    # cSE channel gate: Pallas global avg-pool of x2 = relu(bn2(conv2)),
    # then the tiny (N x C) MLP is left to XLA.
    pooled = _bn_relu_global_avgpool(raw2, scale2, shift2)          # [N, C2]
    hid = jnp.maximum(pooled @ p["wc1"][:, :, 0, 0].T + p["bc1"], 0.0)
    g2 = jax.nn.sigmoid(hid @ p["wc2"][:, :, 0, 0].T + p["bc2"])    # [N, C2]

    # final fused kernel: bn2+relu recompute, sSE spatial gate, scSE gating
    out = _scse_gate_apply(raw2, scale2, shift2,
                           p["ws"].reshape(1, C2), p["bs"].reshape(1, 1), g2)
    return jnp.transpose(out.reshape(N, H, W, C2), (0, 3, 1, 2))


# ---------------------------------------------------------------------------
# Pure-JAX reference (PyTorch semantics) for the correctness check.
# ---------------------------------------------------------------------------
def _reference(x, e, p, eps=1e-5):
    z = _upsample_bilinear_x2_nhwc(jnp.transpose(x, (0, 2, 3, 1)))
    if e is not None:
        z = jnp.concatenate([z, jnp.transpose(e, (0, 2, 3, 1))], axis=-1)
    z = jnp.transpose(z, (0, 3, 1, 2))

    def conv_bn_relu(inp, w, gamma, beta):
        conv = lax.conv_general_dilated(
            inp, w, (1, 1), ((1, 1), (1, 1)),
            dimension_numbers=("NCHW", "OIHW", "NCHW"),
            precision=lax.Precision.HIGHEST)
        mean = jnp.mean(conv, axis=(0, 2, 3), keepdims=True)
        var = jnp.mean((conv - mean) ** 2, axis=(0, 2, 3), keepdims=True)
        y = ((conv - mean) * lax.rsqrt(var + eps) * gamma.reshape(1, -1, 1, 1)
             + beta.reshape(1, -1, 1, 1))
        return jnp.maximum(y, 0.0)

    h = conv_bn_relu(z, p["w1"], p["gamma1"], p["beta1"])
    h = conv_bn_relu(h, p["w2"], p["gamma2"], p["beta2"])

    g1 = jax.nn.sigmoid(
        lax.conv_general_dilated(h, p["ws"], (1, 1), ((0, 0), (0, 0)),
                                 dimension_numbers=("NCHW", "OIHW", "NCHW"),
                                 precision=lax.Precision.HIGHEST)
        + p["bs"].reshape(1, 1, 1, 1))
    pooled = jnp.mean(h, axis=(2, 3))
    hid = jnp.maximum(pooled @ p["wc1"][:, :, 0, 0].T + p["bc1"], 0.0)
    g2 = jax.nn.sigmoid(hid @ p["wc2"][:, :, 0, 0].T + p["bc2"])
    return g1 * h + g2[:, :, None, None] * h


if __name__ == "__main__":
    key = jax.random.PRNGKey(0)
    ks = jax.random.split(key, 11)

    # Decoder(in_channels=8, channels=8, out_channels=8):
    #   x [2,4,8,8] upsampled x2 -> 16x16, concatenated with skip e [2,4,16,16].
    N, Cx, Ce, H0, W0 = 2, 4, 4, 8, 8
    Cin, C1, C2 = Cx + Ce, 8, 8
    H, W = 2 * H0, 2 * W0

    x = jax.random.normal(ks[0], (N, Cx, H0, W0), jnp.float32)
    e = jax.random.normal(ks[1], (N, Ce, H, W), jnp.float32)

    def conv_w(k, cout, cin, kh, kw):
        return (jax.random.normal(k, (cout, cin, kh, kw), jnp.float32)
                / jnp.sqrt(cin * kh * kw))

    params = dict(
        w1=conv_w(ks[2], C1, Cin, 3, 3),
        gamma1=1.0 + 0.1 * jax.random.normal(ks[3], (C1,), jnp.float32),
        beta1=0.1 * jax.random.normal(ks[4], (C1,), jnp.float32),
        w2=conv_w(ks[5], C2, C1, 3, 3),
        gamma2=1.0 + 0.1 * jax.random.normal(ks[6], (C2,), jnp.float32),
        beta2=0.1 * jax.random.normal(ks[7], (C2,), jnp.float32),
        ws=conv_w(ks[8], 1, C2, 1, 1),
        bs=0.05 * jnp.ones((1,), jnp.float32),
        wc1=conv_w(ks[9], C2 // 2, C2, 1, 1),
        bc1=0.02 * jnp.ones((C2 // 2,), jnp.float32),
        wc2=conv_w(ks[10], C2, C2 // 2, 1, 1),
        bc2=-0.01 * jnp.ones((C2,), jnp.float32),
    )

    out = jax.jit(decoder_forward)(x, e, params)
    out = jax.block_until_ready(out)

    ref = _reference(x, e, params)
    assert out.shape == (N, C2, H, W), out.shape
    err = float(jnp.max(jnp.abs(out - ref)))
    assert jnp.allclose(out, ref, atol=1e-2, rtol=1e-2), f"max abs err = {err}"

    print("KERNEL_OK")
</pallas_src>

<mosaic_0001>
module attributes {stable_mosaic.version = 11 : i64} {
  func.func @_conv3x3_bnstat_kernel(%arg0: i32, %arg1: memref<1x16x16x8xf32, #tpu.memory_space<vmem>>, %arg2: memref<72x8xf32, #tpu.memory_space<vmem>>, %arg3: memref<1x256x8xf32, #tpu.memory_space<vmem>>, %arg4: memref<1x2x8xf32, #tpu.memory_space<vmem>>, %arg5: memref<18x18x8xf32, #tpu.memory_space<vmem>>) attributes {dimension_semantics = [#tpu.dimension_semantics<parallel>], iteration_bounds = array<i64: 2>, scalar_prefetch = 0 : i64, scratch_operands = 1 : i64, tpu.core_type = #tpu.core_type<tc>, window_params = [{transform_indices = @transform_0, window_bounds = array<i64: 1, 16, 16, 8>}, {pipeline_mode = #tpu.pipeline_mode<synchronous>, transform_indices = @transform_1, window_bounds = array<i64: 72, 8>}, {transform_indices = @transform_2, window_bounds = array<i64: 1, 256, 8>}, {transform_indices = @transform_3, window_bounds = array<i64: 1, 2, 8>}]} {
    %c0 = arith.constant 0 : index
    %c0_0 = arith.constant 0 : index
    %c0_1 = arith.constant 0 : index
    %c0_2 = arith.constant 0 : index
    %0 = vector.load %arg1[%c0, %c0_0, %c0_1, %c0_2] : memref<1x16x16x8xf32, #tpu.memory_space<vmem>>, vector<1x16x16x8xf32>
    %1 = vector.shape_cast %0 : vector<1x16x16x8xf32> to vector<16x16x8xf32>
    %cst = arith.constant 0.000000e+00 : f32
    %2 = vector.broadcast %cst : f32 to vector<18x18x8xf32>
    %c0_3 = arith.constant 0 : index
    %c0_4 = arith.constant 0 : index
    %c0_5 = arith.constant 0 : index
    %3 = vector.load %arg5[%c0_3, %c0_4, %c0_5] : memref<18x18x8xf32, #tpu.memory_space<vmem>>, vector<18x18x8xf32>
    tpu.vector_store %arg5[%c0_3, %c0_4, %c0_5], %2 {strides = array<i32>} : memref<18x18x8xf32, #tpu.memory_space<vmem>>, vector<18x18x8xf32>,
    %c1 = arith.constant 1 : index
    %c1_6 = arith.constant 1 : index
    %c0_7 = arith.constant 0 : index
    %4 = vector.load %arg5[%c1, %c1_6, %c0_7] : memref<18x18x8xf32, #tpu.memory_space<vmem>>, vector<16x16x8xf32>
    tpu.vector_store %arg5[%c1, %c1_6, %c0_7], %1 {strides = array<i32>} : memref<18x18x8xf32, #tpu.memory_space<vmem>>, vector<16x16x8xf32>,
    %c0_8 = arith.constant 0 : index
    %c0_9 = arith.constant 0 : index
    %c0_10 = arith.constant 0 : index
    %5 = vector.load %arg5[%c0_8, %c0_9, %c0_10] : memref<18x18x8xf32, #tpu.memory_space<vmem>>, vector<18x18x8xf32>
    %6 = vector.extract_strided_slice %5 {offsets = [0, 0, 0], sizes = [16, 16, 8], strides = [1, 1, 1]} : vector<18x18x8xf32> to vector<16x16x8xf32>
    %7 = vector.shape_cast %6 : vector<16x16x8xf32> to vector<256x8xf32>
    %8 = vector.extract_strided_slice %5 {offsets = [0, 1, 0], sizes = [16, 16, 8], strides = [1, 1, 1]} : vector<18x18x8xf32> to vector<16x16x8xf32>
    %9 = vector.shape_cast %8 : vector<16x16x8xf32> to vector<256x8xf32>
    %10 = vector.extract_strided_slice %5 {offsets = [0, 2, 0], sizes = [16, 16, 8], strides = [1, 1, 1]} : vector<18x18x8xf32> to vector<16x16x8xf32>
    %11 = vector.shape_cast %10 : vector<16x16x8xf32> to vector<256x8xf32>
    %12 = vector.extract_strided_slice %5 {offsets = [1, 0, 0], sizes = [16, 16, 8], strides = [1, 1, 1]} : vector<18x18x8xf32> to vector<16x16x8xf32>
    %13 = vector.shape_cast %12 : vector<16x16x8xf32> to vector<256x8xf32>
    %14 = vector.extract_strided_slice %5 {offsets = [1, 1, 0], sizes = [16, 16, 8], strides = [1, 1, 1]} : vector<18x18x8xf32> to vector<16x16x8xf32>
    %15 = vector.shape_cast %14 : vector<16x16x8xf32> to vector<256x8xf32>
    %16 = vector.extract_strided_slice %5 {offsets = [1, 2, 0], sizes = [16, 16, 8], strides = [1, 1, 1]} : vector<18x18x8xf32> to vector<16x16x8xf32>
    %17 = vector.shape_cast %16 : vector<16x16x8xf32> to vector<256x8xf32>
    %18 = vector.extract_strided_slice %5 {offsets = [2, 0, 0], sizes = [16, 16, 8], strides = [1, 1, 1]} : vector<18x18x8xf32> to vector<16x16x8xf32>
    %19 = vector.shape_cast %18 : vector<16x16x8xf32> to vector<256x8xf32>
    %20 = vector.extract_strided_slice %5 {offsets = [2, 1, 0], sizes = [16, 16, 8], strides = [1, 1, 1]} : vector<18x18x8xf32> to vector<16x16x8xf32>
    %21 = vector.shape_cast %20 : vector<16x16x8xf32> to vector<256x8xf32>
    %22 = vector.extract_strided_slice %5 {offsets = [2, 2, 0], sizes = [16, 16, 8], strides = [1, 1, 1]} : vector<18x18x8xf32> to vector<16x16x8xf32>
    %23 = vector.shape_cast %22 : vector<16x16x8xf32> to vector<256x8xf32>
    %24 = tpu.concatenate %7, %9, %11, %13, %15, %17, %19, %21, %23 in 1 : vector<256x8xf32>, vector<256x8xf32>, vector<256x8xf32>, vector<256x8xf32>, vector<256x8xf32>, vector<256x8xf32>, vector<256x8xf32>, vector<256x8xf32>, vector<256x8xf32> -> vector<256x72xf32>
    %c0_11 = arith.constant 0 : index
    %c0_12 = arith.constant 0 : index
    %25 = vector.load %arg2[%c0_11, %c0_12] : memref<72x8xf32, #tpu.memory_space<vmem>>, vector<72x8xf32>
    %cst_13 = arith.constant dense<0.000000e+00> : vector<256x8xf32>
    %26 = tpu.matmul %24, %25, %cst_13 {dimension_numbers = #tpu.dot_dimension_numbers<[1], [0], [0], [1], [0, 0, 1, 1], [], []>} : vector<256x72xf32>, vector<72x8xf32>, vector<256x8xf32> -> vector<256x8xf32>
    %cst_14 = arith.constant dense<0.000000e+00> : vector<8xf32>
    %27 = vector.multi_reduction <add>, %26, %cst_14 [0] : vector<256x8xf32> to vector<8xf32>
    %28 = vector.shape_cast %27 : vector<8xf32> to vector<1x8xf32>
    %29 = arith.mulf %26, %26 : vector<256x8xf32>
    %cst_15 = arith.constant dense<0.000000e+00> : vector<8xf32>
    %30 = vector.multi_reduction <add>, %29, %cst_15 [0] : vector<256x8xf32> to vector<8xf32>
    %31 = vector.shape_cast %30 : vector<8xf32> to vector<1x8xf32>
    %32 = tpu.concatenate %28, %31 in 0 : vector<1x8xf32>, vector<1x8xf32> -> vector<2x8xf32>
    %c0_16 = arith.constant 0 : index
    %c0_17 = arith.constant 0 : index
    %c0_18 = arith.constant 0 : index
    %33 = vector.load %arg4[%c0_16, %c0_17, %c0_18] : memref<1x2x8xf32, #tpu.memory_space<vmem>>, vector<1x2x8xf32>
    %34 = vector.shape_cast %33 : vector<1x2x8xf32> to vector<2x8xf32>
    %35 = vector.shape_cast %32 : vector<2x8xf32> to vector<1x2x8xf32>
    tpu.vector_store %arg4[%c0_16, %c0_17, %c0_18], %35 {strides = array<i32>} : memref<1x2x8xf32, #tpu.memory_space<vmem>>, vector<1x2x8xf32>,
    %c0_19 = arith.constant 0 : index
    %c0_20 = arith.constant 0 : index
    %c0_21 = arith.constant 0 : index
    %36 = vector.load %arg3[%c0_19, %c0_20, %c0_21] : memref<1x256x8xf32, #tpu.memory_space<vmem>>, vector<1x256x8xf32>
    %37 = vector.shape_cast %36 : vector<1x256x8xf32> to vector<256x8xf32>
    %38 = vector.shape_cast %26 : vector<256x8xf32> to vector<1x256x8xf32>
    tpu.vector_store %arg3[%c0_19, %c0_20, %c0_21], %38 {strides = array<i32>} : memref<1x256x8xf32, #tpu.memory_space<vmem>>, vector<1x256x8xf32>,
    return
  }
  func.func @transform_0(%arg0: i32) -> (i32, i32, i32, i32) {
    %c0_i32 = arith.constant 0 : i32
    %c0_i32_0 = arith.constant 0 : i32
    %c0_i32_1 = arith.constant 0 : i32
    %c0_i32_2 = arith.constant 0 : i32
    return %arg0, %c0_i32, %c0_i32_0, %c0_i32_1 : i32, i32, i32, i32
  }
  func.func @transform_1(%arg0: i32) -> (i32, i32) {
    %c0_i32 = arith.constant 0 : i32
    %c0_i32_0 = arith.constant 0 : i32
    %c0_i32_1 = arith.constant 0 : i32
    return %c0_i32, %c0_i32_0 : i32, i32
  }
  func.func @transform_2(%arg0: i32) -> (i32, i32, i32) {
    %c0_i32 = arith.constant 0 : i32
    %c0_i32_0 = arith.constant 0 : i32
    %c0_i32_1 = arith.constant 0 : i32
    return %arg0, %c0_i32, %c0_i32_0 : i32, i32, i32
  }
  func.func @transform_3(%arg0: i32) -> (i32, i32, i32) {
    %c0_i32 = arith.constant 0 : i32
    %c0_i32_0 = arith.constant 0 : i32
    %c0_i32_1 = arith.constant 0 : i32
    return %arg0, %c0_i32, %c0_i32_0 : i32, i32, i32
  }
}

module attributes {stable_mosaic.version = 11 : i64} {
  func.func @_bn_relu_pool_kernel(%arg0: i32, %arg1: i32, %arg2: memref<1x256x8xf32, #tpu.memory_space<vmem>>, %arg3: memref<1x8xf32, #tpu.memory_space<vmem>>, %arg4: memref<1x8xf32, #tpu.memory_space<vmem>>, %arg5: memref<1x1x8xf32, #tpu.memory_space<vmem>>) attributes {dimension_semantics = [#tpu.dimension_semantics<parallel>, #tpu.dimension_semantics<arbitrary>], iteration_bounds = array<i64: 2, 1>, scalar_prefetch = 0 : i64, scratch_operands = 0 : i64, tpu.core_type = #tpu.core_type<tc>, window_params = [{transform_indices = @transform_0, window_bounds = array<i64: 1, 256, 8>}, {pipeline_mode = #tpu.pipeline_mode<synchronous>, transform_indices = @transform_1, window_bounds = array<i64: 1, 8>}, {pipeline_mode = #tpu.pipeline_mode<synchronous>, transform_indices = @transform_2, window_bounds = array<i64: 1, 8>}, {transform_indices = @transform_3, window_bounds = array<i64: 1, 1, 8>}]} {
    %c0_i32 = arith.constant 0 : i32
    %0 = arith.cmpi eq, %arg1, %c0_i32 : i32
    %1 = arith.extui %0 : i1 to i32
    %c0_i32_0 = arith.constant 0 : i32
    %2 = arith.cmpi ne, %1, %c0_i32_0 : i32
    scf.if %2 {
      %cst_14 = arith.constant 0.000000e+00 : f32
      %21 = vector.broadcast %cst_14 : f32 to vector<1x8xf32>
      %c0_15 = arith.constant 0 : index
      %c0_16 = arith.constant 0 : index
      %c0_17 = arith.constant 0 : index
      %22 = vector.load %arg5[%c0_15, %c0_16, %c0_17] : memref<1x1x8xf32, #tpu.memory_space<vmem>>, vector<1x1x8xf32>
      %23 = vector.shape_cast %22 : vector<1x1x8xf32> to vector<1x8xf32>
      %24 = vector.shape_cast %21 : vector<1x8xf32> to vector<1x1x8xf32>
      tpu.vector_store %arg5[%c0_15, %c0_16, %c0_17], %24 {strides = array<i32>} : memref<1x1x8xf32, #tpu.memory_space<vmem>>, vector<1x1x8xf32>,
    } else {
    }
    %c0 = arith.constant 0 : index
    %c0_1 = arith.constant 0 : index
    %c0_2 = arith.constant 0 : index
    %3 = vector.load %arg2[%c0, %c0_1, %c0_2] : memref<1x256x8xf32, #tpu.memory_space<vmem>>, vector<1x256x8xf32>
    %4 = vector.shape_cast %3 : vector<1x256x8xf32> to vector<256x8xf32>
    %c0_3 = arith.constant 0 : index
    %c0_4 = arith.constant 0 : index
    %5 = vector.load %arg3[%c0_3, %c0_4] : memref<1x8xf32, #tpu.memory_space<vmem>>, vector<1x8xf32>
    %6 = vector.broadcast %5 : vector<1x8xf32> to vector<256x8xf32>
    %7 = arith.mulf %4, %6 : vector<256x8xf32>
    %c0_5 = arith.constant 0 : index
    %c0_6 = arith.constant 0 : index
    %8 = vector.load %arg4[%c0_5, %c0_6] : memref<1x8xf32, #tpu.memory_space<vmem>>, vector<1x8xf32>
    %9 = vector.broadcast %8 : vector<1x8xf32> to vector<256x8xf32>
    %10 = arith.addf %7, %9 : vector<256x8xf32>
    %cst = arith.constant 0.000000e+00 : f32
    %11 = vector.broadcast %cst : f32 to vector<256x8xf32>
    %12 = arith.maximumf %10, %11 : vector<256x8xf32>
    %c0_7 = arith.constant 0 : index
    %c0_8 = arith.constant 0 : index
    %c0_9 = arith.constant 0 : index
    %13 = vector.load %arg5[%c0_7, %c0_8, %c0_9] : memref<1x1x8xf32, #tpu.memory_space<vmem>>, vector<1x1x8xf32>
    %14 = vector.shape_cast %13 : vector<1x1x8xf32> to vector<1x8xf32>
    %cst_10 = arith.constant dense<0.000000e+00> : vector<8xf32>
    %15 = vector.multi_reduction <add>, %12, %cst_10 [0] : vector<256x8xf32> to vector<8xf32>
    %16 = vector.shape_cast %15 : vector<8xf32> to vector<1x8xf32>
    %17 = arith.addf %14, %16 : vector<1x8xf32>
    %c0_11 = arith.constant 0 : index
    %c0_12 = arith.constant 0 : index
    %c0_13 = arith.constant 0 : index
    %18 = vector.load %arg5[%c0_11, %c0_12, %c0_13] : memref<1x1x8xf32, #tpu.memory_space<vmem>>, vector<1x1x8xf32>
    %19 = vector.shape_cast %18 : vector<1x1x8xf32> to vector<1x8xf32>
    %20 = vector.shape_cast %17 : vector<1x8xf32> to vector<1x1x8xf32>
    tpu.vector_store %arg5[%c0_11, %c0_12, %c0_13], %20 {strides = array<i32>} : memref<1x1x8xf32, #tpu.memory_space<vmem>>, vector<1x1x8xf32>,
    return
  }
  func.func @transform_0(%arg0: i32, %arg1: i32) -> (i32, i32, i32) {
    %c0_i32 = arith.constant 0 : i32
    %c0_i32_0 = arith.constant 0 : i32
    return %arg0, %arg1, %c0_i32 : i32, i32, i32
  }
  func.func @transform_1(%arg0: i32, %arg1: i32) -> (i32, i32) {
    %c0_i32 = arith.constant 0 : i32
    %c0_i32_0 = arith.constant 0 : i32
    %c0_i32_1 = arith.constant 0 : i32
    return %c0_i32, %c0_i32_0 : i32, i32
  }
  func.func @transform_2(%arg0: i32, %arg1: i32) -> (i32, i32) {
    %c0_i32 = arith.constant 0 : i32
    %c0_i32_0 = arith.constant 0 : i32
    %c0_i32_1 = arith.constant 0 : i32
    return %c0_i32, %c0_i32_0 : i32, i32
  }
  func.func @transform_3(%arg0: i32, %arg1: i32) -> (i32, i32, i32) {
    %c0_i32 = arith.constant 0 : i32
    %c0_i32_0 = arith.constant 0 : i32
    %c0_i32_1 = arith.constant 0 : i32
    return %arg0, %c0_i32, %c0_i32_0 : i32, i32, i32
  }
}

module attributes {stable_mosaic.version = 11 : i64} {
  func.func @_conv3x3_bnstat_kernel(%arg0: i32, %arg1: memref<1x16x16x8xf32, #tpu.memory_space<vmem>>, %arg2: memref<1x8xf32, #tpu.memory_space<vmem>>, %arg3: memref<1x8xf32, #tpu.memory_space<vmem>>, %arg4: memref<72x8xf32, #tpu.memory_space<vmem>>, %arg5: memref<1x256x8xf32, #tpu.memory_space<vmem>>, %arg6: memref<1x2x8xf32, #tpu.memory_space<vmem>>, %arg7: memref<18x18x8xf32, #tpu.memory_space<vmem>>) attributes {dimension_semantics = [#tpu.dimension_semantics<parallel>], iteration_bounds = array<i64: 2>, scalar_prefetch = 0 : i64, scratch_operands = 1 : i64, tpu.core_type = #tpu.core_type<tc>, window_params = [{transform_indices = @transform_0, window_bounds = array<i64: 1, 16, 16, 8>}, {pipeline_mode = #tpu.pipeline_mode<synchronous>, transform_indices = @transform_1, window_bounds = array<i64: 1, 8>}, {pipeline_mode = #tpu.pipeline_mode<synchronous>, transform_indices = @transform_2, window_bounds = array<i64: 1, 8>}, {pipeline_mode = #tpu.pipeline_mode<synchronous>, transform_indices = @transform_3, window_bounds = array<i64: 72, 8>}, {transform_indices = @transform_4, window_bounds = array<i64: 1, 256, 8>}, {transform_indices = @transform_5, window_bounds = array<i64: 1, 2, 8>}]} {
    %c0 = arith.constant 0 : index
    %c0_0 = arith.constant 0 : index
    %c0_1 = arith.constant 0 : index
    %c0_2 = arith.constant 0 : index
    %0 = vector.load %arg1[%c0, %c0_0, %c0_1, %c0_2] : memref<1x16x16x8xf32, #tpu.memory_space<vmem>>, vector<1x16x16x8xf32>
    %1 = vector.shape_cast %0 : vector<1x16x16x8xf32> to vector<16x16x8xf32>
    %c0_3 = arith.constant 0 : index
    %c0_4 = arith.constant 0 : index
    %2 = vector.load %arg2[%c0_3, %c0_4] : memref<1x8xf32, #tpu.memory_space<vmem>>, vector<1x8xf32>
    %3 = vector.shape_cast %2 : vector<1x8xf32> to vector<1x1x8xf32>
    %4 = vector.broadcast %3 : vector<1x1x8xf32> to vector<16x16x8xf32>
    %5 = arith.mulf %1, %4 : vector<16x16x8xf32>
    %c0_5 = arith.constant 0 : index
    %c0_6 = arith.constant 0 : index
    %6 = vector.load %arg3[%c0_5, %c0_6] : memref<1x8xf32, #tpu.memory_space<vmem>>, vector<1x8xf32>
    %7 = vector.shape_cast %6 : vector<1x8xf32> to vector<1x1x8xf32>
    %8 = vector.broadcast %7 : vector<1x1x8xf32> to vector<16x16x8xf32>
    %9 = arith.addf %5, %8 : vector<16x16x8xf32>
    %cst = arith.constant 0.000000e+00 : f32
    %10 = vector.broadcast %cst : f32 to vector<16x16x8xf32>
    %11 = arith.maximumf %9, %10 : vector<16x16x8xf32>
    %cst_7 = arith.constant 0.000000e+00 : f32
    %12 = vector.broadcast %cst_7 : f32 to vector<18x18x8xf32>
    %c0_8 = arith.constant 0 : index
    %c0_9 = arith.constant 0 : index
    %c0_10 = arith.constant 0 : index
    %13 = vector.load %arg7[%c0_8, %c0_9, %c0_10] : memref<18x18x8xf32, #tpu.memory_space<vmem>>, vector<18x18x8xf32>
    tpu.vector_store %arg7[%c0_8, %c0_9, %c0_10], %12 {strides = array<i32>} : memref<18x18x8xf32, #tpu.memory_space<vmem>>, vector<18x18x8xf32>,
    %c1 = arith.constant 1 : index
    %c1_11 = arith.constant 1 : index
    %c0_12 = arith.constant 0 : index
    %14 = vector.load %arg7[%c1, %c1_11, %c0_12] : memref<18x18x8xf32, #tpu.memory_space<vmem>>, vector<16x16x8xf32>
    tpu.vector_store %arg7[%c1, %c1_11, %c0_12], %11 {strides = array<i32>} : memref<18x18x8xf32, #tpu.memory_space<vmem>>, vector<16x16x8xf32>,
    %c0_13 = arith.constant 0 : index
    %c0_14 = arith.constant 0 : index
    %c0_15 = arith.constant 0 : index
    %15 = vector.load %arg7[%c0_13, %c0_14, %c0_15] : memref<18x18x8xf32, #tpu.memory_space<vmem>>, vector<18x18x8xf32>
    %16 = vector.extract_strided_slice %15 {offsets = [0, 0, 0], sizes = [16, 16, 8], strides = [1, 1, 1]} : vector<18x18x8xf32> to vector<16x16x8xf32>
    %17 = vector.shape_cast %16 : vector<16x16x8xf32> to vector<256x8xf32>
    %18 = vector.extract_strided_slice %15 {offsets = [0, 1, 0], sizes = [16, 16, 8], strides = [1, 1, 1]} : vector<18x18x8xf32> to vector<16x16x8xf32>
    %19 = vector.shape_cast %18 : vector<16x16x8xf32> to vector<256x8xf32>
    %20 = vector.extract_strided_slice %15 {offsets = [0, 2, 0], sizes = [16, 16, 8], strides = [1, 1, 1]} : vector<18x18x8xf32> to vector<16x16x8xf32>
    %21 = vector.shape_cast %20 : vector<16x16x8xf32> to vector<256x8xf32>
    %22 = vector.extract_strided_slice %15 {offsets = [1, 0, 0], sizes = [16, 16, 8], strides = [1, 1, 1]} : vector<18x18x8xf32> to vector<16x16x8xf32>
    %23 = vector.shape_cast %22 : vector<16x16x8xf32> to vector<256x8xf32>
    %24 = vector.extract_strided_slice %15 {offsets = [1, 1, 0], sizes = [16, 16, 8], strides = [1, 1, 1]} : vector<18x18x8xf32> to vector<16x16x8xf32>
    %25 = vector.shape_cast %24 : vector<16x16x8xf32> to vector<256x8xf32>
    %26 = vector.extract_strided_slice %15 {offsets = [1, 2, 0], sizes = [16, 16, 8], strides = [1, 1, 1]} : vector<18x18x8xf32> to vector<16x16x8xf32>
    %27 = vector.shape_cast %26 : vector<16x16x8xf32> to vector<256x8xf32>
    %28 = vector.extract_strided_slice %15 {offsets = [2, 0, 0], sizes = [16, 16, 8], strides = [1, 1, 1]} : vector<18x18x8xf32> to vector<16x16x8xf32>
    %29 = vector.shape_cast %28 : vector<16x16x8xf32> to vector<256x8xf32>
    %30 = vector.extract_strided_slice %15 {offsets = [2, 1, 0], sizes = [16, 16, 8], strides = [1, 1, 1]} : vector<18x18x8xf32> to vector<16x16x8xf32>
    %31 = vector.shape_cast %30 : vector<16x16x8xf32> to vector<256x8xf32>
    %32 = vector.extract_strided_slice %15 {offsets = [2, 2, 0], sizes = [16, 16, 8], strides = [1, 1, 1]} : vector<18x18x8xf32> to vector<16x16x8xf32>
    %33 = vector.shape_cast %32 : vector<16x16x8xf32> to vector<256x8xf32>
    %34 = tpu.concatenate %17, %19, %21, %23, %25, %27, %29, %31, %33 in 1 : vector<256x8xf32>, vector<256x8xf32>, vector<256x8xf32>, vector<256x8xf32>, vector<256x8xf32>, vector<256x8xf32>, vector<256x8xf32>, vector<256x8xf32>, vector<256x8xf32> -> vector<256x72xf32>
    %c0_16 = arith.constant 0 : index
    %c0_17 = arith.constant 0 : index
    %35 = vector.load %arg4[%c0_16, %c0_17] : memref<72x8xf32, #tpu.memory_space<vmem>>, vector<72x8xf32>
    %cst_18 = arith.constant dense<0.000000e+00> : vector<256x8xf32>
    %36 = tpu.matmul %34, %35, %cst_18 {dimension_numbers = #tpu.dot_dimension_numbers<[1], [0], [0], [1], [0, 0, 1, 1], [], []>} : vector<256x72xf32>, vector<72x8xf32>, vector<256x8xf32> -> vector<256x8xf32>
    %cst_19 = arith.constant dense<0.000000e+00> : vector<8xf32>
    %37 = vector.multi_reduction <add>, %36, %cst_19 [0] : vector<256x8xf32> to vector<8xf32>
    %38 = vector.shape_cast %37 : vector<8xf32> to vector<1x8xf32>
    %39 = arith.mulf %36, %36 : vector<256x8xf32>
    %cst_20 = arith.constant dense<0.000000e+00> : vector<8xf32>
    %40 = vector.multi_reduction <add>, %39, %cst_20 [0] : vector<256x8xf32> to vector<8xf32>
    %41 = vector.shape_cast %40 : vector<8xf32> to vector<1x8xf32>
    %42 = tpu.concatenate %38, %41 in 0 : vector<1x8xf32>, vector<1x8xf32> -> vector<2x8xf32>
    %c0_21 = arith.constant 0 : index
    %c0_22 = arith.constant 0 : index
    %c0_23 = arith.constant 0 : index
    %43 = vector.load %arg6[%c0_21, %c0_22, %c0_23] : memref<1x2x8xf32, #tpu.memory_space<vmem>>, vector<1x2x8xf32>
    %44 = vector.shape_cast %43 : vector<1x2x8xf32> to vector<2x8xf32>
    %45 = vector.shape_cast %42 : vector<2x8xf32> to vector<1x2x8xf32>
    tpu.vector_store %arg6[%c0_21, %c0_22, %c0_23], %45 {strides = array<i32>} : memref<1x2x8xf32, #tpu.memory_space<vmem>>, vector<1x2x8xf32>,
    %c0_24 = arith.constant 0 : index
    %c0_25 = arith.constant 0 : index
    %c0_26 = arith.constant 0 : index
    %46 = vector.load %arg5[%c0_24, %c0_25, %c0_26] : memref<1x256x8xf32, #tpu.memory_space<vmem>>, vector<1x256x8xf32>
    %47 = vector.shape_cast %46 : vector<1x256x8xf32> to vector<256x8xf32>
    %48 = vector.shape_cast %36 : vector<256x8xf32> to vector<1x256x8xf32>
    tpu.vector_store %arg5[%c0_24, %c0_25, %c0_26], %48 {strides = array<i32>} : memref<1x256x8xf32, #tpu.memory_space<vmem>>, vector<1x256x8xf32>,
    return
  }
  func.func @transform_0(%arg0: i32) -> (i32, i32, i32, i32) {
    %c0_i32 = arith.constant 0 : i32
    %c0_i32_0 = arith.constant 0 : i32
    %c0_i32_1 = arith.constant 0 : i32
    %c0_i32_2 = arith.constant 0 : i32
    return %arg0, %c0_i32, %c0_i32_0, %c0_i32_1 : i32, i32, i32, i32
  }
  func.func @transform_1(%arg0: i32) -> (i32, i32) {
    %c0_i32 = arith.constant 0 : i32
    %c0_i32_0 = arith.constant 0 : i32
    %c0_i32_1 = arith.constant 0 : i32
    return %c0_i32, %c0_i32_0 : i32, i32
  }
  func.func @transform_2(%arg0: i32) -> (i32, i32) {
    %c0_i32 = arith.constant 0 : i32
    %c0_i32_0 = arith.constant 0 : i32
    %c0_i32_1 = arith.constant 0 : i32
    return %c0_i32, %c0_i32_0 : i32, i32
  }
  func.func @transform_3(%arg0: i32) -> (i32, i32) {
    %c0_i32 = arith.constant 0 : i32
    %c0_i32_0 = arith.constant 0 : i32
    %c0_i32_1 = arith.constant 0 : i32
    return %c0_i32, %c0_i32_0 : i32, i32
  }
  func.func @transform_4(%arg0: i32) -> (i32, i32, i32) {
    %c0_i32 = arith.constant 0 : i32
    %c0_i32_0 = arith.constant 0 : i32
    %c0_i32_1 = arith.constant 0 : i32
    return %arg0, %c0_i32, %c0_i32_0 : i32, i32, i32
  }
  func.func @transform_5(%arg0: i32) -> (i32, i32, i32) {
    %c0_i32 = arith.constant 0 : i32
    %c0_i32_0 = arith.constant 0 : i32
    %c0_i32_1 = arith.constant 0 : i32
    return %arg0, %c0_i32, %c0_i32_0 : i32, i32, i32
  }
}

module attributes {stable_mosaic.version = 11 : i64} {
  func.func @_gate_kernel(%arg0: i32, %arg1: i32, %arg2: memref<1x256x8xf32, #tpu.memory_space<vmem>>, %arg3: memref<1x8xf32, #tpu.memory_space<vmem>>, %arg4: memref<1x8xf32, #tpu.memory_space<vmem>>, %arg5: memref<1x8xf32, #tpu.memory_space<vmem>>, %arg6: memref<1x1xf32, #tpu.memory_space<vmem>>, %arg7: memref<1x1x8xf32, #tpu.memory_space<vmem>>, %arg8: memref<1x256x8xf32, #tpu.memory_space<vmem>>) attributes {dimension_semantics = [#tpu.dimension_semantics<parallel>, #tpu.dimension_semantics<parallel>], iteration_bounds = array<i64: 2, 1>, scalar_prefetch = 0 : i64, scratch_operands = 0 : i64, tpu.core_type = #tpu.core_type<tc>, window_params = [{transform_indices = @transform_0, window_bounds = array<i64: 1, 256, 8>}, {pipeline_mode = #tpu.pipeline_mode<synchronous>, transform_indices = @transform_1, window_bounds = array<i64: 1, 8>}, {pipeline_mode = #tpu.pipeline_mode<synchronous>, transform_indices = @transform_2, window_bounds = array<i64: 1, 8>}, {pipeline_mode = #tpu.pipeline_mode<synchronous>, transform_indices = @transform_3, window_bounds = array<i64: 1, 8>}, {pipeline_mode = #tpu.pipeline_mode<synchronous>, transform_indices = @transform_4, window_bounds = array<i64: 1, 1>}, {transform_indices = @transform_5, window_bounds = array<i64: 1, 1, 8>}, {transform_indices = @transform_6, window_bounds = array<i64: 1, 256, 8>}]} {
    %c0 = arith.constant 0 : index
    %c0_0 = arith.constant 0 : index
    %c0_1 = arith.constant 0 : index
    %0 = vector.load %arg2[%c0, %c0_0, %c0_1] : memref<1x256x8xf32, #tpu.memory_space<vmem>>, vector<1x256x8xf32>
    %1 = vector.shape_cast %0 : vector<1x256x8xf32> to vector<256x8xf32>
    %c0_2 = arith.constant 0 : index
    %c0_3 = arith.constant 0 : index
    %2 = vector.load %arg3[%c0_2, %c0_3] : memref<1x8xf32, #tpu.memory_space<vmem>>, vector<1x8xf32>
    %3 = vector.broadcast %2 : vector<1x8xf32> to vector<256x8xf32>
    %4 = arith.mulf %1, %3 : vector<256x8xf32>
    %c0_4 = arith.constant 0 : index
    %c0_5 = arith.constant 0 : index
    %5 = vector.load %arg4[%c0_4, %c0_5] : memref<1x8xf32, #tpu.memory_space<vmem>>, vector<1x8xf32>
    %6 = vector.broadcast %5 : vector<1x8xf32> to vector<256x8xf32>
    %7 = arith.addf %4, %6 : vector<256x8xf32>
    %cst = arith.constant 0.000000e+00 : f32
    %8 = vector.broadcast %cst : f32 to vector<256x8xf32>
    %9 = arith.maximumf %7, %8 : vector<256x8xf32>
    %c0_6 = arith.constant 0 : index
    %c0_7 = arith.constant 0 : index
    %10 = vector.load %arg5[%c0_6, %c0_7] : memref<1x8xf32, #tpu.memory_space<vmem>>, vector<1x8xf32>
    %11 = vector.broadcast %10 : vector<1x8xf32> to vector<256x8xf32>
    %12 = arith.mulf %9, %11 : vector<256x8xf32>
    %cst_8 = arith.constant dense<0.000000e+00> : vector<256xf32>
    %13 = vector.multi_reduction <add>, %12, %cst_8 [1] : vector<256x8xf32> to vector<256xf32>
    %14 = vector.shape_cast %13 : vector<256xf32> to vector<256x1xf32>
    %c0_9 = arith.constant 0 : index
    %c0_10 = arith.constant 0 : index
    %15 = vector.load %arg6[%c0_9, %c0_10] : memref<1x1xf32, #tpu.memory_space<vmem>>, vector<1x1xf32>
    %16 = vector.broadcast %15 : vector<1x1xf32> to vector<256x1xf32>
    %17 = arith.addf %14, %16 : vector<256x1xf32>
    %18 = arith.negf %17 : vector<256x1xf32>
    %19 = math.exp %18 : vector<256x1xf32>
    %cst_11 = arith.constant 1.000000e+00 : f32
    %20 = vector.broadcast %cst_11 : f32 to vector<256x1xf32>
    %21 = arith.addf %20, %19 : vector<256x1xf32>
    %22 = arith.divf %20, %21 : vector<256x1xf32>
    %c0_12 = arith.constant 0 : index
    %c0_13 = arith.constant 0 : index
    %c0_14 = arith.constant 0 : index
    %23 = vector.load %arg7[%c0_12, %c0_13, %c0_14] : memref<1x1x8xf32, #tpu.memory_space<vmem>>, vector<1x1x8xf32>
    %24 = vector.shape_cast %23 : vector<1x1x8xf32> to vector<1x8xf32>
    %25 = vector.broadcast %22 : vector<256x1xf32> to vector<256x8xf32>
    %26 = vector.broadcast %24 : vector<1x8xf32> to vector<256x8xf32>
    %27 = arith.addf %25, %26 : vector<256x8xf32>
    %28 = arith.mulf %27, %9 : vector<256x8xf32>
    %c0_15 = arith.constant 0 : index
    %c0_16 = arith.constant 0 : index
    %c0_17 = arith.constant 0 : index
    %29 = vector.load %arg8[%c0_15, %c0_16, %c0_17] : memref<1x256x8xf32, #tpu.memory_space<vmem>>, vector<1x256x8xf32>
    %30 = vector.shape_cast %29 : vector<1x256x8xf32> to vector<256x8xf32>
    %31 = vector.shape_cast %28 : vector<256x8xf32> to vector<1x256x8xf32>
    tpu.vector_store %arg8[%c0_15, %c0_16, %c0_17], %31 {strides = array<i32>} : memref<1x256x8xf32, #tpu.memory_space<vmem>>, vector<1x256x8xf32>,
    return
  }
  func.func @transform_0(%arg0: i32, %arg1: i32) -> (i32, i32, i32) {
    %c0_i32 = arith.constant 0 : i32
    %c0_i32_0 = arith.constant 0 : i32
    return %arg0, %arg1, %c0_i32 : i32, i32, i32
  }
  func.func @transform_1(%arg0: i32, %arg1: i32) -> (i32, i32) {
    %c0_i32 = arith.constant 0 : i32
    %c0_i32_0 = arith.constant 0 : i32
    %c0_i32_1 = arith.constant 0 : i32
    return %c0_i32, %c0_i32_0 : i32, i32
  }
  func.func @transform_2(%arg0: i32, %arg1: i32) -> (i32, i32) {
    %c0_i32 = arith.constant 0 : i32
    %c0_i32_0 = arith.constant 0 : i32
    %c0_i32_1 = arith.constant 0 : i32
    return %c0_i32, %c0_i32_0 : i32, i32
  }
  func.func @transform_3(%arg0: i32, %arg1: i32) -> (i32, i32) {
    %c0_i32 = arith.constant 0 : i32
    %c0_i32_0 = arith.constant 0 : i32
    %c0_i32_1 = arith.constant 0 : i32
    return %c0_i32, %c0_i32_0 : i32, i32
  }
  func.func @transform_4(%arg0: i32, %arg1: i32) -> (i32, i32) {
    %c0_i32 = arith.constant 0 : i32
    %c0_i32_0 = arith.constant 0 : i32
    %c0_i32_1 = arith.constant 0 : i32
    return %c0_i32, %c0_i32_0 : i32, i32
  }
  func.func @transform_5(%arg0: i32, %arg1: i32) -> (i32, i32, i32) {
    %c0_i32 = arith.constant 0 : i32
    %c0_i32_0 = arith.constant 0 : i32
    %c0_i32_1 = arith.constant 0 : i32
    return %arg0, %c0_i32, %c0_i32_0 : i32, i32, i32
  }
  func.func @transform_6(%arg0: i32, %arg1: i32) -> (i32, i32, i32) {
    %c0_i32 = arith.constant 0 : i32
    %c0_i32_0 = arith.constant 0 : i32
    return %arg0, %arg1, %c0_i32 : i32, i32, i32
  }
}

</mosaic_0001>

<bundles_post_ra>
// kernel: decoder_forward.6
= control target key start
LH: loop header
LB: loop body
LE: loop exit
PB: predicated region body
PF: predicated region fallthrough
CT: control target
= control target key end

     0   :  { %s560_s12 = smov 0   ;;  %s562_s13 = smov 0   ;;  %s740_s0 = inlined_call_operand.vmem [shape: f32[2,256,8], index: 0, kind: input, shape index: {}]   ;;  %s741_s1 = inlined_call_operand.vmem [shape: f32[1,8], index: 1, kind: input, shape index: {}]   ;;  %s742_s2 = inlined_call_operand.vmem [shape: f32[1,8], index: 2, kind: input, shape index: {}]   ;;  %s743_s3 = inlined_call_operand.vmem [shape: f32[2,1,8], index: 3, kind: output, shape index: {}]  }
   0x1   :  { %s564_s14 = smov 0  }
   0x2 LB: > { %s25_s15 = sadd.s32 1, %s533_s13  ;;  %p482_p0 = scmp.ge.s32.totalorder %s537_s14, 1  ;;  %s537_s14 = sphi %s564_s14, %s13_s14   ;;  %s533_s13 = sphi %s562_s13, %s745_s13   ;;  %s529_s12 = sphi %s560_s12, %s744_s12  }
   0x3   : > { %p27_p1 = scmp.ge.s32.totalorder %s25_s15, 2  ;;  %p156_p2 = scmp.lt.s32.totalorder %s537_s14, 3 }
   0x5   : > { %s747_s15 = smov (%p27_p1, %s25_s15), 0  ;;  %p157_p3 = pnand %p482_p0, %p156_p2 }
   0x6   : > { %p183_p4 = scmp.lt.s32.totalorder (!%p157_p3), %s529_s12, 1 }
   0x7   : > { %160 = sbr.rel (%p157_p3) target bundleno = 100 (0x64), region = 32 }
   0xc   : > { %s749_s12 = smov (!%p183_p4, %s529_s12), 1  ;;  %vm199_vm0 = vcmask 57344   ;;  %v539_v0 = vmov 0.0   ;;  %v595_v3 = vld [vmem:[%s741_s1] ss:$0 sm:$0xff]  ;;  %vm344_vm1 = vcmask 64512  }
   0xd   : > { %s581_s18 = scalar_lea.vmem %s743_s3, %s749_s12  ;;  %s489_s19 = sshll.u32 %s749_s12, 8  ;;  %v606_v10 = vld [vmem:[%s742_s2] ss:$0 sm:$0xff] }
   0xe   : > { %200 = vst.msk [vmem:[%s581_s18] sm:$0x1] %vm199_vm0, %v539_v0  ;;  %s588_s22 = scalar_lea.vmem %s740_s0, %s489_s19 }
   0xf   : > { %v201_v1 = vld [vmem:[%s588_s22] sm:$0xff]  ;;  %v202_v2 = vld [vmem:[%s588_s22 + $0x8] sm:$0xff]  ;;  %v203_v4 = vld [vmem:[%s588_s22 + $0x10] sm:$0xff] }
  0x10   : > { %v204_v5 = vld [vmem:[%s588_s22 + $0x18] sm:$0xff]  ;;  %v240_v6 = vmul.f32 %v595_v3, %v201_v1  ;;  %v241_v7 = vmul.f32 %v595_v3, %v202_v2  ;;  %v205_v8 = vld [vmem:[%s588_s22 + $0x20] sm:$0xff]  ;;  %v242_v9 = vmul.f32 %v595_v3, %v203_v4  ;;  %v206_v12 = vld [vmem:[%s588_s22 + $0x28] sm:$0xff] }
  0x11   : > { %v243_v11 = vmul.f32 %v595_v3, %v204_v5  ;;  %v244_v13 = vmul.f32 %v595_v3, %v205_v8  ;;  %v207_v16 = vld [vmem:[%s588_s22 + $0x30] sm:$0xff]  ;;  %v245_v18 = vmul.f32 %v595_v3, %v206_v12  ;;  %v208_v20 = vld [vmem:[%s588_s22 + $0x38] sm:$0xff]  ;;  %v209_v21 = vld [vmem:[%s588_s22 + $0x40] sm:$0xff] }
  0x12   : > { %v279_v14 = vadd.f32 %v606_v10, %v240_v6  ;;  %v280_v15 = vadd.f32 %v606_v10, %v241_v7  ;;  %v281_v17 = vadd.f32 %v606_v10, %v242_v9  ;;  %v246_v22 = vmul.f32 %v595_v3, %v207_v16  ;;  %v210_v30 = vld [vmem:[%s588_s22 + $0x48] sm:$0xff]  ;;  %v211_v36 = vld [vmem:[%s588_s22 + $0x50] sm:$0xff]  ;;  %v212_v43 = vld [vmem:[%s588_s22 + $0x58] sm:$0xff] }
  0x13   : > { %v282_v19 = vadd.f32 %v606_v10, %v243_v11  ;;  %v283_v23 = vadd.f32 %v606_v10, %v244_v13  ;;  %v247_v27 = vmul.f32 %v595_v3, %v208_v20  ;;  %v284_v28 = vadd.f32 %v606_v10, %v245_v18  ;;  %v213_v49 = vld [vmem:[%s588_s22 + $0x60] sm:$0xff]  ;;  %v214_v55 = vld [vmem:[%s588_s22 + $0x68] sm:$0xff]  ;;  %v215_v61 = vld [vmem:[%s588_s22 + $0x70] sm:$0xff] }
  0x14   : > { %v311_v24 = vmax.f32 %v279_v14, 0.0  ;;  %v312_v25 = vmax.f32 %v280_v15, 0.0  ;;  %v313_v26 = vmax.f32 %v281_v17, 0.0  ;;  %v248_v31 = vmul.f32 %v595_v3, %v209_v21  ;;  %v216_v4 = vld [vmem:[%s588_s22 + $0x78] sm:$0xff]  ;;  %v217_v11 = vld [vmem:[%s588_s22 + $0x80] sm:$0xff]  ;;  %v218_v17 = vld [vmem:[%s588_s22 + $0x88] sm:$0xff] }
  0x15   : > { %v314_v29 = vmax.f32 %v282_v19, 0.0  ;;  %v285_v32 = vadd.f32 %v606_v10, %v246_v22  ;;  %v315_v33 = vmax.f32 %v283_v23, 0.0  ;;  %v249_v39 = vmul.f32 %v595_v3, %v210_v30  ;;  %v219_v23 = vld [vmem:[%s588_s22 + $0x90] sm:$0xff] }
  0x16   : > { %v345_v34 = vsel %vm344_vm1, %v311_v24, 0.0  ;;  %v346_v35 = vsel %vm344_vm1, %v312_v25, 0.0  ;;  %v348_v38 = vsel %vm344_vm1, %v313_v26, 0.0  ;;  %v286_v40 = vadd.f32 %v606_v10, %v247_v27 }
  0x17   : > { %v347_v37 = vadd.f32 %v346_v35, %v345_v34  ;;  %v316_v41 = vmax.f32 %v284_v28, 0.0  ;;  %v350_v42 = vsel %vm344_vm1, %v314_v29, 0.0  ;;  %v250_v45 = vmul.f32 %v595_v3, %v211_v36  ;;  %v220_v29 = vld [vmem:[%s588_s22 + $0x98] sm:$0xff]  ;;  %v221_v35 = vld [vmem:[%s588_s22 + $0xa0] sm:$0xff] }
  0x18   : > { %v287_v46 = vadd.f32 %v606_v10, %v248_v31  ;;  %v317_v47 = vmax.f32 %v285_v32, 0.0  ;;  %v352_v48 = vsel %vm344_vm1, %v315_v33, 0.0  ;;  %v251_v51 = vmul.f32 %v595_v3, %v212_v43 }
  0x19   : > { %v349_v44 = vadd.f32 %v348_v38, %v347_v37  ;;  %v288_v52 = vadd.f32 %v606_v10, %v249_v39  ;;  %v318_v53 = vmax.f32 %v286_v40, 0.0  ;;  %v354_v54 = vsel %vm344_vm1, %v316_v41, 0.0  ;;  %v222_v41 = vld [vmem:[%s588_s22 + $0xa8] sm:$0xff] }
  0x1a   : > { %v252_v57 = vmul.f32 %v595_v3, %v213_v49  ;;  %v289_v58 = vadd.f32 %v606_v10, %v250_v45  ;;  %v319_v59 = vmax.f32 %v287_v46, 0.0  ;;  %v356_v60 = vsel %vm344_vm1, %v317_v47, 0.0  ;;  %v223_v47 = vld [vmem:[%s588_s22 + $0xb0] sm:$0xff] }
  0x1b   : > { %v351_v50 = vadd.f32 %v350_v42, %v349_v44  ;;  %v253_v63 = vmul.f32 %v595_v3, %v214_v55  ;;  %v290_v0 = vadd.f32 %v606_v10, %v251_v51  ;;  %v320_v1 = vmax.f32 %v288_v52, 0.0 }
  0x1c   : > { %v358_v2 = vsel %vm344_vm1, %v318_v53, 0.0  ;;  %v254_v6 = vmul.f32 %v595_v3, %v215_v61  ;;  %v291_v7 = vadd.f32 %v606_v10, %v252_v57  ;;  %v321_v8 = vmax.f32 %v289_v58, 0.0  ;;  %v224_v53 = vld [vmem:[%s588_s22 + $0xb8] sm:$0xff] }
  0x1d   : > { %v353_v56 = vadd.f32 %v352_v48, %v351_v50  ;;  %v360_v9 = vsel %vm344_vm1, %v319_v59, 0.0  ;;  %v255_v13 = vmul.f32 %v595_v3, %v216_v4  ;;  %v292_v14 = vadd.f32 %v606_v10, %v253_v63  ;;  %v225_v59 = vld [vmem:[%s588_s22 + $0xc0] sm:$0xff] }
  0x1e   : > { %v322_v15 = vmax.f32 %v290_v0, 0.0  ;;  %v362_v16 = vsel %vm344_vm1, %v320_v1, 0.0  ;;  %v256_v19 = vmul.f32 %v595_v3, %v217_v11  ;;  %v293_v20 = vadd.f32 %v606_v10, %v254_v6  ;;  %v226_v1 = vld [vmem:[%s588_s22 + $0xc8] sm:$0xff] }
  0x1f   : > { %v355_v62 = vadd.f32 %v354_v54, %v353_v56  ;;  %v323_v21 = vmax.f32 %v291_v7, 0.0  ;;  %v364_v22 = vsel %vm344_vm1, %v321_v8, 0.0  ;;  %v257_v25 = vmul.f32 %v595_v3, %v218_v17  ;;  %v227_v8 = vld [vmem:[%s588_s22 + $0xd0] sm:$0xff] }
  0x20   : > { %v294_v26 = vadd.f32 %v606_v10, %v255_v13  ;;  %v324_v27 = vmax.f32 %v292_v14, 0.0  ;;  %v366_v28 = vsel %vm344_vm1, %v322_v15, 0.0  ;;  %v258_v31 = vmul.f32 %v595_v3, %v219_v23  ;;  %v228_v15 = vld [vmem:[%s588_s22 + $0xd8] sm:$0xff] }
  0x21   : > { %v357_v5 = vadd.f32 %v356_v60, %v355_v62  ;;  %v295_v32 = vadd.f32 %v606_v10, %v256_v19  ;;  %v325_v33 = vmax.f32 %v293_v20, 0.0  ;;  %v368_v34 = vsel %vm344_vm1, %v323_v21, 0.0  ;;  %v229_v21 = vld [vmem:[%s588_s22 + $0xe0] sm:$0xff] }
  0x22   : > { %v259_v37 = vmul.f32 %v595_v3, %v220_v29  ;;  %v296_v38 = vadd.f32 %v606_v10, %v257_v25  ;;  %v326_v39 = vmax.f32 %v294_v26, 0.0  ;;  %v370_v40 = vsel %vm344_vm1, %v324_v27, 0.0  ;;  %v230_v27 = vld [vmem:[%s588_s22 + $0xe8] sm:$0xff] }
  0x23   : > { %v359_v12 = vadd.f32 %v358_v2, %v357_v5  ;;  %v260_v43 = vmul.f32 %v595_v3, %v221_v35  ;;  %v297_v44 = vadd.f32 %v606_v10, %v258_v31  ;;  %v327_v45 = vmax.f32 %v295_v32, 0.0 }
  0x24   : > { %v372_v46 = vsel %vm344_vm1, %v325_v33, 0.0  ;;  %v261_v49 = vmul.f32 %v595_v3, %v222_v41  ;;  %v298_v50 = vadd.f32 %v606_v10, %v259_v37  ;;  %v328_v51 = vmax.f32 %v296_v38, 0.0  ;;  %v231_v33 = vld [vmem:[%s588_s22 + $0xf0] sm:$0xff] }
  0x25   : > { %v361_v18 = vadd.f32 %v360_v9, %v359_v12  ;;  %v374_v52 = vsel %vm344_vm1, %v326_v39, 0.0  ;;  %v262_v55 = vmul.f32 %v595_v3, %v223_v47  ;;  %v299_v56 = vadd.f32 %v606_v10, %v260_v43  ;;  %v232_v39 = vld [vmem:[%s588_s22 + $0xf8] sm:$0xff] }
  0x26   : > { %v329_v57 = vmax.f32 %v297_v44, 0.0  ;;  %v376_v58 = vsel %vm344_vm1, %v327_v45, 0.0  ;;  %v263_v61 = vmul.f32 %v595_v3, %v224_v53  ;;  %v300_v62 = vadd.f32 %v606_v10, %v261_v49 }
  0x27   : > { %v363_v24 = vadd.f32 %v362_v16, %v361_v18  ;;  %v330_v63 = vmax.f32 %v298_v50, 0.0  ;;  %v378_v0 = vsel %vm344_vm1, %v328_v51, 0.0  ;;  %v264_v4 = vmul.f32 %v595_v3, %v225_v59 }
  0x28   : > { %v301_v5 = vadd.f32 %v606_v10, %v262_v55  ;;  %v331_v6 = vmax.f32 %v299_v56, 0.0  ;;  %v380_v7 = vsel %vm344_vm1, %v329_v57, 0.0  ;;  %v265_v11 = vmul.f32 %v595_v3, %v226_v1 }
  0x29   : > { %v365_v30 = vadd.f32 %v364_v22, %v363_v24  ;;  %v302_v12 = vadd.f32 %v606_v10, %v263_v61  ;;  %v332_v13 = vmax.f32 %v300_v62, 0.0  ;;  %v382_v14 = vsel %vm344_vm1, %v330_v63, 0.0 }
  0x2a   : > { %v266_v17 = vmul.f32 %v595_v3, %v227_v8  ;;  %v303_v18 = vadd.f32 %v606_v10, %v264_v4  ;;  %v333_v19 = vmax.f32 %v301_v5, 0.0  ;;  %v384_v20 = vsel %vm344_vm1, %v331_v6, 0.0 }
  0x2b   : > { %v367_v36 = vadd.f32 %v366_v28, %v365_v30  ;;  %v267_v23 = vmul.f32 %v595_v3, %v228_v15  ;;  %v304_v24 = vadd.f32 %v606_v10, %v265_v11  ;;  %v334_v25 = vmax.f32 %v302_v12, 0.0  ;;  %v343_v11 = vld [vmem:[%s581_s18] sm:$0x1] }
  0x2c   : > { %v386_v26 = vsel %vm344_vm1, %v332_v13, 0.0  ;;  %v268_v29 = vmul.f32 %v595_v3, %v229_v21  ;;  %v305_v30 = vadd.f32 %v606_v10, %v266_v17  ;;  %v335_v31 = vmax.f32 %v303_v18, 0.0 }
  0x2d   : > { %v369_v42 = vadd.f32 %v368_v34, %v367_v36  ;;  %v388_v32 = vsel %vm344_vm1, %v333_v19, 0.0  ;;  %v269_v35 = vmul.f32 %v595_v3, %v230_v27  ;;  %v306_v36 = vadd.f32 %v606_v10, %v267_v23 }
  0x2e   : > { %v336_v37 = vmax.f32 %v304_v24, 0.0  ;;  %v390_v38 = vsel %vm344_vm1, %v334_v25, 0.0  ;;  %v270_v41 = vmul.f32 %v595_v3, %v231_v33  ;;  %v337_v43 = vmax.f32 %v305_v30, 0.0 }
  0x2f   : > { %v371_v48 = vadd.f32 %v370_v40, %v369_v42  ;;  %v307_v42 = vadd.f32 %v606_v10, %v268_v29  ;;  %v392_v44 = vsel %vm344_vm1, %v335_v31, 0.0  ;;  %v308_v47 = vadd.f32 %v606_v10, %v269_v35 }
  0x30   : > { %v394_v49 = vsel %vm344_vm1, %v336_v37, 0.0  ;;  %v309_v51 = vadd.f32 %v606_v10, %v270_v41  ;;  %v396_v53 = vsel %vm344_vm1, %v337_v43, 0.0 }
  0x31   : > { %v373_v54 = vadd.f32 %v372_v46, %v371_v48  ;;  %v271_v46 = vmul.f32 %v595_v3, %v232_v39  ;;  %v338_v48 = vmax.f32 %v306_v36, 0.0  ;;  %v340_v56 = vmax.f32 %v308_v47, 0.0 }
  0x32   : > { %v341_v59 = vmax.f32 %v309_v51, 0.0 }
  0x33   : > { %v375_v60 = vadd.f32 %v374_v52, %v373_v54  ;;  %v339_v52 = vmax.f32 %v307_v42, 0.0  ;;  %v310_v55 = vadd.f32 %v606_v10, %v271_v46  ;;  %v398_v57 = vsel %vm344_vm1, %v338_v48, 0.0 }
  0x34   : > { %v402_v62 = vsel %vm344_vm1, %v340_v56, 0.0 }
  0x35   : > { %v377_v2 = vadd.f32 %v376_v58, %v375_v60  ;;  %v400_v3 = vsel %vm344_vm1, %v339_v52, 0.0  ;;  %v342_v61 = vmax.f32 %v310_v55, 0.0 }
  0x37   : > { %v379_v9 = vadd.f32 %v378_v0, %v377_v2  ;;  %v404_v0 = vsel %vm344_vm1, %v341_v59, 0.0  ;;  %v406_v2 = vsel %vm344_vm1, %v342_v61, 0.0 }
  0x39   : > { %v381_v16 = vadd.f32 %v380_v7, %v379_v9 }
  0x3b   : > { %v383_v22 = vadd.f32 %v382_v14, %v381_v16 }
  0x3d   : > { %v385_v28 = vadd.f32 %v384_v20, %v383_v22 }
  0x3f   : > { %v387_v34 = vadd.f32 %v386_v26, %v385_v28 }
  0x41   : > { %v389_v40 = vadd.f32 %v388_v32, %v387_v34 }
  0x43   : > { %v391_v45 = vadd.f32 %v390_v38, %v389_v40 }
  0x45   : > { %v393_v50 = vadd.f32 %v392_v44, %v391_v45 }
  0x47   : > { %v395_v54 = vadd.f32 %v394_v49, %v393_v50 }
  0x49   : > { %v397_v58 = vadd.f32 %v396_v53, %v395_v54 }
  0x4b   : > { %v399_v60 = vadd.f32 %v398_v57, %v397_v58 }
  0x4d   : > { %v401_v63 = vadd.f32 %v400_v3, %v399_v60 }
  0x4f   : > { %v403_v1 = vadd.f32 %v402_v62, %v401_v63 }
  0x51   : > { %v405_v10 = vadd.f32 %v404_v0, %v403_v1 }
  0x53   : > { %v407_v4 = vadd.f32 %v406_v2, %v405_v10 }
  0x55   : > { %v408_v5 = vrot.slane %v407_v4, 4 }
  0x57   : > { %v409_v6 = vadd.f32 %v408_v5, %v407_v4 }
  0x59   : > { %v410_v7 = vrot.slane %v409_v6, 2 }
  0x5b   : > { %v411_v8 = vadd.f32 %v410_v7, %v409_v6 }
  0x5d   : > { %v412_v9 = vrot.slane %v411_v8, 1 }
  0x5f   : > { %v413_v12 = vadd.f32 %v412_v9, %v411_v8 }
  0x61   : > { %v414_v13 = vadd.f32 %v413_v12, %v343_v11 }
  0x63   : > { %416 = vst.msk [vmem:[%s581_s18] sm:$0x1] %vm199_vm0, %v414_v13 }
  0x64 PF: > { %s13_s14 = sadd.s32 1, %s537_s14   ;;  %s744_s12 = smov %s533_s13 }
  0x65   : > { %p10_p5 = scmp.ge.s32.totalorder %s13_s14, 4   ;;  %s745_s13 = smov %s747_s15 }
  0x67   :  { %12 = sbr.rel (!%p10_p5) target bundleno = 2 (0x2), region = 66 }

// kernel: decoder_forward.7
= control target key start
LH: loop header
LB: loop body
LE: loop exit
PB: predicated region body
PF: predicated region fallthrough
CT: control target
= control target key end

     0   :  { %s1443_s23 = smov 0   ;;  %s1445_s24 = smov 0   ;;  %s2022_s0 = inlined_call_operand.vmem [shape: f32[2,256,8], index: 0, kind: input, shape index: {}]   ;;  %s2023_s1 = inlined_call_operand.vmem [shape: f32[1,8], index: 1, kind: input, shape index: {}]   ;;  %s2024_s2 = inlined_call_operand.vmem [shape: f32[1,8], index: 2, kind: input, shape index: {}]   ;;  %s2025_s3 = inlined_call_operand.vmem [shape: f32[1,8], index: 3, kind: input, shape index: {}]   ;;  %s2026_s4 = inlined_call_operand.<no memory space> [shape: f32[1,1], index: 4, kind: input, shape index: {}]   ;;  %s2027_s5 = inlined_call_operand.vmem [shape: f32[2,1,8], index: 5, kind: input, shape index: {}]   ;;  %s2028_s6 = inlined_call_operand.vmem [shape: f32[2,256,8], index: 6, kind: output, shape index: {}]  }
   0x1   :  { %v11_v0 = vstv %s2026_s4  ;;  %s1447_s25 = smov 0  }
   0x2   :  { %12 = vst [vmem:[#allocation2] sm:$0x1] %v11_v0 }
   0x3 LB: > { %s30_s4 = sadd.s32 1, %s1398_s24  ;;  %p1179_p0 = scmp.ge.s32.totalorder %s1402_s25, 1  ;;  %s1402_s25 = sphi %s1447_s25, %s18_s25   ;;  %s1398_s24 = sphi %s1445_s24, %s2076_s24   ;;  %s1394_s23 = sphi %s1443_s23, %s2075_s23  }
   0x4   : > { %p32_p1 = scmp.ge.s32.totalorder %s30_s4, 2  ;;  %p243_p2 = scmp.lt.s32.totalorder %s1402_s25, 3 }
   0x6   : > { %s2078_s4 = smov (%p32_p1, %s30_s4), 0  ;;  %p244_p3 = pnand %p1179_p0, %p243_p2 }
   0x7   : > { %p285_p4 = scmp.lt.s32.totalorder (!%p244_p3), %s1394_s23, 1 }
   0x8   : > { %247 = sbr.rel (%p244_p3) target bundleno = 404 (0x194), region = 44 }
   0xd   : > { %s2080_s23 = smov (!%p285_p4, %s1394_s23), 1  ;;  %v1467_v1 = vld [vmem:[%s2023_s1] ss:$0 sm:$0xff]  ;;  %vm488_vm0 = vcmask 64512  }
   0xe   : > { %s1223_s26 = sshll.u32 %s2080_s23, 8  ;;  %v1479_v2 = vld [vmem:[%s2024_s2] ss:$0 sm:$0xff]  ;;  %s296_s14 = scalar_lea.vmem %s2027_s5, %s2080_s23 }
   0xf   : > { %s1474_s7 = scalar_lea.vmem %s2022_s0, %s1223_s26  ;;  %v1507_v20 = vld [vmem:[%s2025_s3] ss:$0 sm:$0xff]  ;;  %s1852_s17 = scalar_lea.vmem %s2028_s6, %s1223_s26 }
  0x10   : > { %v309_v3 = vld [vmem:[%s1474_s7 + $0x10] sm:$0xff]  ;;  %v307_v4 = vld [vmem:[%s1474_s7] sm:$0xff]  ;;  %v310_v5 = vld [vmem:[%s1474_s7 + $0x18] sm:$0xff] }
  0x11   : > { %v348_v6 = vmul.f32 %v1467_v1, %v309_v3  ;;  %v346_v7 = vmul.f32 %v1467_v1, %v307_v4  ;;  %v349_v8 = vmul.f32 %v1467_v1, %v310_v5  ;;  %v308_v9 = vld [vmem:[%s1474_s7 + $0x8] sm:$0xff]  ;;  %v314_v11 = vld [vmem:[%s1474_s7 + $0x38] sm:$0xff]  ;;  %v311_v16 = vld [vmem:[%s1474_s7 + $0x20] sm:$0xff] }
  0x12   : > { %v312_v10 = vld [vmem:[%s1474_s7 + $0x28] sm:$0xff]  ;;  %v347_v12 = vmul.f32 %v1467_v1, %v308_v9  ;;  %v353_v14 = vmul.f32 %v1467_v1, %v314_v11  ;;  %v350_v23 = vmul.f32 %v1467_v1, %v311_v16  ;;  %v318_v37 = vld [vmem:[%s1474_s7 + $0x58] sm:$0xff]  ;;  %v313_v38 = vld [vmem:[%s1474_s7 + $0x30] sm:$0xff] }
  0x13   : > { %v351_v13 = vmul.f32 %v1467_v1, %v312_v10  ;;  %v316_v15 = vld [vmem:[%s1474_s7 + $0x48] sm:$0xff]  ;;  %v1496_v17 = vadd.f32 %v1479_v2, %v348_v6  ;;  %v1499_v18 = vadd.f32 %v1479_v2, %v346_v7  ;;  %v1502_v19 = vadd.f32 %v1479_v2, %v349_v8  ;;  %v315_v41 = vld [vmem:[%s1474_s7 + $0x40] sm:$0xff]  ;;  %v317_v53 = vld [vmem:[%s1474_s7 + $0x50] sm:$0xff] }
  0x14   : > { %v1510_v21 = vadd.f32 %v1479_v2, %v347_v12  ;;  %v355_v27 = vmul.f32 %v1467_v1, %v316_v15  ;;  %v1523_v30 = vadd.f32 %v1479_v2, %v353_v14  ;;  %v1526_v31 = vadd.f32 %v1479_v2, %v350_v23  ;;  %v320_v49 = vld [vmem:[%s1474_s7 + $0x68] sm:$0xff]  ;;  %v322_v57 = vld [vmem:[%s1474_s7 + $0x78] sm:$0xff]  ;;  %v319_v8 = vld [vmem:[%s1474_s7 + $0x60] sm:$0xff] }
  0x15   : > { %v1513_v22 = vadd.f32 %v1479_v2, %v351_v13  ;;  %v419_v24 = vmax.f32 %v1496_v17, 0.0  ;;  %v417_v25 = vmax.f32 %v1499_v18, 0.0  ;;  %v420_v26 = vmax.f32 %v1502_v19, 0.0  ;;  %v324_v7 = vld [vmem:[%s1474_s7 + $0x88] sm:$0xff]  ;;  %v321_v13 = vld [vmem:[%s1474_s7 + $0x70] sm:$0xff]  ;;  %v323_v14 = vld [vmem:[%s1474_s7 + $0x80] sm:$0xff] }
  0x16   : > { %v418_v28 = vmax.f32 %v1510_v21, 0.0  ;;  %v421_v36 = vmax.f32 %v1526_v31, 0.0  ;;  %v2050_v44 = vmax.f32 %v1523_v30, 0.0  ;;  %v1552_v45 = vadd.f32 %v1479_v2, %v355_v27 }
  0x17   : > { %v422_v29 = vmax.f32 %v1513_v22, 0.0  ;;  %v458_v32 = vmul.f32 %v1507_v20, %v419_v24  ;;  %v456_v33 = vmul.f32 %v1507_v20, %v417_v25  ;;  %v459_v34 = vmul.f32 %v1507_v20, %v420_v26 }
  0x18   : > { %v457_v35 = vmul.f32 %v1507_v20, %v418_v28  ;;  %v460_v47 = vmul.f32 %v1507_v20, %v421_v36  ;;  %v357_v48 = vmul.f32 %v1467_v1, %v318_v37  ;;  %v352_v50 = vmul.f32 %v1467_v1, %v313_v38 }
  0x19   : > { %v495_v39 = vsel %vm488_vm0, %v458_v32, 0.0  ;;  %v489_v40 = vsel %vm488_vm0, %v456_v33, 0.0  ;;  %v498_v42 = vsel %vm488_vm0, %v459_v34, 0.0  ;;  %v461_v43 = vmul.f32 %v1507_v20, %v422_v29  ;;  %v326_v33 = vld [vmem:[%s1474_s7 + $0x98] sm:$0xff] }
  0x1a   : > { %496 = vadd.xlane.f32.xlu1 %v495_v39  ;;  %490 = vadd.xlane.f32.xlu0 %v489_v40  ;;  %v492_v46 = vsel %vm488_vm0, %v457_v35, 0.0  ;;  %v354_v51 = vmul.f32 %v1467_v1, %v315_v41  ;;  %v1563_v52 = vadd.f32 %v1479_v2, %v352_v50  ;;  %v463_v54 = vmul.f32 %v1507_v20, %v2050_v44 }
  0x1b   : > { %v426_v55 = vmax.f32 %v1552_v45, 0.0  ;;  %v359_v56 = vmul.f32 %v1467_v1, %v320_v49  ;;  %v504_v59 = vsel %vm488_vm0, %v461_v43, 0.0  ;;  %v501_v60 = vsel %vm488_vm0, %v460_v47, 0.0  ;;  %v325_v49 = vld [vmem:[%s1474_s7 + $0x90] sm:$0xff] }
  0x1c   : > { %v1573_v58 = vadd.f32 %v1479_v2, %v354_v51  ;;  %v1578_v61 = vadd.f32 %v1479_v2, %v357_v48  ;;  %v423_v62 = vmax.f32 %v1563_v52, 0.0  ;;  %v356_v0 = vmul.f32 %v1467_v1, %v317_v53 }
  0x1d   : > { %v361_v4 = vmul.f32 %v1467_v1, %v322_v57  ;;  %v465_v5 = vmul.f32 %v1507_v20, %v426_v55  ;;  %v1591_v6 = vadd.f32 %v1479_v2, %v359_v56  ;;  %v510_v9 = vsel %vm488_vm0, %v463_v54, 0.0  ;;  %v328_v57 = vld [vmem:[%s1474_s7 + $0xa8] sm:$0xff] }
  0x1e   : > { %499 = vadd.xlane.f32.xlu1 %v498_v42  ;;  %493 = vadd.xlane.f32.xlu0 %v492_v46  ;;  %v2048_v63 = vmax.f32 %v1573_v58, 0.0  ;;  %v462_v3 = vmul.f32 %v1507_v20, %v423_v62  ;;  %v428_v10 = vmax.f32 %v1578_v61, 0.0  ;;  %v1604_v15 = vadd.f32 %v1479_v2, %v356_v0 }
  0x1f   : > { %v1607_v16 = vadd.f32 %v1479_v2, %v361_v4  ;;  %v363_v23 = vmul.f32 %v1467_v1, %v324_v7  ;;  %v358_v27 = vmul.f32 %v1467_v1, %v319_v8  ;;  %v2051_v32 = vmax.f32 %v1591_v6, 0.0 }
  0x20   : > { %v507_v11 = vsel %vm488_vm0, %v462_v3, 0.0  ;;  %v464_v12 = vmul.f32 %v1507_v20, %v2048_v63  ;;  %v2046_v34 = vmax.f32 %v1604_v15, 0.0  ;;  %v360_v35 = vmul.f32 %v1467_v1, %v321_v13  ;;  %v327_v3 = vld [vmem:[%s1474_s7 + $0xa0] sm:$0xff]  ;;  %v330_v13 = vld [vmem:[%s1474_s7 + $0xb8] sm:$0xff] }
  0x21   : > { %v362_v37 = vmul.f32 %v1467_v1, %v323_v14  ;;  %v516_v38 = vsel %vm488_vm0, %v465_v5, 0.0  ;;  %v467_v39 = vmul.f32 %v1507_v20, %v428_v10  ;;  %v1622_v41 = vadd.f32 %v1479_v2, %v358_v27 }
  0x22   : > { %505 = vadd.xlane.f32.xlu1 %v504_v59  ;;  %502 = vadd.xlane.f32.xlu0 %v501_v60  ;;  %v513_v40 = vsel %vm488_vm0, %v464_v12, 0.0  ;;  %v466_v42 = vmul.f32 %v1507_v20, %v2046_v34  ;;  %v1628_v43 = vadd.f32 %v1479_v2, %v360_v35  ;;  %v1631_v46 = vadd.f32 %v1479_v2, %v363_v23 }
  0x23   : > { %v365_v47 = vmul.f32 %v1467_v1, %v326_v33  ;;  %v2034_v48 = vmax.f32 %v1622_v41, 0.0  ;;  %v469_v50 = vmul.f32 %v1507_v20, %v2051_v32  ;;  %v2049_v51 = vmax.f32 %v1607_v16, 0.0  ;;  %v329_v33 = vld [vmem:[%s1474_s7 + $0xb0] sm:$0xff] }
  0x24   : > { %v1641_v53 = vadd.f32 %v1479_v2, %v362_v37  ;;  %v522_v54 = vsel %vm488_vm0, %v467_v39, 0.0  ;;  %v519_v56 = vsel %vm488_vm0, %v466_v42, 0.0  ;;  %v2032_v60 = vmax.f32 %v1628_v43, 0.0  ;;  %v332_v42 = vld [vmem:[%s1474_s7 + $0xc8] sm:$0xff] }
  0x25   : > { %v468_v59 = vmul.f32 %v1507_v20, %v2034_v48  ;;  %v364_v0 = vmul.f32 %v1467_v1, %v325_v49  ;;  %v2047_v4 = vmax.f32 %v1631_v46, 0.0  ;;  %v1654_v5 = vadd.f32 %v1479_v2, %v365_v47  ;;  %v337_v48 = vld [vmem:[%s1474_s7 + $0xf0] sm:$0xff] }
  0x26   : > { %511 = vadd.xlane.f32.xlu1 %v510_v9  ;;  %508 = vadd.xlane.f32.xlu0 %v507_v11  ;;  %v528_v7 = vsel %vm488_vm0, %v469_v50, 0.0  ;;  %v471_v8 = vmul.f32 %v1507_v20, %v2049_v51  ;;  %v367_v9 = vmul.f32 %v1467_v1, %v328_v57  ;;  %v2030_v11 = vmax.f32 %v1641_v53, 0.0  ;;  %v331_v57 = vld [vmem:[%s1474_s7 + $0xc0] sm:$0xff] }
  0x27   : > { %v525_v12 = vsel %vm488_vm0, %v468_v59, 0.0  ;;  %v470_v14 = vmul.f32 %v1507_v20, %v2032_v60  ;;  %v1668_v23 = vadd.f32 %v1479_v2, %v364_v0  ;;  %v366_v27 = vmul.f32 %v1467_v1, %v327_v3 }
  0x28   : > { %v473_v35 = vmul.f32 %v1507_v20, %v2047_v4  ;;  %v2038_v37 = vmax.f32 %v1654_v5, 0.0  ;;  %v1678_v39 = vadd.f32 %v1479_v2, %v367_v9  ;;  %v472_v47 = vmul.f32 %v1507_v20, %v2030_v11 }
  0x29   : > { %v531_v49 = vsel %vm488_vm0, %v470_v14, 0.0  ;;  %v2029_v50 = vmax.f32 %v1668_v23, 0.0  ;;  %v371_v0 = vmul.f32 %v1467_v1, %v332_v42  ;;  %v2052_v22 = vmax.f32 %v1591_v6, 0.0 }
  0x2a   : > { %517 = vadd.xlane.f32.xlu1 %v516_v38  ;;  %514 = vadd.xlane.f32.xlu0 %v513_v40  ;;  %v534_v38 = vsel %vm488_vm0, %v471_v8, 0.0  ;;  %v369_v40 = vmul.f32 %v1467_v1, %v330_v13  ;;  %v475_v59 = vmul.f32 %v1507_v20, %v2038_v37  ;;  %v540_v3 = vsel %vm488_vm0, %v473_v35, 0.0  ;;  %v333_v35 = vld [vmem:[%s1474_s7 + $0xd0] sm:$0xff] }
  0x2b   : > { %v537_v9 = vsel %vm488_vm0, %v472_v47, 0.0  ;;  %v474_v13 = vmul.f32 %v1507_v20, %v2029_v50  ;;  %v336_v50 = vld [vmem:[%s1474_s7 + $0xe8] sm:$0xff]  ;;  %v2054_v52 = vmax.f32 %v1607_v16, 0.0 }
  0x2c   : > { %v1699_v8 = vadd.f32 %v1479_v2, %v369_v40  ;;  %v546_v42 = vsel %vm488_vm0, %v475_v59, 0.0 }
  0x2e   : > { %523 = vadd.xlane.f32.xlu1 %v522_v54  ;;  %520 = vadd.xlane.f32.xlu0 %v519_v56  ;;  %v1688_v54 = vadd.f32 %v1479_v2, %v366_v27  ;;  %v368_v56 = vmul.f32 %v1467_v1, %v329_v33  ;;  %v370_v33 = vmul.f32 %v1467_v1, %v331_v57  ;;  %v543_v57 = vsel %vm488_vm0, %v474_v13, 0.0 }
  0x30   : > { %v2031_v14 = vmax.f32 %v1688_v54, 0.0  ;;  %v1708_v27 = vadd.f32 %v1479_v2, %v368_v56  ;;  %v372_v56 = vmul.f32 %v1467_v1, %v333_v35  ;;  %v1729_v59 = vadd.f32 %v1479_v2, %v370_v33 }
  0x32   : > { %529 = vadd.xlane.f32.xlu1 %v528_v7  ;;  %526 = vadd.xlane.f32.xlu0 %v525_v12  ;;  %v2033_v7 = vmax.f32 %v1678_v39, 0.0  ;;  %v334_v12 = vld [vmem:[%s1474_s7 + $0xd8] sm:$0xff] }
  0x33   : > { %v373_v40 = vmul.f32 %v1467_v1, %v334_v12  ;;  %v335_v12 = vld [vmem:[%s1474_s7 + $0xe0] sm:$0xff] }
  0x34   : > { %v477_v47 = vmul.f32 %v1507_v20, %v2033_v7  ;;  %v374_v60 = vmul.f32 %v1467_v1, %v335_v12  ;;  %v338_v7 = vld [vmem:[%s1474_s7 + $0xf8] sm:$0xff] }
  0x36   : > { %535 = vadd.xlane.f32.xlu1 %v534_v38  ;;  %532 = vadd.xlane.f32.xlu0 %v531_v49  ;;  %v1713_v38 = vadd.f32 %v1479_v2, %v371_v0  ;;  %v2036_v49 = vmax.f32 %v1699_v8, 0.0  ;;  %v476_v0 = vmul.f32 %v1507_v20, %v2031_v14  ;;  %v552_v13 = vsel %vm488_vm0, %v477_v47, 0.0 }
  0x37   : > { %v375_v14 = vmul.f32 %v1467_v1, %v336_v50  ;;  %v1749_v47 = vadd.f32 %v1479_v2, %v372_v56 }
  0x38   : > { %v2037_v11 = vmax.f32 %v1713_v38, 0.0  ;;  %v479_v35 = vmul.f32 %v1507_v20, %v2036_v49  ;;  %v549_v33 = vsel %vm488_vm0, %v476_v0, 0.0  ;;  %v1762_v49 = vadd.f32 %v1479_v2, %v374_v60 }
  0x39   : > { %v1758_v12 = vadd.f32 %v1479_v2, %v375_v14  ;;  %v2040_v37 = vmax.f32 %v1749_v47, 0.0 }
  0x3a   : > { %541 = vadd.xlane.f32.xlu1 %v540_v3  ;;  %538 = vadd.xlane.f32.xlu0 %v537_v9  ;;  %v2035_v3 = vmax.f32 %v1708_v27, 0.0  ;;  %v1734_v9 = vadd.f32 %v1479_v2, %v373_v40  ;;  %v558_v0 = vsel %vm488_vm0, %v479_v35, 0.0 }
  0x3b   : > { %v2043_v60 = vmax.f32 %v1758_v12, 0.0 }
  0x3c   : > { %v478_v40 = vmul.f32 %v1507_v20, %v2035_v3  ;;  %v2045_v50 = vmax.f32 %v1734_v9, 0.0  ;;  %v377_v3 = vmul.f32 %v1467_v1, %v338_v7 }
  0x3e   : > { %547 = vadd.xlane.f32.xlu1 %v546_v42  ;;  %544 = vadd.xlane.f32.xlu0 %v543_v57  ;;  %v2041_v42 = vmax.f32 %v1729_v59, 0.0  ;;  %v481_v57 = vmul.f32 %v1507_v20, %v2037_v11  ;;  %v555_v56 = vsel %vm488_vm0, %v478_v40, 0.0  ;;  %v483_v14 = vmul.f32 %v1507_v20, %v2045_v50 }
  0x3f   : > { %v1776_v35 = vadd.f32 %v1479_v2, %v377_v3  ;;  %v482_v40 = vmul.f32 %v1507_v20, %v2040_v37 }
  0x40   : > { %v480_v11 = vmul.f32 %v1507_v20, %v2041_v42  ;;  %v564_v7 = vsel %vm488_vm0, %v481_v57, 0.0  ;;  %v570_v57 = vsel %vm488_vm0, %v483_v14, 0.0 }
  0x41   : > { %v2042_v3 = vmax.f32 %v1776_v35, 0.0 }
  0x42   : > { %553 = vadd.xlane.f32.xlu1 %v552_v13  ;;  %550 = vadd.xlane.f32.xlu0 %v549_v33  ;;  %v376_v13 = vmul.f32 %v1467_v1, %v337_v48  ;;  %v561_v33 = vsel %vm488_vm0, %v480_v11, 0.0  ;;  %v2039_v1 = vmax.f32 %v1762_v49, 0.0  ;;  %v485_v11 = vmul.f32 %v1507_v20, %v2043_v60 }
  0x43   : > { %v487_v14 = vmul.f32 %v1507_v20, %v2042_v3 }
  0x44   : > { %v1784_v48 = vadd.f32 %v1479_v2, %v376_v13  ;;  %v484_v2 = vmul.f32 %v1507_v20, %v2039_v1 }
  0x46   : > { %559 = vadd.xlane.f32.xlu1 %v558_v0  ;;  %556 = vadd.xlane.f32.xlu0 %v555_v56  ;;  %v1404_v0 = vmov 0   ;;  %v567_v56 = vsel %vm488_vm0, %v482_v40, 0.0  ;;  %v2044_v13 = vmax.f32 %v1784_v48, 0.0 }
  0x47   : > { %1250 = vset.pattern.permute.xlu0 %v1404_v0  ;;  %1251 = vset.pattern.permute.xlu1 %v1404_v0  ;;  %v582_v0 = vsel %vm488_vm0, %v487_v14, 0.0 }
  0x48   : > { %v486_v40 = vmul.f32 %v1507_v20, %v2044_v13 }
  0x4a   : > { %565 = vadd.xlane.f32.xlu1 %v564_v7  ;;  %562 = vadd.xlane.f32.xlu0 %v561_v33  ;;  %v576_v7 = vsel %vm488_vm0, %v485_v11, 0.0  ;;  %v573_v33 = vsel %vm488_vm0, %v484_v2, 0.0  ;;  %v579_v1 = vsel %vm488_vm0, %v486_v40, 0.0 }
  0x4e   : > { %571 = vadd.xlane.f32.xlu1 %v570_v57  ;;  %568 = vadd.xlane.f32.xlu0 %v567_v56  ;;  %v1806_v57 = vld [vmem:[#allocation2] ss:$0 sm:$0xff] }
  0x52   : > { %577 = vadd.xlane.f32.xlu1 %v576_v7  ;;  %574 = vadd.xlane.f32.xlu0 %v573_v33 }
  0x56   : > { %583 = vadd.xlane.f32.xlu1 %v582_v0  ;;  %580 = vadd.xlane.f32.xlu0 %v579_v1 }
  0xa3   : > { %v497_v11 = vpop.xlane.xlu1 %496  ;;  %v491_v56 = vpop.xlane.xlu0 %490 }
  0xa4   : > { %v594_v37 = vadd.f32 %v1806_v57, %v497_v11  ;;  %v592_v2 = vadd.f32 %v1806_v57, %v491_v56 }
  0xa6   : > { %v1188_v42 = vmul.f32 -1.442695, %v592_v2  ;;  %v1190_v3 = vmul.f32 -1.442695, %v594_v37 }
  0xa7   : > { %v500_v60 = vpop.xlane.xlu1 %499  ;;  %v494_v20 = vpop.xlane.xlu0 %493 }
  0xa8   : > { %v595_v7 = vadd.f32 %v1806_v57, %v500_v60  ;;  %v593_v14 = vadd.f32 %v1806_v57, %v494_v20  ;;  %1252 = vpow2.f32 %v1188_v42 }
  0xa9   : > { %1254 = vpow2.f32 %v1190_v3 }
  0xaa   : > { %v1189_v33 = vmul.f32 -1.442695, %v593_v14  ;;  %v1191_v1 = vmul.f32 -1.442695, %v595_v7 }
  0xab   : > { %v506_v40 = vpop.xlane.xlu1 %505  ;;  %v503_v0 = vpop.xlane.xlu0 %502 }
  0xac   : > { %v596_v13 = vadd.f32 %v1806_v57, %v503_v0  ;;  %1256 = vpow2.f32 %v1189_v33  ;;  %v597_v11 = vadd.f32 %v1806_v57, %v506_v40 }
  0xad   : > { %1258 = vpow2.f32 %v1191_v1 }
  0xae   : > { %v1192_v37 = vmul.f32 -1.442695, %v596_v13  ;;  %v1193_v50 = vmul.f32 -1.442695, %v597_v11 }
  0xaf   : > { %v512_v56 = vpop.xlane.xlu1 %511  ;;  %v509_v2 = vpop.xlane.xlu0 %508 }
  0xb0   : > { %1260 = vpow2.f32 %v1192_v37  ;;  %v598_v60 = vadd.f32 %v1806_v57, %v509_v2  ;;  %v599_v3 = vadd.f32 %v1806_v57, %v512_v56 }
  0xb1   : > { %1262 = vpow2.f32 %v1193_v50 }
  0xb2   : > { %v1194_v1 = vmul.f32 -1.442695, %v598_v60  ;;  %v1195_v13 = vmul.f32 -1.442695, %v599_v3 }
  0xb3   : > { %v518_v34 = vpop.xlane.xlu1 %517  ;;  %v515_v42 = vpop.xlane.xlu0 %514 }
  0xb4   : > { %v601_v20 = vadd.f32 %v1806_v57, %v518_v34  ;;  %v600_v37 = vadd.f32 %v1806_v57, %v515_v42 }
  0xb5   : > { %v1253_v7 = vpop.eup %1252 }
  0xb6   : > { %v1197_v14 = vmul.f32 -1.442695, %v601_v20  ;;  %v720_v0 = vadd.f32 1.0, %v1253_v7  ;;  %v1255_v4 = vpop.eup %1254  ;;  %v1196_v60 = vmul.f32 -1.442695, %v600_v37 }
  0xb7   : > { %v524_v33 = vpop.xlane.xlu1 %523  ;;  %v521_v40 = vpop.xlane.xlu0 %520  ;;  %v722_v56 = vadd.f32 1.0, %v1255_v4 }
  0xb8   : > { %v603_v11 = vadd.f32 %v1806_v57, %v524_v33  ;;  %1264 = vrcp.f32 %v720_v0  ;;  %v602_v3 = vadd.f32 %v1806_v57, %v521_v40 }
  0xb9   : > { %v1257_v2 = vpop.eup %1256  ;;  %1266 = vpow2.f32 %v1197_v14 }
  0xba   : > { %v1199_v63 = vmul.f32 -1.442695, %v603_v11  ;;  %v721_v51 = vadd.f32 1.0, %v1257_v2  ;;  %1268 = vpow2.f32 %v1194_v1  ;;  %v1259_v7 = vpop.eup %1258  ;;  %v1198_v1 = vmul.f32 -1.442695, %v602_v3 }
  0xbb   : > { %v530_v34 = vpop.xlane.xlu1 %529  ;;  %v527_v20 = vpop.xlane.xlu0 %526  ;;  %1270 = vpow2.f32 %v1195_v13  ;;  %v723_v42 = vadd.f32 1.0, %v1259_v7 }
  0xbc   : > { %v605_v50 = vadd.f32 %v1806_v57, %v530_v34  ;;  %1272 = vrcp.f32 %v721_v51  ;;  %v604_v2 = vadd.f32 %v1806_v57, %v527_v20 }
  0xbd   : > { %1274 = vpow2.f32 %v1199_v63  ;;  %v1261_v11 = vpop.eup %1260 }
  0xbe   : > { %v1201_v0 = vmul.f32 -1.442695, %v605_v50  ;;  %1276 = vrcp.f32 %v722_v56  ;;  %v724_v51 = vadd.f32 1.0, %v1261_v11  ;;  %v1263_v40 = vpop.eup %1262  ;;  %v1200_v56 = vmul.f32 -1.442695, %v604_v2 }
  0xbf   : > { %v536_v33 = vpop.xlane.xlu1 %535  ;;  %v533_v14 = vpop.xlane.xlu0 %532  ;;  %1278 = vpow2.f32 %v1196_v60  ;;  %v725_v3 = vadd.f32 1.0, %v1263_v40 }
  0xc0   : > { %v607_v4 = vadd.f32 %v1806_v57, %v536_v33  ;;  %1280 = vpow2.f32 %v1201_v0  ;;  %v606_v7 = vadd.f32 %v1806_v57, %v533_v14 }
  0xc1   : > { %1282 = vrcp.f32 %v723_v42 }
  0xc2   : > { %v1203_v13 = vmul.f32 -1.442695, %v607_v4  ;;  %1284 = vpow2.f32 %v1198_v1  ;;  %v1202_v1 = vmul.f32 -1.442695, %v606_v7 }
  0xc3   : > { %v542_v37 = vpop.xlane.xlu1 %541  ;;  %v539_v34 = vpop.xlane.xlu0 %538 }
  0xc4   : > { %v609_v63 = vadd.f32 %v1806_v57, %v542_v37  ;;  %1286 = vpow2.f32 %v1203_v13  ;;  %v608_v2 = vadd.f32 %v1806_v57, %v539_v34 }
  0xc5   : > { %v1265_v50 = vpop.eup %1264  ;;  %1288 = vrcp.f32 %v724_v51 }
  0xc6   : > { %v1205_v33 = vmul.f32 -1.442695, %v609_v63  ;;  %v1267_v60 = vpop.eup %1266  ;;  %819 = vperm.xlu0 %1250, %v1265_v50  }
  0xc7   : > { %v548_v20 = vpop.xlane.xlu1 %547  ;;  %v545_v0 = vpop.xlane.xlu0 %544  ;;  %v729_v11 = vadd.f32 1.0, %v1267_v60  ;;  %v1204_v60 = vmul.f32 -1.442695, %v608_v2 }
  0xc8   : > { %v1269_v42 = vpop.eup %1268  ;;  %1290 = vpow2.f32 %v1205_v33  ;;  %v611_v4 = vadd.f32 %v1806_v57, %v548_v20 }
  0xc9   : > { %v1271_v44 = vpop.eup %1270  ;;  %1292 = vpow2.f32 %v1200_v56  ;;  %v726_v40 = vadd.f32 1.0, %v1269_v42  ;;  %v610_v56 = vadd.f32 %v1806_v57, %v545_v0 }
  0xca   : > { %v1273_v14 = vpop.eup %1272  ;;  %1294 = vrcp.f32 %v729_v11  ;;  %v1207_v13 = vmul.f32 -1.442695, %v611_v4  ;;  %v727_v11 = vadd.f32 1.0, %v1271_v44 }
  0xcb   : > { %v1275_v37 = vpop.eup %1274  ;;  %1296 = vrcp.f32 %v725_v3  ;;  %824 = vperm.xlu1 %1251, %v1273_v14   ;;  %v554_v51 = vpop.xlane.xlu1 %553 }
  0xcc   : > { %v551_v63 = vpop.xlane.xlu0 %550  ;;  %v1277_v50 = vpop.eup %1276  ;;  %v731_v32 = vadd.f32 1.0, %v1275_v37  ;;  %1298 = vpow2.f32 %v1207_v13  ;;  %v613_v33 = vadd.f32 %v1806_v57, %v554_v51  ;;  %v1206_v37 = vmul.f32 -1.442695, %v610_v56 }
  0xcd   : > { %1300 = vpow2.f32 %v1202_v1  ;;  %v1279_v7 = vpop.eup %1278  ;;  %v612_v0 = vadd.f32 %v1806_v57, %v551_v63 }
  0xce   : > { %1302 = vrcp.f32 %v731_v32  ;;  %v1209_v34 = vmul.f32 -1.442695, %v613_v33  ;;  %v1281_v20 = vpop.eup %1280  ;;  %v728_v51 = vadd.f32 1.0, %v1279_v7 }
  0xcf   : > { %1304 = vrcp.f32 %v726_v40  ;;  %829 = vperm.xlu1 %1251, %v1277_v50   ;;  %v560_v3 = vpop.xlane.xlu1 %559  ;;  %v1283_v4 = vpop.eup %1282  ;;  %v733_v14 = vadd.f32 1.0, %v1281_v20 }
  0xd0   : > { %v557_v42 = vpop.xlane.xlu0 %556  ;;  %1306 = vpow2.f32 %v1209_v34  ;;  %v615_v13 = vadd.f32 %v1806_v57, %v560_v3  ;;  %v1285_v1 = vpop.eup %1284 }
  0xd1   : > { %1308 = vpow2.f32 %v1204_v60  ;;  %v1287_v32 = vpop.eup %1286  ;;  %v730_v63 = vadd.f32 1.0, %v1285_v1 }
  0xd2   : > { %1310 = vrcp.f32 %v733_v14  ;;  %v1211_v2 = vmul.f32 -1.442695, %v615_v13  ;;  %v1289_v50 = vpop.eup %1288  ;;  %v735_v33 = vadd.f32 1.0, %v1287_v32  ;;  %v1208_v14 = vmul.f32 -1.442695, %v612_v0 }
  0xd3   : > { %1312 = vrcp.f32 %v727_v11  ;;  %834 = vperm.xlu1 %1251, %v1283_v4   ;;  %v566_v44 = vpop.xlane.xlu1 %565  ;;  %v614_v11 = vadd.f32 %v1806_v57, %v557_v42 }
  0xd4   : > { %v563_v40 = vpop.xlane.xlu0 %562  ;;  %1314 = vpow2.f32 %v1211_v2  ;;  %v617_v34 = vadd.f32 %v1806_v57, %v566_v44 }
  0xd5   : > { %v1291_v20 = vpop.eup %1290  ;;  %1316 = vpow2.f32 %v1206_v37  ;;  %v616_v42 = vadd.f32 %v1806_v57, %v563_v40 }
  0xd6   : > { %v1293_v60 = vpop.eup %1292  ;;  %1318 = vrcp.f32 %v735_v33  ;;  %v737_v56 = vadd.f32 1.0, %v1291_v20  ;;  %v1213_v3 = vmul.f32 -1.442695, %v617_v34 }
  0xd7   : > { %v1295_v13 = vpop.eup %1294  ;;  %1320 = vrcp.f32 %v728_v51  ;;  %839 = vperm.xlu1 %1251, %v1289_v50   ;;  %v572_v7 = vpop.xlane.xlu1 %571  ;;  %v732_v20 = vadd.f32 1.0, %v1293_v60  ;;  %v1210_v51 = vmul.f32 -1.442695, %v614_v11  ;;  %v1212_v11 = vmul.f32 -1.442695, %v616_v42 }
  0xd8   : > { %v1297_v4 = vpop.eup %1296  ;;  %1322 = vrcp.f32 %v737_v56  ;;  %864 = vperm.xlu0 %1250, %v1295_v13   ;;  %v619_v2 = vadd.f32 %v1806_v57, %v572_v7  ;;  %v569_v32 = vpop.xlane.xlu0 %568 }
  0xd9   : > { %v1299_v44 = vpop.eup %1298  ;;  %1324 = vpow2.f32 %v1213_v3  ;;  %v618_v40 = vadd.f32 %v1806_v57, %v569_v32 }
  0xda   : > { %v1301_v37 = vpop.eup %1300  ;;  %v739_v33 = vadd.f32 1.0, %v1299_v44  ;;  %v1215_v34 = vmul.f32 -1.442695, %v619_v2  ;;  %1326 = vpow2.f32 %v1208_v14 }
  0xdb   : > { %v1303_v0 = vpop.eup %1302  ;;  %1328 = vrcp.f32 %v730_v63  ;;  %844 = vperm.xlu1 %1251, %v1297_v4   ;;  %v578_v1 = vpop.xlane.xlu1 %577  ;;  %v734_v60 = vadd.f32 1.0, %v1301_v37 }
  0xdc   : > { %v1305_v50 = vpop.eup %1304  ;;  %1330 = vrcp.f32 %v739_v33  ;;  %874 = vperm.xlu0 %1250, %v1303_v0   ;;  %v621_v56 = vadd.f32 %v1806_v57, %v578_v1  ;;  %v575_v14 = vpop.xlane.xlu0 %574 }
  0xdd   : > { %v1307_v13 = vpop.eup %1306  ;;  %1332 = vpow2.f32 %v1215_v34 }
  0xde   : > { %v1309_v3 = vpop.eup %1308  ;;  %v741_v7 = vadd.f32 1.0, %v1307_v13  ;;  %1334 = vrcp.f32 %v732_v20  ;;  %v1217_v2 = vmul.f32 -1.442695, %v621_v56 }
  0xdf   : > { %v1311_v44 = vpop.eup %1310  ;;  %849 = vperm.xlu1 %1251, %v1305_v50   ;;  %v584_v63 = vpop.xlane.xlu1 %583  ;;  %1336 = vpow2.f32 %v1210_v51  ;;  %v736_v37 = vadd.f32 1.0, %v1309_v3  ;;  %v1214_v50 = vmul.f32 -1.442695, %v618_v40  ;;  %v620_v51 = vadd.f32 %v1806_v57, %v575_v14 }
  0xe0   : > { %v1313_v4 = vpop.eup %1312  ;;  %1338 = vrcp.f32 %v741_v7  ;;  %884 = vperm.xlu0 %1250, %v1311_v44   ;;  %v623_v33 = vadd.f32 %v1806_v57, %v584_v63  ;;  %v581_v32 = vpop.xlane.xlu0 %580 }
  0xe1   : > { %v1315_v0 = vpop.eup %1314  ;;  %1340 = vpow2.f32 %v1217_v2  ;;  %v1216_v3 = vmul.f32 -1.442695, %v620_v51 }
  0xe2   : > { %v1317_v34 = vpop.eup %1316  ;;  %v743_v1 = vadd.f32 1.0, %v1315_v0  ;;  %1342 = vrcp.f32 %v734_v60  ;;  %v1219_v20 = vmul.f32 -1.442695, %v623_v33  ;;  %v622_v60 = vadd.f32 %v1806_v57, %v581_v32 }
  0xe3   : > { %v1319_v56 = vpop.eup %1318  ;;  %854 = vperm.xlu1 %1251, %v1313_v4   ;;  %1344 = vpow2.f32 %v1212_v11  ;;  %v738_v2 = vadd.f32 1.0, %v1317_v34 }
  0xe4   : > { %v1321_v42 = vpop.eup %1320  ;;  %1346 = vrcp.f32 %v743_v1  ;;  %894 = vperm.xlu0 %1250, %v1319_v56   ;;  %v1218_v1 = vmul.f32 -1.442695, %v622_v60 }
  0xe5   : > { %v1323_v13 = vpop.eup %1322  ;;  %1348 = vpow2.f32 %v1219_v20 }
  0xe6   : > { %v1325_v7 = vpop.eup %1324  ;;  %1350 = vrcp.f32 %v736_v37 }
  0xe7   : > { %v1327_v44 = vpop.eup %1326  ;;  %v745_v63 = vadd.f32 1.0, %v1325_v7  ;;  %859 = vperm.xlu1 %1251, %v1321_v42   ;;  %1352 = vpow2.f32 %v1214_v50 }
  0xe8   : > { %v1329_v11 = vpop.eup %1328  ;;  %904 = vperm.xlu0 %1250, %v1323_v13   ;;  %v740_v4 = vadd.f32 1.0, %v1327_v44 }
  0xe9   : > { %v1331_v40 = vpop.eup %1330  ;;  %1354 = vrcp.f32 %v745_v63 }
  0xea   : > { %v1333_v14 = vpop.eup %1332  ;;  %1356 = vrcp.f32 %v738_v2 }
  0xeb   : > { %v1335_v33 = vpop.eup %1334  ;;  %v747_v0 = vadd.f32 1.0, %v1333_v14  ;;  %869 = vperm.xlu1 %1251, %v1329_v11   ;;  %1358 = vpow2.f32 %v1216_v3 }
  0xec   : > { %v1337_v34 = vpop.eup %1336  ;;  %914 = vperm.xlu0 %1250, %v1331_v40  }
  0xed   : > { %v1339_v37 = vpop.eup %1338  ;;  %1360 = vrcp.f32 %v747_v0  ;;  %v742_v50 = vadd.f32 1.0, %v1337_v34 }
  0xee   : > { %v1341_v20 = vpop.eup %1340  ;;  %1362 = vrcp.f32 %v740_v4 }
  0xef   : > { %v1343_v56 = vpop.eup %1342  ;;  %v749_v57 = vadd.f32 1.0, %v1341_v20  ;;  %879 = vperm.xlu1 %1251, %v1335_v33   ;;  %1364 = vpow2.f32 %v1218_v1 }
  0xf0   : > { %v1345_v51 = vpop.eup %1344  ;;  %924 = vperm.xlu0 %1250, %v1339_v37  }
  0xf1   : > { %v1347_v42 = vpop.eup %1346  ;;  %1366 = vrcp.f32 %v749_v57  ;;  %v744_v2 = vadd.f32 1.0, %v1345_v51  ;;  %v1844_v51 = vld [vmem:[%s296_s14] ss:$0 sm:$0xff] }
  0xf2   : > { %v1349_v32 = vpop.eup %1348  ;;  %1368 = vrcp.f32 %v742_v50 }
  0xf3   : > { %v1351_v13 = vpop.eup %1350  ;;  %v751_v7 = vadd.f32 1.0, %v1349_v32  ;;  %889 = vperm.xlu1 %1251, %v1343_v56  }
  0xf4   : > { %v1353_v44 = vpop.eup %1352  ;;  %934 = vperm.xlu0 %1250, %v1347_v42  }
  0xf5   : > { %1370 = vrcp.f32 %v751_v7  ;;  %v746_v60 = vadd.f32 1.0, %v1353_v44 }
  0xf6   : > { %v1355_v63 = vpop.eup %1354  ;;  %1372 = vrcp.f32 %v744_v2 }
  0xf7   : > { %v1357_v3 = vpop.eup %1356  ;;  %899 = vperm.xlu1 %1251, %v1351_v13   ;;  %1374 = vrcp.f32 %v746_v60 }
  0xf8   : > { %v1359_v11 = vpop.eup %1358  ;;  %944 = vperm.xlu0 %1250, %v1355_v63  }
  0xf9   : > { %v748_v4 = vadd.f32 1.0, %v1359_v11 }
  0xfa   : > { %v1361_v40 = vpop.eup %1360 }
  0xfb   : > { %v1363_v14 = vpop.eup %1362  ;;  %909 = vperm.xlu1 %1251, %v1357_v3   ;;  %1376 = vrcp.f32 %v748_v4 }
  0xfc   : > { %v1365_v33 = vpop.eup %1364  ;;  %954 = vperm.xlu0 %1250, %v1361_v40  }
  0xfd   : > { %v750_v1 = vadd.f32 1.0, %v1365_v33 }
  0xfe   : > { %v1367_v0 = vpop.eup %1366 }
  0xff   : > { %919 = vperm.xlu1 %1251, %v1363_v14   ;;  %v1369_v34 = vpop.eup %1368  ;;  %1378 = vrcp.f32 %v750_v1 }
 0x100   : > { %964 = vperm.xlu0 %1250, %v1367_v0  }
 0x102   : > { %v1371_v37 = vpop.eup %1370 }
 0x103   : > { %929 = vperm.xlu1 %1251, %v1369_v34   ;;  %v1373_v20 = vpop.eup %1372 }
 0x104   : > { %974 = vperm.xlu0 %1250, %v1371_v37   ;;  %v1375_v56 = vpop.eup %1374 }
 0x107   : > { %939 = vperm.xlu1 %1251, %v1373_v20  }
 0x108   : > { %v1377_v57 = vpop.eup %1376 }
 0x10b   : > { %949 = vperm.xlu1 %1251, %v1375_v56   ;;  %v2053_v56 = vmax.f32 %v1523_v30, 0.0  ;;  %v2056_v30 = vmax.f32 %v1631_v46, 0.0 }
 0x10c   : > { %v1379_v50 = vpop.eup %1378 }
 0x10f   : > { %959 = vperm.xlu1 %1251, %v1377_v57  }
 0x113   : > { %969 = vperm.xlu1 %1251, %v1379_v50  }
 0x141   : > { %v820_v42 = vpop.permute.xlu0 %819 }
 0x142   : > { %v983_v32 = vadd.f32 %v1844_v51, %v820_v42 }
 0x144   : > { %v1015_v13 = vmul.f32 %v983_v32, %v417_v25 }
 0x146   : > { %v825_v7 = vpop.permute.xlu1 %824  ;;  %1047 = vst.msk [vmem:[%s1852_s17] sm:$0xff] %vm488_vm0, %v1015_v13  ;;  %v2055_v13 = vmax.f32 %v1573_v58, 0.0  ;;  %v2058_v58 = vmax.f32 %v1654_v5, 0.0 }
 0x147   : > { %v984_v2 = vadd.f32 %v1844_v51, %v825_v7 }
 0x149   : > { %v1016_v44 = vmul.f32 %v984_v2, %v418_v28 }
 0x14a   : > { %v830_v63 = vpop.permute.xlu1 %829 }
 0x14b   : > { %1048 = vst.msk [vmem:[%s1852_s17 + $0x8] sm:$0xff] %vm488_vm0, %v1016_v44  ;;  %v985_v3 = vadd.f32 %v1844_v51, %v830_v63 }
 0x14d   : > { %v1017_v18 = vmul.f32 %v985_v3, %v419_v24 }
 0x14e   : > { %v835_v60 = vpop.permute.xlu1 %834 }
 0x14f   : > { %1049 = vst.msk [vmem:[%s1852_s17 + $0x10] sm:$0xff] %vm488_vm0, %v1017_v18  ;;  %v986_v25 = vadd.f32 %v1844_v51, %v835_v60  ;;  %v2057_v18 = vmax.f32 %v1604_v15, 0.0  ;;  %v2060_v15 = vmax.f32 %v1678_v39, 0.0 }
 0x151   : > { %v1018_v11 = vmul.f32 %v986_v25, %v420_v26 }
 0x152   : > { %v840_v21 = vpop.permute.xlu1 %839 }
 0x153   : > { %1050 = vst.msk [vmem:[%s1852_s17 + $0x18] sm:$0xff] %vm488_vm0, %v1018_v11  ;;  %v987_v28 = vadd.f32 %v1844_v51, %v840_v21  ;;  %v865_v40 = vpop.permute.xlu0 %864 }
 0x154   : > { %v992_v17 = vadd.f32 %v1844_v51, %v865_v40  ;;  %v2059_v40 = vmax.f32 %v1622_v41, 0.0  ;;  %v2062_v41 = vmax.f32 %v1699_v8, 0.0 }
 0x155   : > { %v1019_v24 = vmul.f32 %v987_v28, %v421_v36 }
 0x156   : > { %v1024_v14 = vmul.f32 %v992_v17, %v426_v55  ;;  %v845_v4 = vpop.permute.xlu1 %844 }
 0x157   : > { %1051 = vst.msk [vmem:[%s1852_s17 + $0x20] sm:$0xff] %vm488_vm0, %v1019_v24  ;;  %v988_v19 = vadd.f32 %v1844_v51, %v845_v4  ;;  %v875_v26 = vpop.permute.xlu0 %874 }
 0x158   : > { %1056 = vst.msk [vmem:[%s1852_s17 + $0x48] sm:$0xff] %vm488_vm0, %v1024_v14  ;;  %v994_v33 = vadd.f32 %v1844_v51, %v875_v26  ;;  %v2061_v26 = vmax.f32 %v1628_v43, 0.0  ;;  %v2064_v43 = vmax.f32 %v1713_v38, 0.0 }
 0x159   : > { %v1020_v0 = vmul.f32 %v988_v19, %v422_v29 }
 0x15a   : > { %v1026_v31 = vmul.f32 %v994_v33, %v428_v10  ;;  %v850_v36 = vpop.permute.xlu1 %849 }
 0x15b   : > { %1052 = vst.msk [vmem:[%s1852_s17 + $0x28] sm:$0xff] %vm488_vm0, %v1020_v0  ;;  %v989_v45 = vadd.f32 %v1844_v51, %v850_v36  ;;  %v885_v55 = vpop.permute.xlu0 %884 }
 0x15c   : > { %1058 = vst.msk [vmem:[%s1852_s17 + $0x58] sm:$0xff] %vm488_vm0, %v1026_v31  ;;  %v996_v1 = vadd.f32 %v1844_v51, %v885_v55  ;;  %v2063_v55 = vmax.f32 %v1641_v53, 0.0  ;;  %v2066_v53 = vmax.f32 %v1734_v9, 0.0 }
 0x15d   : > { %v1021_v34 = vmul.f32 %v989_v45, %v423_v62 }
 0x15e   : > { %v1028_v29 = vmul.f32 %v996_v1, %v2052_v22  ;;  %v855_v61 = vpop.permute.xlu1 %854 }
 0x15f   : > { %1053 = vst.msk [vmem:[%s1852_s17 + $0x30] sm:$0xff] %vm488_vm0, %v1021_v34  ;;  %v990_v10 = vadd.f32 %v1844_v51, %v855_v61  ;;  %v895_v37 = vpop.permute.xlu0 %894 }
 0x160   : > { %1060 = vst.msk [vmem:[%s1852_s17 + $0x68] sm:$0xff] %vm488_vm0, %v1028_v29  ;;  %v998_v20 = vadd.f32 %v1844_v51, %v895_v37 }
 0x161   : > { %v1022_v57 = vmul.f32 %v990_v10, %v2053_v56  ;;  %v2065_v10 = vmax.f32 %v1668_v23, 0.0  ;;  %v2068_v23 = vmax.f32 %v1758_v12, 0.0 }
 0x162   : > { %v1030_v62 = vmul.f32 %v998_v20, %v2054_v52  ;;  %v860_v6 = vpop.permute.xlu1 %859 }
 0x163   : > { %1054 = vst.msk [vmem:[%s1852_s17 + $0x38] sm:$0xff] %vm488_vm0, %v1022_v57  ;;  %v991_v50 = vadd.f32 %v1844_v51, %v860_v6  ;;  %v905_v42 = vpop.permute.xlu0 %904 }
 0x164   : > { %1062 = vst.msk [vmem:[%s1852_s17 + $0x78] sm:$0xff] %vm488_vm0, %v1030_v62  ;;  %v1000_v32 = vadd.f32 %v1844_v51, %v905_v42  ;;  %v2067_v62 = vmax.f32 %v1688_v54, 0.0  ;;  %v2070_v54 = vmax.f32 %v1776_v35, 0.0  ;;  %v2072_v35 = vmax.f32 %v1749_v47, 0.0 }
 0x165   : > { %v1023_v7 = vmul.f32 %v991_v50, %v2055_v13 }
 0x166   : > { %v1032_v2 = vmul.f32 %v1000_v32, %v2056_v30  ;;  %v870_v16 = vpop.permute.xlu1 %869 }
 0x167   : > { %1055 = vst.msk [vmem:[%s1852_s17 + $0x40] sm:$0xff] %vm488_vm0, %v1023_v7  ;;  %v993_v44 = vadd.f32 %v1844_v51, %v870_v16  ;;  %v915_v63 = vpop.permute.xlu0 %914  ;;  %v2069_v7 = vmax.f32 %v1708_v27, 0.0 }
 0x168   : > { %1064 = vst.msk [vmem:[%s1852_s17 + $0x88] sm:$0xff] %vm488_vm0, %v1032_v2  ;;  %v1002_v3 = vadd.f32 %v1844_v51, %v915_v63 }
 0x169   : > { %v1025_v60 = vmul.f32 %v993_v44, %v2057_v18  ;;  %v2071_v44 = vmax.f32 %v1729_v59, 0.0 }
 0x16a   : > { %v1034_v25 = vmul.f32 %v1002_v3, %v2058_v58  ;;  %v880_v46 = vpop.permute.xlu1 %879 }
 0x16b   : > { %1057 = vst.msk [vmem:[%s1852_s17 + $0x50] sm:$0xff] %vm488_vm0, %v1025_v60  ;;  %v995_v11 = vadd.f32 %v1844_v51, %v880_v46  ;;  %v925_v21 = vpop.permute.xlu0 %924 }
 0x16c   : > { %1066 = vst.msk [vmem:[%s1852_s17 + $0x98] sm:$0xff] %vm488_vm0, %v1034_v25  ;;  %v1004_v28 = vadd.f32 %v1844_v51, %v925_v21  ;;  %v2073_v25 = vmax.f32 %v1762_v49, 0.0  ;;  %v2074_v21 = vmax.f32 %v1784_v48, 0.0 }
 0x16d   : > { %v1027_v17 = vmul.f32 %v995_v11, %v2059_v40 }
 0x16e   : > { %v1036_v24 = vmul.f32 %v1004_v28, %v2060_v15  ;;  %v890_v5 = vpop.permute.xlu1 %889 }
 0x16f   : > { %1059 = vst.msk [vmem:[%s1852_s17 + $0x60] sm:$0xff] %vm488_vm0, %v1027_v17  ;;  %v997_v14 = vadd.f32 %v1844_v51, %v890_v5  ;;  %v935_v4 = vpop.permute.xlu0 %934 }
 0x170   : > { %1068 = vst.msk [vmem:[%s1852_s17 + $0xa8] sm:$0xff] %vm488_vm0, %v1036_v24  ;;  %v1006_v19 = vadd.f32 %v1844_v51, %v935_v4 }
 0x171   : > { %v1029_v33 = vmul.f32 %v997_v14, %v2061_v26 }
 0x172   : > { %v1038_v0 = vmul.f32 %v1006_v19, %v2062_v41  ;;  %v900_v39 = vpop.permute.xlu1 %899 }
 0x173   : > { %1061 = vst.msk [vmem:[%s1852_s17 + $0x70] sm:$0xff] %vm488_vm0, %v1029_v33  ;;  %v999_v31 = vadd.f32 %v1844_v51, %v900_v39  ;;  %v945_v36 = vpop.permute.xlu0 %944 }
 0x174   : > { %1070 = vst.msk [vmem:[%s1852_s17 + $0xb8] sm:$0xff] %vm488_vm0, %v1038_v0  ;;  %v1008_v45 = vadd.f32 %v1844_v51, %v945_v36 }
 0x175   : > { %v1031_v1 = vmul.f32 %v999_v31, %v2063_v55 }
 0x176   : > { %v1040_v34 = vmul.f32 %v1008_v45, %v2064_v43  ;;  %v910_v8 = vpop.permute.xlu1 %909 }
 0x177   : > { %1063 = vst.msk [vmem:[%s1852_s17 + $0x80] sm:$0xff] %vm488_vm0, %v1031_v1  ;;  %v1001_v22 = vadd.f32 %v1844_v51, %v910_v8  ;;  %v955_v29 = vpop.permute.xlu0 %954 }
 0x178   : > { %1072 = vst.msk [vmem:[%s1852_s17 + $0xc8] sm:$0xff] %vm488_vm0, %v1040_v34  ;;  %v1010_v61 = vadd.f32 %v1844_v51, %v955_v29 }
 0x179   : > { %v1033_v37 = vmul.f32 %v1001_v22, %v2065_v10 }
 0x17a   : > { %v1042_v20 = vmul.f32 %v1010_v61, %v2066_v53  ;;  %v920_v38 = vpop.permute.xlu1 %919 }
 0x17b   : > { %1065 = vst.msk [vmem:[%s1852_s17 + $0x90] sm:$0xff] %vm488_vm0, %v1033_v37  ;;  %v1003_v56 = vadd.f32 %v1844_v51, %v920_v38  ;;  %v965_v57 = vpop.permute.xlu0 %964 }
 0x17c   : > { %1074 = vst.msk [vmem:[%s1852_s17 + $0xd8] sm:$0xff] %vm488_vm0, %v1042_v20  ;;  %v1012_v52 = vadd.f32 %v1844_v51, %v965_v57 }
 0x17d   : > { %v1035_v6 = vmul.f32 %v1003_v56, %v2067_v62 }
 0x17e   : > { %v1044_v9 = vmul.f32 %v1012_v52, %v2068_v23  ;;  %v930_v50 = vpop.permute.xlu1 %929 }
 0x17f   : > { %1067 = vst.msk [vmem:[%s1852_s17 + $0xa0] sm:$0xff] %vm488_vm0, %v1035_v6  ;;  %v1005_v42 = vadd.f32 %v1844_v51, %v930_v50  ;;  %v975_v32 = vpop.permute.xlu0 %974 }
 0x180   : > { %1076 = vst.msk [vmem:[%s1852_s17 + $0xe8] sm:$0xff] %vm488_vm0, %v1044_v9  ;;  %v1014_v13 = vadd.f32 %v1844_v51, %v975_v32 }
 0x181   : > { %v1037_v30 = vmul.f32 %v1005_v42, %v2069_v7 }
 0x182   : > { %v1046_v12 = vmul.f32 %v1014_v13, %v2070_v54  ;;  %v940_v2 = vpop.permute.xlu1 %939 }
 0x183   : > { %1069 = vst.msk [vmem:[%s1852_s17 + $0xb0] sm:$0xff] %vm488_vm0, %v1037_v30  ;;  %v1007_v16 = vadd.f32 %v1844_v51, %v940_v2 }
 0x184   : > { %1078 = vst.msk [vmem:[%s1852_s17 + $0xf8] sm:$0xff] %vm488_vm0, %v1046_v12 }
 0x185   : > { %v1039_v63 = vmul.f32 %v1007_v16, %v2071_v44 }
 0x186   : > { %v950_v3 = vpop.permute.xlu1 %949 }
 0x187   : > { %1071 = vst.msk [vmem:[%s1852_s17 + $0xc0] sm:$0xff] %vm488_vm0, %v1039_v63  ;;  %v1009_v27 = vadd.f32 %v1844_v51, %v950_v3 }
 0x189   : > { %v1041_v18 = vmul.f32 %v1009_v27, %v2072_v35 }
 0x18a   : > { %v960_v60 = vpop.permute.xlu1 %959 }
 0x18b   : > { %1073 = vst.msk [vmem:[%s1852_s17 + $0xd0] sm:$0xff] %vm488_vm0, %v1041_v18  ;;  %v1011_v58 = vadd.f32 %v1844_v51, %v960_v60 }
 0x18d   : > { %v1043_v46 = vmul.f32 %v1011_v58, %v2073_v25 }
 0x18e   : > { %v970_v11 = vpop.permute.xlu1 %969 }
 0x18f   : > { %1075 = vst.msk [vmem:[%s1852_s17 + $0xe0] sm:$0xff] %vm488_vm0, %v1043_v46  ;;  %v1013_v59 = vadd.f32 %v1844_v51, %v970_v11 }
 0x191   : > { %v1045_v28 = vmul.f32 %v1013_v59, %v2074_v21 }
 0x193   : > { %1077 = vst.msk [vmem:[%s1852_s17 + $0xf0] sm:$0xff] %vm488_vm0, %v1045_v28 }
 0x194 PF: > { %s18_s25 = sadd.s32 1, %s1402_s25   ;;  %s2075_s23 = smov %s1398_s24 }
 0x195   : > { %p15_p5 = scmp.ge.s32.totalorder %s18_s25, 4   ;;  %s2076_s24 = smov %s2078_s4 }
 0x197   :  { %17 = sbr.rel (!%p15_p5) target bundleno = 3 (0x3), region = 77 }

// kernel: decoder_forward.5
= control target key start
LH: loop header
LB: loop body
LE: loop exit
PB: predicated region body
PF: predicated region fallthrough
CT: control target
= control target key end

     0   :  { %s2681_s18 = smov 0   ;;  %s4562_s0 = inlined_call_operand.vmem [shape: f32[2,16,16,8], index: 0, kind: input, shape index: {}]   ;;  %s4563_s1 = inlined_call_operand.vmem [shape: f32[1,8], index: 1, kind: input, shape index: {}]   ;;  %s4564_s2 = inlined_call_operand.vmem [shape: f32[1,8], index: 2, kind: input, shape index: {}]   ;;  %s4565_s3 = inlined_call_operand.vmem [shape: f32[72,8], index: 3, kind: input, shape index: {}]   ;;  %s4566_s4 = inlined_call_operand.vmem [shape: f32[2,256,8], index: 4, kind: output, shape index: {0}]   ;;  %s4567_s5 = inlined_call_operand.vmem [shape: f32[2,2,8], index: 5, kind: output, shape index: {1}]  }
   0x1 LB: > { %s2410_s19 = sadd.s32 4294967295, %s2640_s18   ;;  %p2414_p0 = scmp.ge.s32.totalorder %s2640_s18, 1  ;;  %s2640_s18 = sphi %s2681_s18, %s16_s18  }
   0x2   : > { %p190_p1 = scmp.lt.s32.totalorder %s2640_s18, 3 }
   0x4   : > { %p191_p2 = pnand %p2414_p0, %p190_p1 }
   0x6   : > { %194 = sbr.rel (%p191_p2) target bundleno = 891 (0x37b), region = 36 }
   0xb   : > { %vm378_vm0 = vcmask 64512   ;;  %vm381_vm1 = vcmask 58368   ;;  %p2691_p3 = scmp.lt.s32.totalorder %s2410_s19, 1  ;;  %v2642_v0 = vmov 0.0   ;;  %v2759_v1 = vld [vmem:[%s4563_s1] ss:$0 sm:$0xff] }
   0xc   : > { %379 = vst.msk [vmem:[#allocation2] sm:$0xff] %vm378_vm0, %v2642_v0  ;;  %380 = vst.msk [vmem:[#allocation2 + $0x8] sm:$0xff] %vm378_vm0, %v2642_v0  ;;  %v2771_v2 = vld [vmem:[%s4564_s2] ss:$0 sm:$0xff]  ;;  %vm569_vm2 = vcmask 1046528   ;;  %s2643_s29 = smov 8  }
   0xd   : > { %383 = vst.msk [vmem:[#allocation2 + $0x18] sm:$0xff] %vm378_vm0, %v2642_v0  ;;  %384 = vst.msk [vmem:[#allocation2 + $0x20] sm:$0xff] %vm378_vm0, %v2642_v0  ;;  %s4818_s19 = smov (!%p2691_p3, %s2410_s19), 1  ;;  %vm650_vm3 = vcmask 1045504   ;;  %s2644_s30 = smov 16   ;;  %vm1557_vm4 = vcmask 130048  }
   0xe   : > { %386 = vst.msk [vmem:[#allocation2 + $0x30] sm:$0xff] %vm378_vm0, %v2642_v0  ;;  %387 = vst.msk [vmem:[#allocation2 + $0x38] sm:$0xff] %vm378_vm0, %v2642_v0  ;;  %s2456_s21 = sshll.u32 %s4818_s19, 8  ;;  %s2645_s6 = smov 24   ;;  %vm1590_vm5 = vcmask 195584   ;;  %vm1623_vm6 = vcmask 261120  }
   0xf   : > { %389 = vst.msk [vmem:[#allocation2 + $0x48] sm:$0xff] %vm378_vm0, %v2642_v0  ;;  %390 = vst.msk [vmem:[#allocation2 + $0x50] sm:$0xff] %vm378_vm0, %v2642_v0  ;;  %s2766_s26 = scalar_lea.vmem %s4562_s0, %s2456_s21  ;;  %s2646_s11 = smov 32   ;;  %vm1656_vm7 = vcmask 326656   ;;  %vm1722_vm8 = vcmask 457728   ;;  %vm1689_vm9 = vcmask 392192  }
  0x10   : > { %392 = vst.msk [vmem:[#allocation2 + $0x60] sm:$0xff] %vm378_vm0, %v2642_v0  ;;  %393 = vst.msk [vmem:[#allocation2 + $0x68] sm:$0xff] %vm378_vm0, %v2642_v0  ;;  %v238_v3 = vld [vmem:[%s2766_s26 + $0x10] sm:$0xff]  ;;  %v239_v4 = vld [vmem:[%s2766_s26 + $0x18] sm:$0xff]  ;;  %s2647_s16 = smov 40   ;;  %s2648_s22 = smov 48  }
  0x11   : > { %395 = vst.msk [vmem:[#allocation2 + $0x78] sm:$0xff] %vm378_vm0, %v2642_v0  ;;  %396 = vst.msk [vmem:[#allocation2 + $0x80] sm:$0xff] %vm378_vm0, %v2642_v0  ;;  %v236_v5 = vld [vmem:[%s2766_s26] sm:$0xff]  ;;  %v277_v6 = vmul.f32 %v2759_v1, %v238_v3  ;;  %v278_v7 = vmul.f32 %v2759_v1, %v239_v4  ;;  %v237_v8 = vld [vmem:[%s2766_s26 + $0x8] sm:$0xff]  ;;  %s2650_s7 = smov 56   ;;  %vm1755_vm10 = vcmask 523264  }
  0x12   : > { %398 = vst.msk [vmem:[#allocation2 + $0x90] sm:$0xff] %vm378_vm0, %v2642_v0  ;;  %399 = vst.msk [vmem:[#allocation2 + $0x98] sm:$0xff] %vm378_vm0, %v2642_v0  ;;  %v275_v9 = vmul.f32 %v2759_v1, %v236_v5  ;;  %v240_v10 = vld [vmem:[%s2766_s26 + $0x20] sm:$0xff]  ;;  %v241_v11 = vld [vmem:[%s2766_s26 + $0x28] sm:$0xff]  ;;  %v276_v15 = vmul.f32 %v2759_v1, %v237_v8  ;;  %vm1797_vm11 = vcmask 588800   ;;  %vm2289_vm12 = vcmask 1040384  }
  0x13   : > { %401 = vst.msk [vmem:[#allocation2 + $0xa8] sm:$0xff] %vm378_vm0, %v2642_v0  ;;  %402 = vst.msk [vmem:[#allocation2 + $0xb0] sm:$0xff] %vm378_vm0, %v2642_v0  ;;  %v2782_v12 = vld [vmem:[#allocation2] sm:$0xff]  ;;  %v2784_v13 = vld [vmem:[#allocation2 + $0x8] sm:$0xff]  ;;  %v279_v16 = vmul.f32 %v2759_v1, %v240_v10  ;;  %v280_v17 = vmul.f32 %v2759_v1, %v241_v11  ;;  %v316_v21 = vadd.f32 %v2771_v2, %v277_v6 }
  0x14   : > { %404 = vst.msk [vmem:[#allocation2 + $0xc0] sm:$0xff] %vm378_vm0, %v2642_v0  ;;  %405 = vst.msk [vmem:[#allocation2 + $0xc8] sm:$0xff] %vm378_vm0, %v2642_v0  ;;  %v570_v18 = vrot.slane %v2782_v12, 1  ;;  %v571_v19 = vrot.slane %v2784_v13, 1  ;;  %v242_v22 = vld [vmem:[%s2766_s26 + $0x30] sm:$0xff]  ;;  %v317_v23 = vadd.f32 %v2771_v2, %v278_v7  ;;  %v314_v24 = vadd.f32 %v2771_v2, %v275_v9  ;;  %v243_v27 = vld [vmem:[%s2766_s26 + $0x38] sm:$0xff] }
  0x15   : > { %407 = vst.msk [vmem:[#allocation2 + $0xd8] sm:$0xff] %vm378_vm0, %v2642_v0  ;;  %408 = vst.msk [vmem:[#allocation2 + $0xe0] sm:$0xff] %vm378_vm0, %v2642_v0  ;;  %v315_v25 = vadd.f32 %v2771_v2, %v276_v15  ;;  %v318_v26 = vadd.f32 %v2771_v2, %v279_v16  ;;  %v244_v28 = vld [vmem:[%s2766_s26 + $0x40] sm:$0xff]  ;;  %v245_v29 = vld [vmem:[%s2766_s26 + $0x48] sm:$0xff]  ;;  %v348_v32 = vmax.f32 %v316_v21, 0.0  ;;  %v319_v33 = vadd.f32 %v2771_v2, %v280_v17 }
  0x16   : > { %410 = vst.msk [vmem:[#allocation2 + $0xf0] sm:$0xff] %vm378_vm0, %v2642_v0  ;;  %411 = vst.msk [vmem:[#allocation2 + $0xf8] sm:$0xff] %vm378_vm0, %v2642_v0  ;;  %v572_v30 = vsel %vm569_vm2, %v570_v18, %v571_v19  ;;  %v246_v34 = vld [vmem:[%s2766_s26 + $0x50] sm:$0xff]  ;;  %v247_v35 = vld [vmem:[%s2766_s26 + $0x58] sm:$0xff]  ;;  %v349_v37 = vmax.f32 %v317_v23, 0.0  ;;  %v346_v38 = vmax.f32 %v314_v24, 0.0  ;;  %v281_v43 = vmul.f32 %v2759_v1, %v242_v22 }
  0x17   : > { %413 = vst.msk [vmem:[#allocation2 + $0x108] sm:$0xff] %vm378_vm0, %v2642_v0  ;;  %414 = vst.msk [vmem:[#allocation2 + $0x110] sm:$0xff] %vm378_vm0, %v2642_v0  ;;  %v248_v36 = vld [vmem:[%s2766_s26 + $0x60] sm:$0xff]  ;;  %757 = vrot.lane.b32.xlu0 %v572_v30, %s2643_s29  ;;  %v347_v39 = vmax.f32 %v315_v25, 0.0  ;;  %v350_v40 = vmax.f32 %v318_v26, 0.0  ;;  %v249_v41 = vld [vmem:[%s2766_s26 + $0x68] sm:$0xff]  ;;  %v282_v44 = vmul.f32 %v2759_v1, %v243_v27  ;;  %v283_v45 = vmul.f32 %v2759_v1, %v244_v28 }
  0x18   : > { %416 = vst.msk [vmem:[#allocation2 + $0x120] sm:$0xff] %vm378_vm0, %v2642_v0  ;;  %417 = vst.msk [vmem:[#allocation2 + $0x128] sm:$0xff] %vm378_vm0, %v2642_v0  ;;  %v351_v42 = vmax.f32 %v319_v33, 0.0  ;;  %v284_v46 = vmul.f32 %v2759_v1, %v245_v29  ;;  %v285_v47 = vmul.f32 %v2759_v1, %v246_v34  ;;  %v286_v48 = vmul.f32 %v2759_v1, %v247_v35  ;;  %v250_v58 = vld [vmem:[%s2766_s26 + $0x70] sm:$0xff]  ;;  %v251_v59 = vld [vmem:[%s2766_s26 + $0x78] sm:$0xff] }
  0x19   : > { %419 = vst.msk [vmem:[#allocation2 + $0x138] sm:$0xff] %vm378_vm0, %v2642_v0  ;;  %420 = vst.msk [vmem:[#allocation2 + $0x140] sm:$0xff] %vm378_vm0, %v2642_v0  ;;  %v287_v49 = vmul.f32 %v2759_v1, %v248_v36  ;;  %v320_v50 = vadd.f32 %v2771_v2, %v281_v43  ;;  %v321_v51 = vadd.f32 %v2771_v2, %v282_v44  ;;  %v252_v60 = vld [vmem:[%s2766_s26 + $0x80] sm:$0xff]  ;;  %v253_v3 = vld [vmem:[%s2766_s26 + $0x88] sm:$0xff] }
  0x1a   : > { %422 = vst.msk [vmem:[#allocation2 + $0x150] sm:$0xff] %vm378_vm0, %v2642_v0  ;;  %423 = vst.msk [vmem:[#allocation2 + $0x158] sm:$0xff] %vm378_vm0, %v2642_v0  ;;  %v322_v52 = vadd.f32 %v2771_v2, %v283_v45  ;;  %v288_v53 = vmul.f32 %v2759_v1, %v249_v41  ;;  %v323_v54 = vadd.f32 %v2771_v2, %v284_v46  ;;  %v254_v4 = vld [vmem:[%s2766_s26 + $0x90] sm:$0xff]  ;;  %v255_v18 = vld [vmem:[%s2766_s26 + $0x98] sm:$0xff] }
  0x1b   : > { %425 = vst.msk [vmem:[#allocation2 + $0x168] sm:$0xff] %vm378_vm0, %v2642_v0  ;;  %426 = vst.msk [vmem:[#allocation2 + $0x170] sm:$0xff] %vm378_vm0, %v2642_v0  ;;  %v324_v55 = vadd.f32 %v2771_v2, %v285_v47  ;;  %v325_v56 = vadd.f32 %v2771_v2, %v286_v48  ;;  %v326_v57 = vadd.f32 %v2771_v2, %v287_v49  ;;  %v352_v61 = vmax.f32 %v320_v50, 0.0  ;;  %v256_v41 = vld [vmem:[%s2766_s26 + $0xa0] sm:$0xff]  ;;  %v257_v47 = vld [vmem:[%s2766_s26 + $0xa8] sm:$0xff] }
  0x1c   : > { %428 = vst.msk [vmem:[#allocation2 + $0x180] sm:$0xff] %vm378_vm0, %v2642_v0  ;;  %429 = vst.msk [vmem:[#allocation2 + $0x188] sm:$0xff] %vm378_vm0, %v2642_v0  ;;  %v353_v62 = vmax.f32 %v321_v51, 0.0  ;;  %v354_v63 = vmax.f32 %v322_v52, 0.0  ;;  %v355_v5 = vmax.f32 %v323_v54, 0.0  ;;  %v289_v10 = vmul.f32 %v2759_v1, %v250_v58 }
  0x1d   : > { %431 = vst.msk [vmem:[#allocation2 + $0x198] sm:$0xff] %vm378_vm0, %v2642_v0  ;;  %432 = vst.msk [vmem:[#allocation2 + $0x1a0] sm:$0xff] %vm378_vm0, %v2642_v0  ;;  %v356_v6 = vmax.f32 %v324_v55, 0.0  ;;  %v357_v7 = vmax.f32 %v325_v56, 0.0  ;;  %v358_v8 = vmax.f32 %v326_v57, 0.0  ;;  %v290_v11 = vmul.f32 %v2759_v1, %v251_v59 }
  0x1e   : > { %382 = vst.msk [vmem:[#allocation2 + $0x10] sm:$0x3] %vm381_vm1, %v2642_v0  ;;  %385 = vst.msk [vmem:[#allocation2 + $0x28] sm:$0x3] %vm381_vm1, %v2642_v0  ;;  %v291_v15 = vmul.f32 %v2759_v1, %v252_v60  ;;  %v292_v17 = vmul.f32 %v2759_v1, %v253_v3  ;;  %v328_v24 = vadd.f32 %v2771_v2, %v289_v10  ;;  %v259_v10 = vld [vmem:[%s2766_s26 + $0xb8] sm:$0xff] }
  0x1f   : > { %388 = vst.msk [vmem:[#allocation2 + $0x40] sm:$0x3] %vm381_vm1, %v2642_v0  ;;  %391 = vst.msk [vmem:[#allocation2 + $0x58] sm:$0x3] %vm381_vm1, %v2642_v0  ;;  %v329_v25 = vadd.f32 %v2771_v2, %v290_v11  ;;  %v295_v60 = vmul.f32 %v2759_v1, %v256_v41  ;;  %v260_v11 = vld [vmem:[%s2766_s26 + $0xc0] sm:$0xff] }
  0x20   : > { %394 = vst.msk [vmem:[#allocation2 + $0x70] sm:$0x3] %vm381_vm1, %v2642_v0  ;;  %397 = vst.msk [vmem:[#allocation2 + $0x88] sm:$0x3] %vm381_vm1, %v2642_v0  ;;  %v330_v26 = vadd.f32 %v2771_v2, %v291_v15  ;;  %v360_v44 = vmax.f32 %v328_v24, 0.0 }
  0x21   : > { %400 = vst.msk [vmem:[#allocation2 + $0xa0] sm:$0x3] %vm381_vm1, %v2642_v0  ;;  %403 = vst.msk [vmem:[#allocation2 + $0xb8] sm:$0x3] %vm381_vm1, %v2642_v0  ;;  %v361_v45 = vmax.f32 %v329_v25, 0.0 }
  0x22   : > { %406 = vst.msk [vmem:[#allocation2 + $0xd0] sm:$0x3] %vm381_vm1, %v2642_v0  ;;  %409 = vst.msk [vmem:[#allocation2 + $0xe8] sm:$0x3] %vm381_vm1, %v2642_v0 }
  0x23   : > { %412 = vst.msk [vmem:[#allocation2 + $0x100] sm:$0x3] %vm381_vm1, %v2642_v0  ;;  %415 = vst.msk [vmem:[#allocation2 + $0x118] sm:$0x3] %vm381_vm1, %v2642_v0 }
  0x24   : > { %418 = vst.msk [vmem:[#allocation2 + $0x130] sm:$0x3] %vm381_vm1, %v2642_v0  ;;  %421 = vst.msk [vmem:[#allocation2 + $0x148] sm:$0x3] %vm381_vm1, %v2642_v0 }
  0x25   : > { %424 = vst.msk [vmem:[#allocation2 + $0x160] sm:$0x3] %vm381_vm1, %v2642_v0  ;;  %427 = vst.msk [vmem:[#allocation2 + $0x178] sm:$0x3] %vm381_vm1, %v2642_v0  ;;  %v2786_v14 = vld [vmem:[#allocation2 + $0x10] sm:$0x3] }
  0x26   : > { %430 = vst.msk [vmem:[#allocation2 + $0x190] sm:$0x3] %vm381_vm1, %v2642_v0  ;;  %433 = vst.msk [vmem:[#allocation2 + $0x1a8] sm:$0x3] %vm381_vm1, %v2642_v0  ;;  %v573_v20 = vrot.slane %v2786_v14, 1  ;;  %v327_v0 = vadd.f32 %v2771_v2, %v288_v53  ;;  %v362_v53 = vmax.f32 %v330_v26, 0.0 }
  0x27   : > { %437 = vst.msk [vmem:[#allocation2 + $0x31] sm:$0xff] %vm378_vm0, %v348_v32  ;;  %438 = vst.msk [vmem:[#allocation2 + $0x39] sm:$0xff] %vm378_vm0, %v349_v37  ;;  %v331_v32 = vadd.f32 %v2771_v2, %v292_v17  ;;  %v294_v37 = vmul.f32 %v2759_v1, %v255_v18 }
  0x28   : > { %v574_v31 = vsel %vm569_vm2, %v571_v19, %v573_v20  ;;  %435 = vst.msk [vmem:[#allocation2 + $0x19] sm:$0xff] %vm378_vm0, %v346_v38  ;;  %436 = vst.msk [vmem:[#allocation2 + $0x21] sm:$0xff] %vm378_vm0, %v347_v39  ;;  %v359_v9 = vmax.f32 %v327_v0, 0.0  ;;  %v293_v19 = vmul.f32 %v2759_v1, %v254_v4 }
  0x29   : > { %439 = vst.msk [vmem:[#allocation2 + $0x49] sm:$0xff] %vm378_vm0, %v350_v40  ;;  %440 = vst.msk [vmem:[#allocation2 + $0x51] sm:$0xff] %vm378_vm0, %v351_v42  ;;  %759 = vrot.lane.b32.xlu0 %v574_v31, %s2643_s29  ;;  %v363_v54 = vmax.f32 %v331_v32, 0.0  ;;  %v333_v58 = vadd.f32 %v2771_v2, %v294_v37  ;;  %v298_v37 = vmul.f32 %v2759_v1, %v259_v10 }
  0x2a   : > { %441 = vst.msk [vmem:[#allocation2 + $0x61] sm:$0xff] %vm378_vm0, %v352_v61  ;;  %442 = vst.msk [vmem:[#allocation2 + $0x69] sm:$0xff] %vm378_vm0, %v353_v62  ;;  %v332_v46 = vadd.f32 %v2771_v2, %v293_v19  ;;  %v296_v61 = vmul.f32 %v2759_v1, %v257_v47  ;;  %v262_v47 = vld [vmem:[%s2766_s26 + $0xd0] sm:$0xff] }
  0x2b   : > { %443 = vst.msk [vmem:[#allocation2 + $0x79] sm:$0xff] %vm378_vm0, %v354_v63  ;;  %444 = vst.msk [vmem:[#allocation2 + $0x81] sm:$0xff] %vm378_vm0, %v355_v5 }
  0x2c   : > { %445 = vst.msk [vmem:[#allocation2 + $0x91] sm:$0xff] %vm378_vm0, %v356_v6  ;;  %446 = vst.msk [vmem:[#allocation2 + $0x99] sm:$0xff] %vm378_vm0, %v357_v7  ;;  %v364_v3 = vmax.f32 %v332_v46, 0.0  ;;  %v335_v24 = vadd.f32 %v2771_v2, %v296_v61 }
  0x2d   : > { %447 = vst.msk [vmem:[#allocation2 + $0xa9] sm:$0xff] %vm378_vm0, %v358_v8  ;;  %448 = vst.msk [vmem:[#allocation2 + $0xb1] sm:$0xff] %vm378_vm0, %v359_v9  ;;  %v258_v8 = vld [vmem:[%s2766_s26 + $0xb0] sm:$0xff]  ;;  %v365_v9 = vmax.f32 %v333_v58, 0.0 }
  0x2e   : > { %v2845_v16 = vld [vmem:[#allocation2 + $0x30] sm:$0xff]  ;;  %v2854_v20 = vld [vmem:[#allocation2 + $0x38] sm:$0xff]  ;;  %v2877_v36 = vld [vmem:[#allocation2 + $0x40] sm:$0x3]  ;;  %449 = vst.msk [vmem:[#allocation2 + $0xc1] sm:$0xff] %vm378_vm0, %v360_v44 }
  0x2f   : > { %v580_v21 = vrot.slane %v2845_v16, 1  ;;  %v2857_v22 = vld [vmem:[#allocation2 + $0x18] sm:$0xff]  ;;  %v2859_v23 = vld [vmem:[#allocation2 + $0x20] sm:$0xff]  ;;  %v581_v27 = vrot.slane %v2854_v20, 1  ;;  %v2875_v35 = vld [vmem:[#allocation2 + $0x28] sm:$0x3] }
  0x30   : > { %v575_v28 = vrot.slane %v2857_v22, 1  ;;  %v576_v29 = vrot.slane %v2859_v23, 1  ;;  %v2868_v30 = vld [vmem:[#allocation2 + $0x48] sm:$0xff]  ;;  %v2870_v31 = vld [vmem:[#allocation2 + $0x50] sm:$0xff]  ;;  %v578_v40 = vrot.slane %v2875_v35, 1  ;;  %v583_v42 = vrot.slane %v2877_v36, 1 }
  0x31   : > { %v585_v33 = vrot.slane %v2868_v30, 1  ;;  %v586_v34 = vrot.slane %v2870_v31, 1  ;;  %v2881_v38 = vsel %vm569_vm2, %v580_v21, %v581_v27  ;;  %v2893_v43 = vld [vmem:[#allocation2 + $0x58] sm:$0x3]  ;;  %v2903_v50 = vld [vmem:[#allocation2 + $0x60] sm:$0xff]  ;;  %v2905_v51 = vld [vmem:[#allocation2 + $0x68] sm:$0xff]  ;;  %v334_v21 = vadd.f32 %v2771_v2, %v295_v60 }
  0x32   : > { %v2884_v39 = vsel %vm569_vm2, %v575_v28, %v576_v29  ;;  %765 = vrot.lane.b32.xlu0 %v2881_v38, %s2643_s29  ;;  %v2901_v49 = vsel %vm569_vm2, %v576_v29, %v578_v40  ;;  %v2907_v52 = vld [vmem:[#allocation2 + $0x78] sm:$0xff]  ;;  %v590_v55 = vrot.slane %v2903_v50, 1  ;;  %v591_v56 = vrot.slane %v2905_v51, 1  ;;  %v2911_v57 = vld [vmem:[#allocation2 + $0x80] sm:$0xff]  ;;  %450 = vst.msk [vmem:[#allocation2 + $0xc9] sm:$0xff] %vm378_vm0, %v361_v45  ;;  %451 = vst.msk [vmem:[#allocation2 + $0xd9] sm:$0xff] %vm378_vm0, %v362_v53 }
  0x33   : > { %761 = vrot.lane.b32.xlu1 %v2884_v39, %s2643_s29  ;;  %v2898_v48 = vsel %vm569_vm2, %v585_v33, %v586_v34  ;;  %v588_v59 = vrot.slane %v2893_v43, 1  ;;  %452 = vst.msk [vmem:[#allocation2 + $0xe1] sm:$0xff] %vm378_vm0, %v363_v54  ;;  %v595_v62 = vrot.slane %v2907_v52, 1  ;;  %v596_v63 = vrot.slane %v2911_v57, 1  ;;  %v2927_v0 = vld [vmem:[#allocation2 + $0x90] sm:$0xff]  ;;  %v2935_v6 = vld [vmem:[#allocation2 + $0x98] sm:$0xff] }
  0x34   : > { %4645 = vst [vmem:[#allocation3_spill] sm:$0xff] %v2898_v48  ;;  %v2930_v4 = vsel %vm569_vm2, %v590_v55, %v591_v56  ;;  %v2933_v5 = vsel %vm569_vm2, %v581_v27, %v583_v42  ;;  %v2937_v7 = vld [vmem:[#allocation2 + $0x70] sm:$0x3]  ;;  %453 = vst.msk [vmem:[#allocation2 + $0xf1] sm:$0xff] %vm378_vm0, %v364_v3  ;;  %v600_v17 = vrot.slane %v2927_v0, 1  ;;  %v2947_v18 = vld [vmem:[#allocation2 + $0xa8] sm:$0xff]  ;;  %v297_v28 = vmul.f32 %v2759_v1, %v258_v8 }
  0x35   : > { %4646 = vst [vmem:[#allocation4_spill] sm:$0xff] %v2930_v4  ;;  %v2944_v15 = vsel %vm569_vm2, %v586_v34, %v588_v59  ;;  %v2949_v19 = vld [vmem:[#allocation2 + $0xb0] sm:$0xff]  ;;  %v2960_v25 = vsel %vm569_vm2, %v595_v62, %v596_v63  ;;  %v601_v26 = vrot.slane %v2935_v6, 1  ;;  %v593_v27 = vrot.slane %v2937_v7, 1  ;;  %454 = vst.msk [vmem:[#allocation2 + $0xf9] sm:$0xff] %vm378_vm0, %v365_v9  ;;  %v261_v29 = vld [vmem:[%s2766_s26 + $0xc8] sm:$0xff] }
  0x36   : > { %769 = vrot.lane.b32.xlu0 %v2898_v48, %s2643_s29  ;;  %4647 = vst [vmem:[#allocation5_spill] sm:$0xff] %v2944_v15  ;;  %4648 = vst [vmem:[#allocation6_spill] sm:$0xff] %v2960_v25  ;;  %v2967_v32 = vld [vmem:[#allocation2 + $0x88] sm:$0x3]  ;;  %v366_v33 = vmax.f32 %v334_v21, 0.0  ;;  %v367_v34 = vmax.f32 %v335_v24, 0.0  ;;  %v299_v40 = vmul.f32 %v2759_v1, %v260_v11  ;;  %v336_v44 = vadd.f32 %v2771_v2, %v297_v28 }
  0x37   : > { %763 = vrot.lane.b32.xlu1 %v2901_v49, %s2643_s29  ;;  %v605_v41 = vrot.slane %v2947_v18, 1  ;;  %v606_v42 = vrot.slane %v2949_v19, 1  ;;  %v337_v45 = vadd.f32 %v2771_v2, %v298_v37  ;;  %v300_v46 = vmul.f32 %v2759_v1, %v261_v29  ;;  %v263_v53 = vld [vmem:[%s2766_s26 + $0xd8] sm:$0xff]  ;;  %v264_v59 = vld [vmem:[%s2766_s26 + $0xe0] sm:$0xff]  ;;  %v265_v60 = vld [vmem:[%s2766_s26 + $0xe8] sm:$0xff] }
  0x38   : > { %455 = vst.msk [vmem:[#allocation2 + $0x109] sm:$0xff] %vm378_vm0, %v366_v33  ;;  %456 = vst.msk [vmem:[#allocation2 + $0x111] sm:$0xff] %vm378_vm0, %v367_v34  ;;  %v2987_v54 = vsel %vm569_vm2, %v600_v17, %v601_v26  ;;  %v598_v55 = vrot.slane %v2967_v32, 1  ;;  %v368_v58 = vmax.f32 %v336_v44, 0.0  ;;  %v2993_v61 = vsel %vm569_vm2, %v591_v56, %v593_v27  ;;  %v2995_v62 = vld [vmem:[#allocation2 + $0xa0] sm:$0x3] }
  0x39   : > { %4649 = vst [vmem:[#allocation7_spill] sm:$0xff] %v2987_v54  ;;  %4650 = vst [vmem:[#allocation8_spill] sm:$0xff] %v2993_v61  ;;  %v369_v3 = vmax.f32 %v337_v45, 0.0  ;;  %v338_v8 = vadd.f32 %v2771_v2, %v299_v40  ;;  %v339_v9 = vadd.f32 %v2771_v2, %v300_v46  ;;  %v3002_v10 = vsel %vm569_vm2, %v605_v41, %v606_v42  ;;  %v3004_v11 = vld [vmem:[#allocation2 + $0xc0] sm:$0xff]  ;;  %v3006_v17 = vld [vmem:[#allocation2 + $0xc8] sm:$0xff] }
  0x3a   : > { %773 = vrot.lane.b32.xlu0 %v2930_v4, %s2643_s29  ;;  %4651 = vst [vmem:[#allocation9_spill] sm:$0xff] %v3002_v10  ;;  %457 = vst.msk [vmem:[#allocation2 + $0x121] sm:$0xff] %vm378_vm0, %v368_v58  ;;  %v301_v56 = vmul.f32 %v2759_v1, %v262_v47  ;;  %v302_v21 = vmul.f32 %v2759_v1, %v263_v53  ;;  %v303_v28 = vmul.f32 %v2759_v1, %v264_v59  ;;  %v3028_v44 = vld [vmem:[#allocation2 + $0xb8] sm:$0x3]  ;;  %v3036_v47 = vld [vmem:[#allocation2 + $0xe0] sm:$0xff] }
  0x3b   : > { %767 = vrot.lane.b32.xlu1 %v2933_v5, %s2643_s29  ;;  %458 = vst.msk [vmem:[#allocation2 + $0x129] sm:$0xff] %vm378_vm0, %v369_v3  ;;  %v370_v24 = vmax.f32 %v338_v8, 0.0  ;;  %v371_v27 = vmax.f32 %v339_v9, 0.0  ;;  %v304_v29 = vmul.f32 %v2759_v1, %v265_v60  ;;  %v3021_v33 = vsel %vm569_vm2, %v596_v63, %v598_v55  ;;  %v3034_v46 = vld [vmem:[#allocation2 + $0xd8] sm:$0xff] }
  0x3c   : > { %4652 = vst [vmem:[#allocation10_spill] sm:$0xff] %v3021_v33  ;;  %v603_v34 = vrot.slane %v2995_v62, 1  ;;  %v340_v37 = vadd.f32 %v2771_v2, %v301_v56  ;;  %v341_v40 = vadd.f32 %v2771_v2, %v302_v21  ;;  %v610_v41 = vrot.slane %v3004_v11, 1  ;;  %v3055_v56 = vld [vmem:[#allocation2 + $0xd0] sm:$0x3] }
  0x3d   : > { %v611_v1 = vrot.slane %v3006_v17, 1  ;;  %459 = vst.msk [vmem:[#allocation2 + $0x139] sm:$0xff] %vm378_vm0, %v370_v24  ;;  %460 = vst.msk [vmem:[#allocation2 + $0x141] sm:$0xff] %vm378_vm0, %v371_v27  ;;  %v342_v45 = vadd.f32 %v2771_v2, %v303_v28  ;;  %v343_v63 = vadd.f32 %v2771_v2, %v304_v29  ;;  %v608_v59 = vrot.slane %v3028_v44, 1  ;;  %v3058_v21 = vld [vmem:[#allocation2 + $0xf0] sm:$0xff]  ;;  %v3060_v24 = vld [vmem:[#allocation2 + $0xf8] sm:$0xff] }
  0x3e   : > { %777 = vrot.lane.b32.xlu0 %v2960_v25, %s2643_s29  ;;  %v372_v53 = vmax.f32 %v340_v37, 0.0  ;;  %v373_v55 = vmax.f32 %v341_v40, 0.0  ;;  %v3051_v3 = vsel %vm569_vm2, %v601_v26, %v603_v34  ;;  %v615_v8 = vrot.slane %v3034_v46, 1 }
  0x3f   : > { %771 = vrot.lane.b32.xlu1 %v2944_v15, %s2643_s29  ;;  %v374_v58 = vmax.f32 %v342_v45, 0.0  ;;  %v375_v2 = vmax.f32 %v343_v63, 0.0  ;;  %v3046_v60 = vsel %vm569_vm2, %v610_v41, %v611_v1  ;;  %4654 = vst [vmem:[#allocation12_spill] sm:$0xff] %v3051_v3  ;;  %v616_v9 = vrot.slane %v3036_v47, 1  ;;  %v3078_v37 = vld [vmem:[#allocation2 + $0x108] sm:$0xff]  ;;  %v3080_v40 = vld [vmem:[#allocation2 + $0x110] sm:$0xff] }
  0x40   : > { %461 = vst.msk [vmem:[#allocation2 + $0x151] sm:$0xff] %vm378_vm0, %v372_v53  ;;  %462 = vst.msk [vmem:[#allocation2 + $0x159] sm:$0xff] %vm378_vm0, %v373_v55  ;;  %v613_v26 = vrot.slane %v3055_v56, 1  ;;  %v3074_v28 = vsel %vm569_vm2, %v606_v42, %v608_v59  ;;  %v620_v29 = vrot.slane %v3058_v21, 1  ;;  %v621_v34 = vrot.slane %v3060_v24, 1 }
  0x41   : > { %4653 = vst [vmem:[#allocation11_spill] sm:$0xff] %v3046_v60  ;;  %463 = vst.msk [vmem:[#allocation2 + $0x169] sm:$0xff] %vm378_vm0, %v374_v58  ;;  %v3069_v27 = vsel %vm569_vm2, %v615_v8, %v616_v9  ;;  %v3082_v41 = vld [vmem:[#allocation2 + $0xe8] sm:$0x3]  ;;  %v625_v63 = vrot.slane %v3078_v37, 1  ;;  %v626_v53 = vrot.slane %v3080_v40, 1 }
  0x42   : > { %781 = vrot.lane.b32.xlu0 %v2987_v54, %s2643_s29  ;;  %464 = vst.msk [vmem:[#allocation2 + $0x171] sm:$0xff] %vm378_vm0, %v375_v2  ;;  %4655 = vst [vmem:[#allocation13_spill] sm:$0xff] %v3069_v27  ;;  %v3089_v45 = vsel %vm569_vm2, %v611_v1, %v613_v26  ;;  %v3092_v42 = vsel %vm569_vm2, %v620_v29, %v621_v34  ;;  %v618_v55 = vrot.slane %v3082_v41, 1  ;;  %v3097_v58 = vld [vmem:[#allocation2 + $0x100] sm:$0x3]  ;;  %v3101_v2 = vld [vmem:[#allocation2 + $0x128] sm:$0xff] }
  0x43   : > { %775 = vrot.lane.b32.xlu1 %v2993_v61, %s2643_s29  ;;  %4656 = vst [vmem:[#allocation14_spill] sm:$0xff] %v3074_v28  ;;  %4657 = vst [vmem:[#allocation15_spill] sm:$0xff] %v3089_v45  ;;  %v3099_v59 = vld [vmem:[#allocation2 + $0x120] sm:$0xff]  ;;  %v623_v1 = vrot.slane %v3097_v58, 1  ;;  %v3109_v8 = vsel %vm569_vm2, %v625_v63, %v626_v53 }
  0x44   : > { %4658 = vst [vmem:[#allocation16_spill] sm:$0xff] %v3092_v42  ;;  %4659 = vst [vmem:[#allocation17_spill] sm:$0xff] %v3109_v8  ;;  %v3112_v26 = vsel %vm569_vm2, %v616_v9, %v618_v55  ;;  %v630_v29 = vrot.slane %v3099_v59, 1 }
  0x45   : > { %4660 = vst [vmem:[#allocation18_spill] sm:$0xff] %v3112_v26  ;;  %v3127_v63 = vsel %vm569_vm2, %v621_v34, %v623_v1 }
  0x46   : > { %785 = vrot.lane.b32.xlu0 %v3002_v10, %s2643_s29  ;;  %4661 = vst [vmem:[#allocation19_spill] sm:$0xff] %v3127_v63 }
  0x47   : > { %779 = vrot.lane.b32.xlu1 %v3021_v33, %s2643_s29  ;;  %v3137_v54 = vld [vmem:[#allocation2 + $0x150] sm:$0xff]  ;;  %v3173_v15 = vld [vmem:[#allocation2 + $0x160] sm:$0x3] }
  0x48   : > { %v3154_v25 = vld [vmem:[#allocation2 + $0x168] sm:$0xff] }
  0x49   : > { %v3156_v61 = vld [vmem:[#allocation2 + $0x170] sm:$0xff]  ;;  %v3188_v48 = vld [vmem:[#allocation2 + $0x178] sm:$0x3] }
  0x4a   : > { %789 = vrot.lane.b32.xlu0 %v3046_v60, %s2643_s29  ;;  %v3116_v60 = vld [vmem:[#allocation2 + $0x138] sm:$0xff] }
  0x4b   : > { %783 = vrot.lane.b32.xlu1 %v3051_v3, %s2643_s29  ;;  %v635_v55 = vrot.slane %v3116_v60, 1  ;;  %v3135_v3 = vld [vmem:[#allocation2 + $0x130] sm:$0x3] }
  0x4c   : > { %v633_v34 = vrot.slane %v3135_v3, 1 }
  0x4e   : > { %793 = vrot.lane.b32.xlu0 %v3069_v27, %s2643_s29  ;;  %v631_v27 = vrot.slane %v3101_v2, 1 }
  0x4f   : > { %787 = vrot.lane.b32.xlu1 %v3074_v28, %s2643_s29  ;;  %v3118_v28 = vld [vmem:[#allocation2 + $0x140] sm:$0xff] }
  0x50   : > { %v3130_v9 = vsel %vm569_vm2, %v630_v29, %v631_v27 }
  0x51   : > { %4662 = vst [vmem:[#allocation20_spill] sm:$0xff] %v3130_v9 }
  0x52   : > { %797 = vrot.lane.b32.xlu0 %v3092_v42, %s2643_s29  ;;  %v3120_v42 = vld [vmem:[#allocation2 + $0x118] sm:$0x3] }
  0x53   : > { %791 = vrot.lane.b32.xlu1 %v3089_v45, %s2643_s29  ;;  %v636_v45 = vrot.slane %v3118_v28, 1  ;;  %v628_v10 = vrot.slane %v3120_v42, 1 }
  0x55   : > { %v3147_v1 = vsel %vm569_vm2, %v635_v55, %v636_v45  ;;  %v3150_v29 = vsel %vm569_vm2, %v626_v53, %v628_v10  ;;  %v3165_v55 = vsel %vm569_vm2, %v631_v27, %v633_v34  ;;  %v645_v53 = vrot.slane %v3154_v25, 1 }
  0x56   : > { %801 = vrot.lane.b32.xlu0 %v3109_v8, %s2643_s29  ;;  %v3139_v8 = vld [vmem:[#allocation2 + $0x158] sm:$0xff]  ;;  %4663 = vst [vmem:[#allocation21_spill] sm:$0xff] %v3147_v1  ;;  %4664 = vst [vmem:[#allocation22_spill] sm:$0xff] %v3150_v29  ;;  %v651_v27 = vrot.slane %v2782_v12, 2  ;;  %v656_v12 = vrot.slane %v2857_v22, 2 }
  0x57   : > { %795 = vrot.lane.b32.xlu1 %v3112_v26, %s2643_s29  ;;  %v640_v26 = vrot.slane %v3137_v54, 1  ;;  %v641_v33 = vrot.slane %v3139_v8, 1  ;;  %4665 = vst [vmem:[#allocation23_spill] sm:$0xff] %v3165_v55 }
  0x59   : > { %v3168_v10 = vsel %vm569_vm2, %v640_v26, %v641_v33 }
  0x5a   : > { %805 = vrot.lane.b32.xlu0 %v3130_v9, %s2643_s29  ;;  %v3158_v9 = vld [vmem:[#allocation2 + $0x148] sm:$0x3]  ;;  %4666 = vst [vmem:[#allocation24_spill] sm:$0xff] %v3168_v10 }
  0x5b   : > { %799 = vrot.lane.b32.xlu1 %v3127_v63, %s2643_s29  ;;  %v646_v63 = vrot.slane %v3156_v61, 1  ;;  %v638_v4 = vrot.slane %v3158_v9, 1 }
  0x5d   : > { %v3181_v34 = vsel %vm569_vm2, %v645_v53, %v646_v63  ;;  %v3184_v26 = vsel %vm569_vm2, %v636_v45, %v638_v4  ;;  %v648_v45 = vrot.slane %v3188_v48, 1 }
  0x5e   : > { %809 = vrot.lane.b32.xlu0 %v3147_v1, %s2643_s29  ;;  %4667 = vst [vmem:[#allocation25_spill] sm:$0xff] %v3181_v34  ;;  %4668 = vst [vmem:[#allocation26_spill] sm:$0xff] %v3184_v26  ;;  %v652_v1 = vrot.slane %v2784_v13, 2  ;;  %v657_v13 = vrot.slane %v2859_v23, 2 }
  0x5f   : > { %803 = vrot.lane.b32.xlu1 %v3150_v29, %s2643_s29  ;;  %v643_v29 = vrot.slane %v3173_v15, 1 }
  0x60   : > { %v653_v53 = vsel %vm650_vm3, %v651_v27, %v652_v1  ;;  %v3209_v27 = vsel %vm569_vm2, %v646_v63, %v648_v45  ;;  %v659_v45 = vrot.slane %v2875_v35, 2  ;;  %v676_v35 = vrot.slane %v2907_v52, 2 }
  0x61   : > { %v3197_v4 = vsel %vm569_vm2, %v641_v33, %v643_v29  ;;  %4670 = vst [vmem:[#allocation28_spill] sm:$0xff] %v3209_v27  ;;  %v662_v33 = vrot.slane %v2854_v20, 2  ;;  %v654_v29 = vrot.slane %v2786_v14, 2 }
  0x62   : > { %813 = vrot.lane.b32.xlu0 %v3168_v10, %s2643_s29  ;;  %4669 = vst [vmem:[#allocation27_spill] sm:$0xff] %v3197_v4  ;;  %v3206_v10 = vsel %vm650_vm3, %v656_v12, %v657_v13 }
  0x63   : > { %807 = vrot.lane.b32.xlu1 %v3165_v55, %s2643_s29  ;;  %v655_v63 = vsel %vm650_vm3, %v652_v1, %v654_v29  ;;  %v664_v55 = vrot.slane %v2877_v36, 2  ;;  %v677_v1 = vrot.slane %v2911_v57, 2 }
  0x65   : > { %v3254_v36 = vsel %vm650_vm3, %v676_v35, %v677_v1 }
  0x66   : > { %817 = vrot.lane.b32.xlu0 %v3181_v34, %s2643_s29  ;;  %v661_v34 = vrot.slane %v2845_v16, 2  ;;  %4672 = vst [vmem:[#allocation30_spill] sm:$0xff] %v3254_v36 }
  0x67   : > { %811 = vrot.lane.b32.xlu1 %v3184_v26, %s2643_s29  ;;  %v671_v26 = vrot.slane %v2903_v50, 2 }
  0x68   : > { %v3220_v12 = vsel %vm650_vm3, %v661_v34, %v662_v33  ;;  %v672_v34 = vrot.slane %v2905_v51, 2 }
  0x6a   : > { %853 = vrot.lane.b32.xlu0 %v653_v53, %s2644_s30  ;;  %v666_v53 = vrot.slane %v2868_v30, 2  ;;  %v3243_v29 = vsel %vm650_vm3, %v671_v26, %v672_v34  ;;  %v681_v26 = vrot.slane %v2927_v0, 2 }
  0x6b   : > { %815 = vrot.lane.b32.xlu1 %v3197_v4, %s2643_s29  ;;  %v667_v4 = vrot.slane %v2870_v31, 2  ;;  %4671 = vst [vmem:[#allocation29_spill] sm:$0xff] %v3243_v29 }
  0x6d   : > { %v3228_v14 = vsel %vm650_vm3, %v666_v53, %v667_v4  ;;  %v669_v53 = vrot.slane %v2893_v43, 2  ;;  %v686_v43 = vrot.slane %v2947_v18, 2 }
  0x6e   : > { %857 = vrot.lane.b32.xlu0 %v3206_v10, %s2644_s30 }
  0x6f   : > { %819 = vrot.lane.b32.xlu1 %v3209_v27, %s2643_s29  ;;  %v3231_v27 = vsel %vm650_vm3, %v657_v13, %v659_v45  ;;  %v3246_v13 = vsel %vm650_vm3, %v662_v33, %v664_v55  ;;  %v682_v45 = vrot.slane %v2935_v6, 2  ;;  %v674_v55 = vrot.slane %v2937_v7, 2 }
  0x70   : > { %v687_v33 = vrot.slane %v2949_v19, 2 }
  0x71   : > { %v3269_v35 = vsel %vm650_vm3, %v681_v26, %v682_v45  ;;  %v691_v26 = vrot.slane %v3004_v11, 2 }
  0x72   : > { %861 = vrot.lane.b32.xlu0 %v3220_v12, %s2644_s30  ;;  %v3280_v7 = vsel %vm650_vm3, %v686_v43, %v687_v33  ;;  %v697_v43 = vrot.slane %v3036_v47, 2 }
  0x73   : > { %855 = vrot.lane.b32.xlu1 %v655_v63, %s2644_s30  ;;  %v3257_v63 = vsel %vm650_vm3, %v667_v4, %v669_v53  ;;  %v3272_v4 = vsel %vm650_vm3, %v672_v34, %v674_v55  ;;  %v679_v53 = vrot.slane %v2967_v32, 2  ;;  %4673 = vst [vmem:[#allocation31_spill] sm:$0xff] %v3280_v7  ;;  %v684_v34 = vrot.slane %v2995_v62, 2 }
  0x74   : > { %v696_v32 = vrot.slane %v3034_v46, 2  ;;  %v701_v62 = vrot.slane %v3058_v21, 2 }
  0x76   : > { %865 = vrot.lane.b32.xlu0 %v3228_v14, %s2644_s30 }
  0x77   : > { %859 = vrot.lane.b32.xlu1 %v3231_v27, %s2644_s30 }
  0x7a   : > { %869 = vrot.lane.b32.xlu0 %v3243_v29, %s2644_s30  ;;  %v692_v29 = vrot.slane %v3006_v17, 2 }
  0x7b   : > { %863 = vrot.lane.b32.xlu1 %v3246_v13, %s2644_s30 }
  0x7c   : > { %v3294_v55 = vsel %vm650_vm3, %v691_v26, %v692_v29 }
  0x7d   : > { %4674 = vst [vmem:[#allocation32_spill] sm:$0xff] %v3294_v55 }
  0x7e   : > { %873 = vrot.lane.b32.xlu0 %v3254_v36, %s2644_s30  ;;  %v3283_v36 = vsel %vm650_vm3, %v677_v1, %v679_v53  ;;  %v3297_v1 = vsel %vm650_vm3, %v682_v45, %v684_v34  ;;  %v689_v53 = vrot.slane %v3028_v44, 2  ;;  %v702_v45 = vrot.slane %v3060_v24, 2 }
  0x7f   : > { %867 = vrot.lane.b32.xlu1 %v3257_v63, %s2644_s30  ;;  %v694_v34 = vrot.slane %v3055_v56, 2  ;;  %v706_v44 = vrot.slane %v3078_v37, 2  ;;  %v711_v56 = vrot.slane %v3099_v59, 2 }
  0x80   : > { %v3310_v26 = vsel %vm650_vm3, %v687_v33, %v689_v53  ;;  %v707_v33 = vrot.slane %v3080_v40, 2  ;;  %v699_v53 = vrot.slane %v3082_v41, 2  ;;  %v716_v41 = vrot.slane %v3116_v60, 2 }
  0x81   : > { %v721_v60 = vrot.slane %v3137_v54, 2  ;;  %v726_v54 = vrot.slane %v3154_v25, 2 }
  0x82   : > { %877 = vrot.lane.b32.xlu0 %v3269_v35, %s2644_s30 }
  0x83   : > { %871 = vrot.lane.b32.xlu1 %v3272_v4, %s2644_s30 }
  0x86   : > { %881 = vrot.lane.b32.xlu0 %v3280_v7, %s2644_s30  ;;  %v3307_v7 = vsel %vm650_vm3, %v696_v32, %v697_v43  ;;  %v3323_v32 = vsel %vm650_vm3, %v692_v29, %v694_v34  ;;  %v712_v29 = vrot.slane %v3101_v2, 2  ;;  %v704_v34 = vrot.slane %v3097_v58, 2 }
  0x87   : > { %875 = vrot.lane.b32.xlu1 %v3283_v36, %s2644_s30  ;;  %4675 = vst [vmem:[#allocation33_spill] sm:$0xff] %v3307_v7  ;;  %v709_v2 = vrot.slane %v3120_v42, 2  ;;  %v714_v42 = vrot.slane %v3135_v3, 2  ;;  %v719_v3 = vrot.slane %v3158_v9, 2  ;;  %v729_v9 = vrot.slane %v3188_v48, 2 }
  0x8a   : > { %885 = vrot.lane.b32.xlu0 %v3294_v55, %s2644_s30  ;;  %v3320_v55 = vsel %vm650_vm3, %v701_v62, %v702_v45  ;;  %v3336_v62 = vsel %vm650_vm3, %v697_v43, %v699_v53  ;;  %v717_v43 = vrot.slane %v3118_v28, 2  ;;  %v3353_v53 = vpop.permute.xlu0 %757  ;;  %v722_v28 = vrot.slane %v3139_v8, 2 }
  0x8b   : > { %879 = vrot.lane.b32.xlu1 %v3297_v1, %s2644_s30  ;;  %4676 = vst [vmem:[#allocation34_spill] sm:$0xff] %v3320_v55  ;;  %v727_v8 = vrot.slane %v3156_v61, 2 }
  0x8c   : > { %v3361_v58 = vsel %vm650_vm3, %v716_v41, %v717_v43  ;;  %v3391_v25 = vsel %vm650_vm3, %v717_v43, %v719_v3 }
  0x8d   : > { %4677 = vst [vmem:[#allocation35_spill] sm:$0xff] %v3361_v58  ;;  %v3388_v41 = vsel %vm650_vm3, %v726_v54, %v727_v8  ;;  %4680 = vst [vmem:[#allocation38_spill] sm:$0xff] %v3391_v25 }
  0x8e   : > { %889 = vrot.lane.b32.xlu0 %v3307_v7, %s2644_s30  ;;  %v3333_v7 = vsel %vm650_vm3, %v706_v44, %v707_v33  ;;  %v3349_v44 = vsel %vm650_vm3, %v702_v45, %v704_v34  ;;  %v3364_v45 = vsel %vm650_vm3, %v707_v33, %v709_v2  ;;  %v3376_v34 = vsel %vm650_vm3, %v721_v60, %v722_v28 }
  0x8f   : > { %883 = vrot.lane.b32.xlu1 %v3310_v26, %s2644_s30  ;;  %4678 = vst [vmem:[#allocation36_spill] sm:$0xff] %v3376_v34  ;;  %v3379_v33 = vsel %vm650_vm3, %v712_v29, %v714_v42  ;;  %4679 = vst [vmem:[#allocation37_spill] sm:$0xff] %v3388_v41  ;;  %v724_v2 = vrot.slane %v3173_v15, 2  ;;  %v3415_v15 = vsel %vm650_vm3, %v727_v8, %v729_v9 }
  0x90   : > { %4682 = vst [vmem:[#allocation40_spill] sm:$0xff] %v3415_v15 }
  0x91   : > { %v3403_v61 = vsel %vm650_vm3, %v722_v28, %v724_v2 }
  0x92   : > { %893 = vrot.lane.b32.xlu0 %v3320_v55, %s2644_s30  ;;  %v3346_v55 = vsel %vm650_vm3, %v711_v56, %v712_v29  ;;  %4681 = vst [vmem:[#allocation39_spill] sm:$0xff] %v3403_v61 }
  0x93   : > { %887 = vrot.lane.b32.xlu1 %v3323_v32, %s2644_s30 }
  0x96   : > { %897 = vrot.lane.b32.xlu0 %v3333_v7, %s2644_s30 }
  0x97   : > { %891 = vrot.lane.b32.xlu1 %v3336_v62, %s2644_s30 }
  0x9a   : > { %901 = vrot.lane.b32.xlu0 %v3346_v55, %s2644_s30 }
  0x9b   : > { %895 = vrot.lane.b32.xlu1 %v3349_v44, %s2644_s30  ;;  %v3372_v56 = vpop.permute.xlu0 %759 }
  0x9e   : > { %905 = vrot.lane.b32.xlu0 %v3361_v58, %s2644_s30 }
  0x9f   : > { %899 = vrot.lane.b32.xlu1 %v3364_v45, %s2644_s30 }
  0xa2   : > { %909 = vrot.lane.b32.xlu0 %v3376_v34, %s2644_s30 }
  0xa3   : > { %903 = vrot.lane.b32.xlu1 %v3379_v33, %s2644_s30 }
  0xa4   : > { %v3394_v29 = vpop.permute.xlu0 %765 }
  0xa5   : > { %v3396_v60 = vpop.permute.xlu1 %761 }
  0xa6   : > { %913 = vrot.lane.b32.xlu0 %v3388_v41, %s2644_s30 }
  0xa7   : > { %907 = vrot.lane.b32.xlu1 %v3391_v25, %s2644_s30 }
  0xa8   : > { %v3406_v42 = vpop.permute.xlu0 %769 }
  0xa9   : > { %v3408_v43 = vpop.permute.xlu1 %763 }
  0xaa   : > { %949 = vrot.lane.b32.xlu0 %v2857_v22, %s2645_s6 }
  0xab   : > { %911 = vrot.lane.b32.xlu1 %v3403_v61, %s2644_s30 }
  0xac   : > { %v3417_v54 = vpop.permute.xlu0 %773 }
  0xad   : > { %v3419_v28 = vpop.permute.xlu1 %767 }
  0xae   : > { %953 = vrot.lane.b32.xlu0 %v2845_v16, %s2645_s6 }
  0xaf   : > { %915 = vrot.lane.b32.xlu1 %v3415_v15, %s2644_s30  ;;  %s2649_s30 = smov 64  }
  0xb0   : > { %v3425_v48 = vpop.permute.xlu0 %777 }
  0xb1   : > { %v3427_v3 = vpop.permute.xlu1 %771 }
  0xb2   : > { %957 = vrot.lane.b32.xlu0 %v2868_v30, %s2645_s6 }
  0xb3   : > { %951 = vrot.lane.b32.xlu1 %v2859_v23, %s2645_s6 }
  0xb4   : > { %v3433_v22 = vpop.permute.xlu0 %781 }
  0xb5   : > { %v3435_v8 = vpop.permute.xlu1 %775 }
  0xb6   : > { %961 = vrot.lane.b32.xlu0 %v2903_v50, %s2645_s6 }
  0xb7   : > { %955 = vrot.lane.b32.xlu1 %v2854_v20, %s2645_s6 }
  0xb8   : > { %v3441_v2 = vpop.permute.xlu0 %785 }
  0xb9   : > { %4683 = vst [vmem:[#allocation41_spill] sm:$0xff] %v3441_v2  ;;  %v3443_v9 = vpop.permute.xlu1 %779 }
  0xba   : > { %965 = vrot.lane.b32.xlu0 %v2907_v52, %s2645_s6 }
  0xbb   : > { %959 = vrot.lane.b32.xlu1 %v2870_v31, %s2645_s6 }
  0xbc   : > { %v3449_v23 = vpop.permute.xlu0 %789 }
  0xbd   : > { %4684 = vst [vmem:[#allocation42_spill] sm:$0xff] %v3449_v23  ;;  %v3451_v41 = vpop.permute.xlu1 %783 }
  0xbe   : > { %4685 = vst [vmem:[#allocation43_spill] sm:$0xff] %v3451_v41  ;;  %969 = vrot.lane.b32.xlu0 %v2927_v0, %s2645_s6 }
  0xbf   : > { %963 = vrot.lane.b32.xlu1 %v2905_v51, %s2645_s6 }
  0xc0   : > { %v3457_v15 = vpop.permute.xlu0 %793 }
  0xc1   : > { %4686 = vst [vmem:[#allocation44_spill] sm:$0xff] %v3457_v15  ;;  %v3459_v34 = vpop.permute.xlu1 %787 }
  0xc2   : > { %4687 = vst [vmem:[#allocation45_spill] sm:$0xff] %v3459_v34  ;;  %973 = vrot.lane.b32.xlu0 %v2947_v18, %s2645_s6 }
  0xc3   : > { %967 = vrot.lane.b32.xlu1 %v2911_v57, %s2645_s6 }
  0xc4   : > { %v3465_v61 = vpop.permute.xlu0 %797 }
  0xc5   : > { %4688 = vst [vmem:[#allocation46_spill] sm:$0xff] %v3465_v61  ;;  %v3467_v23 = vpop.permute.xlu1 %791 }
  0xc6   : > { %4689 = vst [vmem:[#allocation47_spill] sm:$0xff] %v3467_v23  ;;  %977 = vrot.lane.b32.xlu0 %v3004_v11, %s2645_s6 }
  0xc7   : > { %971 = vrot.lane.b32.xlu1 %v2935_v6, %s2645_s6 }
  0xc8   : > { %v3473_v2 = vpop.permute.xlu0 %801 }
  0xc9   : > { %4690 = vst [vmem:[#allocation48_spill] sm:$0xff] %v3473_v2  ;;  %v3475_v15 = vpop.permute.xlu1 %795 }
  0xca   : > { %4691 = vst [vmem:[#allocation49_spill] sm:$0xff] %v3475_v15  ;;  %981 = vrot.lane.b32.xlu0 %v3034_v46, %s2645_s6 }
  0xcb   : > { %975 = vrot.lane.b32.xlu1 %v2949_v19, %s2645_s6 }
  0xcc   : > { %v3481_v34 = vpop.permute.xlu0 %805 }
  0xcd   : > { %4692 = vst [vmem:[#allocation50_spill] sm:$0xff] %v3481_v34  ;;  %v3483_v61 = vpop.permute.xlu1 %799 }
  0xce   : > { %4693 = vst [vmem:[#allocation51_spill] sm:$0xff] %v3483_v61  ;;  %985 = vrot.lane.b32.xlu0 %v3058_v21, %s2645_s6  ;;  %v1796_v21 = vld [vmem:[%s4565_s3 + $0x40] sm:$0xff] }
  0xcf   : > { %979 = vrot.lane.b32.xlu1 %v3006_v17, %s2645_s6  ;;  %2499 = vmatprep.subr.mxu0 %v1796_v21 }
  0xd0   : > { %v3489_v23 = vpop.permute.xlu0 %809  ;;  %2565 = vmatprep.subr.mxu1 %v1796_v21  ;;  %2500 = vmatpush3.msra.mxu0 %v1796_v21 }
  0xd1   : > { %4694 = vst [vmem:[#allocation52_spill] sm:$0xff] %v3489_v23  ;;  %v3491_v2 = vpop.permute.xlu1 %803  ;;  %2574 = vmatpush3.msra.mxu1 %v1796_v21 }
  0xd2   : > { %4695 = vst [vmem:[#allocation53_spill] sm:$0xff] %v3491_v2  ;;  %989 = vrot.lane.b32.xlu0 %v3078_v37, %s2645_s6  ;;  %v4708_v2 = vld [vmem:[#allocation5_spill] sm:$0xff] }
  0xd3   : > { %983 = vrot.lane.b32.xlu1 %v3036_v47, %s2645_s6 }
  0xd4   : > { %v3497_v15 = vpop.permute.xlu0 %813 }
  0xd5   : > { %4696 = vst [vmem:[#allocation54_spill] sm:$0xff] %v3497_v15  ;;  %v3499_v34 = vpop.permute.xlu1 %807  ;;  %v1795_v15 = vld [vmem:[%s4565_s3 + $0x38] sm:$0xff] }
  0xd6   : > { %4697 = vst [vmem:[#allocation55_spill] sm:$0xff] %v3499_v34  ;;  %993 = vrot.lane.b32.xlu0 %v3099_v59, %s2645_s6  ;;  %2501 = vmatprep.subr.mxu0 %v1795_v15 }
  0xd7   : > { %987 = vrot.lane.b32.xlu1 %v3060_v24, %s2645_s6  ;;  %v1794_v24 = vld [vmem:[%s4565_s3 + $0x30] sm:$0xff]  ;;  %2566 = vmatprep.subr.mxu1 %v1795_v15 }
  0xd8   : > { %v3508_v37 = vpop.permute.xlu0 %817  ;;  %2502 = vmatpush3.msra.mxu0 %v1795_v15  ;;  %2575 = vmatpush3.msra.mxu1 %v1795_v15  ;;  %v1792_v15 = vld [vmem:[%s4565_s3 + $0x20] sm:$0xff] }
  0xd9   : > { %4698 = vst [vmem:[#allocation56_spill] sm:$0xff] %v3508_v37  ;;  %v3510_v23 = vpop.permute.xlu1 %811  ;;  %2503 = vmatprep.subr.mxu0 %v1794_v24  ;;  %2567 = vmatprep.subr.mxu1 %v1794_v24 }
  0xda   : > { %4699 = vst [vmem:[#allocation57_spill] sm:$0xff] %v3510_v23  ;;  %1047 = vrot.lane.b32.xlu0 %v2901_v49, %s2646_s11  ;;  %v1793_v49 = vld [vmem:[%s4565_s3 + $0x28] sm:$0xff]  ;;  %2504 = vmatpush3.msra.mxu0 %v1794_v24  ;;  %v4703_v23 = vld [vmem:[#allocation3_spill] sm:$0xff] }
  0xdb   : > { %991 = vrot.lane.b32.xlu1 %v3080_v40, %s2645_s6  ;;  %2576 = vmatpush3.msra.mxu1 %v1794_v24 }
  0xdc   : > { %v3522_v59 = vpop.permute.xlu0 %853  ;;  %2505 = vmatprep.subr.mxu0 %v1793_v49  ;;  %2568 = vmatprep.subr.mxu1 %v1793_v49 }
  0xdd   : > { %v3524_v21 = vpop.permute.xlu1 %815  ;;  %2506 = vmatpush3.msra.mxu0 %v1793_v49  ;;  %2577 = vmatpush3.msra.mxu1 %v1793_v49 }
  0xde   : > { %4700 = vst [vmem:[#allocation58_spill] sm:$0xff] %v3524_v21  ;;  %1143 = vrot.lane.b32.xlu0 %v3231_v27, %s2647_s16  ;;  %2507 = vmatprep.subr.mxu0 %v1792_v15 }
  0xdf   : > { %1045 = vrot.lane.b32.xlu1 %v2884_v39, %s2646_s11  ;;  %v1791_v39 = vld [vmem:[%s4565_s3 + $0x18] sm:$0xff]  ;;  %2569 = vmatprep.subr.mxu1 %v1792_v15 }
  0xe0   : > { %v3533_v40 = vpop.permute.xlu0 %857  ;;  %2508 = vmatpush3.msra.mxu0 %v1792_v15  ;;  %2578 = vmatpush3.msra.mxu1 %v1792_v15  ;;  %v1789_v15 = vld [vmem:[%s4565_s3 + $0x8] sm:$0xff] }
  0xe1   : > { %v3535_v37 = vpop.permute.xlu1 %819  ;;  %2509 = vmatprep.subr.mxu0 %v1791_v39  ;;  %2570 = vmatprep.subr.mxu1 %v1791_v39 }
  0xe2   : > { %4701 = vst [vmem:[#allocation59_spill] sm:$0xff] %v3535_v37  ;;  %1239 = vrot.lane.b32.xlu0 %v2854_v20, %s2648_s22  ;;  %v1790_v20 = vld [vmem:[%s4565_s3 + $0x10] sm:$0xff]  ;;  %2510 = vmatpush3.msra.mxu0 %v1791_v39 }
  0xe3   : > { %1141 = vrot.lane.b32.xlu1 %v3206_v10, %s2647_s16  ;;  %2579 = vmatpush3.msra.mxu1 %v1791_v39 }
  0xe4   : > { %v3547_v27 = vpop.permute.xlu0 %861  ;;  %2511 = vmatprep.subr.mxu0 %v1790_v20  ;;  %2571 = vmatprep.subr.mxu1 %v1790_v20 }
  0xe5   : > { %v3549_v24 = vpop.permute.xlu1 %855  ;;  %2512 = vmatpush3.msra.mxu0 %v1790_v20  ;;  %2580 = vmatpush3.msra.mxu1 %v1790_v20 }
  0xe6   : > { %1049 = vrot.lane.b32.xlu0 %v2881_v38, %s2646_s11  ;;  %2513 = vmatprep.subr.mxu0 %v1789_v15 }
  0xe7   : > { %1237 = vrot.lane.b32.xlu1 %v2845_v16, %s2648_s22  ;;  %v1788_v16 = vld [vmem:[%s4565_s3] sm:$0xff]  ;;  %2572 = vmatprep.subr.mxu1 %v1789_v15 }
  0xe8   : > { %v3558_v10 = vpop.permute.xlu0 %865  ;;  %2514 = vmatpush3.msra.mxu0 %v1789_v15  ;;  %2581 = vmatpush3.msra.mxu1 %v1789_v15 }
  0xe9   : > { %v3560_v49 = vpop.permute.xlu1 %859  ;;  %2515 = vmatprep.subr.mxu0 %v1788_v16  ;;  %2573 = vmatprep.subr.mxu1 %v1788_v16 }
  0xea   : > { %1429 = vrot.lane.b32.xlu0 %v3220_v12, %s2649_s30  ;;  %2516 = vmatpush3.msra.mxu0 %v1788_v16 }
  0xeb   : > { %1333 = vrot.lane.b32.xlu1 %v2881_v38, %s2650_s7  ;;  %2582 = vmatpush3.msra.mxu1 %v1788_v16 }
  0xec   : > { %v3572_v39 = vpop.permute.xlu0 %869 }
  0xed   : > { %v3574_v37 = vpop.permute.xlu1 %863 }
  0xee   : > { %1145 = vrot.lane.b32.xlu0 %v3220_v12, %s2647_s16 }
  0xef   : > { %1335 = vrot.lane.b32.xlu1 %v2933_v5, %s2650_s7 }
  0xf0   : > { %v3580_v38 = vpop.permute.xlu0 %873 }
  0xf1   : > { %v3582_v20 = vpop.permute.xlu1 %867 }
  0xf2   : > { %1147 = vrot.lane.b32.xlu0 %v3246_v13, %s2647_s16 }
  0xf3   : > { %1051 = vrot.lane.b32.xlu1 %v2933_v5, %s2646_s11 }
  0xf4   : > { %v3588_v15 = vpop.permute.xlu0 %877 }
  0xf5   : > { %v3590_v21 = vpop.permute.xlu1 %871 }
  0xf6   : > { %1243 = vrot.lane.b32.xlu0 %v2870_v31, %s2648_s22 }
  0xf7   : > { %1431 = vrot.lane.b32.xlu1 %v3246_v13, %s2649_s30 }
  0xf8   : > { %v3596_v12 = vpop.permute.xlu0 %881 }
  0xf9   : > { %4702 = vst [vmem:[#allocation60_spill] sm:$0xff] %v3596_v12  ;;  %v3598_v16 = vpop.permute.xlu1 %875 }
  0xfa   : > { %1053 = vrot.lane.b32.xlu0 %v4703_v23, %s2646_s11 }
  0xfb   : > { %1241 = vrot.lane.b32.xlu1 %v2868_v30, %s2648_s22 }
  0xfc   : > { %v3604_v5 = vpop.permute.xlu0 %885 }
  0xfd   : > { %4704 = vst [vmem:[#allocation3_spill] sm:$0xff] %v3604_v5  ;;  %v3606_v34 = vpop.permute.xlu1 %879 }
  0xfe   : > { %4705 = vst [vmem:[#allocation61_spill] sm:$0xff] %v3606_v34  ;;  %1433 = vrot.lane.b32.xlu0 %v3228_v14, %s2649_s30  ;;  %v4733_v34 = vld [vmem:[#allocation12_spill] sm:$0xff] }
  0xff   : > { %1337 = vrot.lane.b32.xlu1 %v4703_v23, %s2650_s7 }
 0x100   : > { %v3612_v31 = vpop.permute.xlu0 %889 }
 0x101   : > { %4706 = vst [vmem:[#allocation62_spill] sm:$0xff] %v3612_v31  ;;  %v3614_v13 = vpop.permute.xlu1 %883 }
 0x102   : > { %4707 = vst [vmem:[#allocation63_spill] sm:$0xff] %v3614_v13  ;;  %1149 = vrot.lane.b32.xlu0 %v3228_v14, %s2647_s16  ;;  %v4729_v13 = vld [vmem:[#allocation7_spill] sm:$0xff] }
 0x103   : > { %1339 = vrot.lane.b32.xlu1 %v4708_v2, %s2650_s7 }
 0x104   : > { %v3620_v30 = vpop.permute.xlu0 %893 }
 0x105   : > { %4709 = vst [vmem:[#allocation5_spill] sm:$0xff] %v3620_v30  ;;  %v3622_v61 = vpop.permute.xlu1 %887 }
 0x106   : > { %4710 = vst [vmem:[#allocation64_spill] sm:$0xff] %v3622_v61  ;;  %1151 = vrot.lane.b32.xlu0 %v3257_v63, %s2647_s16  ;;  %v4715_v61 = vld [vmem:[#allocation4_spill] sm:$0xff] }
 0x107   : > { %1055 = vrot.lane.b32.xlu1 %v4708_v2, %s2646_s11 }
 0x108   : > { %v3628_v23 = vpop.permute.xlu0 %897 }
 0x109   : > { %4711 = vst [vmem:[#allocation65_spill] sm:$0xff] %v3628_v23  ;;  %v3630_v31 = vpop.permute.xlu1 %891 }
 0x10a   : > { %4712 = vst [vmem:[#allocation66_spill] sm:$0xff] %v3630_v31  ;;  %1247 = vrot.lane.b32.xlu0 %v2905_v51, %s2648_s22  ;;  %v4718_v31 = vld [vmem:[#allocation29_spill] sm:$0xff] }
 0x10b   : > { %1435 = vrot.lane.b32.xlu1 %v3257_v63, %s2649_s30 }
 0x10c   : > { %v3636_v14 = vpop.permute.xlu0 %901 }
 0x10d   : > { %4713 = vst [vmem:[#allocation67_spill] sm:$0xff] %v3636_v14  ;;  %v3638_v30 = vpop.permute.xlu1 %895  ;;  %v4721_v14 = vld [vmem:[#allocation8_spill] sm:$0xff] }
 0x10e   : > { %4714 = vst [vmem:[#allocation68_spill] sm:$0xff] %v3638_v30  ;;  %1057 = vrot.lane.b32.xlu0 %v4715_v61, %s2646_s11 }
 0x10f   : > { %1245 = vrot.lane.b32.xlu1 %v2903_v50, %s2648_s22 }
 0x110   : > { %v3644_v2 = vpop.permute.xlu0 %905 }
 0x111   : > { %4716 = vst [vmem:[#allocation4_spill] sm:$0xff] %v3644_v2  ;;  %v3646_v23 = vpop.permute.xlu1 %899 }
 0x112   : > { %4717 = vst [vmem:[#allocation69_spill] sm:$0xff] %v3646_v23  ;;  %1437 = vrot.lane.b32.xlu0 %v4718_v31, %s2649_s30 }
 0x113   : > { %1341 = vrot.lane.b32.xlu1 %v4715_v61, %s2650_s7 }
 0x114   : > { %v3652_v51 = vpop.permute.xlu0 %909 }
 0x115   : > { %4719 = vst [vmem:[#allocation29_spill] sm:$0xff] %v3652_v51  ;;  %v3654_v63 = vpop.permute.xlu1 %903 }
 0x116   : > { %4720 = vst [vmem:[#allocation70_spill] sm:$0xff] %v3654_v63  ;;  %1153 = vrot.lane.b32.xlu0 %v4718_v31, %s2647_s16 }
 0x117   : > { %1343 = vrot.lane.b32.xlu1 %v4721_v14, %s2650_s7 }
 0x118   : > { %v3660_v50 = vpop.permute.xlu0 %913 }
 0x119   : > { %4722 = vst [vmem:[#allocation8_spill] sm:$0xff] %v3660_v50  ;;  %v3662_v2 = vpop.permute.xlu1 %907 }
 0x11a   : > { %4723 = vst [vmem:[#allocation71_spill] sm:$0xff] %v3662_v2  ;;  %1155 = vrot.lane.b32.xlu0 %v3272_v4, %s2647_s16  ;;  %v4726_v2 = vld [vmem:[#allocation6_spill] sm:$0xff] }
 0x11b   : > { %1059 = vrot.lane.b32.xlu1 %v4721_v14, %s2646_s11 }
 0x11c   : > { %v3668_v61 = vpop.permute.xlu0 %949 }
 0x11d   : > { %v3670_v51 = vpop.permute.xlu1 %911 }
 0x11e   : > { %4724 = vst [vmem:[#allocation72_spill] sm:$0xff] %v3670_v51  ;;  %1251 = vrot.lane.b32.xlu0 %v2911_v57, %s2648_s22  ;;  %v4727_v51 = vld [vmem:[#allocation30_spill] sm:$0xff] }
 0x11f   : > { %1439 = vrot.lane.b32.xlu1 %v3272_v4, %s2649_s30 }
 0x120   : > { %v3676_v31 = vpop.permute.xlu0 %953 }
 0x121   : > { %v3678_v50 = vpop.permute.xlu1 %915 }
 0x122   : > { %4725 = vst [vmem:[#allocation73_spill] sm:$0xff] %v3678_v50  ;;  %1061 = vrot.lane.b32.xlu0 %v4726_v2, %s2646_s11  ;;  %v4728_v50 = vld [vmem:[#allocation10_spill] sm:$0xff] }
 0x123   : > { %1249 = vrot.lane.b32.xlu1 %v2907_v52, %s2648_s22 }
 0x124   : > { %v3684_v14 = vpop.permute.xlu0 %957 }
 0x125   : > { %v3686_v63 = vpop.permute.xlu1 %951 }
 0x126   : > { %1441 = vrot.lane.b32.xlu0 %v4727_v51, %s2649_s30 }
 0x127   : > { %1345 = vrot.lane.b32.xlu1 %v4726_v2, %s2650_s7 }
 0x128   : > { %v3692_v57 = vpop.permute.xlu0 %961 }
 0x129   : > { %v3694_v4 = vpop.permute.xlu1 %955 }
 0x12a   : > { %1157 = vrot.lane.b32.xlu0 %v4727_v51, %s2647_s16 }
 0x12b   : > { %1347 = vrot.lane.b32.xlu1 %v4728_v50, %s2650_s7 }
 0x12c   : > { %v3700_v52 = vpop.permute.xlu0 %965 }
 0x12d   : > { %v3702_v23 = vpop.permute.xlu1 %959 }
 0x12e   : > { %1159 = vrot.lane.b32.xlu0 %v3283_v36, %s2647_s16 }
 0x12f   : > { %1063 = vrot.lane.b32.xlu1 %v4728_v50, %s2646_s11 }
 0x130   : > { %v3708_v2 = vpop.permute.xlu0 %969 }
 0x131   : > { %v3710_v30 = vpop.permute.xlu1 %963 }
 0x132   : > { %1255 = vrot.lane.b32.xlu0 %v2935_v6, %s2648_s22 }
 0x133   : > { %1443 = vrot.lane.b32.xlu1 %v3283_v36, %s2649_s30 }
 0x134   : > { %v3716_v51 = vpop.permute.xlu0 %973 }
 0x135   : > { %v3718_v5 = vpop.permute.xlu1 %967 }
 0x136   : > { %1065 = vrot.lane.b32.xlu0 %v4729_v13, %s2646_s11 }
 0x137   : > { %1253 = vrot.lane.b32.xlu1 %v2927_v0, %s2648_s22 }
 0x138   : > { %v3724_v50 = vpop.permute.xlu0 %977 }
 0x139   : > { %4730 = vst [vmem:[#allocation6_spill] sm:$0xff] %v3724_v50  ;;  %v3726_v12 = vpop.permute.xlu1 %971 }
 0x13a   : > { %1445 = vrot.lane.b32.xlu0 %v3269_v35, %s2649_s30 }
 0x13b   : > { %1349 = vrot.lane.b32.xlu1 %v4729_v13, %s2650_s7 }
 0x13c   : > { %v3732_v6 = vpop.permute.xlu0 %981 }
 0x13d   : > { %4731 = vst [vmem:[#allocation30_spill] sm:$0xff] %v3732_v6  ;;  %v3734_v36 = vpop.permute.xlu1 %975 }
 0x13e   : > { %4732 = vst [vmem:[#allocation10_spill] sm:$0xff] %v3734_v36  ;;  %1161 = vrot.lane.b32.xlu0 %v3269_v35, %s2647_s16 }
 0x13f   : > { %1351 = vrot.lane.b32.xlu1 %v4733_v34, %s2650_s7 }
 0x140   : > { %v3740_v0 = vpop.permute.xlu0 %985 }
 0x141   : > { %4734 = vst [vmem:[#allocation7_spill] sm:$0xff] %v3740_v0  ;;  %v3742_v50 = vpop.permute.xlu1 %979 }
 0x142   : > { %4735 = vst [vmem:[#allocation12_spill] sm:$0xff] %v3742_v50  ;;  %1163 = vrot.lane.b32.xlu0 %v3297_v1, %s2647_s16  ;;  %v4740_v50 = vld [vmem:[#allocation9_spill] sm:$0xff] }
 0x143   : > { %1067 = vrot.lane.b32.xlu1 %v4733_v34, %s2646_s11 }
 0x144   : > { %v3748_v13 = vpop.permute.xlu0 %989 }
 0x145   : > { %4736 = vst [vmem:[#allocation74_spill] sm:$0xff] %v3748_v13  ;;  %v3750_v6 = vpop.permute.xlu1 %983 }
 0x146   : > { %4737 = vst [vmem:[#allocation75_spill] sm:$0xff] %v3750_v6  ;;  %1259 = vrot.lane.b32.xlu0 %v2949_v19, %s2648_s22  ;;  %v4742_v6 = vld [vmem:[#allocation31_spill] sm:$0xff] }
 0x147   : > { %1447 = vrot.lane.b32.xlu1 %v3297_v1, %s2649_s30 }
 0x148   : > { %v3756_v35 = vpop.permute.xlu0 %993 }
 0x149   : > { %4738 = vst [vmem:[#allocation76_spill] sm:$0xff] %v3756_v35  ;;  %v3758_v0 = vpop.permute.xlu1 %987  ;;  %v4743_v35 = vld [vmem:[#allocation14_spill] sm:$0xff] }
 0x14a   : > { %4739 = vst [vmem:[#allocation77_spill] sm:$0xff] %v3758_v0  ;;  %1069 = vrot.lane.b32.xlu0 %v4740_v50, %s2646_s11 }
 0x14b   : > { %1257 = vrot.lane.b32.xlu1 %v2947_v18, %s2648_s22  ;;  %v2600_v18 = vld [vmem:[#allocation2] sm:$0xff] }
 0x14c   : > { %v1048_v34 = vpop.permute.xlu0 %1047 }
 0x14d   : > { %v3764_v13 = vpop.permute.xlu1 %991 }
 0x14e   : > { %4741 = vst [vmem:[#allocation9_spill] sm:$0xff] %v3764_v13  ;;  %1449 = vrot.lane.b32.xlu0 %v4742_v6, %s2649_s30 }
 0x14f   : > { %1353 = vrot.lane.b32.xlu1 %v4740_v50, %s2650_s7  ;;  %v1525_v50 = vsel %vm378_vm0, %v2600_v18, %v3353_v53 }
 0x150   : > { %v1144_v19 = vpop.permute.xlu0 %1143 }
 0x151   : > { %v1046_v1 = vpop.permute.xlu1 %1045 }
 0x152   : > { %1165 = vrot.lane.b32.xlu0 %v4742_v6, %s2647_s16  ;;  %v1558_v6 = vsel %vm1557_vm4, %v1525_v50, %v3522_v59 }
 0x153   : > { %1355 = vrot.lane.b32.xlu1 %v4743_v35, %s2650_s7  ;;  %v1591_v58 = vsel %vm1590_vm5, %v1558_v6, %v3668_v61 }
 0x154   : > { %v1240_v0 = vpop.permute.xlu0 %1239  ;;  %v1624_v25 = vsel %vm1623_vm6, %v1591_v58, %v1046_v1  ;;  %v4744_v58 = vld [vmem:[#allocation11_spill] sm:$0xff]  ;;  %v4745_v1 = vld [vmem:[#allocation32_spill] sm:$0xff] }
 0x155   : > { %v1142_v36 = vpop.permute.xlu1 %1141 }
 0x156   : > { %1167 = vrot.lane.b32.xlu0 %v3310_v26, %s2647_s16  ;;  %v1657_v53 = vsel %vm1656_vm7, %v1624_v25, %v1142_v36  ;;  %v2601_v36 = vld [vmem:[#allocation2 + $0x8] sm:$0xff] }
 0x157   : > { %1071 = vrot.lane.b32.xlu1 %v4743_v35, %s2646_s11 }
 0x158   : > { %v1050_v13 = vpop.permute.xlu0 %1049 }
 0x159   : > { %v1238_v41 = vpop.permute.xlu1 %1237 }
 0x15a   : > { %1263 = vrot.lane.b32.xlu0 %v3006_v17, %s2648_s22  ;;  %v1690_v59 = vsel %vm1689_vm9, %v1657_v53, %v1238_v41  ;;  %v1526_v41 = vsel %vm378_vm0, %v2601_v36, %v3372_v56  ;;  %v4746_v56 = vld [vmem:[#allocation15_spill] sm:$0xff] }
 0x15b   : > { %1451 = vrot.lane.b32.xlu1 %v3310_v26, %s2649_s30  ;;  %v1559_v50 = vsel %vm1557_vm4, %v1526_v41, %v3549_v24 }
 0x15c   : > { %v1430_v35 = vpop.permute.xlu0 %1429 }
 0x15d   : > { %v1334_v18 = vpop.permute.xlu1 %1333 }
 0x15e   : > { %v1723_v61 = vsel %vm1722_vm8, %v1690_v59, %v1334_v18  ;;  %1073 = vrot.lane.b32.xlu0 %v4744_v58, %s2646_s11 }
 0x15f   : > { %1261 = vrot.lane.b32.xlu1 %v3004_v11, %s2648_s22  ;;  %v1756_v17 = vsel %vm1755_vm10, %v1723_v61, %v1430_v35  ;;  %v1592_v11 = vsel %vm1590_vm5, %v1559_v50, %v3686_v63 }
 0x160   : > { %2517 = vmatprep.mubr.msk.f32.mxu0 %vm1797_vm11, %v1756_v17  ;;  %v1146_v26 = vpop.permute.xlu0 %1145  ;;  %v1625_v59 = vsel %vm1623_vm6, %v1592_v11, %v1048_v34  ;;  %v2602_v34 = vld [vmem:[#allocation2 + $0x18] sm:$0xff] }
 0x161   : > { %v1336_v25 = vpop.permute.xlu1 %1335  ;;  %v1658_v35 = vsel %vm1656_vm7, %v1625_v59, %v1144_v19  ;;  %v1527_v19 = vsel %vm378_vm0, %v2602_v34, %v3396_v60  ;;  %v4747_v59 = vld [vmem:[#allocation13_spill] sm:$0xff] }
 0x162   : > { %1453 = vrot.lane.b32.xlu0 %v4745_v1, %s2649_s30  ;;  %v1691_v18 = vsel %vm1689_vm9, %v1658_v35, %v1240_v0  ;;  %v1560_v0 = vsel %vm1557_vm4, %v1527_v19, %v3533_v40 }
 0x163   : > { %1357 = vrot.lane.b32.xlu1 %v4744_v58, %s2650_s7  ;;  %v1724_v61 = vsel %vm1722_vm8, %v1691_v18, %v1336_v25  ;;  %v1593_v36 = vsel %vm1590_vm5, %v1560_v0, %v3676_v31  ;;  %v4748_v18 = vld [vmem:[#allocation33_spill] sm:$0xff] }
 0x164   : > { %v1148_v6 = vpop.permute.xlu0 %1147  ;;  %v1626_v41 = vsel %vm1623_vm6, %v1593_v36, %v1050_v13 }
 0x165   : > { %v1052_v53 = vpop.permute.xlu1 %1051  ;;  %v1659_v60 = vsel %vm1656_vm7, %v1626_v41, %v1146_v26 }
 0x166   : > { %1169 = vrot.lane.b32.xlu0 %v4745_v1, %s2647_s16 }
 0x167   : > { %1359 = vrot.lane.b32.xlu1 %v4746_v56, %s2650_s7 }
 0x168   : > { %v1244_v24 = vpop.permute.xlu0 %1243 }
 0x169   : > { %v1432_v58 = vpop.permute.xlu1 %1431 }
 0x16a   : > { %v1757_v63 = vsel %vm1755_vm10, %v1724_v61, %v1432_v58  ;;  %1171 = vrot.lane.b32.xlu0 %v3323_v32, %s2647_s16 }
 0x16b   : > { %1075 = vrot.lane.b32.xlu1 %v4746_v56, %s2646_s11  ;;  %2518 = vmatmul.mubr.msk.f32.vlgmr.msra.gmra.mxu0 %vm1797_vm11, %v1757_v63  ;;  %v2604_v63 = vld [vmem:[%s4563_s1] ss:$0 sm:$0xff] }
 0x16c   : > { %v1054_v17 = vpop.permute.xlu0 %1053 }
 0x16d   : > { %v1242_v25 = vpop.permute.xlu1 %1241 }
 0x16e   : > { %1267 = vrot.lane.b32.xlu0 %v3036_v47, %s2648_s22  ;;  %v1692_v1 = vsel %vm1689_vm9, %v1659_v60, %v1242_v25  ;;  %v267_v60 = vld [vmem:[%s2766_s26 + $0xf8] sm:$0xff] }
 0x16f   : > { %1455 = vrot.lane.b32.xlu1 %v3323_v32, %s2649_s30  ;;  %v2603_v32 = vld [vmem:[#allocation2 + $0x20] sm:$0xff] }
 0x170   : > { %v1434_v50 = vpop.permute.xlu0 %1433  ;;  %v1528_v31 = vsel %vm378_vm0, %v2603_v32, %v3408_v43  ;;  %v266_v43 = vld [vmem:[%s2766_s26 + $0xf0] sm:$0xff] }
 0x171   : > { %v1338_v11 = vpop.permute.xlu1 %1337  ;;  %v1561_v35 = vsel %vm1557_vm4, %v1528_v31, %v3560_v49  ;;  %v305_v49 = vmul.f32 %v2604_v63, %v266_v43  ;;  %v3894_v43 = vld [vmem:[#allocation2 + $0xf0] sm:$0xff] }
 0x172   : > { %v1725_v40 = vsel %vm1722_vm8, %v1692_v1, %v1338_v11  ;;  %1077 = vrot.lane.b32.xlu0 %v4747_v59, %s2646_s11  ;;  %v1594_v56 = vsel %vm1590_vm5, %v1561_v35, %v3694_v4  ;;  %v4749_v4 = vld [vmem:[#allocation18_spill] sm:$0xff] }
 0x173   : > { %1265 = vrot.lane.b32.xlu1 %v3034_v46, %s2648_s22  ;;  %v1758_v47 = vsel %vm1755_vm10, %v1725_v40, %v1434_v50  ;;  %v1627_v46 = vsel %vm1623_vm6, %v1594_v56, %v1052_v53  ;;  %v2605_v53 = vld [vmem:[%s4564_s2] ss:$0 sm:$0xff]  ;;  %v306_v50 = vmul.f32 %v2604_v63, %v267_v60  ;;  %v3882_v56 = vld [vmem:[#allocation2 + $0xf8] sm:$0xff] }
 0x174   : > { %2520 = vmatprep.mubr.msk.f32.mxu0 %vm1797_vm11, %v1758_v47  ;;  %v1150_v13 = vpop.permute.xlu0 %1149  ;;  %v1660_v34 = vsel %vm1656_vm7, %v1627_v46, %v1148_v6  ;;  %v344_v0 = vadd.f32 %v2605_v53, %v305_v49 }
 0x175   : > { %v1340_v26 = vpop.permute.xlu1 %1339  ;;  %v1693_v19 = vsel %vm1689_vm9, %v1660_v34, %v1244_v24  ;;  %v2606_v24 = vld [vmem:[#allocation2 + $0x30] sm:$0xff]  ;;  %v345_v40 = vadd.f32 %v2605_v53, %v306_v50  ;;  %v4751_v53 = vld [vmem:[#allocation34_spill] sm:$0xff] }
 0x176   : > { %1457 = vrot.lane.b32.xlu0 %v4748_v18, %s2649_s30  ;;  %v1726_v25 = vsel %vm1722_vm8, %v1693_v19, %v1340_v26  ;;  %v376_v1 = vmax.f32 %v344_v0, 0.0  ;;  %v1529_v11 = vsel %vm378_vm0, %v2606_v24, %v3394_v29 }
 0x177   : > { %1361 = vrot.lane.b32.xlu1 %v4747_v59, %s2650_s7  ;;  %v1562_v59 = vsel %vm1557_vm4, %v1529_v11, %v3547_v27  ;;  %v377_v26 = vmax.f32 %v345_v40, 0.0 }
 0x178   : > { %v1152_v61 = vpop.permute.xlu0 %1151  ;;  %465 = vst.msk [vmem:[#allocation2 + $0x181] sm:$0xff] %vm378_vm0, %v376_v1  ;;  %v1595_v31 = vsel %vm1590_vm5, %v1562_v59, %v3684_v14 }
 0x179   : > { %v1056_v58 = vpop.permute.xlu1 %1055  ;;  %v1628_v35 = vsel %vm1623_vm6, %v1595_v31, %v1054_v17  ;;  %466 = vst.msk [vmem:[#allocation2 + $0x189] sm:$0xff] %vm378_vm0, %v377_v26  ;;  %v4750_v17 = vld [vmem:[#allocation16_spill] sm:$0xff] }
 0x17a   : > { %1173 = vrot.lane.b32.xlu0 %v4748_v18, %s2647_s16  ;;  %v1661_v29 = vsel %vm1656_vm7, %v1628_v35, %v1150_v13  ;;  %v2609_v13 = vld [vmem:[#allocation2 + $0x38] sm:$0xff] }
 0x17b   : > { %1363 = vrot.lane.b32.xlu1 %v4749_v4, %s2650_s7  ;;  %v1530_v63 = vsel %vm378_vm0, %v2609_v13, %v3419_v28 }
 0x17c   : > { %v1248_v36 = vpop.permute.xlu0 %1247 }
 0x17d   : > { %v1436_v41 = vpop.permute.xlu1 %1435 }
 0x17e   : > { %v1759_v6 = vsel %vm1755_vm10, %v1726_v25, %v1436_v41  ;;  %1175 = vrot.lane.b32.xlu0 %v3336_v62, %s2647_s16 }
 0x17f   : > { %1079 = vrot.lane.b32.xlu1 %v4749_v4, %s2646_s11  ;;  %2521 = vmatmul.mubr.msk.f32.gmra.mxu0 %vm1797_vm11, %v1759_v6  ;;  %v1563_v4 = vsel %vm1557_vm4, %v1530_v63, %v3574_v37  ;;  %v4752_v37 = vld [vmem:[#allocation19_spill] sm:$0xff] }
 0x180   : > { %v1058_v47 = vpop.permute.xlu0 %1057  ;;  %v1596_v19 = vsel %vm1590_vm5, %v1563_v4, %v3702_v23 }
 0x181   : > { %v1246_v32 = vpop.permute.xlu1 %1245  ;;  %v1629_v0 = vsel %vm1623_vm6, %v1596_v19, %v1056_v58 }
 0x182   : > { %1271 = vrot.lane.b32.xlu0 %v3882_v56, %s2648_s22  ;;  %v1694_v27 = vsel %vm1689_vm9, %v1661_v29, %v1246_v32  ;;  %v1662_v28 = vsel %vm1656_vm7, %v1629_v0, %v1152_v61  ;;  %v2610_v61 = vld [vmem:[#allocation2 + $0x48] sm:$0xff]  ;;  %v3931_v32 = vld [vmem:[#allocation2 + $0x110] sm:$0xff] }
 0x183   : > { %1459 = vrot.lane.b32.xlu1 %v3336_v62, %s2649_s30  ;;  %v1695_v23 = vsel %vm1689_vm9, %v1662_v28, %v1248_v36  ;;  %v1531_v58 = vsel %vm378_vm0, %v2610_v61, %v3406_v42 }
 0x184   : > { %v1438_v18 = vpop.permute.xlu0 %1437  ;;  %v1564_v36 = vsel %vm1557_vm4, %v1531_v58, %v3558_v10 }
 0x185   : > { %v1342_v46 = vpop.permute.xlu1 %1341  ;;  %v1597_v40 = vsel %vm1590_vm5, %v1564_v36, %v3692_v57  ;;  %v4753_v57 = vld [vmem:[#allocation17_spill] sm:$0xff] }
 0x186   : > { %v1727_v14 = vsel %vm1722_vm8, %v1694_v27, %v1342_v46  ;;  %1081 = vrot.lane.b32.xlu0 %v4750_v17, %s2646_s11  ;;  %v1630_v59 = vsel %vm1623_vm6, %v1597_v40, %v1058_v47  ;;  %v3942_v47 = vld [vmem:[#allocation2 + $0x108] sm:$0xff]  ;;  %v4755_v40 = vld [vmem:[#allocation23_spill] sm:$0xff] }
 0x187   : > { %1269 = vrot.lane.b32.xlu1 %v3894_v43, %s2648_s22  ;;  %v1760_v62 = vsel %vm1755_vm10, %v1727_v14, %v1438_v18 }
 0x188   : > { %2523 = vmatprep.mubr.msk.f32.mxu0 %vm1797_vm11, %v1760_v62  ;;  %v1154_v49 = vpop.permute.xlu0 %1153 }
 0x189   : > { %v1344_v34 = vpop.permute.xlu1 %1343  ;;  %v1663_v42 = vsel %vm1656_vm7, %v1630_v59, %v1154_v49  ;;  %v4756_v59 = vld [vmem:[#allocation20_spill] sm:$0xff] }
 0x18a   : > { %1461 = vrot.lane.b32.xlu0 %v4751_v53, %s2649_s30  ;;  %v1728_v60 = vsel %vm1722_vm8, %v1695_v23, %v1344_v34  ;;  %v3979_v23 = vld [vmem:[#allocation2 + $0x128] sm:$0xff] }
 0x18b   : > { %1365 = vrot.lane.b32.xlu1 %v4750_v17, %s2650_s7 }
 0x18c   : > { %v1156_v25 = vpop.permute.xlu0 %1155 }
 0x18d   : > { %v1060_v41 = vpop.permute.xlu1 %1059 }
 0x18e   : > { %1177 = vrot.lane.b32.xlu0 %v4751_v53, %s2647_s16  ;;  %v2614_v53 = vld [vmem:[#allocation2 + $0x60] sm:$0xff] }
 0x18f   : > { %1367 = vrot.lane.b32.xlu1 %v4752_v37, %s2650_s7 }
 0x190   : > { %v1252_v6 = vpop.permute.xlu0 %1251 }
 0x191   : > { %v1440_v1 = vpop.permute.xlu1 %1439 }
 0x192   : > { %v1761_v50 = vsel %vm1755_vm10, %v1728_v60, %v1440_v1  ;;  %1179 = vrot.lane.b32.xlu0 %v3349_v44, %s2647_s16 }
 0x193   : > { %1083 = vrot.lane.b32.xlu1 %v4752_v37, %s2646_s11  ;;  %2524 = vmatmul.mubr.msk.f32.gmra.mxu0 %vm1797_vm11, %v1761_v50 }
 0x194   : > { %v1062_v24 = vpop.permute.xlu0 %1061 }
 0x195   : > { %v1250_v11 = vpop.permute.xlu1 %1249 }
 0x196   : > { %1275 = vrot.lane.b32.xlu0 %v3931_v32, %s2648_s22  ;;  %v1696_v31 = vsel %vm1689_vm9, %v1663_v42, %v1250_v11 }
 0x197   : > { %1463 = vrot.lane.b32.xlu1 %v3349_v44, %s2649_s30  ;;  %v2613_v44 = vld [vmem:[#allocation2 + $0x50] sm:$0xff] }
 0x198   : > { %v1442_v10 = vpop.permute.xlu0 %1441  ;;  %v1532_v27 = vsel %vm378_vm0, %v2613_v44, %v3427_v3 }
 0x199   : > { %v1346_v26 = vpop.permute.xlu1 %1345  ;;  %v1565_v14 = vsel %vm1557_vm4, %v1532_v27, %v3582_v20  ;;  %v4754_v20 = vld [vmem:[#allocation22_spill] sm:$0xff] }
 0x19a   : > { %v1729_v35 = vsel %vm1722_vm8, %v1696_v31, %v1346_v26  ;;  %1085 = vrot.lane.b32.xlu0 %v4753_v57, %s2646_s11  ;;  %v1598_v17 = vsel %vm1590_vm5, %v1565_v14, %v3710_v30 }
 0x19b   : > { %1273 = vrot.lane.b32.xlu1 %v3942_v47, %s2648_s22  ;;  %v1762_v29 = vsel %vm1755_vm10, %v1729_v35, %v1442_v10  ;;  %v1631_v62 = vsel %vm1623_vm6, %v1598_v17, %v1060_v41 }
 0x19c   : > { %2526 = vmatprep.mubr.msk.f32.mxu0 %vm1797_vm11, %v1762_v29  ;;  %v1158_v18 = vpop.permute.xlu0 %1157  ;;  %v1664_v3 = vsel %vm1656_vm7, %v1631_v62, %v1156_v25  ;;  %v2618_v29 = vld [vmem:[#allocation2 + $0x78] sm:$0xff] }
 0x19d   : > { %v1348_v46 = vpop.permute.xlu1 %1347  ;;  %v1697_v30 = vsel %vm1689_vm9, %v1664_v3, %v1252_v6  ;;  %v1535_v44 = vsel %vm378_vm0, %v2618_v29, %v3425_v48  ;;  %v4027_v62 = vld [vmem:[#allocation2 + $0x138] sm:$0xff] }
 0x19e   : > { %1465 = vrot.lane.b32.xlu0 %v3333_v7, %s2649_s30  ;;  %v1730_v49 = vsel %vm1722_vm8, %v1697_v30, %v1348_v46  ;;  %v1568_v27 = vsel %vm1557_vm4, %v1535_v44, %v3580_v38 }
 0x19f   : > { %1369 = vrot.lane.b32.xlu1 %v4753_v57, %s2650_s7  ;;  %v1601_v14 = vsel %vm1590_vm5, %v1568_v27, %v3708_v2 }
 0x1a0   : > { %v1160_v13 = vpop.permute.xlu0 %1159 }
 0x1a1   : > { %v1064_v63 = vpop.permute.xlu1 %1063 }
 0x1a2   : > { %1181 = vrot.lane.b32.xlu0 %v3333_v7, %s2647_s16  ;;  %v1533_v7 = vsel %vm378_vm0, %v2614_v53, %v3417_v54 }
 0x1a3   : > { %1371 = vrot.lane.b32.xlu1 %v4754_v20, %s2650_s7  ;;  %v1566_v0 = vsel %vm1557_vm4, %v1533_v7, %v3572_v39 }
 0x1a4   : > { %v1256_v34 = vpop.permute.xlu0 %1255  ;;  %v1599_v28 = vsel %vm1590_vm5, %v1566_v0, %v3700_v52  ;;  %v3990_v52 = vld [vmem:[#allocation2 + $0x120] sm:$0xff]  ;;  %v4757_v0 = vld [vmem:[#allocation26_spill] sm:$0xff] }
 0x1a5   : > { %v1444_v4 = vpop.permute.xlu1 %1443  ;;  %v1632_v37 = vsel %vm1623_vm6, %v1599_v28, %v1062_v24 }
 0x1a6   : > { %v1763_v19 = vsel %vm1755_vm10, %v1730_v49, %v1444_v4  ;;  %1183 = vrot.lane.b32.xlu0 %v3364_v45, %s2647_s16  ;;  %v1665_v54 = vsel %vm1656_vm7, %v1632_v37, %v1158_v18 }
 0x1a7   : > { %1087 = vrot.lane.b32.xlu1 %v4754_v20, %s2646_s11  ;;  %2527 = vmatmul.mubr.msk.f32.gmra.mxu0 %vm1797_vm11, %v1763_v19  ;;  %v4036_v20 = vld [vmem:[#allocation2 + $0x140] sm:$0xff] }
 0x1a8   : > { %v1066_v25 = vpop.permute.xlu0 %1065 }
 0x1a9   : > { %v1254_v41 = vpop.permute.xlu1 %1253  ;;  %v1634_v17 = vsel %vm1623_vm6, %v1601_v14, %v1066_v25 }
 0x1aa   : > { %1279 = vrot.lane.b32.xlu0 %v3979_v23, %s2648_s22  ;;  %v1698_v60 = vsel %vm1689_vm9, %v1665_v54, %v1254_v41  ;;  %v2622_v54 = vld [vmem:[#allocation2 + $0x90] sm:$0xff] }
 0x1ab   : > { %1467 = vrot.lane.b32.xlu1 %v3364_v45, %s2649_s30  ;;  %v2617_v45 = vld [vmem:[#allocation2 + $0x68] sm:$0xff] }
 0x1ac   : > { %v1446_v39 = vpop.permute.xlu0 %1445  ;;  %v1534_v61 = vsel %vm378_vm0, %v2617_v45, %v3435_v8 }
 0x1ad   : > { %v1350_v6 = vpop.permute.xlu1 %1349  ;;  %v1567_v24 = vsel %vm1557_vm4, %v1534_v61, %v3590_v21  ;;  %v4759_v61 = vld [vmem:[#allocation38_spill] sm:$0xff] }
 0x1ae   : > { %v1731_v1 = vsel %vm1722_vm8, %v1698_v60, %v1350_v6  ;;  %995 = vrot.lane.b32.xlu0 %v3979_v23, %s2645_s6  ;;  %v1600_v11 = vsel %vm1590_vm5, %v1567_v24, %v3718_v5  ;;  %v1537_v60 = vsel %vm378_vm0, %v2622_v54, %v3433_v22  ;;  %v4771_v54 = vld [vmem:[#allocation45_spill] sm:$0xff] }
 0x1af   : > { %1277 = vrot.lane.b32.xlu1 %v3990_v52, %s2648_s22  ;;  %v1764_v50 = vsel %vm1755_vm10, %v1731_v1, %v1446_v39  ;;  %v1633_v42 = vsel %vm1623_vm6, %v1600_v11, %v1064_v63  ;;  %v1570_v39 = vsel %vm1557_vm4, %v1537_v60, %v3588_v15 }
 0x1b0   : > { %2529 = vmatprep.mubr.msk.f32.mxu0 %vm1797_vm11, %v1764_v50  ;;  %v1162_v58 = vpop.permute.xlu0 %1161  ;;  %v1666_v8 = vsel %vm1656_vm7, %v1633_v42, %v1160_v13  ;;  %v1603_v50 = vsel %vm1590_vm5, %v1570_v39, %v3716_v51  ;;  %v4761_v42 = vld [vmem:[#allocation43_spill] sm:$0xff] }
 0x1b1   : > { %v1352_v36 = vpop.permute.xlu1 %1351  ;;  %v1699_v21 = vsel %vm1689_vm9, %v1666_v8, %v1256_v34  ;;  %v1667_v48 = vsel %vm1656_vm7, %v1634_v17, %v1162_v58  ;;  %v4760_v58 = vld [vmem:[#allocation35_spill] sm:$0xff] }
 0x1b2   : > { %1375 = vrot.lane.b32.xlu0 %v4755_v40, %s2650_s7  ;;  %v1732_v5 = vsel %vm1722_vm8, %v1699_v21, %v1352_v36  ;;  %v4762_v21 = vld [vmem:[#allocation61_spill] sm:$0xff] }
 0x1b3   : > { %1373 = vrot.lane.b32.xlu1 %v4756_v59, %s2650_s7 }
 0x1b4   : > { %v1164_v31 = vpop.permute.xlu0 %1163 }
 0x1b5   : > { %v1068_v10 = vpop.permute.xlu1 %1067 }
 0x1b6   : > { %1091 = vrot.lane.b32.xlu0 %v4755_v40, %s2646_s11  ;;  %v4082_v40 = vld [vmem:[#allocation2 + $0x150] sm:$0xff] }
 0x1b7   : > { %1089 = vrot.lane.b32.xlu1 %v4756_v59, %s2646_s11  ;;  %v2624_v59 = vld [vmem:[#allocation2 + $0x98] sm:$0xff] }
 0x1b8   : > { %v1260_v26 = vpop.permute.xlu0 %1259 }
 0x1b9   : > { %v1448_v35 = vpop.permute.xlu1 %1447 }
 0x1ba   : > { %v1765_v57 = vsel %vm1755_vm10, %v1732_v5, %v1448_v35  ;;  %1471 = vrot.lane.b32.xlu0 %v3379_v33, %s2649_s30 }
 0x1bb   : > { %1469 = vrot.lane.b32.xlu1 %v3346_v55, %s2649_s30  ;;  %2530 = vmatmul.mubr.msk.f32.gmra.mxu0 %vm1797_vm11, %v1765_v57  ;;  %v4096_v57 = vld [vmem:[#allocation2 + $0x158] sm:$0xff] }
 0x1bc   : > { %v1070_v18 = vpop.permute.xlu0 %1069 }
 0x1bd   : > { %v1258_v46 = vpop.permute.xlu1 %1257  ;;  %v1636_v45 = vsel %vm1623_vm6, %v1603_v50, %v1070_v18 }
 0x1be   : > { %1281 = vrot.lane.b32.xlu0 %v4027_v62, %s2648_s22  ;;  %v1700_v13 = vsel %vm1689_vm9, %v1667_v48, %v1258_v46 }
 0x1bf   : > { %1185 = vrot.lane.b32.xlu1 %v3346_v55, %s2647_s16  ;;  %v2621_v55 = vld [vmem:[#allocation2 + $0x80] sm:$0xff] }
 0x1c0   : > { %v1450_v38 = vpop.permute.xlu0 %1449  ;;  %v1536_v30 = vsel %vm378_vm0, %v2621_v55, %v3443_v9 }
 0x1c1   : > { %v1354_v63 = vpop.permute.xlu1 %1353  ;;  %v1569_v4 = vsel %vm1557_vm4, %v1536_v30, %v3598_v16  ;;  %v4758_v16 = vld [vmem:[#allocation21_spill] sm:$0xff]  ;;  %v4767_v30 = vld [vmem:[#allocation60_spill] sm:$0xff] }
 0x1c2   : > { %v1733_v3 = vsel %vm1722_vm8, %v1700_v13, %v1354_v63  ;;  %1283 = vrot.lane.b32.xlu0 %v4036_v20, %s2648_s22  ;;  %v1602_v19 = vsel %vm1590_vm5, %v1569_v4, %v3726_v12  ;;  %v4765_v63 = vld [vmem:[#allocation24_spill] sm:$0xff] }
 0x1c3   : > { %1187 = vrot.lane.b32.xlu1 %v3379_v33, %s2647_s16  ;;  %v1766_v2 = vsel %vm1755_vm10, %v1733_v3, %v1450_v38  ;;  %v1635_v33 = vsel %vm1623_vm6, %v1602_v19, %v1068_v10  ;;  %v4764_v38 = vld [vmem:[#allocation27_spill] sm:$0xff]  ;;  %v2626_v3 = vld [vmem:[#allocation2 + $0xa8] sm:$0xff] }
 0x1c4   : > { %2532 = vmatprep.mubr.msk.f32.mxu0 %vm1797_vm11, %v1766_v2  ;;  %v1166_v49 = vpop.permute.xlu0 %1165  ;;  %v1668_v9 = vsel %vm1656_vm7, %v1635_v33, %v1164_v31  ;;  %v1538_v31 = vsel %vm378_vm0, %v2624_v59, %v4761_v42  ;;  %v4766_v2 = vld [vmem:[#allocation41_spill] sm:$0xff]  ;;  %v4768_v19 = vld [vmem:[#allocation6_spill] sm:$0xff] }
 0x1c5   : > { %v1356_v34 = vpop.permute.xlu1 %1355  ;;  %v1701_v12 = vsel %vm1689_vm9, %v1668_v9, %v1260_v26  ;;  %v1669_v22 = vsel %vm1656_vm7, %v1636_v45, %v1166_v49  ;;  %v1571_v5 = vsel %vm1557_vm4, %v1538_v31, %v4762_v21  ;;  %v4763_v26 = vld [vmem:[#allocation10_spill] sm:$0xff]  ;;  %v1539_v55 = vsel %vm378_vm0, %v2626_v3, %v4766_v2  ;;  %v4773_v45 = vld [vmem:[#allocation12_spill] sm:$0xff] }
 0x1c6   : > { %999 = vrot.lane.b32.xlu0 %v4036_v20, %s2645_s6  ;;  %v1734_v25 = vsel %vm1722_vm8, %v1701_v12, %v1356_v34  ;;  %v1604_v35 = vsel %vm1590_vm5, %v1571_v5, %v4763_v26  ;;  %v1572_v49 = vsel %vm1557_vm4, %v1539_v55, %v4767_v30  ;;  %v4774_v21 = vld [vmem:[#allocation42_spill] sm:$0xff]  ;;  %v4775_v26 = vld [vmem:[#allocation3_spill] sm:$0xff] }
 0x1c7   : > { %997 = vrot.lane.b32.xlu1 %v4027_v62, %s2645_s6  ;;  %v1605_v33 = vsel %vm1590_vm5, %v1572_v49, %v4768_v19  ;;  %v2631_v55 = vld [vmem:[#allocation2 + $0xc8] sm:$0xff]  ;;  %v4779_v30 = vld [vmem:[#allocation47_spill] sm:$0xff]  ;;  %v4780_v19 = vld [vmem:[#allocation64_spill] sm:$0xff] }
 0x1c8   : > { %v1168_v53 = vpop.permute.xlu0 %1167  ;;  %v1542_v49 = vsel %vm378_vm0, %v2631_v55, %v4779_v30  ;;  %v4788_v55 = vld [vmem:[#allocation66_spill] sm:$0xff] }
 0x1c9   : > { %v1072_v7 = vpop.permute.xlu1 %1071 }
 0x1ca   : > { %1379 = vrot.lane.b32.xlu0 %v4757_v0, %s2650_s7  ;;  %v1637_v29 = vsel %vm1623_vm6, %v1604_v35, %v1072_v7 }
 0x1cb   : > { %1377 = vrot.lane.b32.xlu1 %v4758_v16, %s2650_s7  ;;  %v1670_v18 = vsel %vm1656_vm7, %v1637_v29, %v1168_v53 }
 0x1cc   : > { %v1264_v41 = vpop.permute.xlu0 %1263 }
 0x1cd   : > { %v1452_v28 = vpop.permute.xlu1 %1451  ;;  %v1703_v46 = vsel %vm1689_vm9, %v1670_v18, %v1264_v41  ;;  %v4770_v41 = vld [vmem:[#allocation36_spill] sm:$0xff] }
 0x1ce   : > { %v1767_v37 = vsel %vm1755_vm10, %v1734_v25, %v1452_v28  ;;  %1095 = vrot.lane.b32.xlu0 %v4757_v0, %s2646_s11  ;;  %v4769_v25 = vld [vmem:[#allocation39_spill] sm:$0xff] }
 0x1cf   : > { %1093 = vrot.lane.b32.xlu1 %v4758_v16, %s2646_s11  ;;  %2533 = vmatmul.mubr.msk.f32.gmra.mxu0 %vm1797_vm11, %v1767_v37  ;;  %v2627_v37 = vld [vmem:[#allocation2 + $0xb0] sm:$0xff] }
 0x1d0   : > { %v1074_v6 = vpop.permute.xlu0 %1073  ;;  %v1540_v60 = vsel %vm378_vm0, %v2627_v37, %v4771_v54  ;;  %v516_v54 = vld [vmem:[#allocation2 + $0x188] sm:$0xff] }
 0x1d1   : > { %v1262_v1 = vpop.permute.xlu1 %1261  ;;  %v1638_v53 = vsel %vm1623_vm6, %v1605_v33, %v1074_v6  ;;  %v1575_v33 = vsel %vm1557_vm4, %v1542_v49, %v4780_v19  ;;  %v4789_v49 = vld [vmem:[#allocation77_spill] sm:$0xff] }
 0x1d2   : > { %1475 = vrot.lane.b32.xlu0 %v4759_v61, %s2649_s30  ;;  %v1702_v36 = vsel %vm1689_vm9, %v1669_v22, %v1262_v1  ;;  %v4772_v1 = vld [vmem:[#allocation63_spill] sm:$0xff] }
 0x1d3   : > { %1473 = vrot.lane.b32.xlu1 %v4760_v58, %s2649_s30  ;;  %v1573_v50 = vsel %vm1557_vm4, %v1540_v60, %v4772_v1  ;;  %v517_v1 = vld [vmem:[#allocation2 + $0x190] sm:$0x3] }
 0x1d4   : > { %v1454_v24 = vpop.permute.xlu0 %1453 }
 0x1d5   : > { %v1358_v11 = vpop.permute.xlu1 %1357 }
 0x1d6   : > { %v1735_v15 = vsel %vm1722_vm8, %v1702_v36, %v1358_v11  ;;  %1285 = vrot.lane.b32.xlu0 %v4082_v40, %s2648_s22 }
 0x1d7   : > { %1189 = vrot.lane.b32.xlu1 %v4760_v58, %s2647_s16  ;;  %v1768_v51 = vsel %vm1755_vm10, %v1735_v15, %v1454_v24  ;;  %v4142_v58 = vld [vmem:[#allocation2 + $0x168] sm:$0xff]  ;;  %v4150_v15 = vld [vmem:[#allocation2 + $0x170] sm:$0xff] }
 0x1d8   : > { %2535 = vmatprep.mubr.msk.f32.mxu0 %vm1797_vm11, %v1768_v51  ;;  %v1170_v10 = vpop.permute.xlu0 %1169 }
 0x1d9   : > { %v1360_v8 = vpop.permute.xlu1 %1359  ;;  %v1671_v7 = vsel %vm1656_vm7, %v1638_v53, %v1170_v10  ;;  %v4781_v53 = vld [vmem:[#allocation75_spill] sm:$0xff] }
 0x1da   : > { %1287 = vrot.lane.b32.xlu0 %v4096_v57, %s2648_s22  ;;  %v1736_v14 = vsel %vm1722_vm8, %v1703_v46, %v1360_v8  ;;  %v2630_v8 = vld [vmem:[#allocation2 + $0xc0] sm:$0xff] }
 0x1db   : > { %1191 = vrot.lane.b32.xlu1 %v4759_v61, %s2647_s16  ;;  %v1606_v61 = vsel %vm1590_vm5, %v1573_v50, %v4773_v45  ;;  %v1541_v5 = vsel %vm378_vm0, %v2630_v8, %v4774_v21  ;;  %v2632_v45 = vld [vmem:[#allocation2 + $0xd8] sm:$0xff] }
 0x1dc   : > { %v1172_v44 = vpop.permute.xlu0 %1171  ;;  %v1574_v35 = vsel %vm1557_vm4, %v1541_v5, %v4775_v26 }
 0x1dd   : > { %v1076_v27 = vpop.permute.xlu1 %1075 }
 0x1de   : > { %1003 = vrot.lane.b32.xlu0 %v4096_v57, %s2645_s6  ;;  %v1639_v22 = vsel %vm1623_vm6, %v1606_v61, %v1076_v27  ;;  %v4776_v27 = vld [vmem:[#allocation30_spill] sm:$0xff]  ;;  %v4784_v61 = vld [vmem:[#allocation44_spill] sm:$0xff] }
 0x1df   : > { %1001 = vrot.lane.b32.xlu1 %v4082_v40, %s2645_s6  ;;  %v1672_v11 = vsel %vm1656_vm7, %v1639_v22, %v1172_v44  ;;  %v1607_v18 = vsel %vm1590_vm5, %v1574_v35, %v4776_v27  ;;  %v1543_v22 = vsel %vm378_vm0, %v2632_v45, %v4784_v61  ;;  %v520_v61 = vld [vmem:[#allocation2 + $0x1a8] sm:$0x3] }
 0x1e0   : > { %v1268_v17 = vpop.permute.xlu0 %1267 }
 0x1e1   : > { %v1456_v48 = vpop.permute.xlu1 %1455  ;;  %v1705_v51 = vsel %vm1689_vm9, %v1672_v11, %v1268_v17  ;;  %v4778_v17 = vld [vmem:[#allocation25_spill] sm:$0xff]  ;;  %v737_v11 = vrot.slane %v517_v1, 1 }
 0x1e2   : > { %v1769_v13 = vsel %vm1755_vm10, %v1736_v14, %v1456_v48  ;;  %1383 = vrot.lane.b32.xlu0 %v4764_v38, %s2650_s7  ;;  %v4777_v14 = vld [vmem:[#allocation28_spill] sm:$0xff] }
 0x1e3   : > { %1381 = vrot.lane.b32.xlu1 %v4765_v63, %s2650_s7  ;;  %2536 = vmatmul.mubr.msk.f32.gmra.mxu0 %vm1797_vm11, %v1769_v13 }
 0x1e4   : > { %v1078_v34 = vpop.permute.xlu0 %1077 }
 0x1e5   : > { %v1266_v4 = vpop.permute.xlu1 %1265  ;;  %v1640_v46 = vsel %vm1623_vm6, %v1607_v18, %v1078_v34 }
 0x1e6   : > { %1099 = vrot.lane.b32.xlu0 %v4764_v38, %s2646_s11  ;;  %v1704_v9 = vsel %vm1689_vm9, %v1671_v7, %v1266_v4  ;;  %v1608_v7 = vsel %vm1590_vm5, %v1575_v33, %v4781_v53 }
 0x1e7   : > { %1097 = vrot.lane.b32.xlu1 %v4765_v63, %s2646_s11 }
 0x1e8   : > { %v1458_v0 = vpop.permute.xlu0 %1457 }
 0x1e9   : > { %v1362_v16 = vpop.permute.xlu1 %1361 }
 0x1ea   : > { %v1737_v12 = vsel %vm1722_vm8, %v1704_v9, %v1362_v16  ;;  %1479 = vrot.lane.b32.xlu0 %v4769_v25, %s2649_s30  ;;  %v4782_v9 = vld [vmem:[#allocation40_spill] sm:$0xff] }
 0x1eb   : > { %1477 = vrot.lane.b32.xlu1 %v4770_v41, %s2649_s30  ;;  %v1770_v28 = vsel %vm1755_vm10, %v1737_v12, %v1458_v0  ;;  %v4783_v0 = vld [vmem:[#allocation37_spill] sm:$0xff] }
 0x1ec   : > { %2538 = vmatprep.mubr.msk.f32.mxu0 %vm1797_vm11, %v1770_v28  ;;  %v1174_v39 = vpop.permute.xlu0 %1173  ;;  %v515_v12 = vld [vmem:[#allocation2 + $0x180] sm:$0xff] }
 0x1ed   : > { %v1364_v6 = vpop.permute.xlu1 %1363  ;;  %v1673_v48 = vsel %vm1656_vm7, %v1640_v46, %v1174_v39 }
 0x1ee   : > { %1289 = vrot.lane.b32.xlu0 %v4142_v58, %s2648_s22  ;;  %v1738_v59 = vsel %vm1722_vm8, %v1705_v51, %v1364_v6  ;;  %v4785_v51 = vld [vmem:[#allocation62_spill] sm:$0xff] }
 0x1ef   : > { %1193 = vrot.lane.b32.xlu1 %v4770_v41, %s2647_s16 }
 0x1f0   : > { %v1176_v36 = vpop.permute.xlu0 %1175 }
 0x1f1   : > { %v1080_v24 = vpop.permute.xlu1 %1079 }
 0x1f2   : > { %1291 = vrot.lane.b32.xlu0 %v4150_v15, %s2648_s22  ;;  %v1641_v16 = vsel %vm1623_vm6, %v1608_v7, %v1080_v24  ;;  %v735_v24 = vrot.slane %v516_v54, 1 }
 0x1f3   : > { %1195 = vrot.lane.b32.xlu1 %v4769_v25, %s2647_s16  ;;  %v1674_v28 = vsel %vm1656_vm7, %v1641_v16, %v1176_v36  ;;  %v734_v36 = vrot.slane %v515_v12, 1 }
 0x1f4   : > { %v1272_v42 = vpop.permute.xlu0 %1271  ;;  %v738_v26 = vsel %vm569_vm2, %v735_v24, %v737_v11 }
 0x1f5   : > { %v1460_v31 = vpop.permute.xlu1 %1459  ;;  %v1707_v37 = vsel %vm1689_vm9, %v1674_v28, %v1272_v42  ;;  %v736_v35 = vsel %vm569_vm2, %v734_v36, %v735_v24  ;;  %v750_v36 = vrot.slane %v520_v61, 1  ;;  %v4790_v24 = vld [vmem:[#allocation51_spill] sm:$0xff] }
 0x1f6   : > { %v1771_v10 = vsel %vm1755_vm10, %v1738_v59, %v1460_v31  ;;  %1007 = vrot.lane.b32.xlu0 %v4150_v15, %s2645_s6  ;;  %v1576_v59 = vsel %vm1557_vm4, %v1543_v22, %v4785_v51  ;;  %v1546_v11 = vsel %vm378_vm0, %v3882_v56, %v4790_v24  ;;  %v4798_v24 = vld [vmem:[#allocation65_spill] sm:$0xff] }
 0x1f7   : > { %1005 = vrot.lane.b32.xlu1 %v4142_v58, %s2645_s6  ;;  %2539 = vmatmul.mubr.msk.f32.gmra.mxu0 %vm1797_vm11, %v1771_v10  ;;  %v4786_v10 = vld [vmem:[#allocation7_spill] sm:$0xff] }
 0x1f8   : > { %v1082_v29 = vpop.permute.xlu0 %1081  ;;  %v1609_v8 = vsel %vm1590_vm5, %v1576_v59, %v4786_v10 }
 0x1f9   : > { %v1270_v44 = vpop.permute.xlu1 %1269  ;;  %v1642_v21 = vsel %vm1623_vm6, %v1609_v8, %v1082_v29  ;;  %v4792_v8 = vld [vmem:[#allocation46_spill] sm:$0xff] }
 0x1fa   : > { %1387 = vrot.lane.b32.xlu0 %v4777_v14, %s2650_s7  ;;  %v1706_v13 = vsel %vm1689_vm9, %v1673_v48, %v1270_v44  ;;  %v742_v48 = vrot.slane %v517_v1, 2 }
 0x1fb   : > { %1385 = vrot.lane.b32.xlu1 %v4778_v17, %s2650_s7 }
 0x1fc   : > { %v1462_v38 = vpop.permute.xlu0 %1461 }
 0x1fd   : > { %v1366_v63 = vpop.permute.xlu1 %1365 }
 0x1fe   : > { %v1739_v3 = vsel %vm1722_vm8, %v1706_v13, %v1366_v63  ;;  %1103 = vrot.lane.b32.xlu0 %v4777_v14, %s2646_s11  ;;  %v739_v14 = vrot.slane %v515_v12, 2  ;;  %v2633_v13 = vld [vmem:[#allocation2 + $0xe0] sm:$0xff] }
 0x1ff   : > { %1101 = vrot.lane.b32.xlu1 %v4778_v17, %s2646_s11  ;;  %v1772_v2 = vsel %vm1755_vm10, %v1739_v3, %v1462_v38  ;;  %v740_v17 = vrot.slane %v516_v54, 2  ;;  %v4787_v38 = vld [vmem:[#allocation49_spill] sm:$0xff] }
 0x200   : > { %2541 = vmatprep.mubr.msk.f32.mxu1 %vm1797_vm11, %v1772_v2  ;;  %v1178_v34 = vpop.permute.xlu0 %1177  ;;  %v1544_v63 = vsel %vm378_vm0, %v2633_v13, %v4787_v38 }
 0x201   : > { %v1368_v4 = vpop.permute.xlu1 %1367  ;;  %v1675_v5 = vsel %vm1656_vm7, %v1642_v21, %v1178_v34  ;;  %v1577_v30 = vsel %vm1557_vm4, %v1544_v63, %v4788_v55  ;;  %v743_v19 = vsel %vm650_vm3, %v740_v17, %v742_v48  ;;  %v741_v33 = vsel %vm650_vm3, %v739_v14, %v740_v17 }
 0x202   : > { %1483 = vrot.lane.b32.xlu0 %v4782_v9, %s2649_s30  ;;  %v1740_v60 = vsel %vm1722_vm8, %v1707_v37, %v1368_v4  ;;  %v1610_v34 = vsel %vm1590_vm5, %v1577_v30, %v4789_v49  ;;  %v1545_v21 = vsel %vm378_vm0, %v3894_v43, %v4792_v8 }
 0x203   : > { %1481 = vrot.lane.b32.xlu1 %v4783_v0, %s2649_s30 }
 0x204   : > { %v1180_v25 = vpop.permute.xlu0 %1179 }
 0x205   : > { %v1084_v41 = vpop.permute.xlu1 %1083 }
 0x206   : > { %1293 = vrot.lane.b32.xlu0 %v515_v12, %s2648_s22  ;;  %v1643_v4 = vsel %vm1623_vm6, %v1610_v34, %v1084_v41 }
 0x207   : > { %1197 = vrot.lane.b32.xlu1 %v4783_v0, %s2647_s16  ;;  %v519_v0 = vld [vmem:[#allocation2 + $0x1a0] sm:$0xff]  ;;  %v1676_v16 = vsel %vm1656_vm7, %v1643_v4, %v1180_v25 }
 0x208   : > { %v1276_v39 = vpop.permute.xlu0 %1275  ;;  %v748_v37 = vrot.slane %v519_v0, 1 }
 0x209   : > { %v1464_v6 = vpop.permute.xlu1 %1463 }
 0x20a   : > { %v1773_v50 = vsel %vm1755_vm10, %v1740_v60, %v1464_v6  ;;  %1295 = vrot.lane.b32.xlu0 %v516_v54, %s2648_s22 }
 0x20b   : > { %1199 = vrot.lane.b32.xlu1 %v4782_v9, %s2647_s16  ;;  %2542 = vmatmul.mubr.msk.f32.vlgmr.msra.gmra.mxu1 %vm1797_vm11, %v1773_v50  ;;  %v518_v9 = vld [vmem:[#allocation2 + $0x198] sm:$0xff]  ;;  %v753_v50 = vrot.slane %v519_v0, 2 }
 0x20c   : > { %v4210_v42 = vpop.permute.xlu0 %1085  ;;  %v747_v28 = vrot.slane %v518_v9, 1  ;;  %v752_v1 = vrot.slane %v518_v9, 2 }
 0x20d   : > { %v1274_v31 = vpop.permute.xlu1 %1273 }
 0x20e   : > { %1011 = vrot.lane.b32.xlu0 %v516_v54, %s2645_s6  ;;  %v1708_v44 = vsel %vm1689_vm9, %v1675_v5, %v1274_v31  ;;  %v749_v25 = vsel %vm569_vm2, %v747_v28, %v748_v37  ;;  %v754_v22 = vsel %vm650_vm3, %v752_v1, %v753_v50  ;;  %v4791_v31 = vld [vmem:[#allocation68_spill] sm:$0xff]  ;;  %v4793_v5 = vld [vmem:[#allocation9_spill] sm:$0xff] }
 0x20f   : > { %1009 = vrot.lane.b32.xlu1 %v515_v12, %s2645_s6  ;;  %v1709_v12 = vsel %vm1689_vm9, %v1676_v16, %v1276_v39  ;;  %v1579_v10 = vsel %vm1557_vm4, %v1546_v11, %v4791_v31  ;;  %v4800_v31 = vld [vmem:[#allocation76_spill] sm:$0xff] }
 0x210   : > { %v1466_v27 = vpop.permute.xlu0 %1465 }
 0x211   : > { %v1370_v18 = vpop.permute.xlu1 %1369 }
 0x212   : > { %v1741_v46 = vsel %vm1722_vm8, %v1708_v44, %v1370_v18  ;;  %1391 = vrot.lane.b32.xlu0 %v738_v26, %s2650_s7  ;;  %v755_v18 = vrot.slane %v520_v61, 2 }
 0x213   : > { %1389 = vrot.lane.b32.xlu1 %v736_v35, %s2650_s7  ;;  %v1774_v29 = vsel %vm1755_vm10, %v1741_v46, %v1466_v27  ;;  %v751_v27 = vsel %vm569_vm2, %v748_v37, %v750_v36  ;;  %v4795_v46 = vld [vmem:[#allocation74_spill] sm:$0xff] }
 0x214   : > { %2544 = vmatprep.mubr.msk.f32.mxu1 %vm1797_vm11, %v1774_v29  ;;  %v1182_v3 = vpop.permute.xlu0 %1181 }
 0x215   : > { %v1372_v2 = vpop.permute.xlu1 %1371 }
 0x216   : > { %1107 = vrot.lane.b32.xlu0 %v738_v26, %s2646_s11  ;;  %v1742_v41 = vsel %vm1722_vm8, %v1709_v12, %v1372_v2  ;;  %v1612_v26 = vsel %vm1590_vm5, %v1579_v10, %v4793_v5 }
 0x217   : > { %1105 = vrot.lane.b32.xlu1 %v736_v35, %s2646_s11  ;;  %v4794_v35 = vld [vmem:[#allocation5_spill] sm:$0xff]  ;;  %s4277_s11 = scalar_lea.vmem %s4566_s4, %s2456_s21  ;;  %s2419_s21 = sshll.u32 %s4818_s19, 1 }
 0x218   : > { %v1184_v53 = vpop.permute.xlu0 %1183  ;;  %v1578_v56 = vsel %vm1557_vm4, %v1545_v21, %v4794_v35  ;;  %s235_s17 = scalar_lea.vmem %s4567_s5, %s2419_s21 }
 0x219   : > { %v1088_v7 = vpop.permute.xlu1 %1087  ;;  %v1611_v29 = vsel %vm1590_vm5, %v1578_v56, %v4795_v46 }
 0x21a   : > { %1487 = vrot.lane.b32.xlu0 %v743_v19, %s2649_s30  ;;  %v1645_v44 = vsel %vm1623_vm6, %v1612_v26, %v1088_v7  ;;  %v1644_v17 = vsel %vm1623_vm6, %v1611_v29, %v4210_v42  ;;  %v756_v42 = vsel %vm650_vm3, %v753_v50, %v755_v18 }
 0x21b   : > { %1485 = vrot.lane.b32.xlu1 %v741_v33, %s2649_s30  ;;  %v1677_v48 = vsel %vm1656_vm7, %v1644_v17, %v1182_v3  ;;  %v1678_v13 = vsel %vm1656_vm7, %v1645_v44, %v1184_v53 }
 0x21c   : > { %v1280_v54 = vpop.permute.xlu0 %1279 }
 0x21d   : > { %v1468_v60 = vpop.permute.xlu1 %1467  ;;  %v1711_v38 = vsel %vm1689_vm9, %v1678_v13, %v1280_v54 }
 0x21e   : > { %v1775_v6 = vsel %vm1755_vm10, %v1742_v41, %v1468_v60  ;;  %1297 = vrot.lane.b32.xlu0 %v518_v9, %s2648_s22 }
 0x21f   : > { %1201 = vrot.lane.b32.xlu1 %v741_v33, %s2647_s16  ;;  %2545 = vmatmul.mubr.msk.f32.gmra.mxu1 %vm1797_vm11, %v1775_v6 }
 0x220   : > { %v4247_v45 = vpop.permute.xlu0 %995 }
 0x221   : > { %v1278_v39 = vpop.permute.xlu1 %1277 }
 0x222   : > { %1393 = vrot.lane.b32.xlu0 %v749_v25, %s2650_s7  ;;  %v1710_v63 = vsel %vm1689_vm9, %v1677_v48, %v1278_v39  ;;  %v4796_v25 = vld [vmem:[#allocation48_spill] sm:$0xff]  ;;  %v4797_v39 = vld [vmem:[#allocation53_spill] sm:$0xff] }
 0x223   : > { %1203 = vrot.lane.b32.xlu1 %v743_v19, %s2647_s16  ;;  %v1547_v50 = vsel %vm378_vm0, %v3942_v47, %v4796_v25  ;;  %v1548_v61 = vsel %vm378_vm0, %v3931_v32, %v4797_v39  ;;  %v4804_v25 = vld [vmem:[#allocation67_spill] sm:$0xff] }
 0x224   : > { %v1376_v51 = vpop.permute.xlu0 %1375  ;;  %v1580_v11 = vsel %vm1557_vm4, %v1547_v50, %v4798_v24 }
 0x225   : > { %v1374_v59 = vpop.permute.xlu1 %1373  ;;  %v1744_v55 = vsel %vm1722_vm8, %v1711_v38, %v1376_v51  ;;  %v4799_v51 = vld [vmem:[#allocation69_spill] sm:$0xff]  ;;  %v1613_v10 = vsel %vm1590_vm5, %v1580_v11, %v4800_v31 }
 0x226   : > { %1489 = vrot.lane.b32.xlu0 %v754_v22, %s2649_s30  ;;  %v1743_v30 = vsel %vm1722_vm8, %v1710_v63, %v1374_v59  ;;  %v1581_v59 = vsel %vm1557_vm4, %v1548_v61, %v4799_v51 }
 0x227   : > { %1299 = vrot.lane.b32.xlu1 %v519_v0, %s2648_s22  ;;  %v1614_v8 = vsel %vm1590_vm5, %v1581_v59, %v4247_v45 }
 0x228   : > { %v1092_v14 = vpop.permute.xlu0 %1091 }
 0x229   : > { %v1090_v43 = vpop.permute.xlu1 %1089  ;;  %v1647_v47 = vsel %vm1623_vm6, %v1614_v8, %v1092_v14 }
 0x22a   : > { %v1646_v21 = vsel %vm1623_vm6, %v1613_v10, %v1090_v43 }
 0x22b   : > { %1395 = vrot.lane.b32.xlu1 %v751_v27, %s2650_s7  ;;  %v2519_v2 = vpop.f32.mrf.mxu0 }
 0x22c   : > { %v2189_v49 = vmul.f32 %v2519_v2, %v2519_v2  ;;  %2293 = vst.msk [vmem:[%s4277_s11 + $0x8] sm:$0xff] %vm378_vm0, %v2519_v2  ;;  %v1472_v3 = vpop.permute.xlu0 %1471  ;;  %v2120_v53 = vsel %vm378_vm0, %v2519_v2, 0.0 }
 0x22d   : > { %v1470_v34 = vpop.permute.xlu1 %1469  ;;  %v1777_v4 = vsel %vm1755_vm10, %v1744_v55, %v1472_v3  ;;  %v1960_v19 = vpop.f32.mrf.mxu0 }
 0x22e   : > { %v1776_v33 = vsel %vm1755_vm10, %v1743_v30, %v1470_v34  ;;  %v2119_v7 = vsel %vm378_vm0, %v1960_v19, 0.0  ;;  %v2188_v9 = vmul.f32 %v1960_v19, %v1960_v19  ;;  %2292 = vst.msk [vmem:[%s4277_s11] sm:$0xff] %vm378_vm0, %v1960_v19  ;;  %v2221_v16 = vsel %vm378_vm0, %v2189_v49, 0.0 }
 0x22f   : > { %1491 = vrot.lane.b32.xlu1 %v756_v42, %s2649_s30  ;;  %2547 = vmatprep.mubr.msk.f32.mxu1 %vm1797_vm11, %v1776_v33  ;;  %v2121_v0 = vadd.f32 %v2120_v53, %v2119_v7 }
 0x230   : > { %2548 = vmatmul.mubr.msk.f32.gmra.mxu1 %vm1797_vm11, %v1777_v4  ;;  %v2220_v12 = vsel %vm378_vm0, %v2188_v9, 0.0  ;;  %v1282_v28 = vpop.permute.xlu0 %1281  ;;  %v4801_v9 = vld [vmem:[#allocation55_spill] sm:$0xff] }
 0x231   : > { %v1186_v37 = vpop.permute.xlu1 %1185  ;;  %v2222_v41 = vadd.f32 %v2221_v16, %v2220_v12  ;;  %v4802_v12 = vld [vmem:[#allocation50_spill] sm:$0xff] }
 0x232   : > { %v1679_v5 = vsel %vm1656_vm7, %v1646_v21, %v1186_v37  ;;  %v4803_v37 = vld [vmem:[#allocation70_spill] sm:$0xff] }
 0x233   : > { %v1712_v29 = vsel %vm1689_vm9, %v1679_v5, %v1282_v28  ;;  %v1549_v28 = vsel %vm378_vm0, %v3990_v52, %v4802_v12 }
 0x234   : > { %v1284_v54 = vpop.permute.xlu0 %1283  ;;  %v1582_v50 = vsel %vm1557_vm4, %v1549_v28, %v4804_v25  ;;  %v4808_v28 = vld [vmem:[#allocation71_spill] sm:$0xff] }
 0x235   : > { %v1188_v60 = vpop.permute.xlu1 %1187 }
 0x236   : > { %v1680_v26 = vsel %vm1656_vm7, %v1647_v47, %v1188_v60 }
 0x237   : > { %v1713_v45 = vsel %vm1689_vm9, %v1680_v26, %v1284_v54 }
 0x238   : > { %v1000_v6 = vpop.permute.xlu0 %999 }
 0x239   : > { %v998_v1 = vpop.permute.xlu1 %997 }
 0x23c   : > { %v1380_v22 = vpop.permute.xlu0 %1379 }
 0x23d   : > { %v1378_v36 = vpop.permute.xlu1 %1377  ;;  %v1746_v43 = vsel %vm1722_vm8, %v1713_v45, %v1380_v22 }
 0x23e   : > { %v1745_v17 = vsel %vm1722_vm8, %v1712_v29, %v1378_v36 }
 0x23f   : > { %v2522_v32 = vpop.f32.mrf.mxu0 }
 0x240   : > { %2295 = vst.msk [vmem:[%s4277_s11 + $0x18] sm:$0xff] %vm378_vm0, %v2522_v32  ;;  %v1096_v35 = vpop.permute.xlu0 %1095  ;;  %v2191_v27 = vmul.f32 %v2522_v32, %v2522_v32  ;;  %v2124_v48 = vsel %vm378_vm0, %v2522_v32, 0.0 }
 0x241   : > { %v1094_v56 = vpop.permute.xlu1 %1093  ;;  %v1970_v44 = vpop.f32.mrf.mxu0 }
 0x242   : > { %v2122_v18 = vsel %vm378_vm0, %v1970_v44, 0.0  ;;  %v2190_v46 = vmul.f32 %v1970_v44, %v1970_v44  ;;  %2294 = vst.msk [vmem:[%s4277_s11 + $0x10] sm:$0xff] %vm378_vm0, %v1970_v44  ;;  %v2225_v49 = vsel %vm378_vm0, %v2191_v27, 0.0 }
 0x243   : > { %v2123_v14 = vadd.f32 %v2122_v18, %v2121_v0  ;;  %v1550_v0 = vsel %vm378_vm0, %v3979_v23, %v4801_v9  ;;  %v1615_v23 = vsel %vm1590_vm5, %v1582_v50, %v998_v1 }
 0x244   : > { %v2223_v13 = vsel %vm378_vm0, %v2190_v46, 0.0  ;;  %v1476_v38 = vpop.permute.xlu0 %1475  ;;  %v1648_v11 = vsel %vm1623_vm6, %v1615_v23, %v1094_v56 }
 0x245   : > { %v1474_v63 = vpop.permute.xlu1 %1473  ;;  %v2224_v2 = vadd.f32 %v2223_v13, %v2222_v41  ;;  %v1779_v42 = vsel %vm1755_vm10, %v1746_v43, %v1476_v38  ;;  %v2125_v30 = vadd.f32 %v2124_v48, %v2123_v14  ;;  %v1583_v41 = vsel %vm1557_vm4, %v1550_v0, %v4803_v37 }
 0x246   : > { %v1778_v55 = vsel %vm1755_vm10, %v1745_v17, %v1474_v63  ;;  %v1616_v39 = vsel %vm1590_vm5, %v1583_v41, %v1000_v6 }
 0x247   : > { %2550 = vmatprep.mubr.msk.f32.mxu1 %vm1797_vm11, %v1778_v55  ;;  %v2226_v3 = vadd.f32 %v2225_v49, %v2224_v2  ;;  %v1649_v52 = vsel %vm1623_vm6, %v1616_v39, %v1096_v35  ;;  %v4805_v49 = vld [vmem:[#allocation52_spill] sm:$0xff] }
 0x248   : > { %2551 = vmatmul.mubr.msk.f32.gmra.mxu1 %vm1797_vm11, %v1779_v42  ;;  %v1286_v34 = vpop.permute.xlu0 %1285 }
 0x249   : > { %v1190_v4 = vpop.permute.xlu1 %1189 }
 0x24a   : > { %v1681_v59 = vsel %vm1656_vm7, %v1648_v11, %v1190_v4 }
 0x24b   : > { %v1714_v26 = vsel %vm1689_vm9, %v1681_v59, %v1286_v34  ;;  %v4806_v34 = vld [vmem:[#allocation57_spill] sm:$0xff] }
 0x24c   : > { %v1288_v19 = vpop.permute.xlu0 %1287  ;;  %v1552_v4 = vsel %vm378_vm0, %v4036_v20, %v4806_v34 }
 0x24d   : > { %v1192_v33 = vpop.permute.xlu1 %1191  ;;  %v1585_v37 = vsel %vm1557_vm4, %v1552_v4, %v4808_v28 }
 0x24e   : > { %v1682_v31 = vsel %vm1656_vm7, %v1649_v52, %v1192_v33 }
 0x24f   : > { %v1715_v5 = vsel %vm1689_vm9, %v1682_v31, %v1288_v19 }
 0x250   : > { %v4334_v53 = vpop.permute.xlu0 %1003 }
 0x251   : > { %v4336_v7 = vpop.permute.xlu1 %1001 }
 0x253   : > { %v2525_v16 = vpop.f32.mrf.mxu0 }
 0x254   : > { %2297 = vst.msk [vmem:[%s4277_s11 + $0x28] sm:$0xff] %vm378_vm0, %v2525_v16  ;;  %v1384_v54 = vpop.permute.xlu0 %1383  ;;  %v2193_v22 = vmul.f32 %v2525_v16, %v2525_v16  ;;  %v2128_v6 = vsel %vm378_vm0, %v2525_v16, 0.0  ;;  %v4807_v16 = vld [vmem:[#allocation4_spill] sm:$0xff] }
 0x255   : > { %v1382_v60 = vpop.permute.xlu1 %1381  ;;  %v1980_v61 = vpop.f32.mrf.mxu0  ;;  %v1748_v56 = vsel %vm1722_vm8, %v1715_v5, %v1384_v54 }
 0x256   : > { %v2126_v36 = vsel %vm378_vm0, %v1980_v61, 0.0  ;;  %v2192_v24 = vmul.f32 %v1980_v61, %v1980_v61  ;;  %2296 = vst.msk [vmem:[%s4277_s11 + $0x20] sm:$0xff] %vm378_vm0, %v1980_v61  ;;  %v2229_v32 = vsel %vm378_vm0, %v2193_v22, 0.0  ;;  %v1747_v44 = vsel %vm1722_vm8, %v1714_v26, %v1382_v60 }
 0x257   : > { %v2127_v51 = vadd.f32 %v2126_v36, %v2125_v30 }
 0x258   : > { %v2227_v10 = vsel %vm378_vm0, %v2192_v24, 0.0  ;;  %v1100_v1 = vpop.permute.xlu0 %1099 }
 0x259   : > { %v1098_v8 = vpop.permute.xlu1 %1097  ;;  %v2228_v47 = vadd.f32 %v2227_v10, %v2226_v3  ;;  %v2129_v21 = vadd.f32 %v2128_v6, %v2127_v51  ;;  %v1551_v3 = vsel %vm378_vm0, %v4027_v62, %v4805_v49  ;;  %v1618_v62 = vsel %vm1590_vm5, %v1585_v37, %v4334_v53  ;;  %v4812_v49 = vld [vmem:[#allocation72_spill] sm:$0xff] }
 0x25a   : > { %v1584_v12 = vsel %vm1557_vm4, %v1551_v3, %v4807_v16  ;;  %v1651_v25 = vsel %vm1623_vm6, %v1618_v62, %v1100_v1 }
 0x25b   : > { %v2230_v35 = vadd.f32 %v2229_v32, %v2228_v47  ;;  %v1617_v20 = vsel %vm1590_vm5, %v1584_v12, %v4336_v7 }
 0x25c   : > { %v1480_v27 = vpop.permute.xlu0 %1479  ;;  %v1650_v50 = vsel %vm1623_vm6, %v1617_v20, %v1098_v8  ;;  %v4813_v20 = vld [vmem:[#allocation56_spill] sm:$0xff] }
 0x25d   : > { %v1478_v18 = vpop.permute.xlu1 %1477  ;;  %v1781_v46 = vsel %vm1755_vm10, %v1748_v56, %v1480_v27 }
 0x25e   : > { %v1780_v45 = vsel %vm1755_vm10, %v1747_v44, %v1478_v18 }
 0x25f   : > { %2553 = vmatprep.mubr.msk.f32.mxu1 %vm1797_vm11, %v1780_v45 }
 0x260   : > { %2554 = vmatmul.mubr.msk.f32.gmra.mxu1 %vm1797_vm11, %v1781_v46  ;;  %v1290_v29 = vpop.permute.xlu0 %1289 }
 0x261   : > { %v1194_v14 = vpop.permute.xlu1 %1193 }
 0x262   : > { %v1683_v61 = vsel %vm1656_vm7, %v1650_v50, %v1194_v14 }
 0x263   : > { %v1716_v53 = vsel %vm1689_vm9, %v1683_v61, %v1290_v29 }
 0x264   : > { %v1292_v43 = vpop.permute.xlu0 %1291 }
 0x265   : > { %v1196_v17 = vpop.permute.xlu1 %1195 }
 0x266   : > { %v1684_v23 = vsel %vm1656_vm7, %v1651_v25, %v1196_v17 }
 0x267   : > { %v2528_v48 = vpop.f32.mrf.mxu0  ;;  %v1717_v24 = vsel %vm1689_vm9, %v1684_v23, %v1292_v43  ;;  %v4809_v43 = vld [vmem:[#allocation54_spill] sm:$0xff] }
 0x268   : > { %2299 = vst.msk [vmem:[%s4277_s11 + $0x38] sm:$0xff] %vm378_vm0, %v2528_v48  ;;  %v4372_v13 = vpop.permute.xlu0 %1007  ;;  %v2195_v2 = vmul.f32 %v2528_v48, %v2528_v48  ;;  %v2132_v19 = vsel %vm378_vm0, %v2528_v48, 0.0  ;;  %v1553_v17 = vsel %vm378_vm0, %v4082_v40, %v4809_v43  ;;  %v4810_v48 = vld [vmem:[#allocation58_spill] sm:$0xff] }
 0x269   : > { %v4374_v38 = vpop.permute.xlu1 %1005  ;;  %v1990_v63 = vpop.f32.mrf.mxu0 }
 0x26a   : > { %v2130_v42 = vsel %vm378_vm0, %v1990_v63, 0.0  ;;  %v2194_v55 = vmul.f32 %v1990_v63, %v1990_v63  ;;  %2298 = vst.msk [vmem:[%s4277_s11 + $0x30] sm:$0xff] %vm378_vm0, %v1990_v63  ;;  %v2233_v60 = vsel %vm378_vm0, %v2195_v2, 0.0  ;;  %v1554_v63 = vsel %vm378_vm0, %v4096_v57, %v4810_v48 }
 0x26b   : > { %v2131_v30 = vadd.f32 %v2130_v42, %v2129_v21  ;;  %v1587_v3 = vsel %vm1557_vm4, %v1554_v63, %v4812_v49 }
 0x26c   : > { %v2231_v33 = vsel %vm378_vm0, %v2194_v55, 0.0  ;;  %v1388_v9 = vpop.permute.xlu0 %1387  ;;  %v4811_v55 = vld [vmem:[#allocation29_spill] sm:$0xff]  ;;  %v1620_v34 = vsel %vm1590_vm5, %v1587_v3, %v4372_v13 }
 0x26d   : > { %v1386_v0 = vpop.permute.xlu1 %1385  ;;  %v2232_v41 = vadd.f32 %v2231_v33, %v2230_v35  ;;  %v2133_v54 = vadd.f32 %v2132_v19, %v2131_v30  ;;  %v1750_v7 = vsel %vm1722_vm8, %v1717_v24, %v1388_v9  ;;  %v1586_v30 = vsel %vm1557_vm4, %v1553_v17, %v4811_v55 }
 0x26e   : > { %v1749_v52 = vsel %vm1722_vm8, %v1716_v53, %v1386_v0  ;;  %v1619_v4 = vsel %vm1590_vm5, %v1586_v30, %v4374_v38 }
 0x26f   : > { %v2234_v39 = vadd.f32 %v2233_v60, %v2232_v41  ;;  %v1555_v60 = vsel %vm378_vm0, %v4142_v58, %v4813_v20 }
 0x270   : > { %v1104_v22 = vpop.permute.xlu0 %1103 }
 0x271   : > { %v1102_v36 = vpop.permute.xlu1 %1101  ;;  %v1653_v40 = vsel %vm1623_vm6, %v1620_v34, %v1104_v22 }
 0x272   : > { %v1652_v19 = vsel %vm1623_vm6, %v1619_v4, %v1102_v36 }
 0x274   : > { %v1484_v11 = vpop.permute.xlu0 %1483 }
 0x275   : > { %v1482_v51 = vpop.permute.xlu1 %1481  ;;  %v1783_v59 = vsel %vm1755_vm10, %v1750_v7, %v1484_v11 }
 0x276   : > { %v1782_v31 = vsel %vm1755_vm10, %v1749_v52, %v1482_v51 }
 0x277   : > { %2556 = vmatprep.mubr.msk.f32.mxu1 %vm1797_vm11, %v1782_v31 }
 0x278   : > { %2557 = vmatmul.mubr.msk.f32.gmra.mxu1 %vm1797_vm11, %v1783_v59  ;;  %v1294_v6 = vpop.permute.xlu0 %1293 }
 0x279   : > { %v1198_v10 = vpop.permute.xlu1 %1197 }
 0x27a   : > { %v1685_v57 = vsel %vm1656_vm7, %v1652_v19, %v1198_v10 }
 0x27b   : > { %v2531_v1 = vpop.f32.mrf.mxu0  ;;  %v1718_v12 = vsel %vm1689_vm9, %v1685_v57, %v1294_v6 }
 0x27c   : > { %2301 = vst.msk [vmem:[%s4277_s11 + $0x48] sm:$0xff] %vm378_vm0, %v2531_v1  ;;  %v1296_v8 = vpop.permute.xlu0 %1295  ;;  %v2197_v32 = vmul.f32 %v2531_v1, %v2531_v1  ;;  %v2136_v56 = vsel %vm378_vm0, %v2531_v1, 0.0 }
 0x27d   : > { %v1200_v47 = vpop.permute.xlu1 %1199  ;;  %v2000_v21 = vpop.f32.mrf.mxu0 }
 0x27e   : > { %v2134_v5 = vsel %vm378_vm0, %v2000_v21, 0.0  ;;  %v2196_v26 = vmul.f32 %v2000_v21, %v2000_v21  ;;  %2300 = vst.msk [vmem:[%s4277_s11 + $0x40] sm:$0xff] %vm378_vm0, %v2000_v21  ;;  %v2237_v29 = vsel %vm378_vm0, %v2197_v32, 0.0  ;;  %v1686_v33 = vsel %vm1656_vm7, %v1653_v40, %v1200_v47 }
 0x27f   : > { %v2135_v35 = vadd.f32 %v2134_v5, %v2133_v54  ;;  %v1719_v16 = vsel %vm1689_vm9, %v1686_v33, %v1296_v8 }
 0x280   : > { %v2235_v44 = vsel %vm378_vm0, %v2196_v26, 0.0  ;;  %v1012_v27 = vpop.permute.xlu0 %1011 }
 0x281   : > { %v1010_v18 = vpop.permute.xlu1 %1009  ;;  %v2236_v46 = vadd.f32 %v2235_v44, %v2234_v39  ;;  %v2137_v45 = vadd.f32 %v2136_v56, %v2135_v35  ;;  %v4814_v39 = vld [vmem:[#allocation8_spill] sm:$0xff]  ;;  %v4815_v35 = vld [vmem:[#allocation59_spill] sm:$0xff]  ;;  %v4816_v44 = vld [vmem:[#allocation73_spill] sm:$0xff] }
 0x282   : > { %v1588_v61 = vsel %vm1557_vm4, %v1555_v60, %v4814_v39  ;;  %v1556_v56 = vsel %vm378_vm0, %v4150_v15, %v4815_v35 }
 0x283   : > { %v2238_v14 = vadd.f32 %v2237_v29, %v2236_v46  ;;  %v1621_v22 = vsel %vm1590_vm5, %v1588_v61, %v1010_v18  ;;  %v1589_v18 = vsel %vm1557_vm4, %v1556_v56, %v4816_v44 }
 0x284   : > { %v1392_v2 = vpop.permute.xlu0 %1391  ;;  %v1622_v46 = vsel %vm1590_vm5, %v1589_v18, %v1012_v27 }
 0x285   : > { %v1390_v42 = vpop.permute.xlu1 %1389  ;;  %v1752_v13 = vsel %vm1722_vm8, %v1719_v16, %v1392_v2 }
 0x286   : > { %v1751_v28 = vsel %vm1722_vm8, %v1718_v12, %v1390_v42 }
 0x288   : > { %v1108_v9 = vpop.permute.xlu0 %1107 }
 0x289   : > { %v1106_v0 = vpop.permute.xlu1 %1105  ;;  %v1655_v29 = vsel %vm1623_vm6, %v1622_v46, %v1108_v9 }
 0x28a   : > { %v1654_v7 = vsel %vm1623_vm6, %v1621_v22, %v1106_v0 }
 0x28c   : > { %v1488_v38 = vpop.permute.xlu0 %1487 }
 0x28d   : > { %v1486_v37 = vpop.permute.xlu1 %1485  ;;  %v1785_v41 = vsel %vm1755_vm10, %v1752_v13, %v1488_v38 }
 0x28e   : > { %v1784_v54 = vsel %vm1755_vm10, %v1751_v28, %v1486_v37 }
 0x28f   : > { %2559 = vmatprep.mubr.msk.f32.mxu1 %vm1797_vm11, %v1784_v54  ;;  %v2534_v62 = vpop.f32.mrf.mxu0 }
 0x290   : > { %2560 = vmatmul.mubr.msk.f32.gmra.mxu1 %vm1797_vm11, %v1785_v41  ;;  %2303 = vst.msk [vmem:[%s4277_s11 + $0x58] sm:$0xff] %vm378_vm0, %v2534_v62  ;;  %v1298_v25 = vpop.permute.xlu0 %1297  ;;  %v2199_v36 = vmul.f32 %v2534_v62, %v2534_v62  ;;  %v2140_v58 = vsel %vm378_vm0, %v2534_v62, 0.0 }
 0x291   : > { %v1202_v50 = vpop.permute.xlu1 %1201  ;;  %v2010_v23 = vpop.f32.mrf.mxu0 }
 0x292   : > { %v2138_v24 = vsel %vm378_vm0, %v2010_v23, 0.0  ;;  %v2198_v53 = vmul.f32 %v2010_v23, %v2010_v23  ;;  %2302 = vst.msk [vmem:[%s4277_s11 + $0x50] sm:$0xff] %vm378_vm0, %v2010_v23  ;;  %v1687_v51 = vsel %vm1656_vm7, %v1654_v7, %v1202_v50  ;;  %v2241_v1 = vsel %vm378_vm0, %v2199_v36, 0.0 }
 0x293   : > { %v2139_v52 = vadd.f32 %v2138_v24, %v2137_v45  ;;  %v1720_v8 = vsel %vm1689_vm9, %v1687_v51, %v1298_v25 }
 0x294   : > { %v2239_v11 = vsel %vm378_vm0, %v2198_v53, 0.0  ;;  %v1394_v59 = vpop.permute.xlu0 %1393 }
 0x295   : > { %v1204_v31 = vpop.permute.xlu1 %1203  ;;  %v2240_v6 = vadd.f32 %v2239_v11, %v2238_v14  ;;  %v2141_v10 = vadd.f32 %v2140_v58, %v2139_v52  ;;  %v1753_v21 = vsel %vm1722_vm8, %v1720_v8, %v1394_v59 }
 0x296   : > { %v1688_v14 = vsel %vm1656_vm7, %v1655_v29, %v1204_v31 }
 0x297   : > { %v2242_v47 = vadd.f32 %v2241_v1, %v2240_v6 }
 0x298   : > { %v1490_v32 = vpop.permute.xlu0 %1489 }
 0x299   : > { %v1300_v5 = vpop.permute.xlu1 %1299  ;;  %v1786_v26 = vsel %vm1755_vm10, %v1753_v21, %v1490_v32 }
 0x29a   : > { %2562 = vmatprep.mubr.msk.f32.mxu1 %vm1797_vm11, %v1786_v26  ;;  %v1721_v43 = vsel %vm1689_vm9, %v1688_v14, %v1300_v5 }
 0x29d   : > { %v1396_v45 = vpop.permute.xlu1 %1395 }
 0x29e   : > { %v1754_v17 = vsel %vm1722_vm8, %v1721_v43, %v1396_v45 }
 0x2a1   : > { %v1492_v48 = vpop.permute.xlu1 %1491 }
 0x2a2   : > { %v1787_v15 = vsel %vm1755_vm10, %v1754_v17, %v1492_v48 }
 0x2a3   : > { %2563 = vmatmul.mubr.msk.f32.gmra.mxu1 %vm1797_vm11, %v1787_v15  ;;  %v2537_v63 = vpop.f32.mrf.mxu0 }
 0x2a4   : > { %2305 = vst.msk [vmem:[%s4277_s11 + $0x68] sm:$0xff] %vm378_vm0, %v2537_v63  ;;  %v2201_v27 = vmul.f32 %v2537_v63, %v2537_v63  ;;  %v2144_v49 = vsel %vm378_vm0, %v2537_v63, 0.0 }
 0x2a5   : > { %v2020_v2 = vpop.f32.mrf.mxu0 }
 0x2a6   : > { %v2142_v42 = vsel %vm378_vm0, %v2020_v2, 0.0  ;;  %v2200_v55 = vmul.f32 %v2020_v2, %v2020_v2  ;;  %2304 = vst.msk [vmem:[%s4277_s11 + $0x60] sm:$0xff] %vm378_vm0, %v2020_v2  ;;  %v2245_v40 = vsel %vm378_vm0, %v2201_v27, 0.0 }
 0x2a7   : > { %v2143_v30 = vadd.f32 %v2142_v42, %v2141_v10 }
 0x2a8   : > { %v2243_v3 = vsel %vm378_vm0, %v2200_v55, 0.0 }
 0x2a9   : > { %v2244_v34 = vadd.f32 %v2243_v3, %v2242_v47  ;;  %v2145_v4 = vadd.f32 %v2144_v49, %v2143_v30 }
 0x2ab   : > { %v2246_v19 = vadd.f32 %v2245_v40, %v2244_v34 }
 0x2b7   : > { %v2540_v57 = vpop.f32.mrf.mxu0 }
 0x2b8   : > { %2307 = vst.msk [vmem:[%s4277_s11 + $0x78] sm:$0xff] %vm378_vm0, %v2540_v57  ;;  %v2203_v9 = vmul.f32 %v2540_v57, %v2540_v57  ;;  %v2148_v13 = vsel %vm378_vm0, %v2540_v57, 0.0 }
 0x2b9   : > { %v2030_v33 = vpop.f32.mrf.mxu0 }
 0x2ba   : > { %v2146_v0 = vsel %vm378_vm0, %v2030_v33, 0.0  ;;  %v2202_v16 = vmul.f32 %v2030_v33, %v2030_v33  ;;  %2306 = vst.msk [vmem:[%s4277_s11 + $0x70] sm:$0xff] %vm378_vm0, %v2030_v33  ;;  %v2249_v41 = vsel %vm378_vm0, %v2203_v9, 0.0 }
 0x2bb   : > { %v2147_v12 = vadd.f32 %v2146_v0, %v2145_v4 }
 0x2bc   : > { %v2247_v28 = vsel %vm378_vm0, %v2202_v16, 0.0 }
 0x2bd   : > { %v2149_v38 = vadd.f32 %v2148_v13, %v2147_v12  ;;  %v2248_v37 = vadd.f32 %v2247_v28, %v2246_v19 }
 0x2bf   : > { %v2250_v54 = vadd.f32 %v2249_v41, %v2248_v37 }
 0x2cb   : > { %v2543_v62 = vpop.f32.mrf.mxu1 }
 0x2cc   : > { %2309 = vst.msk [vmem:[%s4277_s11 + $0x88] sm:$0xff] %vm378_vm0, %v2543_v62  ;;  %v2205_v60 = vmul.f32 %v2543_v62, %v2543_v62  ;;  %v2152_v61 = vsel %vm378_vm0, %v2543_v62, 0.0 }
 0x2cd   : > { %v2040_v20 = vpop.f32.mrf.mxu1 }
 0x2ce   : > { %v2150_v25 = vsel %vm378_vm0, %v2040_v20, 0.0  ;;  %v2204_v50 = vmul.f32 %v2040_v20, %v2040_v20  ;;  %2308 = vst.msk [vmem:[%s4277_s11 + $0x80] sm:$0xff] %vm378_vm0, %v2040_v20  ;;  %v2253_v24 = vsel %vm378_vm0, %v2205_v60, 0.0 }
 0x2cf   : > { %v2151_v39 = vadd.f32 %v2150_v25, %v2149_v38 }
 0x2d0   : > { %v2251_v23 = vsel %vm378_vm0, %v2204_v50, 0.0 }
 0x2d1   : > { %v2252_v22 = vadd.f32 %v2251_v23, %v2250_v54  ;;  %v2153_v36 = vadd.f32 %v2152_v61, %v2151_v39 }
 0x2d3   : > { %v2254_v53 = vadd.f32 %v2253_v24, %v2252_v22 }
 0x2df   : > { %v2546_v7 = vpop.f32.mrf.mxu1 }
 0x2e0   : > { %2311 = vst.msk [vmem:[%s4277_s11 + $0x98] sm:$0xff] %vm378_vm0, %v2546_v7  ;;  %v2207_v58 = vmul.f32 %v2546_v7, %v2546_v7  ;;  %v2156_v31 = vsel %vm378_vm0, %v2546_v7, 0.0 }
 0x2e1   : > { %v2050_v52 = vpop.f32.mrf.mxu1 }
 0x2e2   : > { %v2154_v11 = vsel %vm378_vm0, %v2050_v52, 0.0  ;;  %v2206_v51 = vmul.f32 %v2050_v52, %v2050_v52  ;;  %2310 = vst.msk [vmem:[%s4277_s11 + $0x90] sm:$0xff] %vm378_vm0, %v2050_v52  ;;  %v2257_v8 = vsel %vm378_vm0, %v2207_v58, 0.0 }
 0x2e3   : > { %v2155_v59 = vadd.f32 %v2154_v11, %v2153_v36 }
 0x2e4   : > { %v2255_v6 = vsel %vm378_vm0, %v2206_v51, 0.0 }
 0x2e5   : > { %v2256_v10 = vadd.f32 %v2255_v6, %v2254_v53  ;;  %v2157_v1 = vadd.f32 %v2156_v31, %v2155_v59 }
 0x2e7   : > { %v2258_v47 = vadd.f32 %v2257_v8, %v2256_v10 }
 0x2f0   : > { %v2549_v21 = vpop.f32.mrf.mxu1 }
 0x2f1   : > { %2313 = vst.msk [vmem:[%s4277_s11 + $0xa8] sm:$0xff] %vm378_vm0, %v2549_v21  ;;  %v2209_v5 = vmul.f32 %v2549_v21, %v2549_v21  ;;  %v2160_v44 = vsel %vm378_vm0, %v2549_v21, 0.0 }
 0x2f2   : > { %v2060_v32 = vpop.f32.mrf.mxu1 }
 0x2f3   : > { %v2158_v26 = vsel %vm378_vm0, %v2060_v32, 0.0  ;;  %v2208_v35 = vmul.f32 %v2060_v32, %v2060_v32  ;;  %2312 = vst.msk [vmem:[%s4277_s11 + $0xa0] sm:$0xff] %vm378_vm0, %v2060_v32  ;;  %v2261_v29 = vsel %vm378_vm0, %v2209_v5, 0.0 }
 0x2f4   : > { %v2159_v56 = vadd.f32 %v2158_v26, %v2157_v1 }
 0x2f5   : > { %v2259_v18 = vsel %vm378_vm0, %v2208_v35, 0.0 }
 0x2f6   : > { %v2260_v46 = vadd.f32 %v2259_v18, %v2258_v47  ;;  %v2161_v45 = vadd.f32 %v2160_v44, %v2159_v56 }
 0x2f8   : > { %v2262_v14 = vadd.f32 %v2261_v29, %v2260_v46 }
 0x308   : > { %v2552_v43 = vpop.f32.mrf.mxu1 }
 0x309   : > { %2315 = vst.msk [vmem:[%s4277_s11 + $0xb8] sm:$0xff] %vm378_vm0, %v2552_v43  ;;  %v2211_v48 = vmul.f32 %v2552_v43, %v2552_v43  ;;  %v2164_v27 = vsel %vm378_vm0, %v2552_v43, 0.0 }
 0x30a   : > { %v2070_v17 = vpop.f32.mrf.mxu1 }
 0x30b   : > { %v2162_v15 = vsel %vm378_vm0, %v2070_v17, 0.0  ;;  %v2210_v63 = vmul.f32 %v2070_v17, %v2070_v17  ;;  %2314 = vst.msk [vmem:[%s4277_s11 + $0xb0] sm:$0xff] %vm378_vm0, %v2070_v17  ;;  %v2265_v49 = vsel %vm378_vm0, %v2211_v48, 0.0 }
 0x30c   : > { %v2163_v2 = vadd.f32 %v2162_v15, %v2161_v45 }
 0x30d   : > { %v2263_v42 = vsel %vm378_vm0, %v2210_v63, 0.0 }
 0x30e   : > { %v2264_v55 = vadd.f32 %v2263_v42, %v2262_v14  ;;  %v2165_v30 = vadd.f32 %v2164_v27, %v2163_v2 }
 0x310   : > { %v2266_v3 = vadd.f32 %v2265_v49, %v2264_v55 }
 0x320   : > { %v2555_v34 = vpop.f32.mrf.mxu1 }
 0x321   : > { %2317 = vst.msk [vmem:[%s4277_s11 + $0xc8] sm:$0xff] %vm378_vm0, %v2555_v34  ;;  %v2213_v13 = vmul.f32 %v2555_v34, %v2555_v34  ;;  %v2168_v37 = vsel %vm378_vm0, %v2555_v34, 0.0 }
 0x322   : > { %v2080_v4 = vpop.f32.mrf.mxu1 }
 0x323   : > { %2316 = vst.msk [vmem:[%s4277_s11 + $0xc0] sm:$0xff] %vm378_vm0, %v2080_v4  ;;  %v2212_v57 = vmul.f32 %v2080_v4, %v2080_v4  ;;  %v2166_v9 = vsel %vm378_vm0, %v2080_v4, 0.0  ;;  %v2269_v62 = vsel %vm378_vm0, %v2213_v13, 0.0 }
 0x324   : > { %v2167_v12 = vadd.f32 %v2166_v9, %v2165_v30 }
 0x325   : > { %v2267_v16 = vsel %vm378_vm0, %v2212_v57, 0.0 }
 0x326   : > { %v2268_v38 = vadd.f32 %v2267_v16, %v2266_v3  ;;  %v2169_v54 = vadd.f32 %v2168_v37, %v2167_v12 }
 0x328   : > { %v2270_v25 = vadd.f32 %v2269_v62, %v2268_v38 }
 0x338   : > { %v2558_v40 = vpop.f32.mrf.mxu1 }
 0x339   : > { %2319 = vst.msk [vmem:[%s4277_s11 + $0xd8] sm:$0xff] %vm378_vm0, %v2558_v40  ;;  %v2215_v50 = vmul.f32 %v2558_v40, %v2558_v40  ;;  %v2172_v23 = vsel %vm378_vm0, %v2558_v40, 0.0 }
 0x33a   : > { %v2090_v19 = vpop.f32.mrf.mxu1 }
 0x33b   : > { %2318 = vst.msk [vmem:[%s4277_s11 + $0xd0] sm:$0xff] %vm378_vm0, %v2090_v19  ;;  %v2214_v28 = vmul.f32 %v2090_v19, %v2090_v19  ;;  %v2170_v41 = vsel %vm378_vm0, %v2090_v19, 0.0  ;;  %v2273_v24 = vsel %vm378_vm0, %v2215_v50, 0.0 }
 0x33c   : > { %v2171_v60 = vadd.f32 %v2170_v41, %v2169_v54 }
 0x33d   : > { %v2271_v20 = vsel %vm378_vm0, %v2214_v28, 0.0 }
 0x33e   : > { %v2272_v61 = vadd.f32 %v2271_v20, %v2270_v25  ;;  %v2173_v36 = vadd.f32 %v2172_v23, %v2171_v60 }
 0x340   : > { %v2274_v52 = vadd.f32 %v2273_v24, %v2272_v61 }
 0x350   : > { %v2561_v33 = vpop.f32.mrf.mxu1 }
 0x351   : > { %2321 = vst.msk [vmem:[%s4277_s11 + $0xe8] sm:$0xff] %vm378_vm0, %v2561_v33  ;;  %v2217_v58 = vmul.f32 %v2561_v33, %v2561_v33  ;;  %v2176_v59 = vsel %vm378_vm0, %v2561_v33, 0.0 }
 0x352   : > { %v2100_v0 = vpop.f32.mrf.mxu1 }
 0x353   : > { %2320 = vst.msk [vmem:[%s4277_s11 + $0xe0] sm:$0xff] %vm378_vm0, %v2100_v0  ;;  %v2216_v39 = vmul.f32 %v2100_v0, %v2100_v0  ;;  %v2174_v22 = vsel %vm378_vm0, %v2100_v0, 0.0  ;;  %v2277_v10 = vsel %vm378_vm0, %v2217_v58, 0.0 }
 0x354   : > { %v2175_v7 = vadd.f32 %v2174_v22, %v2173_v36 }
 0x355   : > { %v2275_v53 = vsel %vm378_vm0, %v2216_v39, 0.0 }
 0x356   : > { %v2276_v11 = vadd.f32 %v2275_v53, %v2274_v52  ;;  %v2177_v6 = vadd.f32 %v2176_v59, %v2175_v7 }
 0x358   : > { %v2278_v32 = vadd.f32 %v2277_v10, %v2276_v11 }
 0x363   : > { %v2564_v51 = vpop.f32.mrf.mxu1 }
 0x364   : > { %2323 = vst.msk [vmem:[%s4277_s11 + $0xf8] sm:$0xff] %vm378_vm0, %v2564_v51  ;;  %v2219_v1 = vmul.f32 %v2564_v51, %v2564_v51  ;;  %v2180_v5 = vsel %vm378_vm0, %v2564_v51, 0.0 }
 0x365   : > { %v2110_v31 = vpop.f32.mrf.mxu1 }
 0x366   : > { %v2178_v8 = vsel %vm378_vm0, %v2110_v31, 0.0  ;;  %v2218_v47 = vmul.f32 %v2110_v31, %v2110_v31  ;;  %2322 = vst.msk [vmem:[%s4277_s11 + $0xf0] sm:$0xff] %vm378_vm0, %v2110_v31  ;;  %v2281_v44 = vsel %vm378_vm0, %v2219_v1, 0.0 }
 0x367   : > { %v2179_v21 = vadd.f32 %v2178_v8, %v2177_v6 }
 0x368   : > { %v2279_v26 = vsel %vm378_vm0, %v2218_v47, 0.0 }
 0x369   : > { %v2181_v35 = vadd.f32 %v2180_v5, %v2179_v21  ;;  %v2280_v56 = vadd.f32 %v2279_v26, %v2278_v32 }
 0x36b   : > { %v2182_v18 = vrot.slane %v2181_v35, 4  ;;  %v2282_v46 = vadd.f32 %v2281_v44, %v2280_v56 }
 0x36d   : > { %v2183_v45 = vadd.f32 %v2182_v18, %v2181_v35  ;;  %v2283_v29 = vrot.slane %v2282_v46, 4 }
 0x36f   : > { %v2184_v14 = vrot.slane %v2183_v45, 2  ;;  %v2284_v43 = vadd.f32 %v2283_v29, %v2282_v46 }
 0x371   : > { %v2185_v17 = vadd.f32 %v2184_v14, %v2183_v45  ;;  %v2285_v48 = vrot.slane %v2284_v43, 2 }
 0x373   : > { %v2186_v15 = vrot.slane %v2185_v17, 1  ;;  %v2286_v63 = vadd.f32 %v2285_v48, %v2284_v43 }
 0x375   : > { %v2287_v2 = vrot.slane %v2286_v63, 1  ;;  %v2187_v27 = vadd.f32 %v2186_v15, %v2185_v17 }
 0x377   : > { %v2288_v42 = vadd.f32 %v2287_v2, %v2286_v63 }
 0x379   : > { %v2290_v55 = vsel %vm2289_vm12, %v2187_v27, %v2288_v42 }
 0x37a   : > { %2291 = vst.msk [vmem:[%s235_s17] sm:$0x3] %vm381_vm1, %v2290_v55 }
 0x37b PF: > { %s16_s18 = sadd.s32 1, %s2640_s18  }
 0x37c   : > { %p13_p4 = scmp.ge.s32.totalorder %s16_s18, 4  }
 0x37e   :  { %15 = sbr.rel (!%p13_p4) target bundleno = 1 (0x1), region = 79 }

// kernel: decoder_forward.4
= control target key start
LH: loop header
LB: loop body
LE: loop exit
PB: predicated region body
PF: predicated region fallthrough
CT: control target
= control target key end

     0   :  { %s2503_s12 = smov 0   ;;  %s4290_s0 = inlined_call_operand.vmem [shape: f32[2,16,16,8], index: 0, kind: input, shape index: {}]   ;;  %s4291_s1 = inlined_call_operand.vmem [shape: f32[72,8], index: 1, kind: input, shape index: {}]   ;;  %s4292_s2 = inlined_call_operand.vmem [shape: f32[2,256,8], index: 2, kind: output, shape index: {0}]   ;;  %s4293_s3 = inlined_call_operand.vmem [shape: f32[2,2,8], index: 3, kind: output, shape index: {1}]  }
   0x1 LB: > { %s2246_s13 = sadd.s32 4294967295, %s2472_s12   ;;  %p2250_p0 = scmp.ge.s32.totalorder %s2472_s12, 1  ;;  %s2472_s12 = sphi %s2503_s12, %s14_s12  }
   0x2   : > { %p140_p1 = scmp.lt.s32.totalorder %s2472_s12, 3 }
   0x4   : > { %p141_p2 = pnand %p2250_p0, %p140_p1 }
   0x6   : > { %144 = sbr.rel (%p141_p2) target bundleno = 890 (0x37a), region = 28 }
   0xb   : > { %vm214_vm0 = vcmask 64512   ;;  %vm217_vm1 = vcmask 58368   ;;  %p2513_p3 = scmp.lt.s32.totalorder %s2246_s13, 1  ;;  %v2474_v0 = vmov 0.0   ;;  %vm405_vm2 = vcmask 1046528   ;;  %s2475_s19 = smov 8  }
   0xc   : > { %215 = vst.msk [vmem:[#allocation2] sm:$0xff] %vm214_vm0, %v2474_v0  ;;  %216 = vst.msk [vmem:[#allocation2 + $0x8] sm:$0xff] %vm214_vm0, %v2474_v0  ;;  %vm486_vm3 = vcmask 1045504   ;;  %s2476_s20 = smov 16   ;;  %s2477_s21 = smov 24   ;;  %vm1393_vm4 = vcmask 130048  }
   0xd   : > { %219 = vst.msk [vmem:[#allocation2 + $0x18] sm:$0xff] %vm214_vm0, %v2474_v0  ;;  %220 = vst.msk [vmem:[#allocation2 + $0x20] sm:$0xff] %vm214_vm0, %v2474_v0  ;;  %s4544_s13 = smov (!%p2513_p3, %s2246_s13), 1  ;;  %s2478_s28 = smov 32   ;;  %vm1426_vm5 = vcmask 195584   ;;  %vm1459_vm6 = vcmask 261120  }
   0xe   : > { %222 = vst.msk [vmem:[#allocation2 + $0x30] sm:$0xff] %vm214_vm0, %v2474_v0  ;;  %223 = vst.msk [vmem:[#allocation2 + $0x38] sm:$0xff] %vm214_vm0, %v2474_v0  ;;  %s2290_s15 = sshll.u32 %s4544_s13, 8  ;;  %s2479_s6 = smov 40   ;;  %vm1492_vm7 = vcmask 326656   ;;  %vm1558_vm8 = vcmask 457728  }
   0xf   : > { %225 = vst.msk [vmem:[#allocation2 + $0x48] sm:$0xff] %vm214_vm0, %v2474_v0  ;;  %226 = vst.msk [vmem:[#allocation2 + $0x50] sm:$0xff] %vm214_vm0, %v2474_v0  ;;  %s2583_s18 = scalar_lea.vmem %s4290_s0, %s2290_s15  ;;  %s2480_s11 = smov 48   ;;  %vm1525_vm9 = vcmask 392192   ;;  %vm1591_vm10 = vcmask 523264   ;;  %vm1633_vm11 = vcmask 588800  }
  0x10   : > { %228 = vst.msk [vmem:[#allocation2 + $0x60] sm:$0xff] %vm214_vm0, %v2474_v0  ;;  %229 = vst.msk [vmem:[#allocation2 + $0x68] sm:$0xff] %vm214_vm0, %v2474_v0  ;;  %v182_v1 = vld [vmem:[%s2583_s18] sm:$0xff]  ;;  %v183_v2 = vld [vmem:[%s2583_s18 + $0x8] sm:$0xff]  ;;  %s2482_s22 = smov 64   ;;  %s4006_s23 = scalar_lea.vmem %s4292_s2, %s2290_s15  ;;  %vm2125_vm12 = vcmask 1040384  }
  0x11   : > { %231 = vst.msk [vmem:[#allocation2 + $0x78] sm:$0xff] %vm214_vm0, %v2474_v0  ;;  %232 = vst.msk [vmem:[#allocation2 + $0x80] sm:$0xff] %vm214_vm0, %v2474_v0  ;;  %v184_v3 = vld [vmem:[%s2583_s18 + $0x10] sm:$0xff]  ;;  %v185_v4 = vld [vmem:[%s2583_s18 + $0x18] sm:$0xff]  ;;  %s2255_s15 = sshll.u32 %s4544_s13, 1 }
  0x12   : > { %234 = vst.msk [vmem:[#allocation2 + $0x90] sm:$0xff] %vm214_vm0, %v2474_v0  ;;  %235 = vst.msk [vmem:[#allocation2 + $0x98] sm:$0xff] %vm214_vm0, %v2474_v0  ;;  %v186_v5 = vld [vmem:[%s2583_s18 + $0x20] sm:$0xff]  ;;  %v187_v6 = vld [vmem:[%s2583_s18 + $0x28] sm:$0xff]  ;;  %s181_s26 = scalar_lea.vmem %s4293_s3, %s2255_s15 }
  0x13   : > { %237 = vst.msk [vmem:[#allocation2 + $0xa8] sm:$0xff] %vm214_vm0, %v2474_v0  ;;  %238 = vst.msk [vmem:[#allocation2 + $0xb0] sm:$0xff] %vm214_vm0, %v2474_v0  ;;  %v2594_v7 = vld [vmem:[#allocation2] sm:$0xff]  ;;  %v2596_v8 = vld [vmem:[#allocation2 + $0x8] sm:$0xff] }
  0x14   : > { %240 = vst.msk [vmem:[#allocation2 + $0xc0] sm:$0xff] %vm214_vm0, %v2474_v0  ;;  %241 = vst.msk [vmem:[#allocation2 + $0xc8] sm:$0xff] %vm214_vm0, %v2474_v0  ;;  %v406_v10 = vrot.slane %v2594_v7, 1  ;;  %v407_v11 = vrot.slane %v2596_v8, 1  ;;  %v188_v13 = vld [vmem:[%s2583_s18 + $0x30] sm:$0xff]  ;;  %v189_v14 = vld [vmem:[%s2583_s18 + $0x38] sm:$0xff] }
  0x15   : > { %243 = vst.msk [vmem:[#allocation2 + $0xd8] sm:$0xff] %vm214_vm0, %v2474_v0  ;;  %244 = vst.msk [vmem:[#allocation2 + $0xe0] sm:$0xff] %vm214_vm0, %v2474_v0  ;;  %v190_v15 = vld [vmem:[%s2583_s18 + $0x40] sm:$0xff]  ;;  %v191_v16 = vld [vmem:[%s2583_s18 + $0x48] sm:$0xff] }
  0x16   : > { %246 = vst.msk [vmem:[#allocation2 + $0xf0] sm:$0xff] %vm214_vm0, %v2474_v0  ;;  %247 = vst.msk [vmem:[#allocation2 + $0xf8] sm:$0xff] %vm214_vm0, %v2474_v0  ;;  %v192_v17 = vld [vmem:[%s2583_s18 + $0x50] sm:$0xff]  ;;  %v193_v18 = vld [vmem:[%s2583_s18 + $0x58] sm:$0xff]  ;;  %v408_v19 = vsel %vm405_vm2, %v406_v10, %v407_v11 }
  0x17   : > { %249 = vst.msk [vmem:[#allocation2 + $0x108] sm:$0xff] %vm214_vm0, %v2474_v0  ;;  %250 = vst.msk [vmem:[#allocation2 + $0x110] sm:$0xff] %vm214_vm0, %v2474_v0  ;;  %v194_v20 = vld [vmem:[%s2583_s18 + $0x60] sm:$0xff]  ;;  %v195_v21 = vld [vmem:[%s2583_s18 + $0x68] sm:$0xff]  ;;  %593 = vrot.lane.b32.xlu0 %v408_v19, %s2475_s19 }
  0x18   : > { %252 = vst.msk [vmem:[#allocation2 + $0x120] sm:$0xff] %vm214_vm0, %v2474_v0  ;;  %253 = vst.msk [vmem:[#allocation2 + $0x128] sm:$0xff] %vm214_vm0, %v2474_v0  ;;  %v196_v22 = vld [vmem:[%s2583_s18 + $0x70] sm:$0xff]  ;;  %v197_v23 = vld [vmem:[%s2583_s18 + $0x78] sm:$0xff] }
  0x19   : > { %255 = vst.msk [vmem:[#allocation2 + $0x138] sm:$0xff] %vm214_vm0, %v2474_v0  ;;  %256 = vst.msk [vmem:[#allocation2 + $0x140] sm:$0xff] %vm214_vm0, %v2474_v0  ;;  %v198_v24 = vld [vmem:[%s2583_s18 + $0x80] sm:$0xff]  ;;  %v199_v25 = vld [vmem:[%s2583_s18 + $0x88] sm:$0xff] }
  0x1a   : > { %258 = vst.msk [vmem:[#allocation2 + $0x150] sm:$0xff] %vm214_vm0, %v2474_v0  ;;  %259 = vst.msk [vmem:[#allocation2 + $0x158] sm:$0xff] %vm214_vm0, %v2474_v0  ;;  %v200_v27 = vld [vmem:[%s2583_s18 + $0x90] sm:$0xff]  ;;  %v201_v28 = vld [vmem:[%s2583_s18 + $0x98] sm:$0xff] }
  0x1b   : > { %261 = vst.msk [vmem:[#allocation2 + $0x168] sm:$0xff] %vm214_vm0, %v2474_v0  ;;  %262 = vst.msk [vmem:[#allocation2 + $0x170] sm:$0xff] %vm214_vm0, %v2474_v0  ;;  %v202_v29 = vld [vmem:[%s2583_s18 + $0xa0] sm:$0xff]  ;;  %v203_v60 = vld [vmem:[%s2583_s18 + $0xa8] sm:$0xff] }
  0x1c   : > { %264 = vst.msk [vmem:[#allocation2 + $0x180] sm:$0xff] %vm214_vm0, %v2474_v0  ;;  %265 = vst.msk [vmem:[#allocation2 + $0x188] sm:$0xff] %vm214_vm0, %v2474_v0  ;;  %v207_v10 = vld [vmem:[%s2583_s18 + $0xc8] sm:$0xff] }
  0x1d   : > { %267 = vst.msk [vmem:[#allocation2 + $0x198] sm:$0xff] %vm214_vm0, %v2474_v0  ;;  %268 = vst.msk [vmem:[#allocation2 + $0x1a0] sm:$0xff] %vm214_vm0, %v2474_v0 }
  0x1e   : > { %218 = vst.msk [vmem:[#allocation2 + $0x10] sm:$0x3] %vm217_vm1, %v2474_v0  ;;  %221 = vst.msk [vmem:[#allocation2 + $0x28] sm:$0x3] %vm217_vm1, %v2474_v0 }
  0x1f   : > { %224 = vst.msk [vmem:[#allocation2 + $0x40] sm:$0x3] %vm217_vm1, %v2474_v0  ;;  %227 = vst.msk [vmem:[#allocation2 + $0x58] sm:$0x3] %vm217_vm1, %v2474_v0 }
  0x20   : > { %230 = vst.msk [vmem:[#allocation2 + $0x70] sm:$0x3] %vm217_vm1, %v2474_v0  ;;  %233 = vst.msk [vmem:[#allocation2 + $0x88] sm:$0x3] %vm217_vm1, %v2474_v0 }
  0x21   : > { %236 = vst.msk [vmem:[#allocation2 + $0xa0] sm:$0x3] %vm217_vm1, %v2474_v0  ;;  %239 = vst.msk [vmem:[#allocation2 + $0xb8] sm:$0x3] %vm217_vm1, %v2474_v0 }
  0x22   : > { %242 = vst.msk [vmem:[#allocation2 + $0xd0] sm:$0x3] %vm217_vm1, %v2474_v0  ;;  %245 = vst.msk [vmem:[#allocation2 + $0xe8] sm:$0x3] %vm217_vm1, %v2474_v0 }
  0x23   : > { %248 = vst.msk [vmem:[#allocation2 + $0x100] sm:$0x3] %vm217_vm1, %v2474_v0  ;;  %251 = vst.msk [vmem:[#allocation2 + $0x118] sm:$0x3] %vm217_vm1, %v2474_v0 }
  0x24   : > { %254 = vst.msk [vmem:[#allocation2 + $0x130] sm:$0x3] %vm217_vm1, %v2474_v0  ;;  %257 = vst.msk [vmem:[#allocation2 + $0x148] sm:$0x3] %vm217_vm1, %v2474_v0 }
  0x25   : > { %260 = vst.msk [vmem:[#allocation2 + $0x160] sm:$0x3] %vm217_vm1, %v2474_v0  ;;  %263 = vst.msk [vmem:[#allocation2 + $0x178] sm:$0x3] %vm217_vm1, %v2474_v0  ;;  %v2598_v9 = vld [vmem:[#allocation2 + $0x10] sm:$0x3] }
  0x26   : > { %266 = vst.msk [vmem:[#allocation2 + $0x190] sm:$0x3] %vm217_vm1, %v2474_v0  ;;  %269 = vst.msk [vmem:[#allocation2 + $0x1a8] sm:$0x3] %vm217_vm1, %v2474_v0  ;;  %v409_v12 = vrot.slane %v2598_v9, 1 }
  0x27   : > { %271 = vst.msk [vmem:[#allocation2 + $0x19] sm:$0xff] %vm214_vm0, %v182_v1  ;;  %272 = vst.msk [vmem:[#allocation2 + $0x21] sm:$0xff] %vm214_vm0, %v183_v2  ;;  %v204_v2 = vld [vmem:[%s2583_s18 + $0xb0] sm:$0xff] }
  0x28   : > { %273 = vst.msk [vmem:[#allocation2 + $0x31] sm:$0xff] %vm214_vm0, %v184_v3  ;;  %274 = vst.msk [vmem:[#allocation2 + $0x39] sm:$0xff] %vm214_vm0, %v185_v4  ;;  %v410_v26 = vsel %vm405_vm2, %v407_v11, %v409_v12  ;;  %v205_v3 = vld [vmem:[%s2583_s18 + $0xb8] sm:$0xff]  ;;  %v206_v4 = vld [vmem:[%s2583_s18 + $0xc0] sm:$0xff] }
  0x29   : > { %275 = vst.msk [vmem:[#allocation2 + $0x49] sm:$0xff] %vm214_vm0, %v186_v5  ;;  %276 = vst.msk [vmem:[#allocation2 + $0x51] sm:$0xff] %vm214_vm0, %v187_v6  ;;  %595 = vrot.lane.b32.xlu0 %v410_v26, %s2475_s19  ;;  %v208_v11 = vld [vmem:[%s2583_s18 + $0xd0] sm:$0xff]  ;;  %v209_v12 = vld [vmem:[%s2583_s18 + $0xd8] sm:$0xff] }
  0x2a   : > { %277 = vst.msk [vmem:[#allocation2 + $0x61] sm:$0xff] %vm214_vm0, %v188_v13  ;;  %278 = vst.msk [vmem:[#allocation2 + $0x69] sm:$0xff] %vm214_vm0, %v189_v14  ;;  %v210_v14 = vld [vmem:[%s2583_s18 + $0xe0] sm:$0xff] }
  0x2b   : > { %279 = vst.msk [vmem:[#allocation2 + $0x79] sm:$0xff] %vm214_vm0, %v190_v15  ;;  %280 = vst.msk [vmem:[#allocation2 + $0x81] sm:$0xff] %vm214_vm0, %v191_v16  ;;  %v211_v15 = vld [vmem:[%s2583_s18 + $0xe8] sm:$0xff] }
  0x2c   : > { %281 = vst.msk [vmem:[#allocation2 + $0x91] sm:$0xff] %vm214_vm0, %v192_v17  ;;  %282 = vst.msk [vmem:[#allocation2 + $0x99] sm:$0xff] %vm214_vm0, %v193_v18 }
  0x2d   : > { %283 = vst.msk [vmem:[#allocation2 + $0xa9] sm:$0xff] %vm214_vm0, %v194_v20  ;;  %284 = vst.msk [vmem:[#allocation2 + $0xb1] sm:$0xff] %vm214_vm0, %v195_v21 }
  0x2e   : > { %285 = vst.msk [vmem:[#allocation2 + $0xc1] sm:$0xff] %vm214_vm0, %v196_v22  ;;  %286 = vst.msk [vmem:[#allocation2 + $0xc9] sm:$0xff] %vm214_vm0, %v197_v23  ;;  %v2636_v30 = vld [vmem:[#allocation2 + $0x18] sm:$0xff]  ;;  %v2638_v31 = vld [vmem:[#allocation2 + $0x20] sm:$0xff] }
  0x2f   : > { %287 = vst.msk [vmem:[#allocation2 + $0xd9] sm:$0xff] %vm214_vm0, %v198_v24  ;;  %288 = vst.msk [vmem:[#allocation2 + $0xe1] sm:$0xff] %vm214_vm0, %v199_v25  ;;  %v2640_v32 = vld [vmem:[#allocation2 + $0x30] sm:$0xff]  ;;  %v411_v33 = vrot.slane %v2636_v30, 1  ;;  %v412_v34 = vrot.slane %v2638_v31, 1  ;;  %v2647_v35 = vld [vmem:[#allocation2 + $0x38] sm:$0xff] }
  0x30   : > { %289 = vst.msk [vmem:[#allocation2 + $0xf1] sm:$0xff] %vm214_vm0, %v200_v27  ;;  %290 = vst.msk [vmem:[#allocation2 + $0xf9] sm:$0xff] %vm214_vm0, %v201_v28  ;;  %v416_v36 = vrot.slane %v2640_v32, 1  ;;  %v2650_v37 = vld [vmem:[#allocation2 + $0x28] sm:$0x3]  ;;  %v417_v38 = vrot.slane %v2647_v35, 1 }
  0x31   : > { %291 = vst.msk [vmem:[#allocation2 + $0x109] sm:$0xff] %vm214_vm0, %v202_v29  ;;  %v414_v39 = vrot.slane %v2650_v37, 1  ;;  %v2655_v40 = vld [vmem:[#allocation2 + $0x48] sm:$0xff]  ;;  %v2657_v41 = vld [vmem:[#allocation2 + $0x50] sm:$0xff]  ;;  %v2659_v42 = vld [vmem:[#allocation2 + $0x40] sm:$0x3]  ;;  %v2662_v43 = vsel %vm405_vm2, %v411_v33, %v412_v34 }
  0x32   : > { %v421_v44 = vrot.slane %v2655_v40, 1  ;;  %v422_v45 = vrot.slane %v2657_v41, 1  ;;  %597 = vrot.lane.b32.xlu1 %v2662_v43, %s2475_s19  ;;  %v2669_v46 = vsel %vm405_vm2, %v416_v36, %v417_v38  ;;  %v2671_v47 = vld [vmem:[#allocation2 + $0x60] sm:$0xff]  ;;  %v2673_v48 = vld [vmem:[#allocation2 + $0x68] sm:$0xff]  ;;  %v419_v50 = vrot.slane %v2659_v42, 1  ;;  %v2690_v55 = vld [vmem:[#allocation2 + $0x78] sm:$0xff] }
  0x33   : > { %v2676_v49 = vsel %vm405_vm2, %v412_v34, %v414_v39  ;;  %601 = vrot.lane.b32.xlu0 %v2669_v46, %s2475_s19  ;;  %v2681_v51 = vld [vmem:[#allocation2 + $0x58] sm:$0x3]  ;;  %v426_v53 = vrot.slane %v2671_v47, 1  ;;  %v427_v54 = vrot.slane %v2673_v48, 1  ;;  %v2692_v56 = vld [vmem:[#allocation2 + $0x80] sm:$0xff]  ;;  %v431_v62 = vrot.slane %v2690_v55, 1 }
  0x34   : > { %v2684_v52 = vsel %vm405_vm2, %v421_v44, %v422_v45  ;;  %v2695_v57 = vsel %vm405_vm2, %v417_v38, %v419_v50  ;;  %v424_v58 = vrot.slane %v2681_v51, 1  ;;  %v2700_v59 = vld [vmem:[#allocation2 + $0x70] sm:$0x3]  ;;  %v432_v63 = vrot.slane %v2692_v56, 1  ;;  %v2710_v1 = vld [vmem:[#allocation2 + $0x98] sm:$0xff]  ;;  %292 = vst.msk [vmem:[#allocation2 + $0x111] sm:$0xff] %vm214_vm0, %v203_v60 }
  0x35   : > { %4369 = vst [vmem:[#allocation3_spill] sm:$0xff] %v2684_v52  ;;  %v2704_v61 = vsel %vm405_vm2, %v426_v53, %v427_v54  ;;  %v2708_v0 = vld [vmem:[#allocation2 + $0x90] sm:$0xff]  ;;  %v429_v6 = vrot.slane %v2700_v59, 1  ;;  %293 = vst.msk [vmem:[#allocation2 + $0x121] sm:$0xff] %vm214_vm0, %v204_v2  ;;  %v2730_v13 = vld [vmem:[#allocation2 + $0x88] sm:$0x3] }
  0x36   : > { %599 = vrot.lane.b32.xlu1 %v2676_v49, %s2475_s19  ;;  %4370 = vst [vmem:[#allocation4_spill] sm:$0xff] %v2704_v61  ;;  %v2719_v5 = vsel %vm405_vm2, %v422_v45, %v424_v58  ;;  %294 = vst.msk [vmem:[#allocation2 + $0x129] sm:$0xff] %vm214_vm0, %v205_v3  ;;  %v2738_v16 = vsel %vm405_vm2, %v431_v62, %v432_v63  ;;  %v436_v17 = vrot.slane %v2708_v0, 1  ;;  %v437_v18 = vrot.slane %v2710_v1, 1  ;;  %v2746_v19 = vld [vmem:[#allocation2 + $0xa8] sm:$0xff]  ;;  %v2748_v20 = vld [vmem:[#allocation2 + $0xb0] sm:$0xff] }
  0x37   : > { %605 = vrot.lane.b32.xlu0 %v2684_v52, %s2475_s19  ;;  %4371 = vst [vmem:[#allocation5_spill] sm:$0xff] %v2719_v5  ;;  %295 = vst.msk [vmem:[#allocation2 + $0x139] sm:$0xff] %vm214_vm0, %v206_v4  ;;  %v2751_v21 = vsel %vm405_vm2, %v427_v54, %v429_v6  ;;  %v434_v22 = vrot.slane %v2730_v13, 1  ;;  %v2756_v23 = vld [vmem:[#allocation2 + $0xa0] sm:$0x3]  ;;  %v441_v25 = vrot.slane %v2746_v19, 1 }
  0x38   : > { %296 = vst.msk [vmem:[#allocation2 + $0x141] sm:$0xff] %vm214_vm0, %v207_v10  ;;  %297 = vst.msk [vmem:[#allocation2 + $0x151] sm:$0xff] %vm214_vm0, %v208_v11  ;;  %v2759_v24 = vsel %vm405_vm2, %v436_v17, %v437_v18  ;;  %v442_v26 = vrot.slane %v2748_v20, 1  ;;  %v2765_v27 = vld [vmem:[#allocation2 + $0xc0] sm:$0xff]  ;;  %v2767_v28 = vld [vmem:[#allocation2 + $0xc8] sm:$0xff]  ;;  %v439_v33 = vrot.slane %v2756_v23, 1 }
  0x39   : > { %298 = vst.msk [vmem:[#allocation2 + $0x159] sm:$0xff] %vm214_vm0, %v209_v12  ;;  %4372 = vst [vmem:[#allocation6_spill] sm:$0xff] %v2738_v16  ;;  %v2770_v29 = vsel %vm405_vm2, %v432_v63, %v434_v22  ;;  %v2775_v34 = vld [vmem:[#allocation2 + $0xb8] sm:$0x3]  ;;  %v446_v38 = vrot.slane %v2765_v27, 1  ;;  %v447_v39 = vrot.slane %v2767_v28, 1 }
  0x3a   : > { %603 = vrot.lane.b32.xlu1 %v2695_v57, %s2475_s19  ;;  %299 = vst.msk [vmem:[#allocation2 + $0x169] sm:$0xff] %vm214_vm0, %v210_v14  ;;  %300 = vst.msk [vmem:[#allocation2 + $0x171] sm:$0xff] %vm214_vm0, %v211_v15  ;;  %v2778_v36 = vsel %vm405_vm2, %v441_v25, %v442_v26  ;;  %v2784_v44 = vld [vmem:[#allocation2 + $0xd8] sm:$0xff]  ;;  %v2786_v45 = vld [vmem:[#allocation2 + $0xe0] sm:$0xff]  ;;  %v2789_v50 = vsel %vm405_vm2, %v437_v18, %v439_v33  ;;  %v444_v53 = vrot.slane %v2775_v34, 1  ;;  %v488_v52 = vrot.slane %v2596_v8, 2 }
  0x3b   : > { %609 = vrot.lane.b32.xlu0 %v2704_v61, %s2475_s19  ;;  %4373 = vst [vmem:[#allocation7_spill] sm:$0xff] %v2751_v21  ;;  %4374 = vst [vmem:[#allocation8_spill] sm:$0xff] %v2759_v24  ;;  %v2794_v54 = vld [vmem:[#allocation2 + $0xd0] sm:$0x3]  ;;  %v2797_v58 = vsel %vm405_vm2, %v446_v38, %v447_v39  ;;  %v451_v60 = vrot.slane %v2784_v44, 1  ;;  %v452_v62 = vrot.slane %v2786_v45, 1 }
  0x3c   : > { %4375 = vst [vmem:[#allocation9_spill] sm:$0xff] %v2770_v29  ;;  %4376 = vst [vmem:[#allocation10_spill] sm:$0xff] %v2778_v36  ;;  %v2803_v63 = vld [vmem:[#allocation2 + $0xf0] sm:$0xff]  ;;  %v2805_v2 = vld [vmem:[#allocation2 + $0xf8] sm:$0xff]  ;;  %v2808_v3 = vsel %vm405_vm2, %v442_v26, %v444_v53  ;;  %v449_v4 = vrot.slane %v2794_v54, 1 }
  0x3d   : > { %4377 = vst [vmem:[#allocation11_spill] sm:$0xff] %v2789_v50  ;;  %4378 = vst [vmem:[#allocation12_spill] sm:$0xff] %v2797_v58  ;;  %v2813_v6 = vld [vmem:[#allocation2 + $0xe8] sm:$0x3]  ;;  %v2816_v10 = vsel %vm405_vm2, %v451_v60, %v452_v62  ;;  %v456_v11 = vrot.slane %v2803_v63, 1  ;;  %v457_v12 = vrot.slane %v2805_v2, 1 }
  0x3e   : > { %607 = vrot.lane.b32.xlu1 %v2719_v5, %s2475_s19  ;;  %4379 = vst [vmem:[#allocation13_spill] sm:$0xff] %v2808_v3  ;;  %4380 = vst [vmem:[#allocation14_spill] sm:$0xff] %v2816_v10  ;;  %v2822_v14 = vld [vmem:[#allocation2 + $0x108] sm:$0xff]  ;;  %v2824_v15 = vld [vmem:[#allocation2 + $0x110] sm:$0xff]  ;;  %v2827_v17 = vsel %vm405_vm2, %v447_v39, %v449_v4  ;;  %v454_v18 = vrot.slane %v2813_v6, 1  ;;  %v487_v5 = vrot.slane %v2594_v7, 2 }
  0x3f   : > { %613 = vrot.lane.b32.xlu0 %v2738_v16, %s2475_s19  ;;  %4381 = vst [vmem:[#allocation15_spill] sm:$0xff] %v2827_v17  ;;  %v2832_v22 = vld [vmem:[#allocation2 + $0x100] sm:$0x3]  ;;  %v2835_v25 = vsel %vm405_vm2, %v456_v11, %v457_v12  ;;  %v461_v26 = vrot.slane %v2822_v14, 1  ;;  %v462_v33 = vrot.slane %v2824_v15, 1  ;;  %v2843_v39 = vld [vmem:[#allocation2 + $0x128] sm:$0xff] }
  0x40   : > { %4382 = vst [vmem:[#allocation16_spill] sm:$0xff] %v2835_v25  ;;  %v2841_v38 = vld [vmem:[#allocation2 + $0x120] sm:$0xff]  ;;  %v2846_v53 = vsel %vm405_vm2, %v452_v62, %v454_v18  ;;  %v459_v60 = vrot.slane %v2832_v22, 1  ;;  %v2851_v4 = vld [vmem:[#allocation2 + $0x118] sm:$0x3]  ;;  %v493_v7 = vrot.slane %v2638_v31, 2 }
  0x41   : > { %4383 = vst [vmem:[#allocation17_spill] sm:$0xff] %v2846_v53  ;;  %v2854_v11 = vsel %vm405_vm2, %v461_v26, %v462_v33  ;;  %v2862_v62 = vld [vmem:[#allocation2 + $0x140] sm:$0xff]  ;;  %v2870_v26 = vld [vmem:[#allocation2 + $0x130] sm:$0x3]  ;;  %v2898_v16 = vld [vmem:[#allocation2 + $0x168] sm:$0xff] }
  0x42   : > { %611 = vrot.lane.b32.xlu1 %v2751_v21, %s2475_s19  ;;  %4384 = vst [vmem:[#allocation18_spill] sm:$0xff] %v2854_v11  ;;  %v2865_v18 = vsel %vm405_vm2, %v457_v12, %v459_v60  ;;  %v2881_v12 = vld [vmem:[#allocation2 + $0x158] sm:$0xff]  ;;  %v481_v61 = vrot.slane %v2898_v16, 1 }
  0x43   : > { %617 = vrot.lane.b32.xlu0 %v2759_v24, %s2475_s19  ;;  %4385 = vst [vmem:[#allocation19_spill] sm:$0xff] %v2865_v18 }
  0x46   : > { %615 = vrot.lane.b32.xlu1 %v2770_v29, %s2475_s19 }
  0x47   : > { %621 = vrot.lane.b32.xlu0 %v2778_v36, %s2475_s19 }
  0x4a   : > { %619 = vrot.lane.b32.xlu1 %v2789_v50, %s2475_s19  ;;  %v2879_v50 = vld [vmem:[#allocation2 + $0x150] sm:$0xff] }
  0x4b   : > { %625 = vrot.lane.b32.xlu0 %v2797_v58, %s2475_s19  ;;  %v2860_v58 = vld [vmem:[#allocation2 + $0x138] sm:$0xff]  ;;  %v476_v29 = vrot.slane %v2879_v50, 1 }
  0x4c   : > { %v471_v36 = vrot.slane %v2860_v58, 1 }
  0x4e   : > { %623 = vrot.lane.b32.xlu1 %v2808_v3, %s2475_s19 }
  0x4f   : > { %629 = vrot.lane.b32.xlu0 %v2816_v10, %s2475_s19  ;;  %v466_v10 = vrot.slane %v2841_v38, 1 }
  0x52   : > { %627 = vrot.lane.b32.xlu1 %v2827_v17, %s2475_s19  ;;  %v467_v17 = vrot.slane %v2843_v39, 1 }
  0x53   : > { %633 = vrot.lane.b32.xlu0 %v2835_v25, %s2475_s19  ;;  %v464_v25 = vrot.slane %v2851_v4, 1 }
  0x54   : > { %v2873_v3 = vsel %vm405_vm2, %v466_v10, %v467_v17  ;;  %v2889_v10 = vld [vmem:[#allocation2 + $0x148] sm:$0x3] }
  0x55   : > { %4386 = vst [vmem:[#allocation20_spill] sm:$0xff] %v2873_v3  ;;  %v2884_v60 = vsel %vm405_vm2, %v462_v33, %v464_v25  ;;  %v2900_v25 = vld [vmem:[#allocation2 + $0x170] sm:$0xff] }
  0x56   : > { %631 = vrot.lane.b32.xlu1 %v2846_v53, %s2475_s19  ;;  %v472_v53 = vrot.slane %v2862_v62, 1  ;;  %4387 = vst [vmem:[#allocation21_spill] sm:$0xff] %v2884_v60 }
  0x57   : > { %637 = vrot.lane.b32.xlu0 %v2854_v11, %s2475_s19  ;;  %v469_v11 = vrot.slane %v2870_v26, 1 }
  0x58   : > { %v2892_v24 = vsel %vm405_vm2, %v471_v36, %v472_v53  ;;  %v2908_v36 = vld [vmem:[#allocation2 + $0x160] sm:$0x3] }
  0x59   : > { %4388 = vst [vmem:[#allocation22_spill] sm:$0xff] %v2892_v24  ;;  %v2903_v33 = vsel %vm405_vm2, %v467_v17, %v469_v11  ;;  %v479_v11 = vrot.slane %v2908_v36, 1 }
  0x5a   : > { %635 = vrot.lane.b32.xlu1 %v2865_v18, %s2475_s19  ;;  %v477_v18 = vrot.slane %v2881_v12, 1  ;;  %4389 = vst [vmem:[#allocation23_spill] sm:$0xff] %v2903_v33 }
  0x5b   : > { %641 = vrot.lane.b32.xlu0 %v2873_v3, %s2475_s19  ;;  %v474_v3 = vrot.slane %v2889_v10, 1 }
  0x5c   : > { %v2911_v21 = vsel %vm405_vm2, %v476_v29, %v477_v18 }
  0x5d   : > { %4390 = vst [vmem:[#allocation24_spill] sm:$0xff] %v2911_v21  ;;  %v2918_v17 = vsel %vm405_vm2, %v472_v53, %v474_v3  ;;  %v2933_v3 = vsel %vm405_vm2, %v477_v18, %v479_v11  ;;  %v490_v18 = vrot.slane %v2598_v9, 2 }
  0x5e   : > { %639 = vrot.lane.b32.xlu1 %v2884_v60, %s2475_s19  ;;  %v482_v60 = vrot.slane %v2900_v25, 1  ;;  %4391 = vst [vmem:[#allocation25_spill] sm:$0xff] %v2918_v17  ;;  %4393 = vst [vmem:[#allocation27_spill] sm:$0xff] %v2933_v3 }
  0x5f   : > { %645 = vrot.lane.b32.xlu0 %v2892_v24, %s2475_s19  ;;  %v2923_v24 = vld [vmem:[#allocation2 + $0x178] sm:$0x3] }
  0x60   : > { %v2926_v29 = vsel %vm405_vm2, %v481_v61, %v482_v60  ;;  %v484_v53 = vrot.slane %v2923_v24, 1  ;;  %v492_v61 = vrot.slane %v2636_v30, 2 }
  0x61   : > { %4392 = vst [vmem:[#allocation26_spill] sm:$0xff] %v2926_v29 }
  0x62   : > { %643 = vrot.lane.b32.xlu1 %v2903_v33, %s2475_s19  ;;  %v2944_v8 = vsel %vm405_vm2, %v482_v60, %v484_v53  ;;  %v2949_v11 = vsel %vm486_vm3, %v492_v61, %v493_v7  ;;  %v495_v60 = vrot.slane %v2650_v37, 2  ;;  %v503_v53 = vrot.slane %v2657_v41, 2 }
  0x63   : > { %649 = vrot.lane.b32.xlu0 %v2911_v21, %s2475_s19  ;;  %v489_v21 = vsel %vm486_vm3, %v487_v5, %v488_v52  ;;  %4394 = vst [vmem:[#allocation28_spill] sm:$0xff] %v2944_v8  ;;  %v497_v5 = vrot.slane %v2640_v32, 2 }
  0x64   : > { %v2966_v61 = vsel %vm486_vm3, %v493_v7, %v495_v60  ;;  %v505_v7 = vrot.slane %v2681_v51, 2  ;;  %v513_v60 = vrot.slane %v2692_v56, 2 }
  0x66   : > { %647 = vrot.lane.b32.xlu1 %v2918_v17, %s2475_s19 }
  0x67   : > { %653 = vrot.lane.b32.xlu0 %v2926_v29, %s2475_s19  ;;  %v498_v29 = vrot.slane %v2647_v35, 2 }
  0x69   : > { %v2960_v9 = vsel %vm486_vm3, %v497_v5, %v498_v29  ;;  %v512_v5 = vrot.slane %v2690_v55, 2 }
  0x6a   : > { %651 = vrot.lane.b32.xlu1 %v2933_v3, %s2475_s19  ;;  %v491_v3 = vsel %vm486_vm3, %v488_v52, %v490_v18  ;;  %v507_v52 = vrot.slane %v2671_v47, 2  ;;  %v508_v18 = vrot.slane %v2673_v48, 2 }
  0x6b   : > { %689 = vrot.lane.b32.xlu0 %v489_v21, %s2476_s20  ;;  %v502_v21 = vrot.slane %v2655_v40, 2  ;;  %v2998_v51 = vsel %vm486_vm3, %v512_v5, %v513_v60  ;;  %v523_v5 = vrot.slane %v2748_v20, 2 }
  0x6c   : > { %4395 = vst [vmem:[#allocation29_spill] sm:$0xff] %v2998_v51 }
  0x6d   : > { %v2972_v37 = vsel %vm486_vm3, %v502_v21, %v503_v53  ;;  %v2992_v21 = vsel %vm486_vm3, %v503_v53, %v505_v7  ;;  %v515_v53 = vrot.slane %v2730_v13, 2  ;;  %v522_v7 = vrot.slane %v2746_v19, 2 }
  0x6e   : > { %655 = vrot.lane.b32.xlu1 %v2944_v8, %s2475_s19  ;;  %v500_v8 = vrot.slane %v2659_v42, 2  ;;  %v2985_v42 = vsel %vm486_vm3, %v507_v52, %v508_v18  ;;  %v518_v52 = vrot.slane %v2710_v1, 2 }
  0x6f   : > { %693 = vrot.lane.b32.xlu0 %v2949_v11, %s2476_s20  ;;  %v3018_v33 = vsel %vm486_vm3, %v513_v60, %v515_v53  ;;  %v3024_v13 = vsel %vm486_vm3, %v522_v7, %v523_v5  ;;  %v525_v60 = vrot.slane %v2775_v34, 2  ;;  %v532_v53 = vrot.slane %v2784_v44, 2 }
  0x70   : > { %4397 = vst [vmem:[#allocation31_spill] sm:$0xff] %v3024_v13  ;;  %v533_v7 = vrot.slane %v2786_v45, 2 }
  0x72   : > { %691 = vrot.lane.b32.xlu1 %v491_v3, %s2476_s20  ;;  %v2979_v3 = vsel %vm486_vm3, %v498_v29, %v500_v8  ;;  %v510_v29 = vrot.slane %v2700_v59, 2  ;;  %v517_v8 = vrot.slane %v2708_v0, 2  ;;  %v3050_v34 = vsel %vm486_vm3, %v532_v53, %v533_v7 }
  0x73   : > { %697 = vrot.lane.b32.xlu0 %v2960_v9, %s2476_s20  ;;  %4399 = vst [vmem:[#allocation33_spill] sm:$0xff] %v3050_v34  ;;  %v543_v53 = vrot.slane %v2824_v15, 2 }
  0x74   : > { %v3005_v17 = vsel %vm486_vm3, %v508_v18, %v510_v29  ;;  %v3011_v59 = vsel %vm486_vm3, %v517_v8, %v518_v52  ;;  %v520_v18 = vrot.slane %v2756_v23, 2  ;;  %v527_v29 = vrot.slane %v2765_v27, 2 }
  0x75   : > { %4396 = vst [vmem:[#allocation30_spill] sm:$0xff] %v3011_v59  ;;  %v528_v8 = vrot.slane %v2767_v28, 2 }
  0x76   : > { %695 = vrot.lane.b32.xlu1 %v2966_v61, %s2476_s20 }
  0x77   : > { %701 = vrot.lane.b32.xlu0 %v2972_v37, %s2476_s20  ;;  %v3037_v23 = vsel %vm486_vm3, %v527_v29, %v528_v8  ;;  %v538_v29 = vrot.slane %v2805_v2, 2 }
  0x78   : > { %4398 = vst [vmem:[#allocation32_spill] sm:$0xff] %v3037_v23 }
  0x7a   : > { %699 = vrot.lane.b32.xlu1 %v2979_v3, %s2476_s20 }
  0x7b   : > { %705 = vrot.lane.b32.xlu0 %v2985_v42, %s2476_s20 }
  0x7e   : > { %703 = vrot.lane.b32.xlu1 %v2992_v21, %s2476_s20 }
  0x7f   : > { %709 = vrot.lane.b32.xlu0 %v2998_v51, %s2476_s20  ;;  %v3031_v51 = vsel %vm486_vm3, %v518_v52, %v520_v18  ;;  %v530_v52 = vrot.slane %v2794_v54, 2  ;;  %v537_v18 = vrot.slane %v2803_v63, 2 }
  0x81   : > { %v3063_v54 = vsel %vm486_vm3, %v537_v18, %v538_v29  ;;  %v548_v18 = vrot.slane %v2843_v39, 2 }
  0x82   : > { %707 = vrot.lane.b32.xlu1 %v3005_v17, %s2476_s20 }
  0x83   : > { %713 = vrot.lane.b32.xlu0 %v3011_v59, %s2476_s20  ;;  %v3044_v59 = vsel %vm486_vm3, %v523_v5, %v525_v60  ;;  %v535_v5 = vrot.slane %v2813_v6, 2  ;;  %v542_v60 = vrot.slane %v2822_v14, 2 }
  0x85   : > { %v3076_v6 = vsel %vm486_vm3, %v542_v60, %v543_v53  ;;  %v553_v60 = vrot.slane %v2862_v62, 2 }
  0x86   : > { %711 = vrot.lane.b32.xlu1 %v3018_v33, %s2476_s20 }
  0x87   : > { %717 = vrot.lane.b32.xlu0 %v3024_v13, %s2476_s20  ;;  %v3057_v13 = vsel %vm486_vm3, %v528_v8, %v530_v52  ;;  %v540_v8 = vrot.slane %v2832_v22, 2  ;;  %v547_v52 = vrot.slane %v2841_v38, 2 }
  0x89   : > { %v3089_v22 = vsel %vm486_vm3, %v547_v52, %v548_v18  ;;  %v3106_v52 = vpop.permute.xlu0 %593 }
  0x8a   : > { %715 = vrot.lane.b32.xlu1 %v3031_v51, %s2476_s20 }
  0x8b   : > { %721 = vrot.lane.b32.xlu0 %v3037_v23, %s2476_s20  ;;  %v3070_v23 = vsel %vm486_vm3, %v533_v7, %v535_v5  ;;  %v545_v7 = vrot.slane %v2851_v4, 2  ;;  %v552_v5 = vrot.slane %v2860_v58, 2  ;;  %v558_v58 = vrot.slane %v2881_v12, 2 }
  0x8c   : > { %v563_v12 = vrot.slane %v2900_v25, 2 }
  0x8d   : > { %v3096_v39 = vsel %vm486_vm3, %v543_v53, %v545_v7  ;;  %v3102_v4 = vsel %vm486_vm3, %v552_v5, %v553_v60 }
  0x8e   : > { %719 = vrot.lane.b32.xlu1 %v3044_v59, %s2476_s20  ;;  %4400 = vst [vmem:[#allocation34_spill] sm:$0xff] %v3102_v4 }
  0x8f   : > { %725 = vrot.lane.b32.xlu0 %v3050_v34, %s2476_s20  ;;  %v3083_v34 = vsel %vm486_vm3, %v538_v29, %v540_v8  ;;  %v550_v29 = vrot.slane %v2870_v26, 2  ;;  %v557_v8 = vrot.slane %v2879_v50, 2  ;;  %v555_v26 = vrot.slane %v2889_v10, 2 }
  0x90   : > { %v562_v50 = vrot.slane %v2898_v16, 2  ;;  %v560_v10 = vrot.slane %v2908_v36, 2 }
  0x91   : > { %v3111_v62 = vsel %vm486_vm3, %v548_v18, %v550_v29  ;;  %v3117_v53 = vsel %vm486_vm3, %v557_v8, %v558_v58  ;;  %v3126_v18 = vsel %vm486_vm3, %v553_v60, %v555_v26  ;;  %v565_v60 = vrot.slane %v2923_v24, 2 }
  0x92   : > { %723 = vrot.lane.b32.xlu1 %v3057_v13, %s2476_s20  ;;  %4401 = vst [vmem:[#allocation35_spill] sm:$0xff] %v3117_v53  ;;  %4402 = vst [vmem:[#allocation36_spill] sm:$0xff] %v3126_v18  ;;  %v3134_v29 = vsel %vm486_vm3, %v562_v50, %v563_v12  ;;  %v3141_v25 = vsel %vm486_vm3, %v558_v58, %v560_v10 }
  0x93   : > { %729 = vrot.lane.b32.xlu0 %v3063_v54, %s2476_s20  ;;  %4403 = vst [vmem:[#allocation37_spill] sm:$0xff] %v3134_v29  ;;  %4404 = vst [vmem:[#allocation38_spill] sm:$0xff] %v3141_v25  ;;  %v3153_v26 = vsel %vm486_vm3, %v563_v12, %v565_v60 }
  0x94   : > { %4405 = vst [vmem:[#allocation39_spill] sm:$0xff] %v3153_v26 }
  0x96   : > { %727 = vrot.lane.b32.xlu1 %v3070_v23, %s2476_s20 }
  0x97   : > { %733 = vrot.lane.b32.xlu0 %v3076_v6, %s2476_s20 }
  0x9a   : > { %731 = vrot.lane.b32.xlu1 %v3083_v34, %s2476_s20 }
  0x9b   : > { %737 = vrot.lane.b32.xlu0 %v3089_v22, %s2476_s20  ;;  %v3121_v7 = vpop.permute.xlu0 %595 }
  0x9e   : > { %735 = vrot.lane.b32.xlu1 %v3096_v39, %s2476_s20 }
  0x9f   : > { %741 = vrot.lane.b32.xlu0 %v3102_v4, %s2476_s20 }
  0xa2   : > { %739 = vrot.lane.b32.xlu1 %v3111_v62, %s2476_s20 }
  0xa3   : > { %745 = vrot.lane.b32.xlu0 %v3117_v53, %s2476_s20 }
  0xa4   : > { %v3131_v5 = vpop.permute.xlu1 %597 }
  0xa5   : > { %v3136_v16 = vpop.permute.xlu0 %601 }
  0xa6   : > { %743 = vrot.lane.b32.xlu1 %v3126_v18, %s2476_s20  ;;  %v4458_v18 = vld [vmem:[#allocation11_spill] sm:$0xff] }
  0xa7   : > { %749 = vrot.lane.b32.xlu0 %v3134_v29, %s2476_s20 }
  0xa8   : > { %v3146_v36 = vpop.permute.xlu1 %599 }
  0xa9   : > { %v3148_v8 = vpop.permute.xlu0 %605 }
  0xaa   : > { %747 = vrot.lane.b32.xlu1 %v3141_v25, %s2476_s20 }
  0xab   : > { %785 = vrot.lane.b32.xlu0 %v2636_v30, %s2477_s21 }
  0xac   : > { %v3157_v58 = vpop.permute.xlu1 %603 }
  0xad   : > { %v3159_v24 = vpop.permute.xlu0 %609 }
  0xae   : > { %751 = vrot.lane.b32.xlu1 %v3153_v26, %s2476_s20  ;;  %s2481_s20 = smov 56  }
  0xaf   : > { %789 = vrot.lane.b32.xlu0 %v2640_v32, %s2477_s21 }
  0xb0   : > { %v3165_v50 = vpop.permute.xlu1 %607 }
  0xb1   : > { %v3167_v10 = vpop.permute.xlu0 %613 }
  0xb2   : > { %787 = vrot.lane.b32.xlu1 %v2638_v31, %s2477_s21 }
  0xb3   : > { %793 = vrot.lane.b32.xlu0 %v2655_v40, %s2477_s21 }
  0xb4   : > { %v3173_v30 = vpop.permute.xlu1 %611 }
  0xb5   : > { %v3175_v12 = vpop.permute.xlu0 %617 }
  0xb6   : > { %791 = vrot.lane.b32.xlu1 %v2647_v35, %s2477_s21 }
  0xb7   : > { %797 = vrot.lane.b32.xlu0 %v2671_v47, %s2477_s21 }
  0xb8   : > { %v3181_v60 = vpop.permute.xlu1 %615 }
  0xb9   : > { %v3183_v26 = vpop.permute.xlu0 %621 }
  0xba   : > { %4406 = vst [vmem:[#allocation40_spill] sm:$0xff] %v3183_v26  ;;  %795 = vrot.lane.b32.xlu1 %v2657_v41, %s2477_s21 }
  0xbb   : > { %801 = vrot.lane.b32.xlu0 %v2690_v55, %s2477_s21 }
  0xbc   : > { %v3189_v31 = vpop.permute.xlu1 %619 }
  0xbd   : > { %4407 = vst [vmem:[#allocation41_spill] sm:$0xff] %v3189_v31  ;;  %v3191_v29 = vpop.permute.xlu0 %625 }
  0xbe   : > { %4408 = vst [vmem:[#allocation42_spill] sm:$0xff] %v3191_v29  ;;  %799 = vrot.lane.b32.xlu1 %v2673_v48, %s2477_s21 }
  0xbf   : > { %805 = vrot.lane.b32.xlu0 %v2708_v0, %s2477_s21 }
  0xc0   : > { %v3197_v25 = vpop.permute.xlu1 %623 }
  0xc1   : > { %4409 = vst [vmem:[#allocation43_spill] sm:$0xff] %v3197_v25  ;;  %v3199_v53 = vpop.permute.xlu0 %629 }
  0xc2   : > { %4410 = vst [vmem:[#allocation44_spill] sm:$0xff] %v3199_v53  ;;  %803 = vrot.lane.b32.xlu1 %v2692_v56, %s2477_s21 }
  0xc3   : > { %809 = vrot.lane.b32.xlu0 %v2746_v19, %s2477_s21 }
  0xc4   : > { %v3205_v26 = vpop.permute.xlu1 %627 }
  0xc5   : > { %4411 = vst [vmem:[#allocation45_spill] sm:$0xff] %v3205_v26  ;;  %v3207_v31 = vpop.permute.xlu0 %633 }
  0xc6   : > { %4412 = vst [vmem:[#allocation46_spill] sm:$0xff] %v3207_v31  ;;  %807 = vrot.lane.b32.xlu1 %v2710_v1, %s2477_s21 }
  0xc7   : > { %813 = vrot.lane.b32.xlu0 %v2765_v27, %s2477_s21 }
  0xc8   : > { %v3213_v29 = vpop.permute.xlu1 %631 }
  0xc9   : > { %4413 = vst [vmem:[#allocation47_spill] sm:$0xff] %v3213_v29  ;;  %v3215_v25 = vpop.permute.xlu0 %637 }
  0xca   : > { %4414 = vst [vmem:[#allocation48_spill] sm:$0xff] %v3215_v25  ;;  %811 = vrot.lane.b32.xlu1 %v2748_v20, %s2477_s21 }
  0xcb   : > { %817 = vrot.lane.b32.xlu0 %v2784_v44, %s2477_s21 }
  0xcc   : > { %v3221_v53 = vpop.permute.xlu1 %635 }
  0xcd   : > { %4415 = vst [vmem:[#allocation49_spill] sm:$0xff] %v3221_v53  ;;  %v3223_v26 = vpop.permute.xlu0 %641 }
  0xce   : > { %4416 = vst [vmem:[#allocation50_spill] sm:$0xff] %v3223_v26  ;;  %815 = vrot.lane.b32.xlu1 %v2767_v28, %s2477_s21 }
  0xcf   : > { %821 = vrot.lane.b32.xlu0 %v2803_v63, %s2477_s21  ;;  %v1632_v63 = vld [vmem:[%s4291_s1 + $0x40] sm:$0xff] }
  0xd0   : > { %v3229_v31 = vpop.permute.xlu1 %639  ;;  %2333 = vmatprep.subr.mxu0 %v1632_v63  ;;  %2399 = vmatprep.subr.mxu1 %v1632_v63 }
  0xd1   : > { %4417 = vst [vmem:[#allocation51_spill] sm:$0xff] %v3229_v31  ;;  %v3231_v29 = vpop.permute.xlu0 %645  ;;  %2334 = vmatpush3.msra.mxu0 %v1632_v63  ;;  %2408 = vmatpush3.msra.mxu1 %v1632_v63  ;;  %v1628_v63 = vld [vmem:[%s4291_s1 + $0x20] sm:$0xff] }
  0xd2   : > { %4418 = vst [vmem:[#allocation52_spill] sm:$0xff] %v3231_v29  ;;  %819 = vrot.lane.b32.xlu1 %v2786_v45, %s2477_s21  ;;  %v4432_v31 = vld [vmem:[#allocation5_spill] sm:$0xff] }
  0xd3   : > { %825 = vrot.lane.b32.xlu0 %v2822_v14, %s2477_s21  ;;  %v1631_v14 = vld [vmem:[%s4291_s1 + $0x38] sm:$0xff] }
  0xd4   : > { %v3237_v25 = vpop.permute.xlu1 %643  ;;  %2335 = vmatprep.subr.mxu0 %v1631_v14  ;;  %2400 = vmatprep.subr.mxu1 %v1631_v14 }
  0xd5   : > { %4419 = vst [vmem:[#allocation53_spill] sm:$0xff] %v3237_v25  ;;  %v3239_v53 = vpop.permute.xlu0 %649  ;;  %2336 = vmatpush3.msra.mxu0 %v1631_v14  ;;  %2409 = vmatpush3.msra.mxu1 %v1631_v14 }
  0xd6   : > { %4420 = vst [vmem:[#allocation54_spill] sm:$0xff] %v3239_v53  ;;  %823 = vrot.lane.b32.xlu1 %v2805_v2, %s2477_s21 }
  0xd7   : > { %829 = vrot.lane.b32.xlu0 %v2841_v38, %s2477_s21  ;;  %v1630_v38 = vld [vmem:[%s4291_s1 + $0x30] sm:$0xff] }
  0xd8   : > { %v3248_v29 = vpop.permute.xlu1 %647  ;;  %2337 = vmatprep.subr.mxu0 %v1630_v38  ;;  %2401 = vmatprep.subr.mxu1 %v1630_v38 }
  0xd9   : > { %4421 = vst [vmem:[#allocation55_spill] sm:$0xff] %v3248_v29  ;;  %v3253_v53 = vpop.permute.xlu0 %653  ;;  %2338 = vmatpush3.msra.mxu0 %v1630_v38  ;;  %2410 = vmatpush3.msra.mxu1 %v1630_v38 }
  0xda   : > { %4422 = vst [vmem:[#allocation56_spill] sm:$0xff] %v3253_v53  ;;  %827 = vrot.lane.b32.xlu1 %v2824_v15, %s2477_s21  ;;  %v1629_v53 = vld [vmem:[%s4291_s1 + $0x28] sm:$0xff] }
  0xdb   : > { %883 = vrot.lane.b32.xlu0 %v2676_v49, %s2478_s28  ;;  %2339 = vmatprep.subr.mxu0 %v1629_v53 }
  0xdc   : > { %v3262_v29 = vpop.permute.xlu1 %651  ;;  %2340 = vmatpush3.msra.mxu0 %v1629_v53  ;;  %2402 = vmatprep.subr.mxu1 %v1629_v53 }
  0xdd   : > { %4423 = vst [vmem:[#allocation57_spill] sm:$0xff] %v3262_v29  ;;  %v3267_v15 = vpop.permute.xlu0 %689  ;;  %2341 = vmatprep.subr.mxu0 %v1628_v63  ;;  %v1627_v29 = vld [vmem:[%s4291_s1 + $0x18] sm:$0xff]  ;;  %2411 = vmatpush3.msra.mxu1 %v1629_v53 }
  0xde   : > { %881 = vrot.lane.b32.xlu1 %v2662_v43, %s2478_s28  ;;  %2342 = vmatpush3.msra.mxu0 %v1628_v63 }
  0xdf   : > { %979 = vrot.lane.b32.xlu0 %v2966_v61, %s2479_s6  ;;  %2343 = vmatprep.subr.mxu0 %v1627_v29  ;;  %v1626_v61 = vld [vmem:[%s4291_s1 + $0x10] sm:$0xff] }
  0xe0   : > { %v3276_v49 = vpop.permute.xlu1 %655  ;;  %2344 = vmatpush3.msra.mxu0 %v1627_v29  ;;  %2403 = vmatprep.subr.mxu1 %v1628_v63 }
  0xe1   : > { %4424 = vst [vmem:[#allocation58_spill] sm:$0xff] %v3276_v49  ;;  %v3281_v43 = vpop.permute.xlu0 %693  ;;  %2345 = vmatprep.subr.mxu0 %v1626_v61  ;;  %v1625_v49 = vld [vmem:[%s4291_s1 + $0x8] sm:$0xff]  ;;  %2412 = vmatpush3.msra.mxu1 %v1628_v63 }
  0xe2   : > { %977 = vrot.lane.b32.xlu1 %v2949_v11, %s2479_s6  ;;  %2346 = vmatpush3.msra.mxu0 %v1626_v61 }
  0xe3   : > { %1075 = vrot.lane.b32.xlu0 %v2647_v35, %s2480_s11  ;;  %2347 = vmatprep.subr.mxu0 %v1625_v49  ;;  %v1624_v35 = vld [vmem:[%s4291_s1] sm:$0xff] }
  0xe4   : > { %v3290_v14 = vpop.permute.xlu1 %691  ;;  %2348 = vmatpush3.msra.mxu0 %v1625_v49  ;;  %2404 = vmatprep.subr.mxu1 %v1627_v29 }
  0xe5   : > { %v3295_v11 = vpop.permute.xlu0 %697  ;;  %2349 = vmatprep.subr.mxu0 %v1624_v35  ;;  %2413 = vmatpush3.msra.mxu1 %v1627_v29 }
  0xe6   : > { %1073 = vrot.lane.b32.xlu1 %v2640_v32, %s2480_s11  ;;  %2350 = vmatpush3.msra.mxu0 %v1624_v35 }
  0xe7   : > { %885 = vrot.lane.b32.xlu0 %v2669_v46, %s2478_s28  ;;  %2405 = vmatprep.subr.mxu1 %v1626_v61 }
  0xe8   : > { %v3304_v38 = vpop.permute.xlu1 %695  ;;  %2414 = vmatpush3.msra.mxu1 %v1626_v61 }
  0xe9   : > { %v3306_v25 = vpop.permute.xlu0 %701  ;;  %2406 = vmatprep.subr.mxu1 %v1625_v49 }
  0xea   : > { %1169 = vrot.lane.b32.xlu1 %v2669_v46, %s2481_s20  ;;  %2415 = vmatpush3.msra.mxu1 %v1625_v49 }
  0xeb   : > { %1265 = vrot.lane.b32.xlu0 %v2960_v9, %s2482_s22  ;;  %2407 = vmatprep.subr.mxu1 %v1624_v35 }
  0xec   : > { %v3312_v32 = vpop.permute.xlu1 %699  ;;  %2416 = vmatpush3.msra.mxu1 %v1624_v35 }
  0xed   : > { %v3314_v53 = vpop.permute.xlu0 %705 }
  0xee   : > { %1171 = vrot.lane.b32.xlu1 %v2695_v57, %s2481_s20 }
  0xef   : > { %981 = vrot.lane.b32.xlu0 %v2960_v9, %s2479_s6 }
  0xf0   : > { %v3320_v46 = vpop.permute.xlu1 %703 }
  0xf1   : > { %v3322_v63 = vpop.permute.xlu0 %709 }
  0xf2   : > { %887 = vrot.lane.b32.xlu1 %v2695_v57, %s2478_s28  ;;  %v4427_v57 = vld [vmem:[#allocation3_spill] sm:$0xff] }
  0xf3   : > { %983 = vrot.lane.b32.xlu0 %v2979_v3, %s2479_s6 }
  0xf4   : > { %v3328_v29 = vpop.permute.xlu1 %707 }
  0xf5   : > { %v3330_v61 = vpop.permute.xlu0 %713 }
  0xf6   : > { %4425 = vst [vmem:[#allocation59_spill] sm:$0xff] %v3330_v61  ;;  %1267 = vrot.lane.b32.xlu1 %v2979_v3, %s2482_s22 }
  0xf7   : > { %1079 = vrot.lane.b32.xlu0 %v2657_v41, %s2480_s11 }
  0xf8   : > { %v3336_v9 = vpop.permute.xlu1 %711 }
  0xf9   : > { %v3338_v49 = vpop.permute.xlu0 %717 }
  0xfa   : > { %4426 = vst [vmem:[#allocation60_spill] sm:$0xff] %v3338_v49  ;;  %1077 = vrot.lane.b32.xlu1 %v2655_v40, %s2480_s11 }
  0xfb   : > { %889 = vrot.lane.b32.xlu0 %v4427_v57, %s2478_s28 }
  0xfc   : > { %v3344_v35 = vpop.permute.xlu1 %715 }
  0xfd   : > { %4428 = vst [vmem:[#allocation3_spill] sm:$0xff] %v3344_v35  ;;  %v3346_v26 = vpop.permute.xlu0 %721 }
  0xfe   : > { %4429 = vst [vmem:[#allocation61_spill] sm:$0xff] %v3346_v26  ;;  %1173 = vrot.lane.b32.xlu1 %v4427_v57, %s2481_s20 }
  0xff   : > { %1269 = vrot.lane.b32.xlu0 %v2972_v37, %s2482_s22 }
 0x100   : > { %v3352_v41 = vpop.permute.xlu1 %719 }
 0x101   : > { %4430 = vst [vmem:[#allocation62_spill] sm:$0xff] %v3352_v41  ;;  %v3354_v3 = vpop.permute.xlu0 %725 }
 0x102   : > { %4431 = vst [vmem:[#allocation63_spill] sm:$0xff] %v3354_v3  ;;  %1175 = vrot.lane.b32.xlu1 %v4432_v31, %s2481_s20 }
 0x103   : > { %985 = vrot.lane.b32.xlu0 %v2972_v37, %s2479_s6 }
 0x104   : > { %v3360_v40 = vpop.permute.xlu1 %723 }
 0x105   : > { %4433 = vst [vmem:[#allocation5_spill] sm:$0xff] %v3360_v40  ;;  %v3362_v49 = vpop.permute.xlu0 %729 }
 0x106   : > { %4434 = vst [vmem:[#allocation64_spill] sm:$0xff] %v3362_v49  ;;  %891 = vrot.lane.b32.xlu1 %v4432_v31, %s2478_s28  ;;  %v4439_v31 = vld [vmem:[#allocation4_spill] sm:$0xff] }
 0x107   : > { %987 = vrot.lane.b32.xlu0 %v2992_v21, %s2479_s6 }
 0x108   : > { %v3368_v57 = vpop.permute.xlu1 %727 }
 0x109   : > { %4435 = vst [vmem:[#allocation65_spill] sm:$0xff] %v3368_v57  ;;  %v3370_v26 = vpop.permute.xlu0 %733 }
 0x10a   : > { %4436 = vst [vmem:[#allocation66_spill] sm:$0xff] %v3370_v26  ;;  %1271 = vrot.lane.b32.xlu1 %v2992_v21, %s2482_s22 }
 0x10b   : > { %1083 = vrot.lane.b32.xlu0 %v2673_v48, %s2480_s11 }
 0x10c   : > { %v3376_v37 = vpop.permute.xlu1 %731 }
 0x10d   : > { %4437 = vst [vmem:[#allocation67_spill] sm:$0xff] %v3376_v37  ;;  %v3378_v3 = vpop.permute.xlu0 %737 }
 0x10e   : > { %4438 = vst [vmem:[#allocation68_spill] sm:$0xff] %v3378_v3  ;;  %1081 = vrot.lane.b32.xlu1 %v2671_v47, %s2480_s11  ;;  %v4444_v3 = vld [vmem:[#allocation7_spill] sm:$0xff] }
 0x10f   : > { %893 = vrot.lane.b32.xlu0 %v4439_v31, %s2478_s28 }
 0x110   : > { %v3384_v49 = vpop.permute.xlu1 %735 }
 0x111   : > { %4440 = vst [vmem:[#allocation4_spill] sm:$0xff] %v3384_v49  ;;  %v3386_v57 = vpop.permute.xlu0 %741 }
 0x112   : > { %4441 = vst [vmem:[#allocation69_spill] sm:$0xff] %v3386_v57  ;;  %1177 = vrot.lane.b32.xlu1 %v4439_v31, %s2481_s20 }
 0x113   : > { %1273 = vrot.lane.b32.xlu0 %v2985_v42, %s2482_s22 }
 0x114   : > { %v3392_v48 = vpop.permute.xlu1 %739 }
 0x115   : > { %4442 = vst [vmem:[#allocation70_spill] sm:$0xff] %v3392_v48  ;;  %v3394_v21 = vpop.permute.xlu0 %745 }
 0x116   : > { %4443 = vst [vmem:[#allocation71_spill] sm:$0xff] %v3394_v21  ;;  %1179 = vrot.lane.b32.xlu1 %v4444_v3, %s2481_s20 }
 0x117   : > { %989 = vrot.lane.b32.xlu0 %v2985_v42, %s2479_s6 }
 0x118   : > { %v3400_v47 = vpop.permute.xlu1 %743 }
 0x119   : > { %4445 = vst [vmem:[#allocation7_spill] sm:$0xff] %v3400_v47  ;;  %v3402_v49 = vpop.permute.xlu0 %749  ;;  %v4451_v47 = vld [vmem:[#allocation9_spill] sm:$0xff] }
 0x11a   : > { %4446 = vst [vmem:[#allocation72_spill] sm:$0xff] %v3402_v49  ;;  %895 = vrot.lane.b32.xlu1 %v4444_v3, %s2478_s28  ;;  %v4449_v3 = vld [vmem:[#allocation6_spill] sm:$0xff] }
 0x11b   : > { %991 = vrot.lane.b32.xlu0 %v3005_v17, %s2479_s6 }
 0x11c   : > { %v3408_v31 = vpop.permute.xlu1 %747 }
 0x11d   : > { %4447 = vst [vmem:[#allocation73_spill] sm:$0xff] %v3408_v31  ;;  %v3410_v57 = vpop.permute.xlu0 %785 }
 0x11e   : > { %1275 = vrot.lane.b32.xlu1 %v3005_v17, %s2482_s22  ;;  %v4450_v17 = vld [vmem:[#allocation29_spill] sm:$0xff] }
 0x11f   : > { %1087 = vrot.lane.b32.xlu0 %v2692_v56, %s2480_s11 }
 0x120   : > { %v3416_v42 = vpop.permute.xlu1 %751 }
 0x121   : > { %4448 = vst [vmem:[#allocation74_spill] sm:$0xff] %v3416_v42  ;;  %v3418_v21 = vpop.permute.xlu0 %789 }
 0x122   : > { %1085 = vrot.lane.b32.xlu1 %v2690_v55, %s2480_s11 }
 0x123   : > { %897 = vrot.lane.b32.xlu0 %v4449_v3, %s2478_s28 }
 0x124   : > { %v3424_v49 = vpop.permute.xlu1 %787 }
 0x125   : > { %v3426_v31 = vpop.permute.xlu0 %793 }
 0x126   : > { %1181 = vrot.lane.b32.xlu1 %v4449_v3, %s2481_s20 }
 0x127   : > { %1277 = vrot.lane.b32.xlu0 %v4450_v17, %s2482_s22 }
 0x128   : > { %v3432_v56 = vpop.permute.xlu1 %791 }
 0x129   : > { %v3434_v42 = vpop.permute.xlu0 %797 }
 0x12a   : > { %1183 = vrot.lane.b32.xlu1 %v4451_v47, %s2481_s20 }
 0x12b   : > { %993 = vrot.lane.b32.xlu0 %v4450_v17, %s2479_s6 }
 0x12c   : > { %v3440_v55 = vpop.permute.xlu1 %795 }
 0x12d   : > { %v3442_v48 = vpop.permute.xlu0 %801 }
 0x12e   : > { %899 = vrot.lane.b32.xlu1 %v4451_v47, %s2478_s28  ;;  %v4453_v47 = vld [vmem:[#allocation8_spill] sm:$0xff] }
 0x12f   : > { %995 = vrot.lane.b32.xlu0 %v3018_v33, %s2479_s6 }
 0x130   : > { %v3448_v3 = vpop.permute.xlu1 %799 }
 0x131   : > { %v3450_v26 = vpop.permute.xlu0 %805 }
 0x132   : > { %1279 = vrot.lane.b32.xlu1 %v3018_v33, %s2482_s22  ;;  %v4455_v33 = vld [vmem:[#allocation30_spill] sm:$0xff] }
 0x133   : > { %1091 = vrot.lane.b32.xlu0 %v2710_v1, %s2480_s11 }
 0x134   : > { %v3456_v17 = vpop.permute.xlu1 %803 }
 0x135   : > { %v3458_v37 = vpop.permute.xlu0 %809 }
 0x136   : > { %4452 = vst [vmem:[#allocation6_spill] sm:$0xff] %v3458_v37  ;;  %1089 = vrot.lane.b32.xlu1 %v2708_v0, %s2480_s11 }
 0x137   : > { %901 = vrot.lane.b32.xlu0 %v4453_v47, %s2478_s28 }
 0x138   : > { %v3464_v40 = vpop.permute.xlu1 %807 }
 0x139   : > { %v3466_v41 = vpop.permute.xlu0 %813 }
 0x13a   : > { %4454 = vst [vmem:[#allocation29_spill] sm:$0xff] %v3466_v41  ;;  %1185 = vrot.lane.b32.xlu1 %v4453_v47, %s2481_s20 }
 0x13b   : > { %1281 = vrot.lane.b32.xlu0 %v4455_v33, %s2482_s22 }
 0x13c   : > { %v3472_v1 = vpop.permute.xlu1 %811 }
 0x13d   : > { %4456 = vst [vmem:[#allocation9_spill] sm:$0xff] %v3472_v1  ;;  %v3474_v35 = vpop.permute.xlu0 %817 }
 0x13e   : > { %4457 = vst [vmem:[#allocation8_spill] sm:$0xff] %v3474_v35  ;;  %1187 = vrot.lane.b32.xlu1 %v4458_v18, %s2481_s20 }
 0x13f   : > { %997 = vrot.lane.b32.xlu0 %v4455_v33, %s2479_s6 }
 0x140   : > { %v3480_v0 = vpop.permute.xlu1 %815 }
 0x141   : > { %4459 = vst [vmem:[#allocation30_spill] sm:$0xff] %v3480_v0  ;;  %v3482_v4 = vpop.permute.xlu0 %821 }
 0x142   : > { %4460 = vst [vmem:[#allocation11_spill] sm:$0xff] %v3482_v4  ;;  %903 = vrot.lane.b32.xlu1 %v4458_v18, %s2478_s28  ;;  %v4465_v18 = vld [vmem:[#allocation10_spill] sm:$0xff] }
 0x143   : > { %999 = vrot.lane.b32.xlu0 %v3031_v51, %s2479_s6 }
 0x144   : > { %v3488_v47 = vpop.permute.xlu1 %819 }
 0x145   : > { %4461 = vst [vmem:[#allocation75_spill] sm:$0xff] %v3488_v47  ;;  %v3490_v41 = vpop.permute.xlu0 %825 }
 0x146   : > { %4462 = vst [vmem:[#allocation76_spill] sm:$0xff] %v3490_v41  ;;  %1283 = vrot.lane.b32.xlu1 %v3031_v51, %s2482_s22  ;;  %v4467_v51 = vld [vmem:[#allocation31_spill] sm:$0xff] }
 0x147   : > { %1095 = vrot.lane.b32.xlu0 %v2748_v20, %s2480_s11 }
 0x148   : > { %v3496_v33 = vpop.permute.xlu1 %823 }
 0x149   : > { %4463 = vst [vmem:[#allocation77_spill] sm:$0xff] %v3496_v33  ;;  %v3498_v35 = vpop.permute.xlu0 %829  ;;  %v4468_v33 = vld [vmem:[#allocation13_spill] sm:$0xff] }
 0x14a   : > { %4464 = vst [vmem:[#allocation78_spill] sm:$0xff] %v3498_v35  ;;  %1093 = vrot.lane.b32.xlu1 %v2746_v19, %s2480_s11 }
 0x14b   : > { %905 = vrot.lane.b32.xlu0 %v4465_v18, %s2478_s28 }
 0x14c   : > { %v3504_v4 = vpop.permute.xlu1 %827 }
 0x14d   : > { %4466 = vst [vmem:[#allocation10_spill] sm:$0xff] %v3504_v4  ;;  %v884_v47 = vpop.permute.xlu0 %883  ;;  %v2434_v4 = vld [vmem:[#allocation2] sm:$0xff] }
 0x14e   : > { %1189 = vrot.lane.b32.xlu1 %v4465_v18, %s2481_s20  ;;  %v1361_v18 = vsel %vm214_vm0, %v2434_v4, %v3106_v52 }
 0x14f   : > { %1285 = vrot.lane.b32.xlu0 %v4467_v51, %s2482_s22  ;;  %v1394_v0 = vsel %vm1393_vm4, %v1361_v18, %v3267_v15  ;;  %v4470_v18 = vld [vmem:[#allocation32_spill] sm:$0xff] }
 0x150   : > { %v882_v20 = vpop.permute.xlu1 %881 }
 0x151   : > { %v980_v41 = vpop.permute.xlu0 %979 }
 0x152   : > { %1191 = vrot.lane.b32.xlu1 %v4468_v33, %s2481_s20 }
 0x153   : > { %1001 = vrot.lane.b32.xlu0 %v4467_v51, %s2479_s6  ;;  %v1427_v51 = vsel %vm1426_vm5, %v1394_v0, %v3410_v57 }
 0x154   : > { %v978_v19 = vpop.permute.xlu1 %977  ;;  %v1460_v37 = vsel %vm1459_vm6, %v1427_v51, %v882_v20 }
 0x155   : > { %v1076_v35 = vpop.permute.xlu0 %1075  ;;  %v1493_v4 = vsel %vm1492_vm7, %v1460_v37, %v978_v19 }
 0x156   : > { %907 = vrot.lane.b32.xlu1 %v4468_v33, %s2478_s28  ;;  %v4469_v33 = vld [vmem:[#allocation12_spill] sm:$0xff] }
 0x157   : > { %1003 = vrot.lane.b32.xlu0 %v3044_v59, %s2479_s6 }
 0x158   : > { %v1074_v1 = vpop.permute.xlu1 %1073 }
 0x159   : > { %v886_v61 = vpop.permute.xlu0 %885  ;;  %v1526_v52 = vsel %vm1525_vm9, %v1493_v4, %v1074_v1  ;;  %v2435_v1 = vld [vmem:[#allocation2 + $0x8] sm:$0xff] }
 0x15a   : > { %1287 = vrot.lane.b32.xlu1 %v3044_v59, %s2482_s22 }
 0x15b   : > { %1099 = vrot.lane.b32.xlu0 %v2767_v28, %s2480_s11  ;;  %v1362_v28 = vsel %vm214_vm0, %v2435_v1, %v3121_v7  ;;  %v4471_v7 = vld [vmem:[#allocation15_spill] sm:$0xff] }
 0x15c   : > { %v1170_v15 = vpop.permute.xlu1 %1169  ;;  %v1395_v19 = vsel %vm1393_vm4, %v1362_v28, %v3290_v14 }
 0x15d   : > { %v1559_v57 = vsel %vm1558_vm8, %v1526_v52, %v1170_v15  ;;  %v1266_v0 = vpop.permute.xlu0 %1265 }
 0x15e   : > { %1097 = vrot.lane.b32.xlu1 %v2765_v27, %s2480_s11  ;;  %v1592_v59 = vsel %vm1591_vm10, %v1559_v57, %v1266_v0  ;;  %v1428_v27 = vsel %vm1426_vm5, %v1395_v19, %v3424_v49 }
 0x15f   : > { %909 = vrot.lane.b32.xlu0 %v4469_v33, %s2478_s28  ;;  %2351 = vmatprep.mubr.msk.f32.mxu0 %vm1633_vm11, %v1592_v59  ;;  %v1461_v4 = vsel %vm1459_vm6, %v1428_v27, %v884_v47 }
 0x160   : > { %v1172_v37 = vpop.permute.xlu1 %1171  ;;  %v1494_v52 = vsel %vm1492_vm7, %v1461_v4, %v980_v41  ;;  %v2436_v41 = vld [vmem:[#allocation2 + $0x18] sm:$0xff] }
 0x161   : > { %v982_v20 = vpop.permute.xlu0 %981  ;;  %v1527_v57 = vsel %vm1525_vm9, %v1494_v52, %v1076_v35  ;;  %v1363_v47 = vsel %vm214_vm0, %v2436_v41, %v3131_v5 }
 0x162   : > { %1193 = vrot.lane.b32.xlu1 %v4469_v33, %s2481_s20  ;;  %v1560_v0 = vsel %vm1558_vm8, %v1527_v57, %v1172_v37  ;;  %v1396_v35 = vsel %vm1393_vm4, %v1363_v47, %v3281_v43 }
 0x163   : > { %1289 = vrot.lane.b32.xlu0 %v4470_v18, %s2482_s22  ;;  %v1429_v37 = vsel %vm1426_vm5, %v1396_v35, %v3418_v21  ;;  %v2437_v21 = vld [vmem:[#allocation2 + $0x20] sm:$0xff] }
 0x164   : > { %v888_v51 = vpop.permute.xlu1 %887  ;;  %v1462_v1 = vsel %vm1459_vm6, %v1429_v37, %v886_v61 }
 0x165   : > { %v984_v15 = vpop.permute.xlu0 %983  ;;  %v1495_v19 = vsel %vm1492_vm7, %v1462_v1, %v982_v20  ;;  %v4472_v20 = vld [vmem:[#allocation14_spill] sm:$0xff] }
 0x166   : > { %1195 = vrot.lane.b32.xlu1 %v4471_v7, %s2481_s20 }
 0x167   : > { %1005 = vrot.lane.b32.xlu0 %v4470_v18, %s2479_s6 }
 0x168   : > { %v1268_v14 = vpop.permute.xlu1 %1267 }
 0x169   : > { %v1593_v49 = vsel %vm1591_vm10, %v1560_v0, %v1268_v14  ;;  %v1080_v59 = vpop.permute.xlu0 %1079 }
 0x16a   : > { %911 = vrot.lane.b32.xlu1 %v4471_v7, %s2478_s28  ;;  %2352 = vmatmul.mubr.msk.f32.vlgmr.msra.gmra.mxu0 %vm1633_vm11, %v1593_v49  ;;  %v4474_v49 = vld [vmem:[#allocation17_spill] sm:$0xff] }
 0x16b   : > { %1007 = vrot.lane.b32.xlu0 %v3057_v13, %s2479_s6 }
 0x16c   : > { %v1078_v33 = vpop.permute.xlu1 %1077 }
 0x16d   : > { %v890_v28 = vpop.permute.xlu0 %889  ;;  %v1528_v5 = vsel %vm1525_vm9, %v1495_v19, %v1078_v33 }
 0x16e   : > { %1291 = vrot.lane.b32.xlu1 %v3057_v13, %s2482_s22  ;;  %v1364_v13 = vsel %vm214_vm0, %v2437_v21, %v3146_v36  ;;  %v4473_v36 = vld [vmem:[#allocation33_spill] sm:$0xff] }
 0x16f   : > { %1103 = vrot.lane.b32.xlu0 %v2786_v45, %s2480_s11  ;;  %v1397_v45 = vsel %vm1393_vm4, %v1364_v13, %v3304_v38  ;;  %v4475_v13 = vld [vmem:[#allocation16_spill] sm:$0xff] }
 0x170   : > { %v1174_v43 = vpop.permute.xlu1 %1173  ;;  %v1430_v52 = vsel %vm1426_vm5, %v1397_v45, %v3432_v56 }
 0x171   : > { %v1561_v27 = vsel %vm1558_vm8, %v1528_v5, %v1174_v43  ;;  %v1270_v18 = vpop.permute.xlu0 %1269  ;;  %v213_v43 = vld [vmem:[%s2583_s18 + $0xf8] sm:$0xff] }
 0x172   : > { %1101 = vrot.lane.b32.xlu1 %v2784_v44, %s2480_s11  ;;  %v1594_v61 = vsel %vm1591_vm10, %v1561_v27, %v1270_v18  ;;  %v1463_v44 = vsel %vm1459_vm6, %v1430_v52, %v888_v51  ;;  %302 = vst.msk [vmem:[#allocation2 + $0x189] sm:$0xff] %vm214_vm0, %v213_v43 }
 0x173   : > { %913 = vrot.lane.b32.xlu0 %v4472_v20, %s2478_s28  ;;  %2354 = vmatprep.mubr.msk.f32.mxu0 %vm1633_vm11, %v1594_v61  ;;  %v1496_v0 = vsel %vm1492_vm7, %v1463_v44, %v984_v15  ;;  %v2438_v15 = vld [vmem:[#allocation2 + $0x30] sm:$0xff] }
 0x174   : > { %v1176_v4 = vpop.permute.xlu1 %1175  ;;  %v1529_v38 = vsel %vm1525_vm9, %v1496_v0, %v1080_v59  ;;  %v1365_v35 = vsel %vm214_vm0, %v2438_v15, %v3136_v16  ;;  %v212_v59 = vld [vmem:[%s2583_s18 + $0xf0] sm:$0xff] }
 0x175   : > { %v986_v7 = vpop.permute.xlu0 %985  ;;  %v1562_v56 = vsel %vm1558_vm8, %v1529_v38, %v1176_v4  ;;  %v1398_v33 = vsel %vm1393_vm4, %v1365_v35, %v3295_v11  ;;  %301 = vst.msk [vmem:[#allocation2 + $0x181] sm:$0xff] %vm214_vm0, %v212_v59  ;;  %v3624_v61 = vld [vmem:[#allocation2 + $0xf0] sm:$0xff] }
 0x176   : > { %1197 = vrot.lane.b32.xlu1 %v4472_v20, %s2481_s20  ;;  %v1431_v1 = vsel %vm1426_vm5, %v1398_v33, %v3426_v31  ;;  %v3667_v35 = vld [vmem:[#allocation2 + $0x110] sm:$0xff] }
 0x177   : > { %1293 = vrot.lane.b32.xlu0 %v4473_v36, %s2482_s22  ;;  %v1464_v19 = vsel %vm1459_vm6, %v1431_v1, %v890_v28  ;;  %v2440_v28 = vld [vmem:[#allocation2 + $0x38] sm:$0xff] }
 0x178   : > { %v892_v57 = vpop.permute.xlu1 %891  ;;  %v1497_v16 = vsel %vm1492_vm7, %v1464_v19, %v986_v7  ;;  %v1366_v21 = vsel %vm214_vm0, %v2440_v28, %v3157_v58  ;;  %v4477_v19 = vld [vmem:[#allocation18_spill] sm:$0xff] }
 0x179   : > { %v988_v14 = vpop.permute.xlu0 %987  ;;  %v1399_v20 = vsel %vm1393_vm4, %v1366_v21, %v3312_v32 }
 0x17a   : > { %1199 = vrot.lane.b32.xlu1 %v4474_v49, %s2481_s20  ;;  %v1432_v4 = vsel %vm1426_vm5, %v1399_v20, %v3440_v55 }
 0x17b   : > { %1009 = vrot.lane.b32.xlu0 %v4473_v36, %s2479_s6  ;;  %v1465_v52 = vsel %vm1459_vm6, %v1432_v4, %v892_v57  ;;  %v4476_v36 = vld [vmem:[#allocation19_spill] sm:$0xff] }
 0x17c   : > { %v1272_v41 = vpop.permute.xlu1 %1271  ;;  %v1498_v7 = vsel %vm1492_vm7, %v1465_v52, %v988_v14  ;;  %v2441_v14 = vld [vmem:[#allocation2 + $0x48] sm:$0xff] }
 0x17d   : > { %v1595_v51 = vsel %vm1591_vm10, %v1562_v56, %v1272_v41  ;;  %v1084_v47 = vpop.permute.xlu0 %1083  ;;  %v1367_v38 = vsel %vm214_vm0, %v2441_v14, %v3148_v8 }
 0x17e   : > { %915 = vrot.lane.b32.xlu1 %v4474_v49, %s2478_s28  ;;  %2355 = vmatmul.mubr.msk.f32.gmra.mxu0 %vm1633_vm11, %v1595_v51  ;;  %v1531_v32 = vsel %vm1525_vm9, %v1498_v7, %v1084_v47  ;;  %v1400_v56 = vsel %vm1393_vm4, %v1367_v38, %v3306_v25 }
 0x17f   : > { %1011 = vrot.lane.b32.xlu0 %v3070_v23, %s2479_s6  ;;  %v1433_v41 = vsel %vm1426_vm5, %v1400_v56, %v3434_v42  ;;  %v3672_v42 = vld [vmem:[#allocation2 + $0x108] sm:$0xff]  ;;  %v4479_v56 = vld [vmem:[#allocation20_spill] sm:$0xff] }
 0x180   : > { %v1082_v37 = vpop.permute.xlu1 %1081 }
 0x181   : > { %v894_v5 = vpop.permute.xlu0 %893  ;;  %v1530_v11 = vsel %vm1525_vm9, %v1497_v16, %v1082_v37  ;;  %v2444_v37 = vld [vmem:[#allocation2 + $0x50] sm:$0xff] }
 0x182   : > { %1295 = vrot.lane.b32.xlu1 %v3070_v23, %s2482_s22  ;;  %v1466_v51 = vsel %vm1459_vm6, %v1433_v41, %v894_v5  ;;  %v1368_v1 = vsel %vm214_vm0, %v2444_v37, %v3165_v50 }
 0x183   : > { %1107 = vrot.lane.b32.xlu0 %v2805_v2, %s2480_s11  ;;  %v1401_v16 = vsel %vm1393_vm4, %v1368_v1, %v3320_v46 }
 0x184   : > { %v1178_v27 = vpop.permute.xlu1 %1177  ;;  %v1434_v43 = vsel %vm1426_vm5, %v1401_v16, %v3448_v3 }
 0x185   : > { %v1563_v18 = vsel %vm1558_vm8, %v1530_v11, %v1178_v27  ;;  %v1274_v31 = vpop.permute.xlu0 %1273 }
 0x186   : > { %1105 = vrot.lane.b32.xlu1 %v3624_v61, %s2480_s11  ;;  %v1596_v23 = vsel %vm1591_vm10, %v1563_v18, %v1274_v31 }
 0x187   : > { %917 = vrot.lane.b32.xlu0 %v4475_v13, %s2478_s28  ;;  %2357 = vmatprep.mubr.msk.f32.mxu0 %vm1633_vm11, %v1596_v23  ;;  %v4478_v23 = vld [vmem:[#allocation21_spill] sm:$0xff] }
 0x188   : > { %v1180_v2 = vpop.permute.xlu1 %1179 }
 0x189   : > { %v990_v45 = vpop.permute.xlu0 %989  ;;  %v1564_v55 = vsel %vm1558_vm8, %v1531_v32, %v1180_v2  ;;  %v2445_v2 = vld [vmem:[#allocation2 + $0x60] sm:$0xff] }
 0x18a   : > { %1201 = vrot.lane.b32.xlu1 %v4475_v13, %s2481_s20  ;;  %v1499_v15 = vsel %vm1492_vm7, %v1466_v51, %v990_v45  ;;  %v1369_v20 = vsel %vm214_vm0, %v2445_v2, %v3159_v24  ;;  %v4482_v2 = vld [vmem:[#allocation25_spill] sm:$0xff] }
 0x18b   : > { %1297 = vrot.lane.b32.xlu0 %v3063_v54, %s2482_s22  ;;  %v1402_v4 = vsel %vm1393_vm4, %v1369_v20, %v3314_v53 }
 0x18c   : > { %v896_v58 = vpop.permute.xlu1 %895  ;;  %v1435_v45 = vsel %vm1426_vm5, %v1402_v4, %v3442_v48  ;;  %v3720_v48 = vld [vmem:[#allocation2 + $0x120] sm:$0xff] }
 0x18d   : > { %v992_v44 = vpop.permute.xlu0 %991  ;;  %v1467_v27 = vsel %vm1459_vm6, %v1434_v43, %v896_v58  ;;  %v3763_v43 = vld [vmem:[#allocation2 + $0x138] sm:$0xff] }
 0x18e   : > { %1203 = vrot.lane.b32.xlu1 %v4476_v36, %s2481_s20  ;;  %v1500_v18 = vsel %vm1492_vm7, %v1467_v27, %v992_v44  ;;  %v3715_v44 = vld [vmem:[#allocation2 + $0x128] sm:$0xff] }
 0x18f   : > { %1013 = vrot.lane.b32.xlu0 %v3063_v54, %s2479_s6 }
 0x190   : > { %v1276_v0 = vpop.permute.xlu1 %1275 }
 0x191   : > { %v1597_v57 = vsel %vm1591_vm10, %v1564_v55, %v1276_v0  ;;  %v1088_v49 = vpop.permute.xlu0 %1087  ;;  %v2448_v55 = vld [vmem:[#allocation2 + $0x68] sm:$0xff] }
 0x192   : > { %919 = vrot.lane.b32.xlu1 %v4476_v36, %s2478_s28  ;;  %2358 = vmatmul.mubr.msk.f32.gmra.mxu0 %vm1633_vm11, %v1597_v57  ;;  %v1533_v46 = vsel %vm1525_vm9, %v1500_v18, %v1088_v49  ;;  %v1370_v0 = vsel %vm214_vm0, %v2448_v55, %v3173_v30  ;;  %v4480_v30 = vld [vmem:[#allocation23_spill] sm:$0xff]  ;;  %v3773_v18 = vld [vmem:[#allocation2 + $0x140] sm:$0xff]  ;;  %v4485_v55 = vld [vmem:[#allocation34_spill] sm:$0xff] }
 0x193   : > { %1015 = vrot.lane.b32.xlu0 %v3083_v34, %s2479_s6  ;;  %v1403_v49 = vsel %vm1393_vm4, %v1370_v0, %v3328_v29 }
 0x194   : > { %v1086_v54 = vpop.permute.xlu1 %1085  ;;  %v1436_v14 = vsel %vm1426_vm5, %v1403_v49, %v3456_v17 }
 0x195   : > { %v898_v47 = vpop.permute.xlu0 %897  ;;  %v1532_v8 = vsel %vm1525_vm9, %v1499_v15, %v1086_v54 }
 0x196   : > { %1299 = vrot.lane.b32.xlu1 %v3083_v34, %s2482_s22  ;;  %v1468_v52 = vsel %vm1459_vm6, %v1435_v45, %v898_v47  ;;  %v2453_v45 = vld [vmem:[#allocation2 + $0x90] sm:$0xff] }
 0x197   : > { %1111 = vrot.lane.b32.xlu0 %v3667_v35, %s2480_s11 }
 0x198   : > { %v1182_v25 = vpop.permute.xlu1 %1181 }
 0x199   : > { %v1565_v59 = vsel %vm1558_vm8, %v1532_v8, %v1182_v25  ;;  %v1278_v33 = vpop.permute.xlu0 %1277 }
 0x19a   : > { %1109 = vrot.lane.b32.xlu1 %v3672_v42, %s2480_s11  ;;  %v1598_v34 = vsel %vm1591_vm10, %v1565_v59, %v1278_v33  ;;  %v2449_v59 = vld [vmem:[#allocation2 + $0x78] sm:$0xff] }
 0x19b   : > { %921 = vrot.lane.b32.xlu0 %v4477_v19, %s2478_s28  ;;  %2360 = vmatprep.mubr.msk.f32.mxu0 %vm1633_vm11, %v1598_v34  ;;  %v1371_v33 = vsel %vm214_vm0, %v2449_v59, %v3167_v10 }
 0x19c   : > { %v1184_v5 = vpop.permute.xlu1 %1183  ;;  %v1404_v34 = vsel %vm1393_vm4, %v1371_v33, %v3322_v63  ;;  %v3831_v33 = vld [vmem:[#allocation2 + $0x158] sm:$0xff] }
 0x19d   : > { %v994_v11 = vpop.permute.xlu0 %993  ;;  %v1566_v3 = vsel %vm1558_vm8, %v1533_v46, %v1184_v5  ;;  %v1437_v1 = vsel %vm1426_vm5, %v1404_v34, %v3450_v26 }
 0x19e   : > { %1205 = vrot.lane.b32.xlu1 %v4477_v19, %s2481_s20  ;;  %v1501_v7 = vsel %vm1492_vm7, %v1468_v52, %v994_v11  ;;  %v1373_v52 = vsel %vm214_vm0, %v2453_v45, %v3175_v12  ;;  %v4496_v45 = vld [vmem:[#allocation43_spill] sm:$0xff] }
 0x19f   : > { %1301 = vrot.lane.b32.xlu0 %v3076_v6, %s2482_s22 }
 0x1a0   : > { %v900_v50 = vpop.permute.xlu1 %899 }
 0x1a1   : > { %v996_v31 = vpop.permute.xlu0 %995  ;;  %v1469_v54 = vsel %vm1459_vm6, %v1436_v14, %v900_v50  ;;  %v2451_v50 = vld [vmem:[#allocation2 + $0x80] sm:$0xff] }
 0x1a2   : > { %1207 = vrot.lane.b32.xlu1 %v4478_v23, %s2481_s20  ;;  %v1502_v51 = vsel %vm1492_vm7, %v1469_v54, %v996_v31  ;;  %v2454_v54 = vld [vmem:[#allocation2 + $0x98] sm:$0xff] }
 0x1a3   : > { %1017 = vrot.lane.b32.xlu0 %v3076_v6, %s2479_s6 }
 0x1a4   : > { %v1280_v28 = vpop.permute.xlu1 %1279 }
 0x1a5   : > { %v1599_v21 = vsel %vm1591_vm10, %v1566_v3, %v1280_v28  ;;  %v1092_v13 = vpop.permute.xlu0 %1091 }
 0x1a6   : > { %923 = vrot.lane.b32.xlu1 %v4478_v23, %s2478_s28  ;;  %2361 = vmatmul.mubr.msk.f32.gmra.mxu0 %vm1633_vm11, %v1599_v21  ;;  %v1535_v29 = vsel %vm1525_vm9, %v1502_v51, %v1092_v13  ;;  %v4481_v13 = vld [vmem:[#allocation22_spill] sm:$0xff]  ;;  %v3819_v51 = vld [vmem:[#allocation2 + $0x150] sm:$0xff] }
 0x1a7   : > { %1019 = vrot.lane.b32.xlu0 %v3096_v39, %s2479_s6 }
 0x1a8   : > { %v1090_v6 = vpop.permute.xlu1 %1089 }
 0x1a9   : > { %v902_v58 = vpop.permute.xlu0 %901  ;;  %v1534_v24 = vsel %vm1525_vm9, %v1501_v7, %v1090_v6 }
 0x1aa   : > { %1303 = vrot.lane.b32.xlu1 %v3096_v39, %s2482_s22  ;;  %v1470_v19 = vsel %vm1459_vm6, %v1437_v1, %v902_v58  ;;  %v4483_v58 = vld [vmem:[#allocation59_spill] sm:$0xff] }
 0x1ab   : > { %1115 = vrot.lane.b32.xlu0 %v3715_v44, %s2480_s11  ;;  %v1406_v7 = vsel %vm1393_vm4, %v1373_v52, %v4483_v58  ;;  %v4497_v58 = vld [vmem:[#allocation38_spill] sm:$0xff] }
 0x1ac   : > { %v1186_v53 = vpop.permute.xlu1 %1185 }
 0x1ad   : > { %v1567_v36 = vsel %vm1558_vm8, %v1534_v24, %v1186_v53  ;;  %v1282_v32 = vpop.permute.xlu0 %1281  ;;  %v4484_v53 = vld [vmem:[#allocation6_spill] sm:$0xff] }
 0x1ae   : > { %1113 = vrot.lane.b32.xlu1 %v3720_v48, %s2480_s11  ;;  %v1600_v39 = vsel %vm1591_vm10, %v1567_v36, %v1282_v32  ;;  %v1439_v36 = vsel %vm1426_vm5, %v1406_v7, %v4484_v53 }
 0x1af   : > { %831 = vrot.lane.b32.xlu0 %v3715_v44, %s2477_s21  ;;  %2363 = vmatprep.mubr.msk.f32.mxu0 %vm1633_vm11, %v1600_v39 }
 0x1b0   : > { %v1188_v57 = vpop.permute.xlu1 %1187 }
 0x1b1   : > { %v998_v38 = vpop.permute.xlu0 %997  ;;  %v1568_v17 = vsel %vm1558_vm8, %v1535_v29, %v1188_v57  ;;  %v4486_v57 = vld [vmem:[#allocation36_spill] sm:$0xff]  ;;  %v4488_v29 = vld [vmem:[#allocation3_spill] sm:$0xff] }
 0x1b2   : > { %1209 = vrot.lane.b32.xlu1 %v4479_v56, %s2481_s20  ;;  %v1503_v16 = vsel %vm1492_vm7, %v1470_v19, %v998_v38 }
 0x1b3   : > { %1211 = vrot.lane.b32.xlu0 %v4480_v30, %s2481_s20 }
 0x1b4   : > { %v904_v41 = vpop.permute.xlu1 %903 }
 0x1b5   : > { %v1000_v47 = vpop.permute.xlu0 %999 }
 0x1b6   : > { %925 = vrot.lane.b32.xlu1 %v4479_v56, %s2478_s28 }
 0x1b7   : > { %927 = vrot.lane.b32.xlu0 %v4480_v30, %s2478_s28  ;;  %v4487_v30 = vld [vmem:[#allocation41_spill] sm:$0xff] }
 0x1b8   : > { %v1284_v15 = vpop.permute.xlu1 %1283 }
 0x1b9   : > { %v1601_v8 = vsel %vm1591_vm10, %v1568_v17, %v1284_v15  ;;  %v1096_v25 = vpop.permute.xlu0 %1095  ;;  %v4489_v15 = vld [vmem:[#allocation9_spill] sm:$0xff] }
 0x1ba   : > { %1305 = vrot.lane.b32.xlu1 %v3089_v22, %s2482_s22  ;;  %2364 = vmatmul.mubr.msk.f32.gmra.mxu0 %vm1633_vm11, %v1601_v8 }
 0x1bb   : > { %1307 = vrot.lane.b32.xlu0 %v3111_v62, %s2482_s22 }
 0x1bc   : > { %v1094_v37 = vpop.permute.xlu1 %1093 }
 0x1bd   : > { %v906_v5 = vpop.permute.xlu0 %905  ;;  %v1536_v10 = vsel %vm1525_vm9, %v1503_v16, %v1094_v37 }
 0x1be   : > { %1021 = vrot.lane.b32.xlu1 %v3089_v22, %s2479_s6  ;;  %v1372_v22 = vsel %vm214_vm0, %v2451_v50, %v3181_v60  ;;  %v1472_v32 = vsel %vm1459_vm6, %v1439_v36, %v906_v5  ;;  %v4499_v36 = vld [vmem:[#allocation30_spill] sm:$0xff] }
 0x1bf   : > { %1117 = vrot.lane.b32.xlu0 %v3763_v43, %s2480_s11  ;;  %v1405_v23 = vsel %vm1393_vm4, %v1372_v22, %v3336_v9  ;;  %v4492_v22 = vld [vmem:[#allocation60_spill] sm:$0xff] }
 0x1c0   : > { %v1190_v63 = vpop.permute.xlu1 %1189 }
 0x1c1   : > { %v1569_v11 = vsel %vm1558_vm8, %v1536_v10, %v1190_v63  ;;  %v1286_v27 = vpop.permute.xlu0 %1285 }
 0x1c2   : > { %1023 = vrot.lane.b32.xlu1 %v3111_v62, %s2479_s6  ;;  %v1602_v26 = vsel %vm1591_vm10, %v1569_v11, %v1286_v27  ;;  %v1438_v62 = vsel %vm1426_vm5, %v1405_v23, %v3464_v40  ;;  %v4490_v11 = vld [vmem:[#allocation24_spill] sm:$0xff]  ;;  %v2457_v27 = vld [vmem:[#allocation2 + $0xa8] sm:$0xff]  ;;  %v4493_v23 = vld [vmem:[#allocation27_spill] sm:$0xff] }
 0x1c3   : > { %1119 = vrot.lane.b32.xlu0 %v3773_v18, %s2480_s11  ;;  %2366 = vmatprep.mubr.msk.f32.mxu0 %vm1633_vm11, %v1602_v26  ;;  %v1471_v60 = vsel %vm1459_vm6, %v1438_v62, %v904_v41  ;;  %v1374_v41 = vsel %vm214_vm0, %v2454_v54, %v4487_v30  ;;  %v4491_v26 = vld [vmem:[#allocation40_spill] sm:$0xff] }
 0x1c4   : > { %v1192_v31 = vpop.permute.xlu1 %1191  ;;  %v1504_v28 = vsel %vm1492_vm7, %v1471_v60, %v1000_v47  ;;  %v1407_v17 = vsel %vm1393_vm4, %v1374_v41, %v4488_v29  ;;  %v1375_v50 = vsel %vm214_vm0, %v2457_v27, %v4491_v26  ;;  %v4500_v29 = vld [vmem:[#allocation42_spill] sm:$0xff] }
 0x1c5   : > { %v1002_v46 = vpop.permute.xlu0 %1001  ;;  %v1537_v9 = vsel %vm1525_vm9, %v1504_v28, %v1096_v25  ;;  %v1440_v8 = vsel %vm1426_vm5, %v1407_v17, %v4489_v15  ;;  %v4501_v15 = vld [vmem:[#allocation61_spill] sm:$0xff] }
 0x1c6   : > { %833 = vrot.lane.b32.xlu1 %v3763_v43, %s2477_s21  ;;  %v1570_v40 = vsel %vm1558_vm8, %v1537_v9, %v1192_v31  ;;  %v1505_v0 = vsel %vm1492_vm7, %v1472_v32, %v1002_v46  ;;  %v1408_v31 = vsel %vm1393_vm4, %v1375_v50, %v4492_v22  ;;  %v4494_v46 = vld [vmem:[#allocation29_spill] sm:$0xff]  ;;  %v2462_v50 = vld [vmem:[#allocation2 + $0xc8] sm:$0xff] }
 0x1c7   : > { %835 = vrot.lane.b32.xlu0 %v3773_v18, %s2477_s21  ;;  %v1441_v60 = vsel %vm1426_vm5, %v1408_v31, %v4494_v46  ;;  %v4505_v22 = vld [vmem:[#allocation45_spill] sm:$0xff] }
 0x1c8   : > { %v908_v3 = vpop.permute.xlu1 %907  ;;  %v1378_v31 = vsel %vm214_vm0, %v2462_v50, %v4505_v22  ;;  %v4515_v50 = vld [vmem:[#allocation77_spill] sm:$0xff] }
 0x1c9   : > { %v1004_v21 = vpop.permute.xlu0 %1003  ;;  %v1473_v59 = vsel %vm1459_vm6, %v1440_v8, %v908_v3 }
 0x1ca   : > { %1213 = vrot.lane.b32.xlu1 %v4481_v13, %s2481_s20  ;;  %v1506_v37 = vsel %vm1492_vm7, %v1473_v59, %v1004_v21  ;;  %v4502_v59 = vld [vmem:[#allocation8_spill] sm:$0xff] }
 0x1cb   : > { %1215 = vrot.lane.b32.xlu0 %v4482_v2, %s2481_s20 }
 0x1cc   : > { %v1288_v20 = vpop.permute.xlu1 %1287 }
 0x1cd   : > { %v1603_v4 = vsel %vm1591_vm10, %v1570_v40, %v1288_v20  ;;  %v1100_v6 = vpop.permute.xlu0 %1099  ;;  %v4495_v20 = vld [vmem:[#allocation35_spill] sm:$0xff] }
 0x1ce   : > { %929 = vrot.lane.b32.xlu1 %v4481_v13, %s2478_s28  ;;  %2367 = vmatmul.mubr.msk.f32.gmra.mxu0 %vm1633_vm11, %v1603_v4  ;;  %v1539_v19 = vsel %vm1525_vm9, %v1506_v37, %v1100_v6  ;;  %v2458_v6 = vld [vmem:[#allocation2 + $0xb0] sm:$0xff] }
 0x1cf   : > { %931 = vrot.lane.b32.xlu0 %v4482_v2, %s2478_s28  ;;  %v1376_v52 = vsel %vm214_vm0, %v2458_v6, %v4496_v45 }
 0x1d0   : > { %v1098_v24 = vpop.permute.xlu1 %1097 }
 0x1d1   : > { %v910_v39 = vpop.permute.xlu0 %909  ;;  %v1538_v12 = vsel %vm1525_vm9, %v1505_v0, %v1098_v24  ;;  %v4498_v24 = vld [vmem:[#allocation62_spill] sm:$0xff] }
 0x1d2   : > { %1309 = vrot.lane.b32.xlu1 %v4485_v55, %s2482_s22  ;;  %v1474_v3 = vsel %vm1459_vm6, %v1441_v60, %v910_v39  ;;  %v1409_v53 = vsel %vm1393_vm4, %v1376_v52, %v4498_v24  ;;  %v3877_v0 = vld [vmem:[#allocation2 + $0x168] sm:$0xff]  ;;  %v4507_v60 = vld [vmem:[#allocation75_spill] sm:$0xff] }
 0x1d3   : > { %1311 = vrot.lane.b32.xlu0 %v4486_v57, %s2482_s22  ;;  %v1442_v32 = vsel %vm1426_vm5, %v1409_v53, %v4499_v36  ;;  %v353_v53 = vld [vmem:[#allocation2 + $0x190] sm:$0x3]  ;;  %v2463_v36 = vld [vmem:[#allocation2 + $0xd8] sm:$0xff] }
 0x1d4   : > { %v1194_v49 = vpop.permute.xlu1 %1193 }
 0x1d5   : > { %v1571_v14 = vsel %vm1558_vm8, %v1538_v12, %v1194_v49  ;;  %v1290_v38 = vpop.permute.xlu0 %1289 }
 0x1d6   : > { %1025 = vrot.lane.b32.xlu1 %v4485_v55, %s2479_s6  ;;  %v1604_v56 = vsel %vm1591_vm10, %v1571_v14, %v1290_v38 }
 0x1d7   : > { %1121 = vrot.lane.b32.xlu0 %v3819_v51, %s2480_s11  ;;  %2369 = vmatprep.mubr.msk.f32.mxu0 %vm1633_vm11, %v1604_v56  ;;  %v3886_v56 = vld [vmem:[#allocation2 + $0x170] sm:$0xff] }
 0x1d8   : > { %v1196_v47 = vpop.permute.xlu1 %1195 }
 0x1d9   : > { %v1006_v25 = vpop.permute.xlu0 %1005  ;;  %v1572_v5 = vsel %vm1558_vm8, %v1539_v19, %v1196_v47  ;;  %v2461_v47 = vld [vmem:[#allocation2 + $0xc0] sm:$0xff]  ;;  %v4503_v19 = vld [vmem:[#allocation26_spill] sm:$0xff] }
 0x1da   : > { %1027 = vrot.lane.b32.xlu1 %v4486_v57, %s2479_s6  ;;  %v1507_v21 = vsel %vm1492_vm7, %v1474_v3, %v1006_v25  ;;  %v1377_v17 = vsel %vm214_vm0, %v2461_v47, %v4500_v29 }
 0x1db   : > { %1123 = vrot.lane.b32.xlu0 %v3831_v33, %s2480_s11  ;;  %v1410_v8 = vsel %vm1393_vm4, %v1377_v17, %v4501_v15 }
 0x1dc   : > { %v912_v34 = vpop.permute.xlu1 %911 }
 0x1dd   : > { %v1008_v1 = vpop.permute.xlu0 %1007  ;;  %v1475_v55 = vsel %vm1459_vm6, %v1442_v32, %v912_v34  ;;  %v1443_v34 = vsel %vm1426_vm5, %v1410_v8, %v4502_v59  ;;  %v4510_v32 = vld [vmem:[#allocation44_spill] sm:$0xff] }
 0x1de   : > { %837 = vrot.lane.b32.xlu1 %v3819_v51, %s2477_s21  ;;  %v1508_v57 = vsel %vm1492_vm7, %v1475_v55, %v1008_v1 }
 0x1df   : > { %839 = vrot.lane.b32.xlu0 %v3831_v33, %s2477_s21 }
 0x1e0   : > { %v1292_v16 = vpop.permute.xlu1 %1291 }
 0x1e1   : > { %v1605_v10 = vsel %vm1591_vm10, %v1572_v5, %v1292_v16  ;;  %v1104_v63 = vpop.permute.xlu0 %1103 }
 0x1e2   : > { %1217 = vrot.lane.b32.xlu1 %v4490_v11, %s2481_s20  ;;  %2370 = vmatmul.mubr.msk.f32.gmra.mxu0 %vm1633_vm11, %v1605_v10  ;;  %v1541_v14 = vsel %vm1525_vm9, %v1508_v57, %v1104_v63  ;;  %v4504_v10 = vld [vmem:[#allocation28_spill] sm:$0xff]  ;;  %v4511_v57 = vld [vmem:[#allocation63_spill] sm:$0xff] }
 0x1e3   : > { %1219 = vrot.lane.b32.xlu0 %v4493_v23, %s2481_s20 }
 0x1e4   : > { %v1102_v62 = vpop.permute.xlu1 %1101 }
 0x1e5   : > { %v914_v28 = vpop.permute.xlu0 %913  ;;  %v1540_v13 = vsel %vm1525_vm9, %v1507_v21, %v1102_v62  ;;  %v4506_v62 = vld [vmem:[#allocation5_spill] sm:$0xff] }
 0x1e6   : > { %933 = vrot.lane.b32.xlu1 %v4490_v11, %s2478_s28  ;;  %v1476_v37 = vsel %vm1459_vm6, %v1443_v34, %v914_v28  ;;  %v1411_v46 = vsel %vm1393_vm4, %v1378_v31, %v4506_v62  ;;  %v4508_v21 = vld [vmem:[#allocation37_spill] sm:$0xff] }
 0x1e7   : > { %935 = vrot.lane.b32.xlu0 %v4493_v23, %s2478_s28  ;;  %v1444_v3 = vsel %vm1426_vm5, %v1411_v46, %v4507_v60 }
 0x1e8   : > { %v1198_v9 = vpop.permute.xlu1 %1197 }
 0x1e9   : > { %v1573_v40 = vsel %vm1558_vm8, %v1540_v13, %v1198_v9  ;;  %v1294_v2 = vpop.permute.xlu0 %1293  ;;  %v4509_v9 = vld [vmem:[#allocation39_spill] sm:$0xff] }
 0x1ea   : > { %1313 = vrot.lane.b32.xlu1 %v4495_v20, %s2482_s22  ;;  %v1606_v4 = vsel %vm1591_vm10, %v1573_v40, %v1294_v2  ;;  %v351_v2 = vld [vmem:[#allocation2 + $0x180] sm:$0xff] }
 0x1eb   : > { %1315 = vrot.lane.b32.xlu0 %v4497_v58, %s2482_s22  ;;  %2372 = vmatprep.mubr.msk.f32.mxu0 %vm1633_vm11, %v1606_v4  ;;  %v570_v55 = vrot.slane %v351_v2, 1 }
 0x1ec   : > { %v1200_v7 = vpop.permute.xlu1 %1199 }
 0x1ed   : > { %v1010_v39 = vpop.permute.xlu0 %1009  ;;  %v1574_v38 = vsel %vm1558_vm8, %v1541_v14, %v1200_v7  ;;  %v352_v7 = vld [vmem:[#allocation2 + $0x188] sm:$0xff] }
 0x1ee   : > { %1029 = vrot.lane.b32.xlu1 %v4495_v20, %s2479_s6  ;;  %v1509_v5 = vsel %vm1492_vm7, %v1476_v37, %v1010_v39  ;;  %v1379_v39 = vsel %vm214_vm0, %v2463_v36, %v4510_v32  ;;  %v575_v37 = vrot.slane %v351_v2, 2 }
 0x1ef   : > { %1125 = vrot.lane.b32.xlu0 %v3877_v0, %s2480_s11 }
 0x1f0   : > { %v916_v12 = vpop.permute.xlu1 %915 }
 0x1f1   : > { %v1012_v49 = vpop.permute.xlu0 %1011  ;;  %v1477_v13 = vsel %vm1459_vm6, %v1444_v3, %v916_v12  ;;  %v571_v12 = vrot.slane %v352_v7, 1 }
 0x1f2   : > { %1031 = vrot.lane.b32.xlu1 %v4497_v58, %s2479_s6  ;;  %v1510_v20 = vsel %vm1492_vm7, %v1477_v13, %v1012_v49  ;;  %v1412_v49 = vsel %vm1393_vm4, %v1379_v39, %v4511_v57  ;;  %v355_v13 = vld [vmem:[#allocation2 + $0x1a0] sm:$0xff] }
 0x1f3   : > { %1127 = vrot.lane.b32.xlu0 %v3886_v56, %s2480_s11  ;;  %v572_v17 = vsel %vm405_vm2, %v570_v55, %v571_v12  ;;  %v2465_v55 = vld [vmem:[#allocation2 + $0xf8] sm:$0xff] }
 0x1f4   : > { %v1296_v54 = vpop.permute.xlu1 %1295 }
 0x1f5   : > { %v1607_v30 = vsel %vm1591_vm10, %v1574_v38, %v1296_v54  ;;  %v1108_v41 = vpop.permute.xlu0 %1107  ;;  %v4512_v38 = vld [vmem:[#allocation11_spill] sm:$0xff] }
 0x1f6   : > { %841 = vrot.lane.b32.xlu1 %v3877_v0, %s2477_s21  ;;  %2373 = vmatmul.mubr.msk.f32.gmra.mxu0 %vm1633_vm11, %v1607_v30  ;;  %v1543_v6 = vsel %vm1525_vm9, %v1510_v20, %v1108_v41  ;;  %v1445_v54 = vsel %vm1426_vm5, %v1412_v49, %v4512_v38  ;;  %v573_v30 = vrot.slane %v353_v53, 1 }
 0x1f7   : > { %843 = vrot.lane.b32.xlu0 %v3886_v56, %s2477_s21 }
 0x1f8   : > { %v1106_v25 = vpop.permute.xlu1 %1105  ;;  %v574_v59 = vsel %vm405_vm2, %v571_v12, %v573_v30  ;;  %v4516_v12 = vld [vmem:[#allocation49_spill] sm:$0xff] }
 0x1f9   : > { %v918_v1 = vpop.permute.xlu0 %917  ;;  %v1542_v16 = vsel %vm1525_vm9, %v1509_v5, %v1106_v25  ;;  %v2464_v5 = vld [vmem:[#allocation2 + $0xe0] sm:$0xff]  ;;  %v1382_v57 = vsel %vm214_vm0, %v2465_v55, %v4516_v12  ;;  %v4524_v55 = vld [vmem:[#allocation51_spill] sm:$0xff] }
 0x1fa   : > { %1221 = vrot.lane.b32.xlu1 %v4503_v19, %s2481_s20  ;;  %v1478_v41 = vsel %vm1459_vm6, %v1445_v54, %v918_v1  ;;  %v576_v1 = vrot.slane %v352_v7, 2  ;;  %v4518_v54 = vld [vmem:[#allocation67_spill] sm:$0xff]  ;;  %v1384_v12 = vsel %vm214_vm0, %v3667_v35, %v4524_v55 }
 0x1fb   : > { %1223 = vrot.lane.b32.xlu0 %v4504_v10, %s2481_s20  ;;  %v1415_v30 = vsel %vm1393_vm4, %v1382_v57, %v4518_v54  ;;  %v4525_v57 = vld [vmem:[#allocation78_spill] sm:$0xff]  ;;  %v4526_v54 = vld [vmem:[#allocation4_spill] sm:$0xff] }
 0x1fc   : > { %v1202_v63 = vpop.permute.xlu1 %1201  ;;  %v577_v62 = vsel %vm486_vm3, %v575_v37, %v576_v1 }
 0x1fd   : > { %v1575_v11 = vsel %vm1558_vm8, %v1542_v16, %v1202_v63  ;;  %v1298_v27 = vpop.permute.xlu0 %1297  ;;  %v4513_v16 = vld [vmem:[#allocation47_spill] sm:$0xff] }
 0x1fe   : > { %937 = vrot.lane.b32.xlu1 %v4503_v19, %s2478_s28  ;;  %v1608_v26 = vsel %vm1591_vm10, %v1575_v11, %v1298_v27  ;;  %v4514_v11 = vld [vmem:[#allocation65_spill] sm:$0xff] }
 0x1ff   : > { %939 = vrot.lane.b32.xlu0 %v4504_v10, %s2478_s28  ;;  %2375 = vmatprep.mubr.msk.f32.mxu1 %vm1633_vm11, %v1608_v26  ;;  %v1380_v10 = vsel %vm214_vm0, %v2464_v5, %v4513_v16  ;;  %v578_v26 = vrot.slane %v353_v53, 2  ;;  %v589_v53 = vrot.slane %v355_v13, 2 }
 0x200   : > { %v1204_v23 = vpop.permute.xlu1 %1203  ;;  %v1413_v27 = vsel %vm1393_vm4, %v1380_v10, %v4514_v11 }
 0x201   : > { %v1014_v28 = vpop.permute.xlu0 %1013  ;;  %v1576_v45 = vsel %vm1558_vm8, %v1543_v6, %v1204_v23  ;;  %v1446_v22 = vsel %vm1426_vm5, %v1413_v27, %v4515_v50  ;;  %v579_v60 = vsel %vm486_vm3, %v576_v1, %v578_v26 }
 0x202   : > { %1317 = vrot.lane.b32.xlu1 %v4508_v21, %s2482_s22  ;;  %v1511_v29 = vsel %vm1492_vm7, %v1478_v41, %v1014_v28 }
 0x203   : > { %1319 = vrot.lane.b32.xlu0 %v4509_v9, %s2482_s22 }
 0x204   : > { %v920_v40 = vpop.permute.xlu1 %919 }
 0x205   : > { %v1016_v4 = vpop.permute.xlu0 %1015  ;;  %v1479_v23 = vsel %vm1459_vm6, %v1446_v22, %v920_v40 }
 0x206   : > { %1033 = vrot.lane.b32.xlu1 %v4508_v21, %s2479_s6  ;;  %v1512_v3 = vsel %vm1492_vm7, %v1479_v23, %v1016_v4  ;;  %v354_v21 = vld [vmem:[#allocation2 + $0x198] sm:$0xff] }
 0x207   : > { %1129 = vrot.lane.b32.xlu0 %v351_v2, %s2480_s11  ;;  %v583_v6 = vrot.slane %v354_v21, 1 }
 0x208   : > { %v1300_v52 = vpop.permute.xlu1 %1299 }
 0x209   : > { %v1609_v58 = vsel %vm1591_vm10, %v1576_v45, %v1300_v52  ;;  %v1112_v24 = vpop.permute.xlu0 %1111  ;;  %v584_v45 = vrot.slane %v355_v13, 1 }
 0x20a   : > { %1035 = vrot.lane.b32.xlu1 %v4509_v9, %s2479_s6  ;;  %2376 = vmatmul.mubr.msk.f32.vlgmr.msra.gmra.mxu1 %vm1633_vm11, %v1609_v58  ;;  %v1545_v9 = vsel %vm1525_vm9, %v1512_v3, %v1112_v24  ;;  %v356_v58 = vld [vmem:[#allocation2 + $0x1a8] sm:$0x3] }
 0x20b   : > { %1131 = vrot.lane.b32.xlu0 %v352_v7, %s2480_s11  ;;  %v585_v24 = vsel %vm405_vm2, %v583_v6, %v584_v45  ;;  %v586_v32 = vrot.slane %v356_v58, 1 }
 0x20c   : > { %v1110_v14 = vpop.permute.xlu1 %1109 }
 0x20d   : > { %v3945_v47 = vpop.permute.xlu0 %921  ;;  %v1544_v15 = vsel %vm1525_vm9, %v1511_v29, %v1110_v14  ;;  %v4517_v14 = vld [vmem:[#allocation46_spill] sm:$0xff]  ;;  %v4519_v29 = vld [vmem:[#allocation64_spill] sm:$0xff] }
 0x20e   : > { %845 = vrot.lane.b32.xlu1 %v351_v2, %s2477_s21  ;;  %v1381_v38 = vsel %vm214_vm0, %v3624_v61, %v4517_v14 }
 0x20f   : > { %847 = vrot.lane.b32.xlu0 %v352_v7, %s2477_s21  ;;  %v588_v7 = vrot.slane %v354_v21, 2 }
 0x210   : > { %v1206_v8 = vpop.permute.xlu1 %1205 }
 0x211   : > { %v1577_v25 = vsel %vm1558_vm8, %v1544_v15, %v1206_v8  ;;  %v1302_v34 = vpop.permute.xlu0 %1301  ;;  %v590_v49 = vsel %vm486_vm3, %v588_v7, %v589_v53  ;;  %v4520_v15 = vld [vmem:[#allocation10_spill] sm:$0xff]  ;;  %v4522_v7 = vld [vmem:[#allocation48_spill] sm:$0xff] }
 0x212   : > { %1225 = vrot.lane.b32.xlu1 %v572_v17, %s2481_s20  ;;  %v1610_v19 = vsel %vm1591_vm10, %v1577_v25, %v1302_v34  ;;  %v1448_v8 = vsel %vm1426_vm5, %v1415_v30, %v4520_v15  ;;  %v587_v25 = vsel %vm405_vm2, %v584_v45, %v586_v32  ;;  %v4521_v34 = vld [vmem:[#allocation76_spill] sm:$0xff]  ;;  %v4523_v32 = vld [vmem:[#allocation66_spill] sm:$0xff]  ;;  %v1417_v30 = vsel %vm1393_vm4, %v1384_v12, %v4526_v54 }
 0x213   : > { %1227 = vrot.lane.b32.xlu0 %v574_v59, %s2481_s20  ;;  %2378 = vmatprep.mubr.msk.f32.mxu1 %vm1633_vm11, %v1610_v19 }
 0x214   : > { %v1208_v63 = vpop.permute.xlu1 %1207 }
 0x215   : > { %v1018_v31 = vpop.permute.xlu0 %1017  ;;  %v1578_v2 = vsel %vm1558_vm8, %v1545_v9, %v1208_v63 }
 0x216   : > { %941 = vrot.lane.b32.xlu1 %v572_v17, %s2478_s28  ;;  %v1414_v17 = vsel %vm1393_vm4, %v1381_v38, %v4519_v29 }
 0x217   : > { %943 = vrot.lane.b32.xlu0 %v574_v59, %s2478_s28  ;;  %v591_v59 = vrot.slane %v356_v58, 2  ;;  %v1447_v37 = vsel %vm1426_vm5, %v1414_v17, %v4521_v34 }
 0x218   : > { %v924_v46 = vpop.permute.xlu1 %923  ;;  %v1480_v19 = vsel %vm1459_vm6, %v1447_v37, %v3945_v47 }
 0x219   : > { %v1020_v28 = vpop.permute.xlu0 %1019  ;;  %v1481_v61 = vsel %vm1459_vm6, %v1448_v8, %v924_v46  ;;  %v1513_v5 = vsel %vm1492_vm7, %v1480_v19, %v1018_v31  ;;  %v592_v26 = vsel %vm486_vm3, %v589_v53, %v591_v59 }
 0x21a   : > { %1321 = vrot.lane.b32.xlu1 %v577_v62, %s2482_s22  ;;  %v1514_v63 = vsel %vm1492_vm7, %v1481_v61, %v1020_v28 }
 0x21b   : > { %1323 = vrot.lane.b32.xlu0 %v579_v60, %s2482_s22 }
 0x21c   : > { %v1304_v40 = vpop.permute.xlu1 %1303 }
 0x21d   : > { %v1611_v20 = vsel %vm1591_vm10, %v1578_v2, %v1304_v40  ;;  %v1116_v52 = vpop.permute.xlu0 %1115 }
 0x21e   : > { %1037 = vrot.lane.b32.xlu1 %v577_v62, %s2479_s6  ;;  %2379 = vmatmul.mubr.msk.f32.gmra.mxu1 %vm1633_vm11, %v1611_v20  ;;  %v1547_v50 = vsel %vm1525_vm9, %v1514_v63, %v1116_v52 }
 0x21f   : > { %1133 = vrot.lane.b32.xlu0 %v354_v21, %s2480_s11 }
 0x220   : > { %v1114_v4 = vpop.permute.xlu1 %1113 }
 0x221   : > { %v3979_v36 = vpop.permute.xlu0 %831  ;;  %v1546_v11 = vsel %vm1525_vm9, %v1513_v5, %v1114_v4 }
 0x222   : > { %1039 = vrot.lane.b32.xlu1 %v579_v60, %s2479_s6 }
 0x223   : > { %1229 = vrot.lane.b32.xlu0 %v585_v24, %s2481_s20  ;;  %v1383_v24 = vsel %vm214_vm0, %v3672_v42, %v4522_v7  ;;  %v1450_v42 = vsel %vm1426_vm5, %v1417_v30, %v3979_v36 }
 0x224   : > { %v1210_v39 = vpop.permute.xlu1 %1209 }
 0x225   : > { %v1212_v41 = vpop.permute.xlu0 %1211  ;;  %v1579_v47 = vsel %vm1558_vm8, %v1546_v11, %v1210_v39  ;;  %v1416_v39 = vsel %vm1393_vm4, %v1383_v24, %v4523_v32  ;;  %v4529_v24 = vld [vmem:[#allocation53_spill] sm:$0xff] }
 0x226   : > { %1135 = vrot.lane.b32.xlu1 %v355_v13, %s2480_s11  ;;  %v1580_v3 = vsel %vm1558_vm8, %v1547_v50, %v1212_v41 }
 0x227   : > { %1325 = vrot.lane.b32.xlu0 %v590_v49, %s2482_s22  ;;  %v1449_v49 = vsel %vm1426_vm5, %v1416_v39, %v4525_v57 }
 0x228   : > { %v926_v1 = vpop.permute.xlu1 %925 }
 0x229   : > { %v928_v16 = vpop.permute.xlu0 %927  ;;  %v1482_v41 = vsel %vm1459_vm6, %v1449_v49, %v926_v1 }
 0x22a   : > { %v2353_v10 = vpop.f32.mrf.mxu0  ;;  %1231 = vrot.lane.b32.xlu1 %v587_v25, %s2481_s20  ;;  %v1483_v35 = vsel %vm1459_vm6, %v1450_v42, %v928_v16 }
 0x22b   : > { %v2025_v27 = vmul.f32 %v2353_v10, %v2353_v10  ;;  %2129 = vst.msk [vmem:[%s4006_s23 + $0x8] sm:$0xff] %vm214_vm0, %v2353_v10  ;;  %v1956_v23 = vsel %vm214_vm0, %v2353_v10, 0.0 }
 0x22c   : > { %v1796_v22 = vpop.f32.mrf.mxu0  ;;  %v1306_v31 = vpop.permute.xlu1 %1305 }
 0x22d   : > { %v1955_v62 = vsel %vm214_vm0, %v1796_v22, 0.0  ;;  %v2024_v46 = vmul.f32 %v1796_v22, %v1796_v22  ;;  %2128 = vst.msk [vmem:[%s4006_s23] sm:$0xff] %vm214_vm0, %v1796_v22  ;;  %v1612_v60 = vsel %vm1591_vm10, %v1579_v47, %v1306_v31  ;;  %v1308_v21 = vpop.permute.xlu0 %1307  ;;  %v2057_v13 = vsel %vm214_vm0, %v2025_v27, 0.0 }
 0x22e   : > { %v1957_v28 = vadd.f32 %v1956_v23, %v1955_v62  ;;  %1327 = vrot.lane.b32.xlu1 %v592_v26, %s2482_s22  ;;  %2381 = vmatprep.mubr.msk.f32.mxu1 %vm1633_vm11, %v1612_v60  ;;  %v1613_v2 = vsel %vm1591_vm10, %v1580_v3, %v1308_v21 }
 0x22f   : > { %v2056_v9 = vsel %vm214_vm0, %v2024_v46, 0.0  ;;  %2382 = vmatmul.mubr.msk.f32.gmra.mxu1 %vm1633_vm11, %v1613_v2 }
 0x230   : > { %v2058_v40 = vadd.f32 %v2057_v13, %v2056_v9  ;;  %v1022_v20 = vpop.permute.xlu1 %1021  ;;  %v4527_v13 = vld [vmem:[#allocation50_spill] sm:$0xff] }
 0x231   : > { %v1118_v6 = vpop.permute.xlu0 %1117  ;;  %v1515_v29 = vsel %vm1492_vm7, %v1482_v41, %v1022_v20  ;;  %v1385_v9 = vsel %vm214_vm0, %v3720_v48, %v4527_v13  ;;  %v4528_v20 = vld [vmem:[#allocation68_spill] sm:$0xff]  ;;  %v4530_v48 = vld [vmem:[#allocation70_spill] sm:$0xff]  ;;  %v4532_v13 = vld [vmem:[#allocation69_spill] sm:$0xff] }
 0x232   : > { %v1548_v1 = vsel %vm1525_vm9, %v1515_v29, %v1118_v6  ;;  %v1418_v6 = vsel %vm1393_vm4, %v1385_v9, %v4528_v20 }
 0x234   : > { %v1024_v45 = vpop.permute.xlu1 %1023 }
 0x235   : > { %v1120_v52 = vpop.permute.xlu0 %1119  ;;  %v1516_v34 = vsel %vm1492_vm7, %v1483_v35, %v1024_v45 }
 0x236   : > { %v1549_v11 = vsel %vm1525_vm9, %v1516_v34, %v1120_v52 }
 0x238   : > { %v834_v4 = vpop.permute.xlu1 %833 }
 0x239   : > { %v4031_v58 = vpop.permute.xlu0 %835  ;;  %v1451_v32 = vsel %vm1426_vm5, %v1418_v6, %v834_v4 }
 0x23c   : > { %v1214_v53 = vpop.permute.xlu1 %1213 }
 0x23d   : > { %v1216_v14 = vpop.permute.xlu0 %1215  ;;  %v1581_v5 = vsel %vm1558_vm8, %v1548_v1, %v1214_v53  ;;  %v1386_v53 = vsel %vm214_vm0, %v3715_v44, %v4529_v24 }
 0x23e   : > { %v2356_v38 = vpop.f32.mrf.mxu0  ;;  %v1582_v50 = vsel %vm1558_vm8, %v1549_v11, %v1216_v14  ;;  %v1419_v12 = vsel %vm1393_vm4, %v1386_v53, %v4530_v48 }
 0x23f   : > { %2131 = vst.msk [vmem:[%s4006_s23 + $0x18] sm:$0xff] %vm214_vm0, %v2356_v38  ;;  %v2027_v8 = vmul.f32 %v2356_v38, %v2356_v38  ;;  %v1960_v36 = vsel %vm214_vm0, %v2356_v38, 0.0  ;;  %v1452_v38 = vsel %vm1426_vm5, %v1419_v12, %v4031_v58 }
 0x240   : > { %v1806_v17 = vpop.f32.mrf.mxu0  ;;  %v930_v15 = vpop.permute.xlu1 %929 }
 0x241   : > { %v1958_v25 = vsel %vm214_vm0, %v1806_v17, 0.0  ;;  %v2026_v59 = vmul.f32 %v1806_v17, %v1806_v17  ;;  %2130 = vst.msk [vmem:[%s4006_s23 + $0x10] sm:$0xff] %vm214_vm0, %v1806_v17  ;;  %v932_v61 = vpop.permute.xlu0 %931  ;;  %v2061_v27 = vsel %vm214_vm0, %v2027_v8, 0.0  ;;  %v1484_v57 = vsel %vm1459_vm6, %v1451_v32, %v930_v15 }
 0x242   : > { %v1959_v37 = vadd.f32 %v1958_v25, %v1957_v28  ;;  %v1485_v4 = vsel %vm1459_vm6, %v1452_v38, %v932_v61 }
 0x243   : > { %v2059_v19 = vsel %vm214_vm0, %v2026_v59, 0.0 }
 0x244   : > { %v2060_v10 = vadd.f32 %v2059_v19, %v2058_v40  ;;  %v1310_v16 = vpop.permute.xlu1 %1309  ;;  %v1961_v63 = vadd.f32 %v1960_v36, %v1959_v37 }
 0x245   : > { %v1614_v26 = vsel %vm1591_vm10, %v1581_v5, %v1310_v16  ;;  %v1312_v47 = vpop.permute.xlu0 %1311 }
 0x246   : > { %2384 = vmatprep.mubr.msk.f32.mxu1 %vm1633_vm11, %v1614_v26  ;;  %v2062_v22 = vadd.f32 %v2061_v27, %v2060_v10  ;;  %v1615_v31 = vsel %vm1591_vm10, %v1582_v50, %v1312_v47 }
 0x247   : > { %2385 = vmatmul.mubr.msk.f32.gmra.mxu1 %vm1633_vm11, %v1615_v31 }
 0x248   : > { %v1026_v23 = vpop.permute.xlu1 %1025 }
 0x249   : > { %v1122_v62 = vpop.permute.xlu0 %1121  ;;  %v1517_v54 = vsel %vm1492_vm7, %v1484_v57, %v1026_v23  ;;  %v4531_v23 = vld [vmem:[#allocation52_spill] sm:$0xff] }
 0x24a   : > { %v1550_v35 = vsel %vm1525_vm9, %v1517_v54, %v1122_v62  ;;  %v1387_v62 = vsel %vm214_vm0, %v3763_v43, %v4531_v23 }
 0x24b   : > { %v1420_v9 = vsel %vm1393_vm4, %v1387_v62, %v4532_v13 }
 0x24c   : > { %v1028_v46 = vpop.permute.xlu1 %1027 }
 0x24d   : > { %v1124_v60 = vpop.permute.xlu0 %1123  ;;  %v1518_v29 = vsel %vm1492_vm7, %v1485_v4, %v1028_v46 }
 0x24e   : > { %v1551_v58 = vsel %vm1525_vm9, %v1518_v29, %v1124_v60 }
 0x250   : > { %v4067_v3 = vpop.permute.xlu1 %837 }
 0x251   : > { %v4069_v28 = vpop.permute.xlu0 %839  ;;  %v1453_v6 = vsel %vm1426_vm5, %v1420_v9, %v4067_v3 }
 0x252   : > { %v2359_v21 = vpop.f32.mrf.mxu0 }
 0x253   : > { %2133 = vst.msk [vmem:[%s4006_s23 + $0x28] sm:$0xff] %vm214_vm0, %v2359_v21  ;;  %v2029_v45 = vmul.f32 %v2359_v21, %v2359_v21  ;;  %v1964_v49 = vsel %vm214_vm0, %v2359_v21, 0.0 }
 0x254   : > { %v1816_v2 = vpop.f32.mrf.mxu0  ;;  %v1218_v40 = vpop.permute.xlu1 %1217 }
 0x255   : > { %v1962_v52 = vsel %vm214_vm0, %v1816_v2, 0.0  ;;  %v2028_v7 = vmul.f32 %v1816_v2, %v1816_v2  ;;  %2132 = vst.msk [vmem:[%s4006_s23 + $0x20] sm:$0xff] %vm214_vm0, %v1816_v2  ;;  %v1220_v55 = vpop.permute.xlu0 %1219  ;;  %v2065_v42 = vsel %vm214_vm0, %v2029_v45, 0.0  ;;  %v1583_v8 = vsel %vm1558_vm8, %v1550_v35, %v1218_v40  ;;  %v4533_v40 = vld [vmem:[#allocation55_spill] sm:$0xff] }
 0x256   : > { %v1963_v39 = vadd.f32 %v1962_v52, %v1961_v63  ;;  %v1584_v34 = vsel %vm1558_vm8, %v1551_v58, %v1220_v55  ;;  %v1388_v20 = vsel %vm214_vm0, %v3773_v18, %v4533_v40 }
 0x257   : > { %v2063_v14 = vsel %vm214_vm0, %v2028_v7, 0.0  ;;  %v4534_v7 = vld [vmem:[#allocation7_spill] sm:$0xff] }
 0x258   : > { %v2064_v30 = vadd.f32 %v2063_v14, %v2062_v22  ;;  %v934_v44 = vpop.permute.xlu1 %933  ;;  %v1965_v41 = vadd.f32 %v1964_v49, %v1963_v39  ;;  %v1421_v43 = vsel %vm1393_vm4, %v1388_v20, %v4534_v7 }
 0x259   : > { %v936_v17 = vpop.permute.xlu0 %935  ;;  %v1486_v24 = vsel %vm1459_vm6, %v1453_v6, %v934_v44  ;;  %v1454_v53 = vsel %vm1426_vm5, %v1421_v43, %v4069_v28 }
 0x25a   : > { %v2066_v15 = vadd.f32 %v2065_v42, %v2064_v30  ;;  %v1487_v55 = vsel %vm1459_vm6, %v1454_v53, %v936_v17 }
 0x25c   : > { %v1314_v25 = vpop.permute.xlu1 %1313 }
 0x25d   : > { %v1616_v59 = vsel %vm1591_vm10, %v1583_v8, %v1314_v25  ;;  %v1316_v37 = vpop.permute.xlu0 %1315 }
 0x25e   : > { %2387 = vmatprep.mubr.msk.f32.mxu1 %vm1633_vm11, %v1616_v59  ;;  %v1617_v61 = vsel %vm1591_vm10, %v1584_v34, %v1316_v37 }
 0x25f   : > { %2388 = vmatmul.mubr.msk.f32.gmra.mxu1 %vm1633_vm11, %v1617_v61 }
 0x260   : > { %v1030_v1 = vpop.permute.xlu1 %1029 }
 0x261   : > { %v1126_v36 = vpop.permute.xlu0 %1125  ;;  %v1519_v32 = vsel %vm1492_vm7, %v1486_v24, %v1030_v1 }
 0x262   : > { %v1552_v3 = vsel %vm1525_vm9, %v1519_v32, %v1126_v36 }
 0x264   : > { %v1032_v19 = vpop.permute.xlu1 %1031 }
 0x265   : > { %v1128_v5 = vpop.permute.xlu0 %1127  ;;  %v1520_v18 = vsel %vm1492_vm7, %v1487_v55, %v1032_v19  ;;  %v4535_v19 = vld [vmem:[#allocation54_spill] sm:$0xff] }
 0x266   : > { %v2362_v10 = vpop.f32.mrf.mxu0  ;;  %v1553_v49 = vsel %vm1525_vm9, %v1520_v18, %v1128_v5  ;;  %v1389_v5 = vsel %vm214_vm0, %v3819_v51, %v4535_v19 }
 0x267   : > { %2135 = vst.msk [vmem:[%s4006_s23 + $0x38] sm:$0xff] %vm214_vm0, %v2362_v10  ;;  %v2031_v11 = vmul.f32 %v2362_v10, %v2362_v10  ;;  %v1968_v22 = vsel %vm214_vm0, %v2362_v10, 0.0 }
 0x268   : > { %v1826_v16 = vpop.f32.mrf.mxu0  ;;  %v842_v63 = vpop.permute.xlu1 %841 }
 0x269   : > { %v1966_v27 = vsel %vm214_vm0, %v1826_v16, 0.0  ;;  %v2030_v26 = vmul.f32 %v1826_v16, %v1826_v16  ;;  %2134 = vst.msk [vmem:[%s4006_s23 + $0x30] sm:$0xff] %vm214_vm0, %v1826_v16  ;;  %v844_v47 = vpop.permute.xlu0 %843  ;;  %v2069_v2 = vsel %vm214_vm0, %v2031_v11, 0.0  ;;  %v4536_v16 = vld [vmem:[#allocation71_spill] sm:$0xff] }
 0x26a   : > { %v1967_v50 = vadd.f32 %v1966_v27, %v1965_v41  ;;  %v1422_v11 = vsel %vm1393_vm4, %v1389_v5, %v4536_v16  ;;  %v4537_v27 = vld [vmem:[#allocation57_spill] sm:$0xff] }
 0x26b   : > { %v2067_v31 = vsel %vm214_vm0, %v2030_v26, 0.0  ;;  %v1390_v26 = vsel %vm214_vm0, %v3831_v33, %v4537_v27 }
 0x26c   : > { %v2068_v46 = vadd.f32 %v2067_v31, %v2066_v15  ;;  %v1222_v60 = vpop.permute.xlu1 %1221  ;;  %v1969_v21 = vadd.f32 %v1968_v22, %v1967_v50  ;;  %v1455_v50 = vsel %vm1426_vm5, %v1422_v11, %v842_v63  ;;  %v4538_v31 = vld [vmem:[#allocation73_spill] sm:$0xff] }
 0x26d   : > { %v1224_v45 = vpop.permute.xlu0 %1223  ;;  %v1585_v12 = vsel %vm1558_vm8, %v1552_v3, %v1222_v60  ;;  %v1423_v23 = vsel %vm1393_vm4, %v1390_v26, %v4538_v31  ;;  %v4540_v3 = vld [vmem:[#allocation72_spill] sm:$0xff] }
 0x26e   : > { %v2070_v52 = vadd.f32 %v2069_v2, %v2068_v46  ;;  %v1586_v28 = vsel %vm1558_vm8, %v1553_v49, %v1224_v45  ;;  %v1456_v46 = vsel %vm1426_vm5, %v1423_v23, %v844_v47 }
 0x270   : > { %v938_v39 = vpop.permute.xlu1 %937 }
 0x271   : > { %v940_v48 = vpop.permute.xlu0 %939  ;;  %v1488_v62 = vsel %vm1459_vm6, %v1455_v50, %v938_v39  ;;  %v4539_v39 = vld [vmem:[#allocation56_spill] sm:$0xff] }
 0x272   : > { %v1391_v55 = vsel %vm214_vm0, %v3877_v0, %v4539_v39 }
 0x274   : > { %v1318_v57 = vpop.permute.xlu1 %1317 }
 0x275   : > { %v1618_v14 = vsel %vm1591_vm10, %v1585_v12, %v1318_v57  ;;  %v1320_v38 = vpop.permute.xlu0 %1319  ;;  %v1424_v12 = vsel %vm1393_vm4, %v1391_v55, %v4540_v3 }
 0x276   : > { %2390 = vmatprep.mubr.msk.f32.mxu1 %vm1633_vm11, %v1618_v14  ;;  %v1619_v54 = vsel %vm1591_vm10, %v1586_v28, %v1320_v38 }
 0x277   : > { %2391 = vmatmul.mubr.msk.f32.gmra.mxu1 %vm1633_vm11, %v1619_v54 }
 0x278   : > { %v1034_v30 = vpop.permute.xlu1 %1033 }
 0x279   : > { %v1130_v44 = vpop.permute.xlu0 %1129  ;;  %v1521_v51 = vsel %vm1492_vm7, %v1488_v62, %v1034_v30 }
 0x27a   : > { %v2365_v41 = vpop.f32.mrf.mxu0  ;;  %v1554_v33 = vsel %vm1525_vm9, %v1521_v51, %v1130_v44 }
 0x27b   : > { %2137 = vst.msk [vmem:[%s4006_s23 + $0x48] sm:$0xff] %vm214_vm0, %v2365_v41  ;;  %v2033_v29 = vmul.f32 %v2365_v41, %v2365_v41  ;;  %v1972_v25 = vsel %vm214_vm0, %v2365_v41, 0.0 }
 0x27c   : > { %v1836_v4 = vpop.f32.mrf.mxu0  ;;  %v1036_v42 = vpop.permute.xlu1 %1035 }
 0x27d   : > { %v1970_v17 = vsel %vm214_vm0, %v1836_v4, 0.0  ;;  %v2032_v15 = vmul.f32 %v1836_v4, %v1836_v4  ;;  %2136 = vst.msk [vmem:[%s4006_s23 + $0x40] sm:$0xff] %vm214_vm0, %v1836_v4  ;;  %v1132_v8 = vpop.permute.xlu0 %1131  ;;  %v2073_v61 = vsel %vm214_vm0, %v2033_v29, 0.0 }
 0x27e   : > { %v1971_v35 = vadd.f32 %v1970_v17, %v1969_v21  ;;  %v1489_v21 = vsel %vm1459_vm6, %v1456_v46, %v940_v48  ;;  %v4541_v17 = vld [vmem:[#allocation58_spill] sm:$0xff] }
 0x27f   : > { %v2071_v58 = vsel %vm214_vm0, %v2032_v15, 0.0  ;;  %v1522_v13 = vsel %vm1492_vm7, %v1489_v21, %v1036_v42  ;;  %v1392_v15 = vsel %vm214_vm0, %v3886_v56, %v4541_v17 }
 0x280   : > { %v2072_v59 = vadd.f32 %v2071_v58, %v2070_v52  ;;  %v846_v34 = vpop.permute.xlu1 %845  ;;  %v1973_v37 = vadd.f32 %v1972_v25, %v1971_v35  ;;  %v1555_v40 = vsel %vm1525_vm9, %v1522_v13, %v1132_v8  ;;  %v4542_v25 = vld [vmem:[#allocation74_spill] sm:$0xff] }
 0x281   : > { %v848_v1 = vpop.permute.xlu0 %847  ;;  %v1457_v14 = vsel %vm1426_vm5, %v1424_v12, %v846_v34  ;;  %v1425_v58 = vsel %vm1393_vm4, %v1392_v15, %v4542_v25 }
 0x282   : > { %v2074_v36 = vadd.f32 %v2073_v61, %v2072_v59  ;;  %v1458_v34 = vsel %vm1426_vm5, %v1425_v58, %v848_v1 }
 0x284   : > { %v1226_v10 = vpop.permute.xlu1 %1225 }
 0x285   : > { %v1228_v22 = vpop.permute.xlu0 %1227  ;;  %v1587_v63 = vsel %vm1558_vm8, %v1554_v33, %v1226_v10 }
 0x286   : > { %v1588_v47 = vsel %vm1558_vm8, %v1555_v40, %v1228_v22 }
 0x288   : > { %v942_v60 = vpop.permute.xlu1 %941 }
 0x289   : > { %v944_v9 = vpop.permute.xlu0 %943  ;;  %v1490_v30 = vsel %vm1459_vm6, %v1457_v14, %v942_v60 }
 0x28a   : > { %v1491_v61 = vsel %vm1459_vm6, %v1458_v34, %v944_v9 }
 0x28c   : > { %v1322_v2 = vpop.permute.xlu1 %1321 }
 0x28d   : > { %v1620_v20 = vsel %vm1591_vm10, %v1587_v63, %v1322_v2  ;;  %v1324_v6 = vpop.permute.xlu0 %1323 }
 0x28e   : > { %v2368_v45 = vpop.f32.mrf.mxu0  ;;  %2393 = vmatprep.mubr.msk.f32.mxu1 %vm1633_vm11, %v1620_v20  ;;  %v1621_v52 = vsel %vm1591_vm10, %v1588_v47, %v1324_v6 }
 0x28f   : > { %2139 = vst.msk [vmem:[%s4006_s23 + $0x58] sm:$0xff] %vm214_vm0, %v2368_v45  ;;  %2394 = vmatmul.mubr.msk.f32.gmra.mxu1 %vm1633_vm11, %v1621_v52  ;;  %v2035_v24 = vmul.f32 %v2368_v45, %v2368_v45  ;;  %v1976_v57 = vsel %vm214_vm0, %v2368_v45, 0.0 }
 0x290   : > { %v1846_v7 = vpop.f32.mrf.mxu0  ;;  %v1038_v43 = vpop.permute.xlu1 %1037 }
 0x291   : > { %v1974_v53 = vsel %vm214_vm0, %v1846_v7, 0.0  ;;  %v2034_v32 = vmul.f32 %v1846_v7, %v1846_v7  ;;  %2138 = vst.msk [vmem:[%s4006_s23 + $0x50] sm:$0xff] %vm214_vm0, %v1846_v7  ;;  %v1134_v48 = vpop.permute.xlu0 %1133  ;;  %v2077_v44 = vsel %vm214_vm0, %v2035_v24, 0.0  ;;  %v1523_v0 = vsel %vm1492_vm7, %v1490_v30, %v1038_v43 }
 0x292   : > { %v1975_v18 = vadd.f32 %v1974_v53, %v1973_v37  ;;  %v1556_v29 = vsel %vm1525_vm9, %v1523_v0, %v1134_v48 }
 0x293   : > { %v2075_v49 = vsel %vm214_vm0, %v2034_v32, 0.0 }
 0x294   : > { %v2076_v28 = vadd.f32 %v2075_v49, %v2074_v36  ;;  %v1040_v38 = vpop.permute.xlu1 %1039  ;;  %v1977_v54 = vadd.f32 %v1976_v57, %v1975_v18 }
 0x295   : > { %v1230_v41 = vpop.permute.xlu0 %1229  ;;  %v1524_v36 = vsel %vm1492_vm7, %v1491_v61, %v1040_v38 }
 0x296   : > { %v2078_v4 = vadd.f32 %v2077_v44, %v2076_v28  ;;  %v1589_v35 = vsel %vm1558_vm8, %v1556_v29, %v1230_v41 }
 0x298   : > { %v1136_v42 = vpop.permute.xlu1 %1135 }
 0x299   : > { %v1326_v8 = vpop.permute.xlu0 %1325  ;;  %v1557_v56 = vsel %vm1525_vm9, %v1524_v36, %v1136_v42 }
 0x29a   : > { %v1622_v59 = vsel %vm1591_vm10, %v1589_v35, %v1326_v8 }
 0x29b   : > { %2396 = vmatprep.mubr.msk.f32.mxu1 %vm1633_vm11, %v1622_v59 }
 0x29c   : > { %v1232_v37 = vpop.permute.xlu1 %1231 }
 0x29d   : > { %v1590_v19 = vsel %vm1558_vm8, %v1557_v56, %v1232_v37 }
 0x2a0   : > { %v1328_v5 = vpop.permute.xlu1 %1327 }
 0x2a1   : > { %v1623_v10 = vsel %vm1591_vm10, %v1590_v19, %v1328_v5 }
 0x2a2   : > { %v2371_v16 = vpop.f32.mrf.mxu0  ;;  %2397 = vmatmul.mubr.msk.f32.gmra.mxu1 %vm1633_vm11, %v1623_v10 }
 0x2a3   : > { %2141 = vst.msk [vmem:[%s4006_s23 + $0x68] sm:$0xff] %vm214_vm0, %v2371_v16  ;;  %v2037_v11 = vmul.f32 %v2371_v16, %v2371_v16  ;;  %v1980_v22 = vsel %vm214_vm0, %v2371_v16, 0.0 }
 0x2a4   : > { %v1856_v1 = vpop.f32.mrf.mxu0 }
 0x2a5   : > { %v1978_v27 = vsel %vm214_vm0, %v1856_v1, 0.0  ;;  %v2036_v26 = vmul.f32 %v1856_v1, %v1856_v1  ;;  %2140 = vst.msk [vmem:[%s4006_s23 + $0x60] sm:$0xff] %vm214_vm0, %v1856_v1  ;;  %v2081_v46 = vsel %vm214_vm0, %v2037_v11, 0.0 }
 0x2a6   : > { %v1979_v50 = vadd.f32 %v1978_v27, %v1977_v54 }
 0x2a7   : > { %v2079_v31 = vsel %vm214_vm0, %v2036_v26, 0.0 }
 0x2a8   : > { %v2080_v23 = vadd.f32 %v2079_v31, %v2078_v4  ;;  %v1981_v62 = vadd.f32 %v1980_v22, %v1979_v50 }
 0x2aa   : > { %v2082_v51 = vadd.f32 %v2081_v46, %v2080_v23 }
 0x2b6   : > { %v2374_v60 = vpop.f32.mrf.mxu0 }
 0x2b7   : > { %2143 = vst.msk [vmem:[%s4006_s23 + $0x78] sm:$0xff] %vm214_vm0, %v2374_v60  ;;  %v2039_v13 = vmul.f32 %v2374_v60, %v2374_v60  ;;  %v1984_v2 = vsel %vm214_vm0, %v2374_v60, 0.0 }
 0x2b8   : > { %v1866_v21 = vpop.f32.mrf.mxu0 }
 0x2b9   : > { %v1982_v9 = vsel %vm214_vm0, %v1866_v21, 0.0  ;;  %v2038_v33 = vmul.f32 %v1866_v21, %v1866_v21  ;;  %2142 = vst.msk [vmem:[%s4006_s23 + $0x70] sm:$0xff] %vm214_vm0, %v1866_v21  ;;  %v2085_v6 = vsel %vm214_vm0, %v2039_v13, 0.0 }
 0x2ba   : > { %v1983_v63 = vadd.f32 %v1982_v9, %v1981_v62 }
 0x2bb   : > { %v2083_v40 = vsel %vm214_vm0, %v2038_v33, 0.0 }
 0x2bc   : > { %v1985_v20 = vadd.f32 %v1984_v2, %v1983_v63  ;;  %v2084_v47 = vadd.f32 %v2083_v40, %v2082_v51 }
 0x2be   : > { %v2086_v45 = vadd.f32 %v2085_v6, %v2084_v47 }
 0x2ca   : > { %v2377_v52 = vpop.f32.mrf.mxu1 }
 0x2cb   : > { %2145 = vst.msk [vmem:[%s4006_s23 + $0x88] sm:$0xff] %vm214_vm0, %v2377_v52  ;;  %v2041_v43 = vmul.f32 %v2377_v52, %v2377_v52  ;;  %v1988_v39 = vsel %vm214_vm0, %v2377_v52, 0.0 }
 0x2cc   : > { %v1876_v7 = vpop.f32.mrf.mxu1 }
 0x2cd   : > { %v1986_v24 = vsel %vm214_vm0, %v1876_v7, 0.0  ;;  %v2040_v53 = vmul.f32 %v1876_v7, %v1876_v7  ;;  %2144 = vst.msk [vmem:[%s4006_s23 + $0x80] sm:$0xff] %vm214_vm0, %v1876_v7  ;;  %v2089_v3 = vsel %vm214_vm0, %v2041_v43, 0.0 }
 0x2ce   : > { %v1987_v32 = vadd.f32 %v1986_v24, %v1985_v20 }
 0x2cf   : > { %v2087_v55 = vsel %vm214_vm0, %v2040_v53, 0.0 }
 0x2d0   : > { %v2088_v18 = vadd.f32 %v2087_v55, %v2086_v45  ;;  %v1989_v48 = vadd.f32 %v1988_v39, %v1987_v32 }
 0x2d2   : > { %v2090_v12 = vadd.f32 %v2089_v3, %v2088_v18 }
 0x2de   : > { %v2380_v57 = vpop.f32.mrf.mxu1 }
 0x2df   : > { %2147 = vst.msk [vmem:[%s4006_s23 + $0x98] sm:$0xff] %vm214_vm0, %v2380_v57  ;;  %v2043_v14 = vmul.f32 %v2380_v57, %v2380_v57  ;;  %v1992_v30 = vsel %vm214_vm0, %v2380_v57, 0.0 }
 0x2e0   : > { %v1886_v49 = vpop.f32.mrf.mxu1 }
 0x2e1   : > { %v1990_v28 = vsel %vm214_vm0, %v1886_v49, 0.0  ;;  %v2042_v38 = vmul.f32 %v1886_v49, %v1886_v49  ;;  %2146 = vst.msk [vmem:[%s4006_s23 + $0x90] sm:$0xff] %vm214_vm0, %v1886_v49  ;;  %v2093_v4 = vsel %vm214_vm0, %v2043_v14, 0.0 }
 0x2e2   : > { %v1991_v54 = vadd.f32 %v1990_v28, %v1989_v48 }
 0x2e3   : > { %v2091_v44 = vsel %vm214_vm0, %v2042_v38, 0.0 }
 0x2e4   : > { %v2092_v0 = vadd.f32 %v2091_v44, %v2090_v12  ;;  %v1993_v41 = vadd.f32 %v1992_v30, %v1991_v54 }
 0x2e6   : > { %v2094_v42 = vadd.f32 %v2093_v4, %v2092_v0 }
 0x2ef   : > { %v2383_v29 = vpop.f32.mrf.mxu1 }
 0x2f0   : > { %2149 = vst.msk [vmem:[%s4006_s23 + $0xa8] sm:$0xff] %vm214_vm0, %v2383_v29  ;;  %v2045_v15 = vmul.f32 %v2383_v29, %v2383_v29  ;;  %v1996_v58 = vsel %vm214_vm0, %v2383_v29, 0.0 }
 0x2f1   : > { %v1896_v17 = vpop.f32.mrf.mxu1 }
 0x2f2   : > { %v1994_v35 = vsel %vm214_vm0, %v1896_v17, 0.0  ;;  %v2044_v8 = vmul.f32 %v1896_v17, %v1896_v17  ;;  %2148 = vst.msk [vmem:[%s4006_s23 + $0xa0] sm:$0xff] %vm214_vm0, %v1896_v17  ;;  %v2097_v61 = vsel %vm214_vm0, %v2045_v15, 0.0 }
 0x2f3   : > { %v1995_v25 = vadd.f32 %v1994_v35, %v1993_v41 }
 0x2f4   : > { %v2095_v59 = vsel %vm214_vm0, %v2044_v8, 0.0 }
 0x2f5   : > { %v2096_v34 = vadd.f32 %v2095_v59, %v2094_v42  ;;  %v1997_v37 = vadd.f32 %v1996_v58, %v1995_v25 }
 0x2f7   : > { %v2098_v36 = vadd.f32 %v2097_v61, %v2096_v34 }
 0x307   : > { %v2386_v56 = vpop.f32.mrf.mxu1 }
 0x308   : > { %2151 = vst.msk [vmem:[%s4006_s23 + $0xb8] sm:$0xff] %vm214_vm0, %v2386_v56  ;;  %v2047_v5 = vmul.f32 %v2386_v56, %v2386_v56  ;;  %v2000_v11 = vsel %vm214_vm0, %v2386_v56, 0.0 }
 0x309   : > { %v1906_v19 = vpop.f32.mrf.mxu1 }
 0x30a   : > { %v1998_v10 = vsel %vm214_vm0, %v1906_v19, 0.0  ;;  %v2046_v16 = vmul.f32 %v1906_v19, %v1906_v19  ;;  %2150 = vst.msk [vmem:[%s4006_s23 + $0xb0] sm:$0xff] %vm214_vm0, %v1906_v19  ;;  %v2101_v22 = vsel %vm214_vm0, %v2047_v5, 0.0 }
 0x30b   : > { %v1999_v1 = vadd.f32 %v1998_v10, %v1997_v37 }
 0x30c   : > { %v2099_v27 = vsel %vm214_vm0, %v2046_v16, 0.0 }
 0x30d   : > { %v2100_v26 = vadd.f32 %v2099_v27, %v2098_v36  ;;  %v2001_v50 = vadd.f32 %v2000_v11, %v1999_v1 }
 0x30f   : > { %v2102_v31 = vadd.f32 %v2101_v22, %v2100_v26 }
 0x31f   : > { %v2389_v23 = vpop.f32.mrf.mxu1 }
 0x320   : > { %2153 = vst.msk [vmem:[%s4006_s23 + $0xc8] sm:$0xff] %vm214_vm0, %v2389_v23  ;;  %v2049_v2 = vmul.f32 %v2389_v23, %v2389_v23  ;;  %v2004_v47 = vsel %vm214_vm0, %v2389_v23, 0.0 }
 0x321   : > { %v1916_v62 = vpop.f32.mrf.mxu1 }
 0x322   : > { %2152 = vst.msk [vmem:[%s4006_s23 + $0xc0] sm:$0xff] %vm214_vm0, %v1916_v62  ;;  %v2048_v60 = vmul.f32 %v1916_v62, %v1916_v62  ;;  %v2002_v13 = vsel %vm214_vm0, %v1916_v62, 0.0  ;;  %v2105_v52 = vsel %vm214_vm0, %v2049_v2, 0.0 }
 0x323   : > { %v2003_v63 = vadd.f32 %v2002_v13, %v2001_v50 }
 0x324   : > { %v2103_v33 = vsel %vm214_vm0, %v2048_v60, 0.0 }
 0x325   : > { %v2104_v20 = vadd.f32 %v2103_v33, %v2102_v31  ;;  %v2005_v45 = vadd.f32 %v2004_v47, %v2003_v63 }
 0x327   : > { %v2106_v24 = vadd.f32 %v2105_v52, %v2104_v20 }
 0x337   : > { %v2392_v46 = vpop.f32.mrf.mxu1 }
 0x338   : > { %2155 = vst.msk [vmem:[%s4006_s23 + $0xd8] sm:$0xff] %vm214_vm0, %v2392_v46  ;;  %v2051_v53 = vmul.f32 %v2392_v46, %v2392_v46  ;;  %v2008_v55 = vsel %vm214_vm0, %v2392_v46, 0.0 }
 0x339   : > { %v1926_v51 = vpop.f32.mrf.mxu1 }
 0x33a   : > { %2154 = vst.msk [vmem:[%s4006_s23 + $0xd0] sm:$0xff] %vm214_vm0, %v1926_v51  ;;  %v2050_v40 = vmul.f32 %v1926_v51, %v1926_v51  ;;  %v2006_v6 = vsel %vm214_vm0, %v1926_v51, 0.0  ;;  %v2109_v3 = vsel %vm214_vm0, %v2051_v53, 0.0 }
 0x33b   : > { %v2007_v43 = vadd.f32 %v2006_v6, %v2005_v45 }
 0x33c   : > { %v2107_v7 = vsel %vm214_vm0, %v2050_v40, 0.0 }
 0x33d   : > { %v2108_v39 = vadd.f32 %v2107_v7, %v2106_v24  ;;  %v2009_v48 = vadd.f32 %v2008_v55, %v2007_v43 }
 0x33f   : > { %v2110_v49 = vadd.f32 %v2109_v3, %v2108_v39 }
 0x34f   : > { %v2395_v21 = vpop.f32.mrf.mxu1 }
 0x350   : > { %2157 = vst.msk [vmem:[%s4006_s23 + $0xe8] sm:$0xff] %vm214_vm0, %v2395_v21  ;;  %v2053_v14 = vmul.f32 %v2395_v21, %v2395_v21  ;;  %v2012_v54 = vsel %vm214_vm0, %v2395_v21, 0.0 }
 0x351   : > { %v1936_v9 = vpop.f32.mrf.mxu1 }
 0x352   : > { %2156 = vst.msk [vmem:[%s4006_s23 + $0xe0] sm:$0xff] %vm214_vm0, %v1936_v9  ;;  %v2052_v32 = vmul.f32 %v1936_v9, %v1936_v9  ;;  %v2010_v18 = vsel %vm214_vm0, %v1936_v9, 0.0  ;;  %v2113_v0 = vsel %vm214_vm0, %v2053_v14, 0.0 }
 0x353   : > { %v2011_v57 = vadd.f32 %v2010_v18, %v2009_v48 }
 0x354   : > { %v2111_v12 = vsel %vm214_vm0, %v2052_v32, 0.0 }
 0x355   : > { %v2112_v28 = vadd.f32 %v2111_v12, %v2110_v49  ;;  %v2013_v44 = vadd.f32 %v2012_v54, %v2011_v57 }
 0x357   : > { %v2114_v17 = vadd.f32 %v2113_v0, %v2112_v28 }
 0x362   : > { %v2398_v38 = vpop.f32.mrf.mxu1 }
 0x363   : > { %2159 = vst.msk [vmem:[%s4006_s23 + $0xf8] sm:$0xff] %vm214_vm0, %v2398_v38  ;;  %v2055_v41 = vmul.f32 %v2398_v38, %v2398_v38  ;;  %v2016_v15 = vsel %vm214_vm0, %v2398_v38, 0.0 }
 0x364   : > { %v1946_v30 = vpop.f32.mrf.mxu1 }
 0x365   : > { %v2014_v4 = vsel %vm214_vm0, %v1946_v30, 0.0  ;;  %v2054_v42 = vmul.f32 %v1946_v30, %v1946_v30  ;;  %2158 = vst.msk [vmem:[%s4006_s23 + $0xf0] sm:$0xff] %vm214_vm0, %v1946_v30  ;;  %v2117_v58 = vsel %vm214_vm0, %v2055_v41, 0.0 }
 0x366   : > { %v2015_v29 = vadd.f32 %v2014_v4, %v2013_v44 }
 0x367   : > { %v2115_v35 = vsel %vm214_vm0, %v2054_v42, 0.0 }
 0x368   : > { %v2017_v8 = vadd.f32 %v2016_v15, %v2015_v29  ;;  %v2116_v25 = vadd.f32 %v2115_v35, %v2114_v17 }
 0x36a   : > { %v2018_v59 = vrot.slane %v2017_v8, 4  ;;  %v2118_v34 = vadd.f32 %v2117_v58, %v2116_v25 }
 0x36c   : > { %v2019_v37 = vadd.f32 %v2018_v59, %v2017_v8  ;;  %v2119_v61 = vrot.slane %v2118_v34, 4 }
 0x36e   : > { %v2020_v36 = vrot.slane %v2019_v37, 2  ;;  %v2120_v56 = vadd.f32 %v2119_v61, %v2118_v34 }
 0x370   : > { %v2021_v19 = vadd.f32 %v2020_v36, %v2019_v37  ;;  %v2121_v5 = vrot.slane %v2120_v56, 2 }
 0x372   : > { %v2022_v10 = vrot.slane %v2021_v19, 1  ;;  %v2122_v16 = vadd.f32 %v2121_v5, %v2120_v56 }
 0x374   : > { %v2123_v1 = vrot.slane %v2122_v16, 1  ;;  %v2023_v11 = vadd.f32 %v2022_v10, %v2021_v19 }
 0x376   : > { %v2124_v27 = vadd.f32 %v2123_v1, %v2122_v16 }
 0x378   : > { %v2126_v26 = vsel %vm2125_vm12, %v2023_v11, %v2124_v27 }
 0x379   : > { %2127 = vst.msk [vmem:[%s181_s26] sm:$0x3] %vm217_vm1, %v2126_v26 }
 0x37a PF: > { %s14_s12 = sadd.s32 1, %s2472_s12  }
 0x37b   : > { %p11_p4 = scmp.ge.s32.totalorder %s14_s12, 4  }
 0x37d   :  { %13 = sbr.rel (!%p11_p4) target bundleno = 1 (0x1), region = 71 }

</bundles_post_ra>
